<compile_context>
chip_gen: v7x
topology: tpu7x:2x2x1
jax: 0.10.0
libtpu: 0.0.40
codegen_flags: <defaults>
</compile_context>

<pallas_src>
import functools
import math

import jax
import jax.numpy as jnp
from jax.experimental import pallas as pl
from jax.experimental.pallas import tpu as pltpu

HEAD_SIZE = 64            # per-head size (CUDA kernel hard-codes 64)
HEAD_SIZE_DIVISOR = 8
CHUNK_LEN = 64            # intra-chunk length for the WKV7 kernel (<=64 for f32)


def _round_up(x, m):
    return (x + m - 1) // m * m


@functools.lru_cache(maxsize=None)
def _vmem_limit_bytes():
    # generation-aware scoped-VMEM budget (v7x has 64 MiB/TC, v5e/v6e 128 MiB)
    try:
        cap = pltpu.get_tpu_info().vmem_capacity_bytes
    except Exception:
        cap = 128 * 1024 * 1024
    return int(min(64 * 1024 * 1024, cap // 2))


def _pad_cols(w, align=128):
    """Pad the last (output) dim of a weight to a multiple of 128, once."""
    n = w.shape[-1]
    pad = _round_up(n, align) - n
    if pad:
        w = jnp.pad(w, ((0, 0), (0, pad)))
    return w


# ----------------------------------------------------------------------------
# Tiled matmul kernel (all dense layers)
# ----------------------------------------------------------------------------
def _matmul_kernel(x_ref, w_ref, o_ref, acc_ref):
    @pl.when(pl.program_id(2) == 0)
    def _():
        acc_ref[...] = jnp.zeros_like(acc_ref)

    acc_ref[...] += jnp.dot(x_ref[...], w_ref[...],
                            preferred_element_type=jnp.float32)

    @pl.when(pl.program_id(2) == pl.num_programs(2) - 1)
    def _():
        o_ref[...] = acc_ref[...].astype(o_ref.dtype)


def pallas_linear(x, w, out_dtype=jnp.bfloat16, n_valid=None,
                  tm=512, tn=512, tk=512):
    """x: (M, K) @ w: (K, N) -> (M, N[:n_valid]).  Weights are pre-padded so
    that no weight copy happens at call time; only M is padded if needed."""
    M, K = x.shape
    K2, N = w.shape
    assert K == K2, (K, K2)
    assert N % 128 == 0, "pre-pad weight columns to a multiple of 128"

    if K % 128 == 0 and K > tk:         # tile K only when it is 128-aligned
        tk_ = tk
        while K % tk_:
            tk_ -= 128
    else:                               # small / odd K: whole-K block (= full dim)
        tk_ = K
    tn_ = min(tn, N)
    while N % tn_:
        tn_ -= 128
    tm_ = min(tm, _round_up(M, 8))
    Mp = _round_up(M, tm_)
    if Mp != M:
        x = jnp.pad(x, ((0, Mp - M), (0, 0)))

    out = pl.pallas_call(
        _matmul_kernel,
        out_shape=jax.ShapeDtypeStruct((Mp, N), out_dtype),
        grid_spec=pltpu.PrefetchScalarGridSpec(
            num_scalar_prefetch=0,
            grid=(Mp // tm_, N // tn_, K // tk_),
            in_specs=[
                pl.BlockSpec((tm_, tk_), lambda i, j, k: (i, k)),
                pl.BlockSpec((tk_, tn_), lambda i, j, k: (k, j)),
            ],
            out_specs=pl.BlockSpec((tm_, tn_), lambda i, j, k: (i, j)),
            scratch_shapes=[pltpu.VMEM((tm_, tn_), jnp.float32)],
        ),
        compiler_params=pltpu.CompilerParams(
            dimension_semantics=("parallel", "parallel", "arbitrary"),
            vmem_limit_bytes=_vmem_limit_bytes(),
        ),
    )(x, w)
    n_out = N if n_valid is None else n_valid
    if Mp != M or n_out != N:
        out = out[:M, :n_out]
    return out


# ----------------------------------------------------------------------------
# Fused FFN kernel: relu(x @ Wk)**2 @ Wv with the 4C hidden kept in VMEM
# ----------------------------------------------------------------------------
def _ffn_kernel(x_ref, wk_ref, wv_ref, o_ref, acc_ref):
    @pl.when(pl.program_id(1) == 0)
    def _():
        acc_ref[...] = jnp.zeros_like(acc_ref)

    h = jnp.dot(x_ref[...], wk_ref[...], preferred_element_type=jnp.float32)
    h = jnp.square(jnp.maximum(h, 0.0)).astype(jnp.bfloat16)
    acc_ref[...] += jnp.dot(h, wv_ref[...], preferred_element_type=jnp.float32)

    @pl.when(pl.program_id(1) == pl.num_programs(1) - 1)
    def _():
        o_ref[...] = acc_ref[...].astype(o_ref.dtype)


def pallas_ffn(x, wk, wv, n_valid=None, tm=256, th=512):
    M, C = x.shape
    Ck, KH = wk.shape
    KH2, Cout = wv.shape
    assert C == Ck and KH == KH2, "FFN weight shapes mismatch"
    th_ = min(th, KH)
    while KH % th_:
        th_ -= 128
    tm_ = min(tm, _round_up(M, 8))
    Mp = _round_up(M, tm_)
    if Mp != M:
        x = jnp.pad(x, ((0, Mp - M), (0, 0)))

    out = pl.pallas_call(
        _ffn_kernel,
        out_shape=jax.ShapeDtypeStruct((Mp, Cout), jnp.bfloat16),
        grid_spec=pltpu.PrefetchScalarGridSpec(
            num_scalar_prefetch=0,
            grid=(Mp // tm_, KH // th_),
            in_specs=[
                pl.BlockSpec((tm_, C), lambda i, h: (i, 0)),
                pl.BlockSpec((C, th_), lambda i, h: (0, h)),
                pl.BlockSpec((th_, Cout), lambda i, h: (h, 0)),
            ],
            out_specs=pl.BlockSpec((tm_, Cout), lambda i, h: (i, 0)),
            scratch_shapes=[pltpu.VMEM((tm_, Cout), jnp.float32)],
        ),
        compiler_params=pltpu.CompilerParams(
            dimension_semantics=("parallel", "arbitrary"),
            vmem_limit_bytes=_vmem_limit_bytes(),
        ),
    )(x, wk, wv)
    n_out = Cout if n_valid is None else n_valid
    if Mp != M or n_out != Cout:
        out = out[:M, :n_out]
    return out


# ----------------------------------------------------------------------------
# Chunked WKV7 kernel (2 heads / 128 lanes per block, native (B,T,C) layout)
# fused: kk-normalize, k_a adjust, a/b build, GroupNorm(ln_x), r*k*r_k residual,
#        and the att*g gate.
# ----------------------------------------------------------------------------
def _wkv7_kernel(r_ref, w_ref, k_ref, v_ref, a_ref, g_ref,
                 kk_ref, ka_ref, lnw_ref, lnb_ref, rk_ref,
                 o_ref, s_ref, *, chunk, head_size, eps):
    @pl.when(pl.program_id(2) == 0)
    def _():
        s_ref[...] = jnp.zeros_like(s_ref)

    f32 = jnp.float32
    t_blk = r_ref.shape[1]
    W = r_ref.shape[2]                 # 2 * N lanes
    N = head_size
    L = chunk
    n_chunks = t_blk // L
    n_heads = W // N                   # == 2

    # loop-invariant constants (hoisted out of the chunk loop)
    row = jax.lax.broadcasted_iota(jnp.int32, (L, L), 0)
    col = jax.lax.broadcasted_iota(jnp.int32, (L, L), 1)
    tril_inc = (row >= col).astype(f32)     # s <= t
    tril_exc = (row > col).astype(f32)      # s <  t
    eye = (row == col).astype(f32)

    # block-diagonal (W, W) matrix: per-head lane sum, broadcast back over lanes
    gi = jax.lax.broadcasted_iota(jnp.int32, (W, W), 0) >= N
    gj = jax.lax.broadcasted_iota(jnp.int32, (W, W), 1) >= N
    head_sum = (gi == gj).astype(f32)

    kkv = kk_ref[...].astype(f32)           # (1, W)
    kav = ka_ref[...].astype(f32)
    lnw = lnw_ref[...].astype(f32)
    lnb = lnb_ref[...].astype(f32)
    rkv = rk_ref[...].astype(f32)

    def dot_nt(a_, b_):   # contract last dims:  (L,N)x(M,N) -> (L,M)
        return jax.lax.dot_general(a_, b_, (((1,), (1,)), ((), ())),
                                   preferred_element_type=f32)

    def dot_nn(a_, b_):   # standard:            (L,K)x(K,M) -> (L,M)
        return jax.lax.dot_general(a_, b_, (((1,), (0,)), ((), ())),
                                   preferred_element_type=f32)

    def dot_tn(a_, b_):   # contract first dims: (L,M)x(L,K) -> (M,K)
        return jax.lax.dot_general(a_, b_, (((0,), (0,)), ((), ())),
                                   preferred_element_type=f32)

    inv_n = 1.0 / N

    def chunk_step(c, carry):
        t0 = pl.multiple_of(c * L, L)
        rL = r_ref[0, pl.ds(t0, L), :].astype(f32)
        wL = w_ref[0, pl.ds(t0, L), :].astype(f32)
        kL = k_ref[0, pl.ds(t0, L), :].astype(f32)
        vL = v_ref[0, pl.ds(t0, L), :].astype(f32)
        aL = a_ref[0, pl.ds(t0, L), :].astype(f32)
        gL = g_ref[0, pl.ds(t0, L), :].astype(f32)

        # ---------- lane-dense prologue (full 128 lanes) ----------
        lw = -jnp.exp(wL)                         # per-step log decay, <= 0
        lc = dot_nn(tril_inc, lw)                 # exact f32 inclusive prefix sum
        e_lc = jnp.exp(lc)                        # CSE'd exponentials (4 total)
        e_neg = jnp.exp(-lc)                      # NOTE: < ~4e16 for L <= 64
        e_lce = jnp.exp(lc - lw)                  # exclusive-prefix decay
        c_end = e_lc[L - 1:L, :]                  # (1, W)

        kk = kL * kkv
        kk_ss = dot_nn(kk * kk, head_sum)         # per-head sum of squares
        kk_n = kk / jnp.maximum(jnp.sqrt(kk_ss), 1e-12)
        k_adj = kL * (1.0 + (aL - 1.0) * kav)
        a_in = -kk_n
        b_in = kk_n * aL

        qc = rL * e_lc
        kc = k_adj * e_neg
        bc = b_in * e_neg
        ac = a_in * e_lce
        rk_bc = dot_nn(rL * k_adj * rkv, head_sum)   # (r*k*r_k).sum per head

        # ---------- per-head chunked recurrence (MXU) ----------
        ys = []
        for h in range(n_heads):
            sl = slice(h * N, (h + 1) * N)
            qch, kch, bch, ach = qc[:, sl], kc[:, sl], bc[:, sl], ac[:, sl]
            vh, ce = vL[:, sl], c_end[:, sl]
            S0 = s_ref[h, :, :]                      # (N_value, N_key) f32

            m_qb = dot_nt(qch, bch) * tril_inc
            m_qk = dot_nt(qch, kch) * tril_inc
            m_ab = dot_nt(ach, bch) * tril_exc
            m_ak = dot_nt(ach, kch) * tril_exc

            # (I - m_ab)^-1 via nilpotent doubling (skip the dead last squaring)
            inv = eye + m_ab
            pm = dot_nn(m_ab, m_ab)
            n_ = 2
            while n_ < L:
                inv = inv + dot_nn(pm, inv)
                if 2 * n_ < L:
                    pm = dot_nn(pm, pm)
                n_ *= 2

            u = dot_nn(inv, dot_nt(ach, S0) + dot_nn(m_ak, vh))        # (L, N)
            y = dot_nt(qch, S0) + dot_nn(m_qb, u) + dot_nn(m_qk, vh)   # (L, N)
            s_ref[h, :, :] = (S0 * ce
                              + dot_tn(u, bch * ce)
                              + dot_tn(vh, kch * ce))
            ys.append(y)

        y = jnp.concatenate(ys, axis=1)              # back to lane-dense (L, W)

        # ---------- fused epilogue: GroupNorm + residual + gate ----------
        mu = dot_nn(y, head_sum) * inv_n
        yc = y - mu
        var = dot_nn(yc * yc, head_sum) * inv_n
        gn = yc * jax.lax.rsqrt(var + eps) * lnw + lnb
        o = (gn + rk_bc * vL) * gL
        o_ref[0, pl.ds(t0, L), :] = o.astype(o_ref.dtype)
        return carry

    jax.lax.fori_loop(0, n_chunks, chunk_step, 0, unroll=2)


def _pick_chunk(T, max_chunk=CHUNK_LEN):
    c = min(max_chunk, T)
    while T % c:
        c -= 8
    assert c >= 8 and T % c == 0
    return c


def _pick_t_block(T, chunk, target=2048):
    tb = min(T, max(chunk, (target // chunk) * chunk))
    while T % tb or tb % chunk:
        tb -= chunk
    return tb


def run_wkv7(r, w, k, v, a, g, k_k, k_a, ln_w, ln_b, r_k, H, N,
             chunk=None, t_block=None):
    """RUN_CUDA_RWKV7g with kk-normalize / k_a / a / b construction, GroupNorm,
    the (r*k*r_k).sum*v residual and the *g gate fused.  Native (B,T,C) layout."""
    B, T, C = r.shape
    assert C == H * N
    assert T % 8 == 0
    # TODO(synk): odd head counts would need a 1-head (C==64) fallback path.
    assert H % 2 == 0, "kernel processes head pairs (128 lanes per block)"
    if chunk is None:
        chunk = _pick_chunk(T)
    assert T % chunk == 0
    if t_block is None:
        t_block = _pick_t_block(T, chunk)
    assert T % t_block == 0 and t_block % chunk == 0
    HP = H // 2
    W = 2 * N

    def small(p_):
        return p_.reshape(1, C).astype(jnp.float32)

    big = pl.BlockSpec((1, t_block, W), lambda bb, hp, tb: (bb, tb, hp))
    sm = pl.BlockSpec((1, W), lambda bb, hp, tb: (0, hp))
    eps = 1e-5 * HEAD_SIZE_DIVISOR ** 2

    return pl.pallas_call(
        functools.partial(_wkv7_kernel, chunk=chunk, head_size=N, eps=eps),
        out_shape=jax.ShapeDtypeStruct((B, T, C), jnp.bfloat16),
        grid_spec=pltpu.PrefetchScalarGridSpec(
            num_scalar_prefetch=0,
            grid=(B, HP, T // t_block),
            in_specs=[big] * 6 + [sm] * 5,
            out_specs=big,
            scratch_shapes=[pltpu.VMEM((2, N, N), jnp.float32)],
        ),
        compiler_params=pltpu.CompilerParams(
            dimension_semantics=("parallel", "parallel", "arbitrary"),
            vmem_limit_bytes=_vmem_limit_bytes(),
        ),
    )(r.astype(jnp.bfloat16), w.astype(jnp.float32), k.astype(jnp.bfloat16),
      v.astype(jnp.bfloat16), a.astype(jnp.bfloat16), g.astype(jnp.bfloat16),
      small(k_k), small(k_a), small(ln_w), small(ln_b), small(r_k))


def wkv7_reference(r, w, k, v, a, g, k_k, k_a, ln_w, ln_b, r_k, H, N):
    """Pure-JAX sequential reference of the fully fused WKV7 kernel."""
    B, T, C = r.shape
    f32 = jnp.float32
    eps = 1e-5 * HEAD_SIZE_DIVISOR ** 2
    rf = r.astype(jnp.bfloat16).astype(f32)
    kf = k.astype(jnp.bfloat16).astype(f32)
    vf = v.astype(jnp.bfloat16).astype(f32)
    af = a.astype(jnp.bfloat16).astype(f32)
    gf = g.astype(jnp.bfloat16).astype(f32)
    wf = w.astype(f32)
    kkv = k_k.reshape(1, 1, C).astype(f32)
    kav = k_a.reshape(1, 1, C).astype(f32)

    kk = (kf * kkv).reshape(B, T, H, N)
    kk = kk / jnp.maximum(jnp.sqrt(jnp.sum(kk * kk, -1, keepdims=True)), 1e-12)
    kk = kk.reshape(B, T, C)
    k_adj = kf * (1.0 + (af - 1.0) * kav)
    a_in = -kk
    b_in = kk * af

    q4, w4, k4, v4, a4, b4 = [t.reshape(B, T, H, N)
                              for t in (rf, wf, k_adj, vf, a_in, b_in)]

    def head_scan(q, w_, k_, v_, a_, b_):
        def step(S, xs):
            qt, wt, kt, vt, at, bt = xs
            d = jnp.exp(-jnp.exp(wt))
            sa = S @ at
            S = S * d[None, :] + sa[:, None] * bt[None, :] + vt[:, None] * kt[None, :]
            return S, S @ qt
        _, ys = jax.lax.scan(step, jnp.zeros((N, N), f32), (q, w_, k_, v_, a_, b_))
        return ys

    inner = jax.vmap(head_scan, in_axes=1, out_axes=1)
    yh = jax.vmap(inner, in_axes=0, out_axes=0)(q4, w4, k4, v4, a4, b4)

    mu = yh.mean(-1, keepdims=True)
    var = ((yh - mu) ** 2).mean(-1, keepdims=True)
    gn = ((yh - mu) * jax.lax.rsqrt(var + eps)
          * ln_w.astype(f32).reshape(1, 1, H, N)
          + ln_b.astype(f32).reshape(1, 1, H, N))
    rk = jnp.sum(q4 * k4 * r_k.astype(f32).reshape(1, 1, H, N), -1, keepdims=True)
    return (gn + rk * v4).reshape(B, T, C) * gf


# ----------------------------------------------------------------------------
# Plain-JAX glue (norms, token shift, activations)
# ----------------------------------------------------------------------------
def layer_norm(x, w, b, eps=1e-5):
    xf = x.astype(jnp.float32)
    mu = xf.mean(-1, keepdims=True)
    var = jnp.mean((xf - mu) ** 2, axis=-1, keepdims=True)
    y = (xf - mu) * jax.lax.rsqrt(var + eps)
    return (y * w.astype(jnp.float32) + b.astype(jnp.float32)).astype(x.dtype)


def time_shift(x):
    # nn.ZeroPad2d((0,0,1,-1)) on (B,T,C): shift right by one step, zero at t=0
    return jnp.pad(x, ((0, 0), (1, 0), (0, 0)))[:, :-1, :]


def softplus(x):
    return jnp.logaddexp(x, 0.0)


# ----------------------------------------------------------------------------
# Module forwards
# ----------------------------------------------------------------------------
def tmix_forward(p, layer_id, x, v_first):
    B, T, C = x.shape
    H = C // HEAD_SIZE
    N = HEAD_SIZE
    dt = x.dtype
    f32 = jnp.float32
    D_DECAY = p["w2"].shape[0]
    D_AAA = p["a2"].shape[0]
    D_GATE = p["g2"].shape[0]
    has_v = "v2" in p
    D_MV = p["v2"].shape[0] if has_v else 0

    # fused token-shift projection: [x, xx] @ W_fused (one launch for
    # receptance/key/value/w1/a1/g1(/v1))
    xx = time_shift(x) - x
    z = jnp.concatenate([x, xx], axis=-1).reshape(B * T, 2 * C)
    proj = pallas_linear(z, p["fused_in_w"])

    o0 = 0
    r = proj[:, o0:o0 + C].reshape(B, T, C); o0 += C
    k = proj[:, o0:o0 + C].reshape(B, T, C); o0 += C
    v = proj[:, o0:o0 + C].reshape(B, T, C); o0 += C
    w_hid = proj[:, o0:o0 + D_DECAY]; o0 += D_DECAY
    a_hid = proj[:, o0:o0 + D_AAA]; o0 += D_AAA
    g_hid = proj[:, o0:o0 + D_GATE]; o0 += D_GATE
    v_hid = proj[:, o0:o0 + D_MV] if has_v else None

    # TODO(synk): batch the w2/a2/g2/v2 second-stage LoRA matmuls into a single
    # launch with column-ranged fused tanh/sigmoid epilogues.
    w_lora = pallas_linear(jnp.tanh(w_hid.astype(f32)).astype(jnp.bfloat16),
                           p["w2"], out_dtype=f32, n_valid=C).reshape(B, T, C)
    w_f32 = -softplus(-(p["w0"].astype(f32) + w_lora)) - 0.5   # decay, f32 all the way

    if layer_id == 0:
        v_first = v
    else:
        v_lora = pallas_linear(v_hid, p["v2"], out_dtype=f32,
                               n_valid=C).reshape(B, T, C)
        vg = jax.nn.sigmoid(p["v0"].astype(f32) + v_lora)
        v = (v.astype(f32) + (v_first.astype(f32) - v.astype(f32)) * vg).astype(dt)

    a_lora = pallas_linear(a_hid, p["a2"], out_dtype=f32,
                           n_valid=C).reshape(B, T, C)
    a = jax.nn.sigmoid(p["a0"].astype(f32) + a_lora).astype(jnp.bfloat16)
    g = pallas_linear(jax.nn.sigmoid(g_hid.astype(f32)).astype(jnp.bfloat16),
                      p["g2"], n_valid=C).reshape(B, T, C)

    # WKV7 + kk/k_a/a/b construction + GroupNorm(ln_x) + residual + *g, fused
    att = run_wkv7(r, w_f32, k, v, a, g,
                   p["k_k"], p["k_a"], p["ln_x_w"], p["ln_x_b"], p["r_k"],
                   H=H, N=N)
    out = pallas_linear(att.reshape(B * T, C), p["output"],
                        n_valid=C).reshape(B, T, C)
    return out, v_first


def cmix_forward(p, x):
    B, T, C = x.shape
    xx = time_shift(x) - x
    kin = x + xx * p["x_k"]
    return pallas_ffn(kin.reshape(B * T, C), p["key"], p["value"],
                      n_valid=C).reshape(B, T, C)


def block_forward(p, layer_id, x, v_first):
    if layer_id == 0:
        x = layer_norm(x, p["ln0_w"], p["ln0_b"])
    xa, v_first = tmix_forward(
        p["att"], layer_id, layer_norm(x, p["ln1_w"], p["ln1_b"]), v_first)
    x = x + xa
    x = x + cmix_forward(p["ffn"], layer_norm(x, p["ln2_w"], p["ln2_b"]))
    return x, v_first


def rwkv_forward(params, idx):
    x = params["emb"][idx]                      # embedding gather (glue)
    v_first = jnp.zeros_like(x)
    for l, bp in enumerate(params["blocks"]):
        x, v_first = block_forward(bp, l, x, v_first)
    x = layer_norm(x, params["ln_out_w"], params["ln_out_b"])
    B, T, C = x.shape
    return pallas_linear(x.reshape(B * T, C), params["head"]).reshape(B, T, -1)


# ----------------------------------------------------------------------------
# Deterministic parameter construction (shapes follow the module's __init__).
# Weights are padded to 128-column multiples HERE (not per forward call).
# ----------------------------------------------------------------------------
def make_params(key, n_layer, n_embd, vocab, head_size):
    C = n_embd
    H = C // head_size
    N = head_size
    assert C % head_size == 0
    assert vocab % 128 == 0
    keys = iter(jax.random.split(key, 512))

    def nxt():
        return next(keys)

    def lin_w(fan_in, fan_out, scale=None):
        s = (1.0 / math.sqrt(fan_in)) if scale is None else scale
        return (jax.random.normal(nxt(), (fan_in, fan_out), jnp.float32) * s
                ).astype(jnp.bfloat16)

    D_DECAY = max(32, int(round(1.8 * C ** 0.5 / 32) * 32))
    D_AAA = max(32, int(round(1.8 * C ** 0.5 / 32) * 32))
    D_MV = max(32, int(round(1.3 * C ** 0.5 / 32) * 32))
    D_GATE = max(32, int(round(0.6 * C ** 0.8 / 32) * 32))
    ddd = jnp.arange(C, dtype=jnp.float32) / C

    blocks = []
    for l in range(n_layer):
        r0 = l / (n_layer - 1) if n_layer > 1 else 0.0
        r1 = 1.0 - l / n_layer
        decay_speed = -7.0 + 5.0 * (
            jnp.arange(C, dtype=jnp.float32) / (C - 1)
        ) ** (0.85 + 1.0 * r0 ** 0.5)

        x_r = 1.0 - ddd ** (0.2 * r1)
        x_w = 1.0 - ddd ** (0.9 * r1)
        x_k_ = 1.0 - (ddd ** (0.9 * r1) + 0.4 * r0)
        x_v_ = 1.0 - (ddd ** (0.4 * r1) + 0.6 * r0)
        x_a = 1.0 - ddd ** (0.9 * r1)
        x_g = 1.0 - ddd ** (0.2 * r1)

        # TODO(synk): orthogonal_ init for *2 LoRA matrices replaced by scaled
        # normals (initialization-only difference).
        Ws = dict(
            receptance=lin_w(C, C),
            key=lin_w(C, C),
            value=lin_w(C, C),
            w1=lin_w(C, D_DECAY, 0.02),
            a1=lin_w(C, D_AAA, 0.02),
            g1=lin_w(C, D_GATE, 0.02),
        )
        mixes = dict(receptance=x_r, key=x_k_, value=x_v_, w1=x_w, a1=x_a, g1=x_g)
        order = ["receptance", "key", "value", "w1", "a1", "g1"]
        if l != 0:
            Ws["v1"] = lin_w(C, D_MV, 0.02)
            mixes["v1"] = x_v_
            order.append("v1")

        # fused projection weight for the [x, xx] input:
        #   (x + xx*mix) @ W  ==  x @ W + xx @ (diag(mix) W)
        top = jnp.concatenate([Ws[n].astype(jnp.float32) for n in order], axis=1)
        bot = jnp.concatenate(
            [mixes[n].reshape(C, 1) * Ws[n].astype(jnp.float32) for n in order],
            axis=1)
        fused_in_w = _pad_cols(
            jnp.concatenate([top, bot], axis=0).astype(jnp.bfloat16))

        att = dict(
            fused_in_w=fused_in_w,
            w0=(decay_speed + 0.5).reshape(1, 1, C).astype(jnp.float32),
            w2=_pad_cols(lin_w(D_DECAY, C, 0.1 / math.sqrt(D_DECAY))),
            a0=jnp.zeros((1, 1, C), jnp.float32),
            a2=_pad_cols(lin_w(D_AAA, C, 0.1 / math.sqrt(D_AAA))),
            g2=_pad_cols(lin_w(D_GATE, C, 0.1 / math.sqrt(D_GATE))),
            k_k=(jnp.ones((1, 1, C)) * 0.85).astype(jnp.float32),
            k_a=jnp.ones((1, 1, C), jnp.float32),
            r_k=jnp.zeros((H, N), jnp.float32),
            output=_pad_cols(lin_w(C, C)),
            ln_x_w=jnp.ones((C,), jnp.float32),
            ln_x_b=jnp.zeros((C,), jnp.float32),
        )
        if l != 0:
            att.update(
                v0=jnp.ones((1, 1, C), jnp.float32),
                v2=_pad_cols(lin_w(D_MV, C, 0.1 / math.sqrt(D_MV))),
            )
        ffn = dict(
            x_k=(1.0 - ddd ** (r1 ** 4)).reshape(1, 1, C).astype(jnp.bfloat16),
            key=lin_w(C, 4 * C),
            value=_pad_cols(lin_w(4 * C, C)),
        )
        blk = dict(
            att=att, ffn=ffn,
            ln1_w=jnp.ones((C,), jnp.bfloat16), ln1_b=jnp.zeros((C,), jnp.bfloat16),
            ln2_w=jnp.ones((C,), jnp.bfloat16), ln2_b=jnp.zeros((C,), jnp.bfloat16),
        )
        if l == 0:
            blk.update(ln0_w=jnp.ones((C,), jnp.bfloat16),
                       ln0_b=jnp.zeros((C,), jnp.bfloat16))
        blocks.append(blk)

    return dict(
        emb=(jax.random.normal(nxt(), (vocab, C), jnp.float32) * 0.02
             ).astype(jnp.bfloat16),
        blocks=blocks,
        ln_out_w=jnp.ones((C,), jnp.bfloat16),
        ln_out_b=jnp.zeros((C,), jnp.bfloat16),
        head=lin_w(C, vocab),
    )


if __name__ == "__main__":
    # --- 1. fused WKV7 kernel consistency check vs a lax.scan reference ------
    key = jax.random.PRNGKey(0)
    Bc, Tc, Hc, Nc = 2, 256, 2, HEAD_SIZE
    Cc = Hc * Nc
    ks = jax.random.split(key, 12)
    rr = (0.4 * jax.random.normal(ks[0], (Bc, Tc, Cc))).astype(jnp.bfloat16)
    kk_in = (0.4 * jax.random.normal(ks[1], (Bc, Tc, Cc))).astype(jnp.bfloat16)
    vv = (0.4 * jax.random.normal(ks[2], (Bc, Tc, Cc))).astype(jnp.bfloat16)
    ww = (-jnp.logaddexp(-jax.random.normal(ks[3], (Bc, Tc, Cc)), 0.0)
          - 0.5).astype(jnp.float32)                      # w <= -0.5 (as in model)
    aa = jax.nn.sigmoid(jax.random.normal(ks[4], (Bc, Tc, Cc))).astype(jnp.bfloat16)
    gg = (0.5 * jax.random.normal(ks[5], (Bc, Tc, Cc))).astype(jnp.bfloat16)
    kkp = (0.85 + 0.05 * jax.random.normal(ks[6], (Cc,))).astype(jnp.float32)
    kap = jax.nn.sigmoid(jax.random.normal(ks[7], (Cc,))).astype(jnp.float32)
    lnw_c = (1.0 + 0.1 * jax.random.normal(ks[8], (Cc,))).astype(jnp.float32)
    lnb_c = (0.05 * jax.random.normal(ks[9], (Cc,))).astype(jnp.float32)
    rk_c = (0.1 * jax.random.normal(ks[10], (Hc, Nc))).astype(jnp.float32)

    args = (rr, ww, kk_in, vv, aa, gg, kkp, kap, lnw_c, lnb_c, rk_c)
    y_ker = jax.jit(functools.partial(run_wkv7, H=Hc, N=Nc, t_block=128))(*args)
    y_ref = jax.jit(functools.partial(wkv7_reference, H=Hc, N=Nc))(*args)
    jax.block_until_ready((y_ker, y_ref))
    err = float(jnp.max(jnp.abs(y_ker.astype(jnp.float32) - y_ref)))
    scale = float(jnp.max(jnp.abs(y_ref))) + 1e-6
    assert err / scale < 5e-2, f"WKV7 kernel mismatch: max err {err}, scale {scale}"

    # --- 2. end-to-end RWKV Block stack forward ------------------------------
    n_layer, n_embd, vocab_size = 2, 128, 256
    B, T = 2, 64
    params = make_params(jax.random.PRNGKey(0), n_layer, n_embd, vocab_size,
                         HEAD_SIZE)
    idx = jax.random.randint(jax.random.PRNGKey(1), (B, T), 0, vocab_size,
                             dtype=jnp.int32)
    logits = jax.jit(rwkv_forward)(params, idx)
    jax.block_until_ready(logits)
    assert logits.shape == (B, T, vocab_size) and logits.dtype == jnp.bfloat16
    print("KERNEL_OK")
</pallas_src>

<mosaic_0001>
module attributes {stable_mosaic.version = 11 : i64} {
  func.func @_wkv7_kernel(%arg0: i32, %arg1: i32, %arg2: i32, %arg3: memref<1x128x128xbf16, #tpu.memory_space<vmem>>, %arg4: memref<1x128x128xf32, #tpu.memory_space<vmem>>, %arg5: memref<1x128x128xbf16, #tpu.memory_space<vmem>>, %arg6: memref<1x128x128xbf16, #tpu.memory_space<vmem>>, %arg7: memref<1x128x128xbf16, #tpu.memory_space<vmem>>, %arg8: memref<1x128x128xbf16, #tpu.memory_space<vmem>>, %arg9: memref<1x128xf32, #tpu.memory_space<vmem>>, %arg10: memref<1x128xf32, #tpu.memory_space<vmem>>, %arg11: memref<1x128xf32, #tpu.memory_space<vmem>>, %arg12: memref<1x128xf32, #tpu.memory_space<vmem>>, %arg13: memref<1x128xf32, #tpu.memory_space<vmem>>, %arg14: memref<1x128x128xbf16, #tpu.memory_space<vmem>>, %arg15: memref<2x64x64xf32, #tpu.memory_space<vmem>>) attributes {dimension_semantics = [#tpu.dimension_semantics<parallel>, #tpu.dimension_semantics<parallel>, #tpu.dimension_semantics<arbitrary>], iteration_bounds = array<i64: 2, 1, 2>, scalar_prefetch = 0 : i64, scratch_operands = 1 : i64, tpu.core_type = #tpu.core_type<tc>, window_params = [{transform_indices = @transform_0, window_bounds = array<i64: 1, 128, 128>}, {transform_indices = @transform_1, window_bounds = array<i64: 1, 128, 128>}, {transform_indices = @transform_2, window_bounds = array<i64: 1, 128, 128>}, {transform_indices = @transform_3, window_bounds = array<i64: 1, 128, 128>}, {transform_indices = @transform_4, window_bounds = array<i64: 1, 128, 128>}, {transform_indices = @transform_5, window_bounds = array<i64: 1, 128, 128>}, {transform_indices = @transform_6, window_bounds = array<i64: 1, 128>}, {transform_indices = @transform_7, window_bounds = array<i64: 1, 128>}, {transform_indices = @transform_8, window_bounds = array<i64: 1, 128>}, {transform_indices = @transform_9, window_bounds = array<i64: 1, 128>}, {transform_indices = @transform_10, window_bounds = array<i64: 1, 128>}, {transform_indices = @transform_11, window_bounds = array<i64: 1, 128, 128>}]} {
    %c0_i32 = arith.constant 0 : i32
    %0 = arith.cmpi eq, %arg2, %c0_i32 : i32
    %1 = arith.extui %0 : i1 to i32
    %c0_i32_0 = arith.constant 0 : i32
    %2 = arith.cmpi ne, %1, %c0_i32_0 : i32
    scf.if %2 {
      %cst_181 = arith.constant 0.000000e+00 : f32
      %419 = vector.broadcast %cst_181 : f32 to vector<2x64x64xf32>
      %c0_182 = arith.constant 0 : index
      %c0_183 = arith.constant 0 : index
      %c0_184 = arith.constant 0 : index
      %420 = vector.load %arg15[%c0_182, %c0_183, %c0_184] : memref<2x64x64xf32, #tpu.memory_space<vmem>>, vector<2x64x64xf32>
      tpu.vector_store %arg15[%c0_182, %c0_183, %c0_184], %419 {strides = array<i32>} : memref<2x64x64xf32, #tpu.memory_space<vmem>>, vector<2x64x64xf32>,
    } else {
    }
    %3 = tpu.iota {dimensions = array<i32: 0>} : vector<64x64xi32>
    %4 = tpu.iota {dimensions = array<i32: 1>} : vector<64x64xi32>
    %5 = arith.cmpi sge, %3, %4 : vector<64x64xi32>
    %6 = arith.extui %5 : vector<64x64xi1> to vector<64x64xi32>
    %7 = arith.sitofp %6 : vector<64x64xi32> to vector<64x64xf32>
    %8 = arith.cmpi sgt, %3, %4 : vector<64x64xi32>
    %9 = arith.extui %8 : vector<64x64xi1> to vector<64x64xi32>
    %10 = arith.sitofp %9 : vector<64x64xi32> to vector<64x64xf32>
    %11 = arith.cmpi eq, %3, %4 : vector<64x64xi32>
    %12 = arith.extui %11 : vector<64x64xi1> to vector<64x64xi32>
    %13 = arith.sitofp %12 : vector<64x64xi32> to vector<64x64xf32>
    %14 = tpu.iota {dimensions = array<i32: 0>} : vector<128x128xi32>
    %c64_i32 = arith.constant 64 : i32
    %15 = vector.broadcast %c64_i32 : i32 to vector<128x128xi32>
    %16 = arith.cmpi sge, %14, %15 : vector<128x128xi32>
    %17 = tpu.iota {dimensions = array<i32: 1>} : vector<128x128xi32>
    %c64_i32_1 = arith.constant 64 : i32
    %18 = vector.broadcast %c64_i32_1 : i32 to vector<128x128xi32>
    %19 = arith.cmpi sge, %17, %18 : vector<128x128xi32>
    %20 = arith.xori %16, %19 : vector<128x128xi1>
    %cst = arith.constant dense<true> : vector<128x128xi1>
    %21 = arith.xori %20, %cst : vector<128x128xi1>
    %22 = arith.extui %21 : vector<128x128xi1> to vector<128x128xi32>
    %23 = arith.sitofp %22 : vector<128x128xi32> to vector<128x128xf32>
    %c0 = arith.constant 0 : index
    %c0_2 = arith.constant 0 : index
    %24 = vector.load %arg9[%c0, %c0_2] : memref<1x128xf32, #tpu.memory_space<vmem>>, vector<1x128xf32>
    %c0_3 = arith.constant 0 : index
    %c0_4 = arith.constant 0 : index
    %25 = vector.load %arg10[%c0_3, %c0_4] : memref<1x128xf32, #tpu.memory_space<vmem>>, vector<1x128xf32>
    %c0_5 = arith.constant 0 : index
    %c0_6 = arith.constant 0 : index
    %26 = vector.load %arg11[%c0_5, %c0_6] : memref<1x128xf32, #tpu.memory_space<vmem>>, vector<1x128xf32>
    %c0_7 = arith.constant 0 : index
    %c0_8 = arith.constant 0 : index
    %27 = vector.load %arg12[%c0_7, %c0_8] : memref<1x128xf32, #tpu.memory_space<vmem>>, vector<1x128xf32>
    %c0_9 = arith.constant 0 : index
    %c0_10 = arith.constant 0 : index
    %28 = vector.load %arg13[%c0_9, %c0_10] : memref<1x128xf32, #tpu.memory_space<vmem>>, vector<1x128xf32>
    %c0_i32_11 = arith.constant 0 : i32
    %c64_i32_12 = arith.constant 64 : i32
    %29 = arith.muli %c0_i32_11, %c64_i32_12 : i32
    %30 = tpu.assume_multiple %29, 64 : i32
    %c0_13 = arith.constant 0 : index
    %31 = arith.index_cast %30 : i32 to index
    %c0_14 = arith.constant 0 : index
    %32 = vector.load %arg3[%c0_13, %31, %c0_14] : memref<1x128x128xbf16, #tpu.memory_space<vmem>>, vector<1x64x128xbf16>
    %33 = vector.shape_cast %32 : vector<1x64x128xbf16> to vector<64x128xbf16>
    %34 = arith.extf %33 : vector<64x128xbf16> to vector<64x128xf32>
    %c0_15 = arith.constant 0 : index
    %35 = arith.index_cast %30 : i32 to index
    %c0_16 = arith.constant 0 : index
    %36 = vector.load %arg4[%c0_15, %35, %c0_16] : memref<1x128x128xf32, #tpu.memory_space<vmem>>, vector<1x64x128xf32>
    %37 = vector.shape_cast %36 : vector<1x64x128xf32> to vector<64x128xf32>
    %c0_17 = arith.constant 0 : index
    %38 = arith.index_cast %30 : i32 to index
    %c0_18 = arith.constant 0 : index
    %39 = vector.load %arg5[%c0_17, %38, %c0_18] : memref<1x128x128xbf16, #tpu.memory_space<vmem>>, vector<1x64x128xbf16>
    %40 = vector.shape_cast %39 : vector<1x64x128xbf16> to vector<64x128xbf16>
    %41 = arith.extf %40 : vector<64x128xbf16> to vector<64x128xf32>
    %c0_19 = arith.constant 0 : index
    %42 = arith.index_cast %30 : i32 to index
    %c0_20 = arith.constant 0 : index
    %43 = vector.load %arg6[%c0_19, %42, %c0_20] : memref<1x128x128xbf16, #tpu.memory_space<vmem>>, vector<1x64x128xbf16>
    %44 = vector.shape_cast %43 : vector<1x64x128xbf16> to vector<64x128xbf16>
    %45 = arith.extf %44 : vector<64x128xbf16> to vector<64x128xf32>
    %c0_21 = arith.constant 0 : index
    %46 = arith.index_cast %30 : i32 to index
    %c0_22 = arith.constant 0 : index
    %47 = vector.load %arg7[%c0_21, %46, %c0_22] : memref<1x128x128xbf16, #tpu.memory_space<vmem>>, vector<1x64x128xbf16>
    %48 = vector.shape_cast %47 : vector<1x64x128xbf16> to vector<64x128xbf16>
    %49 = arith.extf %48 : vector<64x128xbf16> to vector<64x128xf32>
    %c0_23 = arith.constant 0 : index
    %50 = arith.index_cast %30 : i32 to index
    %c0_24 = arith.constant 0 : index
    %51 = vector.load %arg8[%c0_23, %50, %c0_24] : memref<1x128x128xbf16, #tpu.memory_space<vmem>>, vector<1x64x128xbf16>
    %52 = vector.shape_cast %51 : vector<1x64x128xbf16> to vector<64x128xbf16>
    %53 = arith.extf %52 : vector<64x128xbf16> to vector<64x128xf32>
    %54 = math.exp %37 : vector<64x128xf32>
    %cst_25 = arith.constant 0.000000e+00 : f32
    %55 = vector.broadcast %cst_25 : f32 to vector<64x128xf32>
    %56 = arith.subf %55, %54 : vector<64x128xf32>
    %cst_26 = arith.constant dense<0.000000e+00> : vector<64x128xf32>
    %57 = tpu.matmul %7, %56, %cst_26 {dimension_numbers = #tpu.dot_dimension_numbers<[1], [0], [0], [1], [0, 0, 1, 1], [], []>} : vector<64x64xf32>, vector<64x128xf32>, vector<64x128xf32> -> vector<64x128xf32>
    %58 = math.exp %57 : vector<64x128xf32>
    %cst_27 = arith.constant 0.000000e+00 : f32
    %59 = vector.broadcast %cst_27 : f32 to vector<64x128xf32>
    %60 = arith.subf %59, %57 : vector<64x128xf32>
    %61 = math.exp %60 : vector<64x128xf32>
    %62 = arith.subf %57, %56 : vector<64x128xf32>
    %63 = math.exp %62 : vector<64x128xf32>
    %64 = vector.extract_strided_slice %58 {offsets = [63, 0], sizes = [1, 128], strides = [1, 1]} : vector<64x128xf32> to vector<1x128xf32>
    %65 = vector.broadcast %24 : vector<1x128xf32> to vector<64x128xf32>
    %66 = arith.mulf %41, %65 : vector<64x128xf32>
    %67 = arith.mulf %66, %66 : vector<64x128xf32>
    %cst_28 = arith.constant dense<0.000000e+00> : vector<64x128xf32>
    %68 = tpu.matmul %67, %23, %cst_28 {dimension_numbers = #tpu.dot_dimension_numbers<[1], [0], [0], [1], [0, 0, 1, 1], [], []>} : vector<64x128xf32>, vector<128x128xf32>, vector<64x128xf32> -> vector<64x128xf32>
    %69 = math.sqrt %68 : vector<64x128xf32>
    %cst_29 = arith.constant 9.99999996E-13 : f32
    %70 = vector.broadcast %cst_29 : f32 to vector<64x128xf32>
    %71 = arith.maximumf %69, %70 : vector<64x128xf32>
    %72 = arith.divf %66, %71 : vector<64x128xf32>
    %cst_30 = arith.constant 1.000000e+00 : f32
    %73 = vector.broadcast %cst_30 : f32 to vector<64x128xf32>
    %74 = arith.subf %49, %73 : vector<64x128xf32>
    %75 = vector.broadcast %25 : vector<1x128xf32> to vector<64x128xf32>
    %76 = arith.mulf %74, %75 : vector<64x128xf32>
    %cst_31 = arith.constant 1.000000e+00 : f32
    %77 = vector.broadcast %cst_31 : f32 to vector<64x128xf32>
    %78 = arith.addf %77, %76 : vector<64x128xf32>
    %79 = arith.mulf %41, %78 : vector<64x128xf32>
    %cst_32 = arith.constant 0.000000e+00 : f32
    %80 = vector.broadcast %cst_32 : f32 to vector<64x128xf32>
    %81 = arith.subf %80, %72 : vector<64x128xf32>
    %82 = arith.mulf %72, %49 : vector<64x128xf32>
    %83 = arith.mulf %34, %58 : vector<64x128xf32>
    %84 = arith.mulf %79, %61 : vector<64x128xf32>
    %85 = arith.mulf %82, %61 : vector<64x128xf32>
    %86 = arith.mulf %81, %63 : vector<64x128xf32>
    %87 = arith.mulf %34, %79 : vector<64x128xf32>
    %88 = vector.broadcast %28 : vector<1x128xf32> to vector<64x128xf32>
    %89 = arith.mulf %87, %88 : vector<64x128xf32>
    %cst_33 = arith.constant dense<0.000000e+00> : vector<64x128xf32>
    %90 = tpu.matmul %89, %23, %cst_33 {dimension_numbers = #tpu.dot_dimension_numbers<[1], [0], [0], [1], [0, 0, 1, 1], [], []>} : vector<64x128xf32>, vector<128x128xf32>, vector<64x128xf32> -> vector<64x128xf32>
    %91 = vector.extract_strided_slice %83 {offsets = [0, 0], sizes = [64, 64], strides = [1, 1]} : vector<64x128xf32> to vector<64x64xf32>
    %92 = vector.extract_strided_slice %84 {offsets = [0, 0], sizes = [64, 64], strides = [1, 1]} : vector<64x128xf32> to vector<64x64xf32>
    %93 = vector.extract_strided_slice %85 {offsets = [0, 0], sizes = [64, 64], strides = [1, 1]} : vector<64x128xf32> to vector<64x64xf32>
    %94 = vector.extract_strided_slice %86 {offsets = [0, 0], sizes = [64, 64], strides = [1, 1]} : vector<64x128xf32> to vector<64x64xf32>
    %95 = vector.extract_strided_slice %45 {offsets = [0, 0], sizes = [64, 64], strides = [1, 1]} : vector<64x128xf32> to vector<64x64xf32>
    %96 = vector.extract_strided_slice %64 {offsets = [0, 0], sizes = [1, 64], strides = [1, 1]} : vector<1x128xf32> to vector<1x64xf32>
    %c0_34 = arith.constant 0 : index
    %c0_35 = arith.constant 0 : index
    %c0_36 = arith.constant 0 : index
    %97 = vector.load %arg15[%c0_34, %c0_35, %c0_36] : memref<2x64x64xf32, #tpu.memory_space<vmem>>, vector<1x64x64xf32>
    %98 = vector.shape_cast %97 : vector<1x64x64xf32> to vector<64x64xf32>
    %cst_37 = arith.constant dense<0.000000e+00> : vector<64x64xf32>
    %99 = tpu.matmul %91, %93, %cst_37 {dimension_numbers = #tpu.dot_dimension_numbers<[1], [1], [0], [0], [0, 0, 1, 0], [], []>} : vector<64x64xf32>, vector<64x64xf32>, vector<64x64xf32> -> vector<64x64xf32>
    %100 = arith.mulf %99, %7 : vector<64x64xf32>
    %cst_38 = arith.constant dense<0.000000e+00> : vector<64x64xf32>
    %101 = tpu.matmul %91, %92, %cst_38 {dimension_numbers = #tpu.dot_dimension_numbers<[1], [1], [0], [0], [0, 0, 1, 0], [], []>} : vector<64x64xf32>, vector<64x64xf32>, vector<64x64xf32> -> vector<64x64xf32>
    %102 = arith.mulf %101, %7 : vector<64x64xf32>
    %cst_39 = arith.constant dense<0.000000e+00> : vector<64x64xf32>
    %103 = tpu.matmul %94, %93, %cst_39 {dimension_numbers = #tpu.dot_dimension_numbers<[1], [1], [0], [0], [0, 0, 1, 0], [], []>} : vector<64x64xf32>, vector<64x64xf32>, vector<64x64xf32> -> vector<64x64xf32>
    %104 = arith.mulf %103, %10 : vector<64x64xf32>
    %cst_40 = arith.constant dense<0.000000e+00> : vector<64x64xf32>
    %105 = tpu.matmul %94, %92, %cst_40 {dimension_numbers = #tpu.dot_dimension_numbers<[1], [1], [0], [0], [0, 0, 1, 0], [], []>} : vector<64x64xf32>, vector<64x64xf32>, vector<64x64xf32> -> vector<64x64xf32>
    %106 = arith.mulf %105, %10 : vector<64x64xf32>
    %107 = arith.addf %13, %104 : vector<64x64xf32>
    %cst_41 = arith.constant dense<0.000000e+00> : vector<64x64xf32>
    %108 = tpu.matmul %104, %104, %cst_41 {dimension_numbers = #tpu.dot_dimension_numbers<[1], [0], [0], [1], [0, 0, 1, 1], [], []>} : vector<64x64xf32>, vector<64x64xf32>, vector<64x64xf32> -> vector<64x64xf32>
    %cst_42 = arith.constant dense<0.000000e+00> : vector<64x64xf32>
    %109 = tpu.matmul %108, %107, %cst_42 {dimension_numbers = #tpu.dot_dimension_numbers<[1], [0], [0], [1], [0, 0, 1, 1], [], []>} : vector<64x64xf32>, vector<64x64xf32>, vector<64x64xf32> -> vector<64x64xf32>
    %110 = arith.addf %107, %109 : vector<64x64xf32>
    %cst_43 = arith.constant dense<0.000000e+00> : vector<64x64xf32>
    %111 = tpu.matmul %108, %108, %cst_43 {dimension_numbers = #tpu.dot_dimension_numbers<[1], [0], [0], [1], [0, 0, 1, 1], [], []>} : vector<64x64xf32>, vector<64x64xf32>, vector<64x64xf32> -> vector<64x64xf32>
    %cst_44 = arith.constant dense<0.000000e+00> : vector<64x64xf32>
    %112 = tpu.matmul %111, %110, %cst_44 {dimension_numbers = #tpu.dot_dimension_numbers<[1], [0], [0], [1], [0, 0, 1, 1], [], []>} : vector<64x64xf32>, vector<64x64xf32>, vector<64x64xf32> -> vector<64x64xf32>
    %113 = arith.addf %110, %112 : vector<64x64xf32>
    %cst_45 = arith.constant dense<0.000000e+00> : vector<64x64xf32>
    %114 = tpu.matmul %111, %111, %cst_45 {dimension_numbers = #tpu.dot_dimension_numbers<[1], [0], [0], [1], [0, 0, 1, 1], [], []>} : vector<64x64xf32>, vector<64x64xf32>, vector<64x64xf32> -> vector<64x64xf32>
    %cst_46 = arith.constant dense<0.000000e+00> : vector<64x64xf32>
    %115 = tpu.matmul %114, %113, %cst_46 {dimension_numbers = #tpu.dot_dimension_numbers<[1], [0], [0], [1], [0, 0, 1, 1], [], []>} : vector<64x64xf32>, vector<64x64xf32>, vector<64x64xf32> -> vector<64x64xf32>
    %116 = arith.addf %113, %115 : vector<64x64xf32>
    %cst_47 = arith.constant dense<0.000000e+00> : vector<64x64xf32>
    %117 = tpu.matmul %114, %114, %cst_47 {dimension_numbers = #tpu.dot_dimension_numbers<[1], [0], [0], [1], [0, 0, 1, 1], [], []>} : vector<64x64xf32>, vector<64x64xf32>, vector<64x64xf32> -> vector<64x64xf32>
    %cst_48 = arith.constant dense<0.000000e+00> : vector<64x64xf32>
    %118 = tpu.matmul %117, %116, %cst_48 {dimension_numbers = #tpu.dot_dimension_numbers<[1], [0], [0], [1], [0, 0, 1, 1], [], []>} : vector<64x64xf32>, vector<64x64xf32>, vector<64x64xf32> -> vector<64x64xf32>
    %119 = arith.addf %116, %118 : vector<64x64xf32>
    %cst_49 = arith.constant dense<0.000000e+00> : vector<64x64xf32>
    %120 = tpu.matmul %117, %117, %cst_49 {dimension_numbers = #tpu.dot_dimension_numbers<[1], [0], [0], [1], [0, 0, 1, 1], [], []>} : vector<64x64xf32>, vector<64x64xf32>, vector<64x64xf32> -> vector<64x64xf32>
    %cst_50 = arith.constant dense<0.000000e+00> : vector<64x64xf32>
    %121 = tpu.matmul %120, %119, %cst_50 {dimension_numbers = #tpu.dot_dimension_numbers<[1], [0], [0], [1], [0, 0, 1, 1], [], []>} : vector<64x64xf32>, vector<64x64xf32>, vector<64x64xf32> -> vector<64x64xf32>
    %122 = arith.addf %119, %121 : vector<64x64xf32>
    %cst_51 = arith.constant dense<0.000000e+00> : vector<64x64xf32>
    %123 = tpu.matmul %94, %98, %cst_51 {dimension_numbers = #tpu.dot_dimension_numbers<[1], [1], [0], [0], [0, 0, 1, 0], [], []>} : vector<64x64xf32>, vector<64x64xf32>, vector<64x64xf32> -> vector<64x64xf32>
    %cst_52 = arith.constant dense<0.000000e+00> : vector<64x64xf32>
    %124 = tpu.matmul %106, %95, %cst_52 {dimension_numbers = #tpu.dot_dimension_numbers<[1], [0], [0], [1], [0, 0, 1, 1], [], []>} : vector<64x64xf32>, vector<64x64xf32>, vector<64x64xf32> -> vector<64x64xf32>
    %125 = arith.addf %123, %124 : vector<64x64xf32>
    %cst_53 = arith.constant dense<0.000000e+00> : vector<64x64xf32>
    %126 = tpu.matmul %122, %125, %cst_53 {dimension_numbers = #tpu.dot_dimension_numbers<[1], [0], [0], [1], [0, 0, 1, 1], [], []>} : vector<64x64xf32>, vector<64x64xf32>, vector<64x64xf32> -> vector<64x64xf32>
    %cst_54 = arith.constant dense<0.000000e+00> : vector<64x64xf32>
    %127 = tpu.matmul %91, %98, %cst_54 {dimension_numbers = #tpu.dot_dimension_numbers<[1], [1], [0], [0], [0, 0, 1, 0], [], []>} : vector<64x64xf32>, vector<64x64xf32>, vector<64x64xf32> -> vector<64x64xf32>
    %cst_55 = arith.constant dense<0.000000e+00> : vector<64x64xf32>
    %128 = tpu.matmul %100, %126, %cst_55 {dimension_numbers = #tpu.dot_dimension_numbers<[1], [0], [0], [1], [0, 0, 1, 1], [], []>} : vector<64x64xf32>, vector<64x64xf32>, vector<64x64xf32> -> vector<64x64xf32>
    %129 = arith.addf %127, %128 : vector<64x64xf32>
    %cst_56 = arith.constant dense<0.000000e+00> : vector<64x64xf32>
    %130 = tpu.matmul %102, %95, %cst_56 {dimension_numbers = #tpu.dot_dimension_numbers<[1], [0], [0], [1], [0, 0, 1, 1], [], []>} : vector<64x64xf32>, vector<64x64xf32>, vector<64x64xf32> -> vector<64x64xf32>
    %131 = arith.addf %129, %130 : vector<64x64xf32>
    %132 = vector.broadcast %96 : vector<1x64xf32> to vector<64x64xf32>
    %133 = arith.mulf %98, %132 : vector<64x64xf32>
    %134 = vector.broadcast %96 : vector<1x64xf32> to vector<64x64xf32>
    %135 = arith.mulf %93, %134 : vector<64x64xf32>
    %cst_57 = arith.constant dense<0.000000e+00> : vector<64x64xf32>
    %136 = tpu.matmul %126, %135, %cst_57 {dimension_numbers = #tpu.dot_dimension_numbers<[0], [0], [1], [1], [0, 1, 1, 1], [], []>} : vector<64x64xf32>, vector<64x64xf32>, vector<64x64xf32> -> vector<64x64xf32>
    %137 = arith.addf %133, %136 : vector<64x64xf32>
    %138 = vector.broadcast %96 : vector<1x64xf32> to vector<64x64xf32>
    %139 = arith.mulf %92, %138 : vector<64x64xf32>
    %cst_58 = arith.constant dense<0.000000e+00> : vector<64x64xf32>
    %140 = tpu.matmul %95, %139, %cst_58 {dimension_numbers = #tpu.dot_dimension_numbers<[0], [0], [1], [1], [0, 1, 1, 1], [], []>} : vector<64x64xf32>, vector<64x64xf32>, vector<64x64xf32> -> vector<64x64xf32>
    %141 = arith.addf %137, %140 : vector<64x64xf32>
    %c0_59 = arith.constant 0 : index
    %c0_60 = arith.constant 0 : index
    %c0_61 = arith.constant 0 : index
    %142 = vector.load %arg15[%c0_59, %c0_60, %c0_61] : memref<2x64x64xf32, #tpu.memory_space<vmem>>, vector<1x64x64xf32>
    %143 = vector.shape_cast %142 : vector<1x64x64xf32> to vector<64x64xf32>
    %144 = vector.shape_cast %141 : vector<64x64xf32> to vector<1x64x64xf32>
    tpu.vector_store %arg15[%c0_59, %c0_60, %c0_61], %144 {strides = array<i32>} : memref<2x64x64xf32, #tpu.memory_space<vmem>>, vector<1x64x64xf32>,
    %145 = vector.extract_strided_slice %83 {offsets = [0, 64], sizes = [64, 64], strides = [1, 1]} : vector<64x128xf32> to vector<64x64xf32>
    %146 = vector.extract_strided_slice %84 {offsets = [0, 64], sizes = [64, 64], strides = [1, 1]} : vector<64x128xf32> to vector<64x64xf32>
    %147 = vector.extract_strided_slice %85 {offsets = [0, 64], sizes = [64, 64], strides = [1, 1]} : vector<64x128xf32> to vector<64x64xf32>
    %148 = vector.extract_strided_slice %86 {offsets = [0, 64], sizes = [64, 64], strides = [1, 1]} : vector<64x128xf32> to vector<64x64xf32>
    %149 = vector.extract_strided_slice %45 {offsets = [0, 64], sizes = [64, 64], strides = [1, 1]} : vector<64x128xf32> to vector<64x64xf32>
    %150 = vector.extract_strided_slice %64 {offsets = [0, 64], sizes = [1, 64], strides = [1, 1]} : vector<1x128xf32> to vector<1x64xf32>
    %c1 = arith.constant 1 : index
    %c0_62 = arith.constant 0 : index
    %c0_63 = arith.constant 0 : index
    %151 = vector.load %arg15[%c1, %c0_62, %c0_63] : memref<2x64x64xf32, #tpu.memory_space<vmem>>, vector<1x64x64xf32>
    %152 = vector.shape_cast %151 : vector<1x64x64xf32> to vector<64x64xf32>
    %cst_64 = arith.constant dense<0.000000e+00> : vector<64x64xf32>
    %153 = tpu.matmul %145, %147, %cst_64 {dimension_numbers = #tpu.dot_dimension_numbers<[1], [1], [0], [0], [0, 0, 1, 0], [], []>} : vector<64x64xf32>, vector<64x64xf32>, vector<64x64xf32> -> vector<64x64xf32>
    %154 = arith.mulf %153, %7 : vector<64x64xf32>
    %cst_65 = arith.constant dense<0.000000e+00> : vector<64x64xf32>
    %155 = tpu.matmul %145, %146, %cst_65 {dimension_numbers = #tpu.dot_dimension_numbers<[1], [1], [0], [0], [0, 0, 1, 0], [], []>} : vector<64x64xf32>, vector<64x64xf32>, vector<64x64xf32> -> vector<64x64xf32>
    %156 = arith.mulf %155, %7 : vector<64x64xf32>
    %cst_66 = arith.constant dense<0.000000e+00> : vector<64x64xf32>
    %157 = tpu.matmul %148, %147, %cst_66 {dimension_numbers = #tpu.dot_dimension_numbers<[1], [1], [0], [0], [0, 0, 1, 0], [], []>} : vector<64x64xf32>, vector<64x64xf32>, vector<64x64xf32> -> vector<64x64xf32>
    %158 = arith.mulf %157, %10 : vector<64x64xf32>
    %cst_67 = arith.constant dense<0.000000e+00> : vector<64x64xf32>
    %159 = tpu.matmul %148, %146, %cst_67 {dimension_numbers = #tpu.dot_dimension_numbers<[1], [1], [0], [0], [0, 0, 1, 0], [], []>} : vector<64x64xf32>, vector<64x64xf32>, vector<64x64xf32> -> vector<64x64xf32>
    %160 = arith.mulf %159, %10 : vector<64x64xf32>
    %161 = arith.addf %13, %158 : vector<64x64xf32>
    %cst_68 = arith.constant dense<0.000000e+00> : vector<64x64xf32>
    %162 = tpu.matmul %158, %158, %cst_68 {dimension_numbers = #tpu.dot_dimension_numbers<[1], [0], [0], [1], [0, 0, 1, 1], [], []>} : vector<64x64xf32>, vector<64x64xf32>, vector<64x64xf32> -> vector<64x64xf32>
    %cst_69 = arith.constant dense<0.000000e+00> : vector<64x64xf32>
    %163 = tpu.matmul %162, %161, %cst_69 {dimension_numbers = #tpu.dot_dimension_numbers<[1], [0], [0], [1], [0, 0, 1, 1], [], []>} : vector<64x64xf32>, vector<64x64xf32>, vector<64x64xf32> -> vector<64x64xf32>
    %164 = arith.addf %161, %163 : vector<64x64xf32>
    %cst_70 = arith.constant dense<0.000000e+00> : vector<64x64xf32>
    %165 = tpu.matmul %162, %162, %cst_70 {dimension_numbers = #tpu.dot_dimension_numbers<[1], [0], [0], [1], [0, 0, 1, 1], [], []>} : vector<64x64xf32>, vector<64x64xf32>, vector<64x64xf32> -> vector<64x64xf32>
    %cst_71 = arith.constant dense<0.000000e+00> : vector<64x64xf32>
    %166 = tpu.matmul %165, %164, %cst_71 {dimension_numbers = #tpu.dot_dimension_numbers<[1], [0], [0], [1], [0, 0, 1, 1], [], []>} : vector<64x64xf32>, vector<64x64xf32>, vector<64x64xf32> -> vector<64x64xf32>
    %167 = arith.addf %164, %166 : vector<64x64xf32>
    %cst_72 = arith.constant dense<0.000000e+00> : vector<64x64xf32>
    %168 = tpu.matmul %165, %165, %cst_72 {dimension_numbers = #tpu.dot_dimension_numbers<[1], [0], [0], [1], [0, 0, 1, 1], [], []>} : vector<64x64xf32>, vector<64x64xf32>, vector<64x64xf32> -> vector<64x64xf32>
    %cst_73 = arith.constant dense<0.000000e+00> : vector<64x64xf32>
    %169 = tpu.matmul %168, %167, %cst_73 {dimension_numbers = #tpu.dot_dimension_numbers<[1], [0], [0], [1], [0, 0, 1, 1], [], []>} : vector<64x64xf32>, vector<64x64xf32>, vector<64x64xf32> -> vector<64x64xf32>
    %170 = arith.addf %167, %169 : vector<64x64xf32>
    %cst_74 = arith.constant dense<0.000000e+00> : vector<64x64xf32>
    %171 = tpu.matmul %168, %168, %cst_74 {dimension_numbers = #tpu.dot_dimension_numbers<[1], [0], [0], [1], [0, 0, 1, 1], [], []>} : vector<64x64xf32>, vector<64x64xf32>, vector<64x64xf32> -> vector<64x64xf32>
    %cst_75 = arith.constant dense<0.000000e+00> : vector<64x64xf32>
    %172 = tpu.matmul %171, %170, %cst_75 {dimension_numbers = #tpu.dot_dimension_numbers<[1], [0], [0], [1], [0, 0, 1, 1], [], []>} : vector<64x64xf32>, vector<64x64xf32>, vector<64x64xf32> -> vector<64x64xf32>
    %173 = arith.addf %170, %172 : vector<64x64xf32>
    %cst_76 = arith.constant dense<0.000000e+00> : vector<64x64xf32>
    %174 = tpu.matmul %171, %171, %cst_76 {dimension_numbers = #tpu.dot_dimension_numbers<[1], [0], [0], [1], [0, 0, 1, 1], [], []>} : vector<64x64xf32>, vector<64x64xf32>, vector<64x64xf32> -> vector<64x64xf32>
    %cst_77 = arith.constant dense<0.000000e+00> : vector<64x64xf32>
    %175 = tpu.matmul %174, %173, %cst_77 {dimension_numbers = #tpu.dot_dimension_numbers<[1], [0], [0], [1], [0, 0, 1, 1], [], []>} : vector<64x64xf32>, vector<64x64xf32>, vector<64x64xf32> -> vector<64x64xf32>
    %176 = arith.addf %173, %175 : vector<64x64xf32>
    %cst_78 = arith.constant dense<0.000000e+00> : vector<64x64xf32>
    %177 = tpu.matmul %148, %152, %cst_78 {dimension_numbers = #tpu.dot_dimension_numbers<[1], [1], [0], [0], [0, 0, 1, 0], [], []>} : vector<64x64xf32>, vector<64x64xf32>, vector<64x64xf32> -> vector<64x64xf32>
    %cst_79 = arith.constant dense<0.000000e+00> : vector<64x64xf32>
    %178 = tpu.matmul %160, %149, %cst_79 {dimension_numbers = #tpu.dot_dimension_numbers<[1], [0], [0], [1], [0, 0, 1, 1], [], []>} : vector<64x64xf32>, vector<64x64xf32>, vector<64x64xf32> -> vector<64x64xf32>
    %179 = arith.addf %177, %178 : vector<64x64xf32>
    %cst_80 = arith.constant dense<0.000000e+00> : vector<64x64xf32>
    %180 = tpu.matmul %176, %179, %cst_80 {dimension_numbers = #tpu.dot_dimension_numbers<[1], [0], [0], [1], [0, 0, 1, 1], [], []>} : vector<64x64xf32>, vector<64x64xf32>, vector<64x64xf32> -> vector<64x64xf32>
    %cst_81 = arith.constant dense<0.000000e+00> : vector<64x64xf32>
    %181 = tpu.matmul %145, %152, %cst_81 {dimension_numbers = #tpu.dot_dimension_numbers<[1], [1], [0], [0], [0, 0, 1, 0], [], []>} : vector<64x64xf32>, vector<64x64xf32>, vector<64x64xf32> -> vector<64x64xf32>
    %cst_82 = arith.constant dense<0.000000e+00> : vector<64x64xf32>
    %182 = tpu.matmul %154, %180, %cst_82 {dimension_numbers = #tpu.dot_dimension_numbers<[1], [0], [0], [1], [0, 0, 1, 1], [], []>} : vector<64x64xf32>, vector<64x64xf32>, vector<64x64xf32> -> vector<64x64xf32>
    %183 = arith.addf %181, %182 : vector<64x64xf32>
    %cst_83 = arith.constant dense<0.000000e+00> : vector<64x64xf32>
    %184 = tpu.matmul %156, %149, %cst_83 {dimension_numbers = #tpu.dot_dimension_numbers<[1], [0], [0], [1], [0, 0, 1, 1], [], []>} : vector<64x64xf32>, vector<64x64xf32>, vector<64x64xf32> -> vector<64x64xf32>
    %185 = arith.addf %183, %184 : vector<64x64xf32>
    %186 = vector.broadcast %150 : vector<1x64xf32> to vector<64x64xf32>
    %187 = arith.mulf %152, %186 : vector<64x64xf32>
    %188 = vector.broadcast %150 : vector<1x64xf32> to vector<64x64xf32>
    %189 = arith.mulf %147, %188 : vector<64x64xf32>
    %cst_84 = arith.constant dense<0.000000e+00> : vector<64x64xf32>
    %190 = tpu.matmul %180, %189, %cst_84 {dimension_numbers = #tpu.dot_dimension_numbers<[0], [0], [1], [1], [0, 1, 1, 1], [], []>} : vector<64x64xf32>, vector<64x64xf32>, vector<64x64xf32> -> vector<64x64xf32>
    %191 = arith.addf %187, %190 : vector<64x64xf32>
    %192 = vector.broadcast %150 : vector<1x64xf32> to vector<64x64xf32>
    %193 = arith.mulf %146, %192 : vector<64x64xf32>
    %cst_85 = arith.constant dense<0.000000e+00> : vector<64x64xf32>
    %194 = tpu.matmul %149, %193, %cst_85 {dimension_numbers = #tpu.dot_dimension_numbers<[0], [0], [1], [1], [0, 1, 1, 1], [], []>} : vector<64x64xf32>, vector<64x64xf32>, vector<64x64xf32> -> vector<64x64xf32>
    %195 = arith.addf %191, %194 : vector<64x64xf32>
    %c1_86 = arith.constant 1 : index
    %c0_87 = arith.constant 0 : index
    %c0_88 = arith.constant 0 : index
    %196 = vector.load %arg15[%c1_86, %c0_87, %c0_88] : memref<2x64x64xf32, #tpu.memory_space<vmem>>, vector<1x64x64xf32>
    %197 = vector.shape_cast %196 : vector<1x64x64xf32> to vector<64x64xf32>
    %198 = vector.shape_cast %195 : vector<64x64xf32> to vector<1x64x64xf32>
    tpu.vector_store %arg15[%c1_86, %c0_87, %c0_88], %198 {strides = array<i32>} : memref<2x64x64xf32, #tpu.memory_space<vmem>>, vector<1x64x64xf32>,
    %199 = tpu.concatenate %131, %185 in 1 : vector<64x64xf32>, vector<64x64xf32> -> vector<64x128xf32>
    %cst_89 = arith.constant dense<0.000000e+00> : vector<64x128xf32>
    %200 = tpu.matmul %199, %23, %cst_89 {dimension_numbers = #tpu.dot_dimension_numbers<[1], [0], [0], [1], [0, 0, 1, 1], [], []>} : vector<64x128xf32>, vector<128x128xf32>, vector<64x128xf32> -> vector<64x128xf32>
    %cst_90 = arith.constant 1.562500e-02 : f32
    %201 = vector.broadcast %cst_90 : f32 to vector<64x128xf32>
    %202 = arith.mulf %200, %201 : vector<64x128xf32>
    %203 = arith.subf %199, %202 : vector<64x128xf32>
    %204 = arith.mulf %203, %203 : vector<64x128xf32>
    %cst_91 = arith.constant dense<0.000000e+00> : vector<64x128xf32>
    %205 = tpu.matmul %204, %23, %cst_91 {dimension_numbers = #tpu.dot_dimension_numbers<[1], [0], [0], [1], [0, 0, 1, 1], [], []>} : vector<64x128xf32>, vector<128x128xf32>, vector<64x128xf32> -> vector<64x128xf32>
    %cst_92 = arith.constant 1.562500e-02 : f32
    %206 = vector.broadcast %cst_92 : f32 to vector<64x128xf32>
    %207 = arith.mulf %205, %206 : vector<64x128xf32>
    %cst_93 = arith.constant 6.400000e-04 : f32
    %208 = vector.broadcast %cst_93 : f32 to vector<64x128xf32>
    %209 = arith.addf %207, %208 : vector<64x128xf32>
    %210 = math.rsqrt %209 : vector<64x128xf32>
    %211 = arith.mulf %203, %210 : vector<64x128xf32>
    %212 = vector.broadcast %26 : vector<1x128xf32> to vector<64x128xf32>
    %213 = arith.mulf %211, %212 : vector<64x128xf32>
    %214 = vector.broadcast %27 : vector<1x128xf32> to vector<64x128xf32>
    %215 = arith.addf %213, %214 : vector<64x128xf32>
    %216 = arith.mulf %90, %45 : vector<64x128xf32>
    %217 = arith.addf %215, %216 : vector<64x128xf32>
    %218 = arith.mulf %217, %53 : vector<64x128xf32>
    %219 = arith.truncf %218 : vector<64x128xf32> to vector<64x128xbf16>
    %c0_94 = arith.constant 0 : index
    %220 = arith.index_cast %30 : i32 to index
    %c0_95 = arith.constant 0 : index
    %221 = vector.load %arg14[%c0_94, %220, %c0_95] : memref<1x128x128xbf16, #tpu.memory_space<vmem>>, vector<1x64x128xbf16>
    %222 = vector.shape_cast %221 : vector<1x64x128xbf16> to vector<64x128xbf16>
    %223 = vector.shape_cast %219 : vector<64x128xbf16> to vector<1x64x128xbf16>
    tpu.vector_store %arg14[%c0_94, %220, %c0_95], %223 {strides = array<i32>} : memref<1x128x128xbf16, #tpu.memory_space<vmem>>, vector<1x64x128xbf16>,
    %c1_i32 = arith.constant 1 : i32
    %c64_i32_96 = arith.constant 64 : i32
    %224 = arith.muli %c1_i32, %c64_i32_96 : i32
    %225 = tpu.assume_multiple %224, 64 : i32
    %c0_97 = arith.constant 0 : index
    %226 = arith.index_cast %225 : i32 to index
    %c0_98 = arith.constant 0 : index
    %227 = vector.load %arg3[%c0_97, %226, %c0_98] : memref<1x128x128xbf16, #tpu.memory_space<vmem>>, vector<1x64x128xbf16>
    %228 = vector.shape_cast %227 : vector<1x64x128xbf16> to vector<64x128xbf16>
    %229 = arith.extf %228 : vector<64x128xbf16> to vector<64x128xf32>
    %c0_99 = arith.constant 0 : index
    %230 = arith.index_cast %225 : i32 to index
    %c0_100 = arith.constant 0 : index
    %231 = vector.load %arg4[%c0_99, %230, %c0_100] : memref<1x128x128xf32, #tpu.memory_space<vmem>>, vector<1x64x128xf32>
    %232 = vector.shape_cast %231 : vector<1x64x128xf32> to vector<64x128xf32>
    %c0_101 = arith.constant 0 : index
    %233 = arith.index_cast %225 : i32 to index
    %c0_102 = arith.constant 0 : index
    %234 = vector.load %arg5[%c0_101, %233, %c0_102] : memref<1x128x128xbf16, #tpu.memory_space<vmem>>, vector<1x64x128xbf16>
    %235 = vector.shape_cast %234 : vector<1x64x128xbf16> to vector<64x128xbf16>
    %236 = arith.extf %235 : vector<64x128xbf16> to vector<64x128xf32>
    %c0_103 = arith.constant 0 : index
    %237 = arith.index_cast %225 : i32 to index
    %c0_104 = arith.constant 0 : index
    %238 = vector.load %arg6[%c0_103, %237, %c0_104] : memref<1x128x128xbf16, #tpu.memory_space<vmem>>, vector<1x64x128xbf16>
    %239 = vector.shape_cast %238 : vector<1x64x128xbf16> to vector<64x128xbf16>
    %240 = arith.extf %239 : vector<64x128xbf16> to vector<64x128xf32>
    %c0_105 = arith.constant 0 : index
    %241 = arith.index_cast %225 : i32 to index
    %c0_106 = arith.constant 0 : index
    %242 = vector.load %arg7[%c0_105, %241, %c0_106] : memref<1x128x128xbf16, #tpu.memory_space<vmem>>, vector<1x64x128xbf16>
    %243 = vector.shape_cast %242 : vector<1x64x128xbf16> to vector<64x128xbf16>
    %244 = arith.extf %243 : vector<64x128xbf16> to vector<64x128xf32>
    %c0_107 = arith.constant 0 : index
    %245 = arith.index_cast %225 : i32 to index
    %c0_108 = arith.constant 0 : index
    %246 = vector.load %arg8[%c0_107, %245, %c0_108] : memref<1x128x128xbf16, #tpu.memory_space<vmem>>, vector<1x64x128xbf16>
    %247 = vector.shape_cast %246 : vector<1x64x128xbf16> to vector<64x128xbf16>
    %248 = arith.extf %247 : vector<64x128xbf16> to vector<64x128xf32>
    %249 = math.exp %232 : vector<64x128xf32>
    %cst_109 = arith.constant 0.000000e+00 : f32
    %250 = vector.broadcast %cst_109 : f32 to vector<64x128xf32>
    %251 = arith.subf %250, %249 : vector<64x128xf32>
    %cst_110 = arith.constant dense<0.000000e+00> : vector<64x128xf32>
    %252 = tpu.matmul %7, %251, %cst_110 {dimension_numbers = #tpu.dot_dimension_numbers<[1], [0], [0], [1], [0, 0, 1, 1], [], []>} : vector<64x64xf32>, vector<64x128xf32>, vector<64x128xf32> -> vector<64x128xf32>
    %253 = math.exp %252 : vector<64x128xf32>
    %cst_111 = arith.constant 0.000000e+00 : f32
    %254 = vector.broadcast %cst_111 : f32 to vector<64x128xf32>
    %255 = arith.subf %254, %252 : vector<64x128xf32>
    %256 = math.exp %255 : vector<64x128xf32>
    %257 = arith.subf %252, %251 : vector<64x128xf32>
    %258 = math.exp %257 : vector<64x128xf32>
    %259 = vector.extract_strided_slice %253 {offsets = [63, 0], sizes = [1, 128], strides = [1, 1]} : vector<64x128xf32> to vector<1x128xf32>
    %260 = vector.broadcast %24 : vector<1x128xf32> to vector<64x128xf32>
    %261 = arith.mulf %236, %260 : vector<64x128xf32>
    %262 = arith.mulf %261, %261 : vector<64x128xf32>
    %cst_112 = arith.constant dense<0.000000e+00> : vector<64x128xf32>
    %263 = tpu.matmul %262, %23, %cst_112 {dimension_numbers = #tpu.dot_dimension_numbers<[1], [0], [0], [1], [0, 0, 1, 1], [], []>} : vector<64x128xf32>, vector<128x128xf32>, vector<64x128xf32> -> vector<64x128xf32>
    %264 = math.sqrt %263 : vector<64x128xf32>
    %cst_113 = arith.constant 9.99999996E-13 : f32
    %265 = vector.broadcast %cst_113 : f32 to vector<64x128xf32>
    %266 = arith.maximumf %264, %265 : vector<64x128xf32>
    %267 = arith.divf %261, %266 : vector<64x128xf32>
    %cst_114 = arith.constant 1.000000e+00 : f32
    %268 = vector.broadcast %cst_114 : f32 to vector<64x128xf32>
    %269 = arith.subf %244, %268 : vector<64x128xf32>
    %270 = vector.broadcast %25 : vector<1x128xf32> to vector<64x128xf32>
    %271 = arith.mulf %269, %270 : vector<64x128xf32>
    %cst_115 = arith.constant 1.000000e+00 : f32
    %272 = vector.broadcast %cst_115 : f32 to vector<64x128xf32>
    %273 = arith.addf %272, %271 : vector<64x128xf32>
    %274 = arith.mulf %236, %273 : vector<64x128xf32>
    %cst_116 = arith.constant 0.000000e+00 : f32
    %275 = vector.broadcast %cst_116 : f32 to vector<64x128xf32>
    %276 = arith.subf %275, %267 : vector<64x128xf32>
    %277 = arith.mulf %267, %244 : vector<64x128xf32>
    %278 = arith.mulf %229, %253 : vector<64x128xf32>
    %279 = arith.mulf %274, %256 : vector<64x128xf32>
    %280 = arith.mulf %277, %256 : vector<64x128xf32>
    %281 = arith.mulf %276, %258 : vector<64x128xf32>
    %282 = arith.mulf %229, %274 : vector<64x128xf32>
    %283 = vector.broadcast %28 : vector<1x128xf32> to vector<64x128xf32>
    %284 = arith.mulf %282, %283 : vector<64x128xf32>
    %cst_117 = arith.constant dense<0.000000e+00> : vector<64x128xf32>
    %285 = tpu.matmul %284, %23, %cst_117 {dimension_numbers = #tpu.dot_dimension_numbers<[1], [0], [0], [1], [0, 0, 1, 1], [], []>} : vector<64x128xf32>, vector<128x128xf32>, vector<64x128xf32> -> vector<64x128xf32>
    %286 = vector.extract_strided_slice %278 {offsets = [0, 0], sizes = [64, 64], strides = [1, 1]} : vector<64x128xf32> to vector<64x64xf32>
    %287 = vector.extract_strided_slice %279 {offsets = [0, 0], sizes = [64, 64], strides = [1, 1]} : vector<64x128xf32> to vector<64x64xf32>
    %288 = vector.extract_strided_slice %280 {offsets = [0, 0], sizes = [64, 64], strides = [1, 1]} : vector<64x128xf32> to vector<64x64xf32>
    %289 = vector.extract_strided_slice %281 {offsets = [0, 0], sizes = [64, 64], strides = [1, 1]} : vector<64x128xf32> to vector<64x64xf32>
    %290 = vector.extract_strided_slice %240 {offsets = [0, 0], sizes = [64, 64], strides = [1, 1]} : vector<64x128xf32> to vector<64x64xf32>
    %291 = vector.extract_strided_slice %259 {offsets = [0, 0], sizes = [1, 64], strides = [1, 1]} : vector<1x128xf32> to vector<1x64xf32>
    %c0_118 = arith.constant 0 : index
    %c0_119 = arith.constant 0 : index
    %c0_120 = arith.constant 0 : index
    %292 = vector.load %arg15[%c0_118, %c0_119, %c0_120] : memref<2x64x64xf32, #tpu.memory_space<vmem>>, vector<1x64x64xf32>
    %293 = vector.shape_cast %292 : vector<1x64x64xf32> to vector<64x64xf32>
    %cst_121 = arith.constant dense<0.000000e+00> : vector<64x64xf32>
    %294 = tpu.matmul %286, %288, %cst_121 {dimension_numbers = #tpu.dot_dimension_numbers<[1], [1], [0], [0], [0, 0, 1, 0], [], []>} : vector<64x64xf32>, vector<64x64xf32>, vector<64x64xf32> -> vector<64x64xf32>
    %295 = arith.mulf %294, %7 : vector<64x64xf32>
    %cst_122 = arith.constant dense<0.000000e+00> : vector<64x64xf32>
    %296 = tpu.matmul %286, %287, %cst_122 {dimension_numbers = #tpu.dot_dimension_numbers<[1], [1], [0], [0], [0, 0, 1, 0], [], []>} : vector<64x64xf32>, vector<64x64xf32>, vector<64x64xf32> -> vector<64x64xf32>
    %297 = arith.mulf %296, %7 : vector<64x64xf32>
    %cst_123 = arith.constant dense<0.000000e+00> : vector<64x64xf32>
    %298 = tpu.matmul %289, %288, %cst_123 {dimension_numbers = #tpu.dot_dimension_numbers<[1], [1], [0], [0], [0, 0, 1, 0], [], []>} : vector<64x64xf32>, vector<64x64xf32>, vector<64x64xf32> -> vector<64x64xf32>
    %299 = arith.mulf %298, %10 : vector<64x64xf32>
    %cst_124 = arith.constant dense<0.000000e+00> : vector<64x64xf32>
    %300 = tpu.matmul %289, %287, %cst_124 {dimension_numbers = #tpu.dot_dimension_numbers<[1], [1], [0], [0], [0, 0, 1, 0], [], []>} : vector<64x64xf32>, vector<64x64xf32>, vector<64x64xf32> -> vector<64x64xf32>
    %301 = arith.mulf %300, %10 : vector<64x64xf32>
    %302 = arith.addf %13, %299 : vector<64x64xf32>
    %cst_125 = arith.constant dense<0.000000e+00> : vector<64x64xf32>
    %303 = tpu.matmul %299, %299, %cst_125 {dimension_numbers = #tpu.dot_dimension_numbers<[1], [0], [0], [1], [0, 0, 1, 1], [], []>} : vector<64x64xf32>, vector<64x64xf32>, vector<64x64xf32> -> vector<64x64xf32>
    %cst_126 = arith.constant dense<0.000000e+00> : vector<64x64xf32>
    %304 = tpu.matmul %303, %302, %cst_126 {dimension_numbers = #tpu.dot_dimension_numbers<[1], [0], [0], [1], [0, 0, 1, 1], [], []>} : vector<64x64xf32>, vector<64x64xf32>, vector<64x64xf32> -> vector<64x64xf32>
    %305 = arith.addf %302, %304 : vector<64x64xf32>
    %cst_127 = arith.constant dense<0.000000e+00> : vector<64x64xf32>
    %306 = tpu.matmul %303, %303, %cst_127 {dimension_numbers = #tpu.dot_dimension_numbers<[1], [0], [0], [1], [0, 0, 1, 1], [], []>} : vector<64x64xf32>, vector<64x64xf32>, vector<64x64xf32> -> vector<64x64xf32>
    %cst_128 = arith.constant dense<0.000000e+00> : vector<64x64xf32>
    %307 = tpu.matmul %306, %305, %cst_128 {dimension_numbers = #tpu.dot_dimension_numbers<[1], [0], [0], [1], [0, 0, 1, 1], [], []>} : vector<64x64xf32>, vector<64x64xf32>, vector<64x64xf32> -> vector<64x64xf32>
    %308 = arith.addf %305, %307 : vector<64x64xf32>
    %cst_129 = arith.constant dense<0.000000e+00> : vector<64x64xf32>
    %309 = tpu.matmul %306, %306, %cst_129 {dimension_numbers = #tpu.dot_dimension_numbers<[1], [0], [0], [1], [0, 0, 1, 1], [], []>} : vector<64x64xf32>, vector<64x64xf32>, vector<64x64xf32> -> vector<64x64xf32>
    %cst_130 = arith.constant dense<0.000000e+00> : vector<64x64xf32>
    %310 = tpu.matmul %309, %308, %cst_130 {dimension_numbers = #tpu.dot_dimension_numbers<[1], [0], [0], [1], [0, 0, 1, 1], [], []>} : vector<64x64xf32>, vector<64x64xf32>, vector<64x64xf32> -> vector<64x64xf32>
    %311 = arith.addf %308, %310 : vector<64x64xf32>
    %cst_131 = arith.constant dense<0.000000e+00> : vector<64x64xf32>
    %312 = tpu.matmul %309, %309, %cst_131 {dimension_numbers = #tpu.dot_dimension_numbers<[1], [0], [0], [1], [0, 0, 1, 1], [], []>} : vector<64x64xf32>, vector<64x64xf32>, vector<64x64xf32> -> vector<64x64xf32>
    %cst_132 = arith.constant dense<0.000000e+00> : vector<64x64xf32>
    %313 = tpu.matmul %312, %311, %cst_132 {dimension_numbers = #tpu.dot_dimension_numbers<[1], [0], [0], [1], [0, 0, 1, 1], [], []>} : vector<64x64xf32>, vector<64x64xf32>, vector<64x64xf32> -> vector<64x64xf32>
    %314 = arith.addf %311, %313 : vector<64x64xf32>
    %cst_133 = arith.constant dense<0.000000e+00> : vector<64x64xf32>
    %315 = tpu.matmul %312, %312, %cst_133 {dimension_numbers = #tpu.dot_dimension_numbers<[1], [0], [0], [1], [0, 0, 1, 1], [], []>} : vector<64x64xf32>, vector<64x64xf32>, vector<64x64xf32> -> vector<64x64xf32>
    %cst_134 = arith.constant dense<0.000000e+00> : vector<64x64xf32>
    %316 = tpu.matmul %315, %314, %cst_134 {dimension_numbers = #tpu.dot_dimension_numbers<[1], [0], [0], [1], [0, 0, 1, 1], [], []>} : vector<64x64xf32>, vector<64x64xf32>, vector<64x64xf32> -> vector<64x64xf32>
    %317 = arith.addf %314, %316 : vector<64x64xf32>
    %cst_135 = arith.constant dense<0.000000e+00> : vector<64x64xf32>
    %318 = tpu.matmul %289, %293, %cst_135 {dimension_numbers = #tpu.dot_dimension_numbers<[1], [1], [0], [0], [0, 0, 1, 0], [], []>} : vector<64x64xf32>, vector<64x64xf32>, vector<64x64xf32> -> vector<64x64xf32>
    %cst_136 = arith.constant dense<0.000000e+00> : vector<64x64xf32>
    %319 = tpu.matmul %301, %290, %cst_136 {dimension_numbers = #tpu.dot_dimension_numbers<[1], [0], [0], [1], [0, 0, 1, 1], [], []>} : vector<64x64xf32>, vector<64x64xf32>, vector<64x64xf32> -> vector<64x64xf32>
    %320 = arith.addf %318, %319 : vector<64x64xf32>
    %cst_137 = arith.constant dense<0.000000e+00> : vector<64x64xf32>
    %321 = tpu.matmul %317, %320, %cst_137 {dimension_numbers = #tpu.dot_dimension_numbers<[1], [0], [0], [1], [0, 0, 1, 1], [], []>} : vector<64x64xf32>, vector<64x64xf32>, vector<64x64xf32> -> vector<64x64xf32>
    %cst_138 = arith.constant dense<0.000000e+00> : vector<64x64xf32>
    %322 = tpu.matmul %286, %293, %cst_138 {dimension_numbers = #tpu.dot_dimension_numbers<[1], [1], [0], [0], [0, 0, 1, 0], [], []>} : vector<64x64xf32>, vector<64x64xf32>, vector<64x64xf32> -> vector<64x64xf32>
    %cst_139 = arith.constant dense<0.000000e+00> : vector<64x64xf32>
    %323 = tpu.matmul %295, %321, %cst_139 {dimension_numbers = #tpu.dot_dimension_numbers<[1], [0], [0], [1], [0, 0, 1, 1], [], []>} : vector<64x64xf32>, vector<64x64xf32>, vector<64x64xf32> -> vector<64x64xf32>
    %324 = arith.addf %322, %323 : vector<64x64xf32>
    %cst_140 = arith.constant dense<0.000000e+00> : vector<64x64xf32>
    %325 = tpu.matmul %297, %290, %cst_140 {dimension_numbers = #tpu.dot_dimension_numbers<[1], [0], [0], [1], [0, 0, 1, 1], [], []>} : vector<64x64xf32>, vector<64x64xf32>, vector<64x64xf32> -> vector<64x64xf32>
    %326 = arith.addf %324, %325 : vector<64x64xf32>
    %327 = vector.broadcast %291 : vector<1x64xf32> to vector<64x64xf32>
    %328 = arith.mulf %293, %327 : vector<64x64xf32>
    %329 = vector.broadcast %291 : vector<1x64xf32> to vector<64x64xf32>
    %330 = arith.mulf %288, %329 : vector<64x64xf32>
    %cst_141 = arith.constant dense<0.000000e+00> : vector<64x64xf32>
    %331 = tpu.matmul %321, %330, %cst_141 {dimension_numbers = #tpu.dot_dimension_numbers<[0], [0], [1], [1], [0, 1, 1, 1], [], []>} : vector<64x64xf32>, vector<64x64xf32>, vector<64x64xf32> -> vector<64x64xf32>
    %332 = arith.addf %328, %331 : vector<64x64xf32>
    %333 = vector.broadcast %291 : vector<1x64xf32> to vector<64x64xf32>
    %334 = arith.mulf %287, %333 : vector<64x64xf32>
    %cst_142 = arith.constant dense<0.000000e+00> : vector<64x64xf32>
    %335 = tpu.matmul %290, %334, %cst_142 {dimension_numbers = #tpu.dot_dimension_numbers<[0], [0], [1], [1], [0, 1, 1, 1], [], []>} : vector<64x64xf32>, vector<64x64xf32>, vector<64x64xf32> -> vector<64x64xf32>
    %336 = arith.addf %332, %335 : vector<64x64xf32>
    %c0_143 = arith.constant 0 : index
    %c0_144 = arith.constant 0 : index
    %c0_145 = arith.constant 0 : index
    %337 = vector.load %arg15[%c0_143, %c0_144, %c0_145] : memref<2x64x64xf32, #tpu.memory_space<vmem>>, vector<1x64x64xf32>
    %338 = vector.shape_cast %337 : vector<1x64x64xf32> to vector<64x64xf32>
    %339 = vector.shape_cast %336 : vector<64x64xf32> to vector<1x64x64xf32>
    tpu.vector_store %arg15[%c0_143, %c0_144, %c0_145], %339 {strides = array<i32>} : memref<2x64x64xf32, #tpu.memory_space<vmem>>, vector<1x64x64xf32>,
    %340 = vector.extract_strided_slice %278 {offsets = [0, 64], sizes = [64, 64], strides = [1, 1]} : vector<64x128xf32> to vector<64x64xf32>
    %341 = vector.extract_strided_slice %279 {offsets = [0, 64], sizes = [64, 64], strides = [1, 1]} : vector<64x128xf32> to vector<64x64xf32>
    %342 = vector.extract_strided_slice %280 {offsets = [0, 64], sizes = [64, 64], strides = [1, 1]} : vector<64x128xf32> to vector<64x64xf32>
    %343 = vector.extract_strided_slice %281 {offsets = [0, 64], sizes = [64, 64], strides = [1, 1]} : vector<64x128xf32> to vector<64x64xf32>
    %344 = vector.extract_strided_slice %240 {offsets = [0, 64], sizes = [64, 64], strides = [1, 1]} : vector<64x128xf32> to vector<64x64xf32>
    %345 = vector.extract_strided_slice %259 {offsets = [0, 64], sizes = [1, 64], strides = [1, 1]} : vector<1x128xf32> to vector<1x64xf32>
    %c1_146 = arith.constant 1 : index
    %c0_147 = arith.constant 0 : index
    %c0_148 = arith.constant 0 : index
    %346 = vector.load %arg15[%c1_146, %c0_147, %c0_148] : memref<2x64x64xf32, #tpu.memory_space<vmem>>, vector<1x64x64xf32>
    %347 = vector.shape_cast %346 : vector<1x64x64xf32> to vector<64x64xf32>
    %cst_149 = arith.constant dense<0.000000e+00> : vector<64x64xf32>
    %348 = tpu.matmul %340, %342, %cst_149 {dimension_numbers = #tpu.dot_dimension_numbers<[1], [1], [0], [0], [0, 0, 1, 0], [], []>} : vector<64x64xf32>, vector<64x64xf32>, vector<64x64xf32> -> vector<64x64xf32>
    %349 = arith.mulf %348, %7 : vector<64x64xf32>
    %cst_150 = arith.constant dense<0.000000e+00> : vector<64x64xf32>
    %350 = tpu.matmul %340, %341, %cst_150 {dimension_numbers = #tpu.dot_dimension_numbers<[1], [1], [0], [0], [0, 0, 1, 0], [], []>} : vector<64x64xf32>, vector<64x64xf32>, vector<64x64xf32> -> vector<64x64xf32>
    %351 = arith.mulf %350, %7 : vector<64x64xf32>
    %cst_151 = arith.constant dense<0.000000e+00> : vector<64x64xf32>
    %352 = tpu.matmul %343, %342, %cst_151 {dimension_numbers = #tpu.dot_dimension_numbers<[1], [1], [0], [0], [0, 0, 1, 0], [], []>} : vector<64x64xf32>, vector<64x64xf32>, vector<64x64xf32> -> vector<64x64xf32>
    %353 = arith.mulf %352, %10 : vector<64x64xf32>
    %cst_152 = arith.constant dense<0.000000e+00> : vector<64x64xf32>
    %354 = tpu.matmul %343, %341, %cst_152 {dimension_numbers = #tpu.dot_dimension_numbers<[1], [1], [0], [0], [0, 0, 1, 0], [], []>} : vector<64x64xf32>, vector<64x64xf32>, vector<64x64xf32> -> vector<64x64xf32>
    %355 = arith.mulf %354, %10 : vector<64x64xf32>
    %356 = arith.addf %13, %353 : vector<64x64xf32>
    %cst_153 = arith.constant dense<0.000000e+00> : vector<64x64xf32>
    %357 = tpu.matmul %353, %353, %cst_153 {dimension_numbers = #tpu.dot_dimension_numbers<[1], [0], [0], [1], [0, 0, 1, 1], [], []>} : vector<64x64xf32>, vector<64x64xf32>, vector<64x64xf32> -> vector<64x64xf32>
    %cst_154 = arith.constant dense<0.000000e+00> : vector<64x64xf32>
    %358 = tpu.matmul %357, %356, %cst_154 {dimension_numbers = #tpu.dot_dimension_numbers<[1], [0], [0], [1], [0, 0, 1, 1], [], []>} : vector<64x64xf32>, vector<64x64xf32>, vector<64x64xf32> -> vector<64x64xf32>
    %359 = arith.addf %356, %358 : vector<64x64xf32>
    %cst_155 = arith.constant dense<0.000000e+00> : vector<64x64xf32>
    %360 = tpu.matmul %357, %357, %cst_155 {dimension_numbers = #tpu.dot_dimension_numbers<[1], [0], [0], [1], [0, 0, 1, 1], [], []>} : vector<64x64xf32>, vector<64x64xf32>, vector<64x64xf32> -> vector<64x64xf32>
    %cst_156 = arith.constant dense<0.000000e+00> : vector<64x64xf32>
    %361 = tpu.matmul %360, %359, %cst_156 {dimension_numbers = #tpu.dot_dimension_numbers<[1], [0], [0], [1], [0, 0, 1, 1], [], []>} : vector<64x64xf32>, vector<64x64xf32>, vector<64x64xf32> -> vector<64x64xf32>
    %362 = arith.addf %359, %361 : vector<64x64xf32>
    %cst_157 = arith.constant dense<0.000000e+00> : vector<64x64xf32>
    %363 = tpu.matmul %360, %360, %cst_157 {dimension_numbers = #tpu.dot_dimension_numbers<[1], [0], [0], [1], [0, 0, 1, 1], [], []>} : vector<64x64xf32>, vector<64x64xf32>, vector<64x64xf32> -> vector<64x64xf32>
    %cst_158 = arith.constant dense<0.000000e+00> : vector<64x64xf32>
    %364 = tpu.matmul %363, %362, %cst_158 {dimension_numbers = #tpu.dot_dimension_numbers<[1], [0], [0], [1], [0, 0, 1, 1], [], []>} : vector<64x64xf32>, vector<64x64xf32>, vector<64x64xf32> -> vector<64x64xf32>
    %365 = arith.addf %362, %364 : vector<64x64xf32>
    %cst_159 = arith.constant dense<0.000000e+00> : vector<64x64xf32>
    %366 = tpu.matmul %363, %363, %cst_159 {dimension_numbers = #tpu.dot_dimension_numbers<[1], [0], [0], [1], [0, 0, 1, 1], [], []>} : vector<64x64xf32>, vector<64x64xf32>, vector<64x64xf32> -> vector<64x64xf32>
    %cst_160 = arith.constant dense<0.000000e+00> : vector<64x64xf32>
    %367 = tpu.matmul %366, %365, %cst_160 {dimension_numbers = #tpu.dot_dimension_numbers<[1], [0], [0], [1], [0, 0, 1, 1], [], []>} : vector<64x64xf32>, vector<64x64xf32>, vector<64x64xf32> -> vector<64x64xf32>
    %368 = arith.addf %365, %367 : vector<64x64xf32>
    %cst_161 = arith.constant dense<0.000000e+00> : vector<64x64xf32>
    %369 = tpu.matmul %366, %366, %cst_161 {dimension_numbers = #tpu.dot_dimension_numbers<[1], [0], [0], [1], [0, 0, 1, 1], [], []>} : vector<64x64xf32>, vector<64x64xf32>, vector<64x64xf32> -> vector<64x64xf32>
    %cst_162 = arith.constant dense<0.000000e+00> : vector<64x64xf32>
    %370 = tpu.matmul %369, %368, %cst_162 {dimension_numbers = #tpu.dot_dimension_numbers<[1], [0], [0], [1], [0, 0, 1, 1], [], []>} : vector<64x64xf32>, vector<64x64xf32>, vector<64x64xf32> -> vector<64x64xf32>
    %371 = arith.addf %368, %370 : vector<64x64xf32>
    %cst_163 = arith.constant dense<0.000000e+00> : vector<64x64xf32>
    %372 = tpu.matmul %343, %347, %cst_163 {dimension_numbers = #tpu.dot_dimension_numbers<[1], [1], [0], [0], [0, 0, 1, 0], [], []>} : vector<64x64xf32>, vector<64x64xf32>, vector<64x64xf32> -> vector<64x64xf32>
    %cst_164 = arith.constant dense<0.000000e+00> : vector<64x64xf32>
    %373 = tpu.matmul %355, %344, %cst_164 {dimension_numbers = #tpu.dot_dimension_numbers<[1], [0], [0], [1], [0, 0, 1, 1], [], []>} : vector<64x64xf32>, vector<64x64xf32>, vector<64x64xf32> -> vector<64x64xf32>
    %374 = arith.addf %372, %373 : vector<64x64xf32>
    %cst_165 = arith.constant dense<0.000000e+00> : vector<64x64xf32>
    %375 = tpu.matmul %371, %374, %cst_165 {dimension_numbers = #tpu.dot_dimension_numbers<[1], [0], [0], [1], [0, 0, 1, 1], [], []>} : vector<64x64xf32>, vector<64x64xf32>, vector<64x64xf32> -> vector<64x64xf32>
    %cst_166 = arith.constant dense<0.000000e+00> : vector<64x64xf32>
    %376 = tpu.matmul %340, %347, %cst_166 {dimension_numbers = #tpu.dot_dimension_numbers<[1], [1], [0], [0], [0, 0, 1, 0], [], []>} : vector<64x64xf32>, vector<64x64xf32>, vector<64x64xf32> -> vector<64x64xf32>
    %cst_167 = arith.constant dense<0.000000e+00> : vector<64x64xf32>
    %377 = tpu.matmul %349, %375, %cst_167 {dimension_numbers = #tpu.dot_dimension_numbers<[1], [0], [0], [1], [0, 0, 1, 1], [], []>} : vector<64x64xf32>, vector<64x64xf32>, vector<64x64xf32> -> vector<64x64xf32>
    %378 = arith.addf %376, %377 : vector<64x64xf32>
    %cst_168 = arith.constant dense<0.000000e+00> : vector<64x64xf32>
    %379 = tpu.matmul %351, %344, %cst_168 {dimension_numbers = #tpu.dot_dimension_numbers<[1], [0], [0], [1], [0, 0, 1, 1], [], []>} : vector<64x64xf32>, vector<64x64xf32>, vector<64x64xf32> -> vector<64x64xf32>
    %380 = arith.addf %378, %379 : vector<64x64xf32>
    %381 = vector.broadcast %345 : vector<1x64xf32> to vector<64x64xf32>
    %382 = arith.mulf %347, %381 : vector<64x64xf32>
    %383 = vector.broadcast %345 : vector<1x64xf32> to vector<64x64xf32>
    %384 = arith.mulf %342, %383 : vector<64x64xf32>
    %cst_169 = arith.constant dense<0.000000e+00> : vector<64x64xf32>
    %385 = tpu.matmul %375, %384, %cst_169 {dimension_numbers = #tpu.dot_dimension_numbers<[0], [0], [1], [1], [0, 1, 1, 1], [], []>} : vector<64x64xf32>, vector<64x64xf32>, vector<64x64xf32> -> vector<64x64xf32>
    %386 = arith.addf %382, %385 : vector<64x64xf32>
    %387 = vector.broadcast %345 : vector<1x64xf32> to vector<64x64xf32>
    %388 = arith.mulf %341, %387 : vector<64x64xf32>
    %cst_170 = arith.constant dense<0.000000e+00> : vector<64x64xf32>
    %389 = tpu.matmul %344, %388, %cst_170 {dimension_numbers = #tpu.dot_dimension_numbers<[0], [0], [1], [1], [0, 1, 1, 1], [], []>} : vector<64x64xf32>, vector<64x64xf32>, vector<64x64xf32> -> vector<64x64xf32>
    %390 = arith.addf %386, %389 : vector<64x64xf32>
    %c1_171 = arith.constant 1 : index
    %c0_172 = arith.constant 0 : index
    %c0_173 = arith.constant 0 : index
    %391 = vector.load %arg15[%c1_171, %c0_172, %c0_173] : memref<2x64x64xf32, #tpu.memory_space<vmem>>, vector<1x64x64xf32>
    %392 = vector.shape_cast %391 : vector<1x64x64xf32> to vector<64x64xf32>
    %393 = vector.shape_cast %390 : vector<64x64xf32> to vector<1x64x64xf32>
    tpu.vector_store %arg15[%c1_171, %c0_172, %c0_173], %393 {strides = array<i32>} : memref<2x64x64xf32, #tpu.memory_space<vmem>>, vector<1x64x64xf32>,
    %394 = tpu.concatenate %326, %380 in 1 : vector<64x64xf32>, vector<64x64xf32> -> vector<64x128xf32>
    %cst_174 = arith.constant dense<0.000000e+00> : vector<64x128xf32>
    %395 = tpu.matmul %394, %23, %cst_174 {dimension_numbers = #tpu.dot_dimension_numbers<[1], [0], [0], [1], [0, 0, 1, 1], [], []>} : vector<64x128xf32>, vector<128x128xf32>, vector<64x128xf32> -> vector<64x128xf32>
    %cst_175 = arith.constant 1.562500e-02 : f32
    %396 = vector.broadcast %cst_175 : f32 to vector<64x128xf32>
    %397 = arith.mulf %395, %396 : vector<64x128xf32>
    %398 = arith.subf %394, %397 : vector<64x128xf32>
    %399 = arith.mulf %398, %398 : vector<64x128xf32>
    %cst_176 = arith.constant dense<0.000000e+00> : vector<64x128xf32>
    %400 = tpu.matmul %399, %23, %cst_176 {dimension_numbers = #tpu.dot_dimension_numbers<[1], [0], [0], [1], [0, 0, 1, 1], [], []>} : vector<64x128xf32>, vector<128x128xf32>, vector<64x128xf32> -> vector<64x128xf32>
    %cst_177 = arith.constant 1.562500e-02 : f32
    %401 = vector.broadcast %cst_177 : f32 to vector<64x128xf32>
    %402 = arith.mulf %400, %401 : vector<64x128xf32>
    %cst_178 = arith.constant 6.400000e-04 : f32
    %403 = vector.broadcast %cst_178 : f32 to vector<64x128xf32>
    %404 = arith.addf %402, %403 : vector<64x128xf32>
    %405 = math.rsqrt %404 : vector<64x128xf32>
    %406 = arith.mulf %398, %405 : vector<64x128xf32>
    %407 = vector.broadcast %26 : vector<1x128xf32> to vector<64x128xf32>
    %408 = arith.mulf %406, %407 : vector<64x128xf32>
    %409 = vector.broadcast %27 : vector<1x128xf32> to vector<64x128xf32>
    %410 = arith.addf %408, %409 : vector<64x128xf32>
    %411 = arith.mulf %285, %240 : vector<64x128xf32>
    %412 = arith.addf %410, %411 : vector<64x128xf32>
    %413 = arith.mulf %412, %248 : vector<64x128xf32>
    %414 = arith.truncf %413 : vector<64x128xf32> to vector<64x128xbf16>
    %c0_179 = arith.constant 0 : index
    %415 = arith.index_cast %225 : i32 to index
    %c0_180 = arith.constant 0 : index
    %416 = vector.load %arg14[%c0_179, %415, %c0_180] : memref<1x128x128xbf16, #tpu.memory_space<vmem>>, vector<1x64x128xbf16>
    %417 = vector.shape_cast %416 : vector<1x64x128xbf16> to vector<64x128xbf16>
    %418 = vector.shape_cast %414 : vector<64x128xbf16> to vector<1x64x128xbf16>
    tpu.vector_store %arg14[%c0_179, %415, %c0_180], %418 {strides = array<i32>} : memref<1x128x128xbf16, #tpu.memory_space<vmem>>, vector<1x64x128xbf16>,
    %c2_i32 = arith.constant 2 : i32
    return
  }
  func.func @transform_0(%arg0: i32, %arg1: i32, %arg2: i32) -> (i32, i32, i32) {
    %c0_i32 = arith.constant 0 : i32
    return %arg0, %arg2, %arg1 : i32, i32, i32
  }
  func.func @transform_1(%arg0: i32, %arg1: i32, %arg2: i32) -> (i32, i32, i32) {
    %c0_i32 = arith.constant 0 : i32
    return %arg0, %arg2, %arg1 : i32, i32, i32
  }
  func.func @transform_2(%arg0: i32, %arg1: i32, %arg2: i32) -> (i32, i32, i32) {
    %c0_i32 = arith.constant 0 : i32
    return %arg0, %arg2, %arg1 : i32, i32, i32
  }
  func.func @transform_3(%arg0: i32, %arg1: i32, %arg2: i32) -> (i32, i32, i32) {
    %c0_i32 = arith.constant 0 : i32
    return %arg0, %arg2, %arg1 : i32, i32, i32
  }
  func.func @transform_4(%arg0: i32, %arg1: i32, %arg2: i32) -> (i32, i32, i32) {
    %c0_i32 = arith.constant 0 : i32
    return %arg0, %arg2, %arg1 : i32, i32, i32
  }
  func.func @transform_5(%arg0: i32, %arg1: i32, %arg2: i32) -> (i32, i32, i32) {
    %c0_i32 = arith.constant 0 : i32
    return %arg0, %arg2, %arg1 : i32, i32, i32
  }
  func.func @transform_6(%arg0: i32, %arg1: i32, %arg2: i32) -> (i32, i32) {
    %c0_i32 = arith.constant 0 : i32
    %c0_i32_0 = arith.constant 0 : i32
    return %c0_i32, %arg1 : i32, i32
  }
  func.func @transform_7(%arg0: i32, %arg1: i32, %arg2: i32) -> (i32, i32) {
    %c0_i32 = arith.constant 0 : i32
    %c0_i32_0 = arith.constant 0 : i32
    return %c0_i32, %arg1 : i32, i32
  }
  func.func @transform_8(%arg0: i32, %arg1: i32, %arg2: i32) -> (i32, i32) {
    %c0_i32 = arith.constant 0 : i32
    %c0_i32_0 = arith.constant 0 : i32
    return %c0_i32, %arg1 : i32, i32
  }
  func.func @transform_9(%arg0: i32, %arg1: i32, %arg2: i32) -> (i32, i32) {
    %c0_i32 = arith.constant 0 : i32
    %c0_i32_0 = arith.constant 0 : i32
    return %c0_i32, %arg1 : i32, i32
  }
  func.func @transform_10(%arg0: i32, %arg1: i32, %arg2: i32) -> (i32, i32) {
    %c0_i32 = arith.constant 0 : i32
    %c0_i32_0 = arith.constant 0 : i32
    return %c0_i32, %arg1 : i32, i32
  }
  func.func @transform_11(%arg0: i32, %arg1: i32, %arg2: i32) -> (i32, i32, i32) {
    %c0_i32 = arith.constant 0 : i32
    return %arg0, %arg2, %arg1 : i32, i32, i32
  }
}

</mosaic_0001>

<bundles_post_ra>
// kernel: run_wkv7.1
= control target key start
LH: loop header
LB: loop body
LE: loop exit
PB: predicated region body
PF: predicated region fallthrough
CT: control target
= control target key end

     0   :  { %s30618_s0 = inlined_call_operand.hbm [shape: bf16[2,256,128], index: 0, kind: input, shape index: {}]   ;;  %s30619_s1 = inlined_call_operand.hbm [shape: f32[2,256,128], index: 1, kind: input, shape index: {}]   ;;  %s30620_s2 = inlined_call_operand.hbm [shape: bf16[2,256,128], index: 2, kind: input, shape index: {}]   ;;  %s30621_s3 = inlined_call_operand.hbm [shape: bf16[2,256,128], index: 3, kind: input, shape index: {}]   ;;  %s30622_s4 = inlined_call_operand.hbm [shape: bf16[2,256,128], index: 4, kind: input, shape index: {}]   ;;  %s30623_s5 = inlined_call_operand.hbm [shape: bf16[2,256,128], index: 5, kind: input, shape index: {}]   ;;  %s30624_s6 = inlined_call_operand.hbm [shape: f32[1,128], index: 6, kind: input, shape index: {}]   ;;  %s30625_s7 = inlined_call_operand.hbm [shape: f32[1,128], index: 7, kind: input, shape index: {}]   ;;  %s30626_s8 = inlined_call_operand.hbm [shape: f32[1,128], index: 8, kind: input, shape index: {}]   ;;  %s30627_s9 = inlined_call_operand.hbm [shape: f32[1,128], index: 9, kind: input, shape index: {}]   ;;  %s30628_s10 = inlined_call_operand.hbm [shape: f32[1,128], index: 10, kind: input, shape index: {}]   ;;  %s30629_s11 = inlined_call_operand.hbm [shape: bf16[2,256,128], index: 11, kind: output, shape index: {}]  }
   0x1   :  { %30937 = sst [smem:[#allocation143_spill]] %s30619_s1 }
   0x2   :  { %30938 = sst [smem:[#allocation144_spill]] %s30623_s5 }
   0x3   :  { %30939 = sst [smem:[#allocation145_spill]] %s30624_s6 }
   0x4   :  { %30940 = sst [smem:[#allocation146_spill]] %s30625_s7 }
   0x5   :  { %30941 = sst [smem:[#allocation147_spill]] %s30627_s9 }
   0x6   :  { %30942 = sst [smem:[#allocation148_spill]] %s30629_s11 }
   0x7   :  { %16 = vsyncpa [#allocation4], 0 }
   0x8   :  { %18 = vsyncpa [#allocation4 + $0x1], 0 }
   0x9   :  { %19 = vsyncpa [#allocation7], 0 }
   0xa   :  { %21 = vsyncpa [#allocation7 + $0x1], 0 }
   0xb   :  { %22 = vsyncpa [#allocation10], 0 }
   0xc   :  { %24 = vsyncpa [#allocation10 + $0x1], 0 }
   0xd   :  { %25 = vsyncpa [#allocation13], 0 }
   0xe   :  { %27 = vsyncpa [#allocation13 + $0x1], 0 }
   0xf   :  { %28 = vsyncpa [#allocation16], 0 }
  0x10   :  { %29 = vsyncpa [#allocation19], 0 }
  0x11   :  { %30 = vsyncpa [#allocation5], 0 }
  0x12   :  { %32 = vsyncpa [#allocation5 + $0x1], 0  ;;  %s24580_s17 = smov 0   ;;  %s24582_s18 = smov 0  }
  0x13   :  { %s24584_s19 = smov 0   ;;  %s24586_s20 = smov 0  }
  0x14   :  { %s24588_s21 = smov 0   ;;  %s24590_s22 = smov 0  }
  0x15   :  { %s24592_s23 = smov 0   ;;  %s24594_s24 = smov 0  }
  0x16 LB: > { %30943 = sst [smem:[#allocation30_spill]] %s24468_s17  ;;  %s24621_s25 = sadd.s32 4294967295, %s24496_s24   ;;  %s24496_s24 = sphi %s24594_s24, %s38_s24   ;;  %s24492_s23 = sphi %s24592_s23, %s31580_s23   ;;  %s24488_s22 = sphi %s24590_s22, %s31583_s22   ;;  %s24484_s21 = sphi %s24588_s21, %s31578_s21   ;;  %s24480_s20 = sphi %s24586_s20, %s31577_s20   ;;  %s24476_s19 = sphi %s24584_s19, %s31576_s19   ;;  %s24472_s18 = sphi %s24582_s18, %s31582_s18   ;;  %s24468_s17 = sphi %s24580_s17, %s31581_s17  }
  0x17   : > { %30944 = sst [smem:[#allocation31_spill]] %s24476_s19  ;;  %p15411_p0 = scmp.ge.s32.totalorder %s24496_s24, 1 }
  0x18   : > { %30945 = sst [smem:[#allocation32_spill]] %s24480_s20  ;;  %p30631_p1 = scmp.eq.s32.totalorder %s24621_s25, 0 }
  0x19   : > { %30946 = sst [smem:[#allocation33_spill]] %s24484_s21  ;;  %p402_p2 = scmp.lt.s32.totalorder %s24496_s24, 5 }
  0x1a   : > { %30947 = sst [smem:[#allocation34_spill]] %s24488_s22  ;;  %s24498_s27 = smov [#allocation14]  }
  0x1b   : > { %30948 = sst [smem:[#allocation35_spill]] %s24492_s23  ;;  %p24626_p3 = pnand %p15411_p0, %p402_p2 }
  0x1c   : > { %30949 = sst [smem:[#allocation36_spill]] %s24496_s24  ;;  %s417_s28 = sshll.u32 %s24498_s27, 4  ;;  %s418_s28 = int_to_ptr.vmem [resolvable:$true] %s417_s28 }
  0x1d   : > { %s30950_s26 = scalar_select %p24626_p3, 1, 0 }
  0x1e   : > { %p23479_p4 = pneg %p24626_p3  ;;  %s24499_s29 = smov [#allocation15]  }
  0x1f   : > { %30951 = sst [smem:[#allocation37_spill]] %s30950_s26  ;;  %s430_s30 = sshll.u32 %s24499_s29, 4  ;;  %s24638_s30 = int_to_ptr.vmem [resolvable:$true] %s430_s30 }
  0x20   : > { %p24634_p5 = pnand %p23479_p4, %p30631_p1  ;;  %s24500_s13 = smov [#allocation18]  }
  0x21   : > { %s456_s14 = sshll.u32 %s24500_s13, 4  ;;  %s30953_s6 = sld [smem:[#allocation145_spill]]  ;;  %s24640_s14 = int_to_ptr.vmem [resolvable:$true] %s456_s14 }
  0x22   : > { %s30952_s12 = scalar_select %p24634_p5, 1, 0 }
  0x23   : > { %p24650_p7 = pneg %p24634_p5 }
  0x25   : > { %s30954_s29 = scalar_select %p24650_p7, 1, 0 }
  0x27   : > { %s24054_s27 = scalar_lea.hbm %s30953_s6, 16 }
  0x28   : > { %p24055_p6 = scmp.ne.s32.totalorder %s30953_s6, %s24054_s27  ;;  %p24061_p10 = scmp.lt.u32.totalorder %s24054_s27, %s30953_s6 }
  0x2a   : > { %p24057_p8 = pnand %p24650_p7, %p24055_p6 }
  0x2c   : > { %p24058_p9 = pneg %p24057_p8 }
  0x2e   : > { %p24063_p11 = pnand %p24061_p10, %p24058_p9 }
  0x30   : > { %24066 = shalt.err (!%p24063_p11)
}
  0x31   : > { %s24067_s15 = scalar_lea.vmem %s418_s28, 16  ;;  %s24074_s11 = scalar_lea.vmem %s418_s28, 32 }
  0x32   : > { %p24068_p12 = scmp.ne.s32.totalorder %s418_s28, %s24067_s15  ;;  %p24075_p2 = scmp.lt.s32.totalorder %s418_s28, %s418_s28 }
  0x33   : > { %p24076_p4 = scmp.lt.s32.totalorder %s24074_s11, %s24067_s15 }
  0x34   : > { %p24070_p13 = pnand %p24068_p12, %p24650_p7 }
  0x35   : > { %p24077_p1 = por %p24076_p4, %p24075_p2 }
  0x36   : > { %p24071_p0 = pneg %p24070_p13 }
  0x38   : > { %p24078_p3 = pnand %p24077_p1, %p24071_p0 }
  0x3a   : > { %24081 = shalt.err (!%p24078_p3)
}
  0x3b   : > { %23482 = dma.hbm_to_vmem [thread:$0]  (!%p24634_p5), %s30953_s6, 16, %s418_s28, [#allocation13]  }
  0x3c   : > { %s30955_s7 = sld [smem:[#allocation146_spill]] }
  0x42   : > { %s24082_s13 = scalar_lea.hbm %s30955_s7, 16 }
  0x43   : > { %p24083_p6 = scmp.ne.s32.totalorder %s30955_s7, %s24082_s13  ;;  %p24089_p1 = scmp.lt.u32.totalorder %s24082_s13, %s30955_s7 }
  0x45   : > { %p24085_p8 = pnand %p24083_p6, %p24650_p7 }
  0x47   : > { %p24086_p9 = pneg %p24085_p8 }
  0x49   : > { %p24091_p3 = pnand %p24089_p1, %p24086_p9 }
  0x4b   : > { %24094 = shalt.err (!%p24091_p3)
}
  0x4c   : > { %s24095_s28 = scalar_lea.vmem %s24638_s30, 16  ;;  %s24102_s5 = scalar_lea.vmem %s24638_s30, 32 }
  0x4d   : > { %p24096_p10 = scmp.ne.s32.totalorder %s24638_s30, %s24095_s28  ;;  %p24103_p13 = scmp.lt.s32.totalorder %s24638_s30, %s24638_s30 }
  0x4e   : > { %p24104_p0 = scmp.lt.s32.totalorder %s24102_s5, %s24095_s28 }
  0x4f   : > { %p24098_p11 = pnand %p24096_p10, %p24650_p7 }
  0x50   : > { %p24105_p2 = por %p24104_p0, %p24103_p13 }
  0x51   : > { %p24099_p12 = pneg %p24098_p11 }
  0x53   : > { %p24106_p4 = pnand %p24105_p2, %p24099_p12 }
  0x55   : > { %24109 = shalt.err (!%p24106_p4)
}
  0x56   : > { %23485 = dma.hbm_to_vmem [thread:$0]  (!%p24634_p5), %s30955_s7, 16, %s24638_s30, [#allocation16]  }
  0x57   : > { %s30956_s9 = sld [smem:[#allocation147_spill]] }
  0x5d   : > { %s24110_s27 = scalar_lea.hbm %s30956_s9, 16 }
  0x5e   : > { %p24111_p6 = scmp.ne.s32.totalorder %s30956_s9, %s24110_s27  ;;  %p24117_p1 = scmp.lt.u32.totalorder %s24110_s27, %s30956_s9 }
  0x60   : > { %p24113_p8 = pnand %p24111_p6, %p24650_p7 }
  0x62   : > { %p24114_p9 = pneg %p24113_p8 }
  0x64   : > { %p24119_p3 = pnand %p24117_p1, %p24114_p9 }
  0x66   : > { %24122 = shalt.err (!%p24119_p3)
}
  0x67   : > { %s24123_s30 = scalar_lea.vmem %s24640_s14, 16  ;;  %s24130_s5 = scalar_lea.vmem %s24640_s14, 32 }
  0x68   : > { %p24124_p10 = scmp.ne.s32.totalorder %s24640_s14, %s24123_s30  ;;  %p24131_p13 = scmp.lt.s32.totalorder %s24640_s14, %s24640_s14 }
  0x69   : > { %p24132_p0 = scmp.lt.s32.totalorder %s24130_s5, %s24123_s30 }
  0x6a   : > { %p24126_p11 = pnand %p24124_p10, %p24650_p7 }
  0x6b   : > { %p24133_p2 = por %p24132_p0, %p24131_p13 }
  0x6c   : > { %p24127_p12 = pneg %p24126_p11 }
  0x6e   : > { %p24134_p4 = pnand %p24133_p2, %p24127_p12 }
  0x70   : > { %24137 = shalt.err (!%p24134_p4)
}
  0x71   : > { %23491 = dma.hbm_to_vmem [thread:$0]  (!%p24634_p5), %s30956_s9, 16, %s24640_s14, [#allocation19]  }
  0x72   : > { %s15410_s16 = sadd.s32 4294967294, %s24496_s24   ;;  %s50_s20 = sadd.s32 1, %s24488_s22 }
  0x73   : > { %s57_s27 = sadd.s32 1, %s24492_s23  ;;  %p51_p6 = scmp.ge.s32.totalorder %s50_s20, 2 }
  0x74   : > { %s68_s13 = sadd.s32 1, %s24476_s19  ;;  %p75_p8 = scmp.ne.s32.totalorder %s24476_s19, %s24472_s18 }
  0x75   : > { %p76_p9 = scmp.eq.s32.totalorder %s24496_s24, 0  ;;  %s31585_s20 = smov (%p51_p6, %s50_s20), 0 }
  0x76   : > { %30957 = sst [smem:[#allocation38_spill]] %s31585_s20  ;;  %s31587_s27 = smov (!%p51_p6, %s57_s27), %s24492_s23 }
  0x77   : > { %s62_s15 = ssub.s32 %s24488_s22, %s31585_s20  ;;  %p24726_p1 = por %p76_p9, %p75_p8 }
  0x78   : > { %p59_p3 = scmp.ge.s32.totalorder %s31587_s27, 2  ;;  %p81_p10 = scmp.ne.s32.totalorder %s24472_s18, %s24468_s17 }
  0x79   : > { %p389_p11 = scmp.eq.s32.totalorder %s24621_s25, 3  ;;  %p395_p12 = scmp.eq.s32.totalorder %s15410_s16, 3 }
  0x7a   : > { %s31589_s27 = smov (%p59_p3, %s31587_s27), 0  ;;  %p30960_p13 = scmp.eq.s32.totalorder %s24621_s25, 0 }
  0x7b   : > { %30959 = sst [smem:[#allocation39_spill]] %s31589_s27  ;;  %p24741_p2 = por %p389_p11, %p75_p8 }
  0x7c   : > { %p24737_p0 = por %p30960_p13, %p81_p10  ;;  %s61_s30 = ssub.s32 %s24492_s23, %s31589_s27 }
  0x7d   : > { %s30962_s28 = scalar_select %p24741_p2, 1, 0 }
  0x7e   : > { %s30961_s14 = scalar_select %p24737_p0, 1, 0 }
  0x7f   : > { %30963 = sst [smem:[#allocation40_spill]] %s30962_s28  ;;  %p24747_p4 = por %p395_p12, %p81_p10 }
  0x80   : > { %s63_s26 = sor.u32 %s62_s15, %s61_s30  ;;  %p23523_p6 = scmp.lt.s32.totalorder %s24496_s24, 4 }
  0x81   : > { %s30964_s5 = scalar_select %p24747_p4, 1, 0 }
  0x82   : > { %p66_p9 = scmp.eq.s32.totalorder %s63_s26, 0  ;;  %s24753_s21 = sand.u32 1, %s24476_s19  }
  0x83   : > { %30965 = sst [smem:[#allocation41_spill]] %s30964_s5  ;;  %s24756_s16 = sshll.u32 %s24753_s21, 6 }
  0x84   : > { %s15419_s6 = sshll.u32 %s24488_s22, 4  ;;  %s15420_s9 = sshll.u32 %s24492_s23, 5 }
  0x85   : > { %s24760_s7 = scalar_select %p66_p9, %s24476_s19, %s68_s13  }
  0x86   : > { %p24765_p8 = pnand %p23523_p6, %p24726_p1  ;;  %s491_s20 = sadd.s32 %s15420_s9, %s15419_s6 }
  0x87   : > { %30966 = sst [smem:[#allocation42_spill]] %s24760_s7  ;;  %s24770_s15 = sand.u32 1, %s24496_s24  }
  0x88   : > { %s30967_s27 = scalar_select %p24765_p8, 1, 0 }
  0x89   : > { %s24772_s30 = sshll.u32 %s491_s20, 6  ;;  %s15422_s26 = sshll.u32 %s24753_s21, 7 }
  0x8a   : > { %s15425_s5 = sshll.u32 %s491_s20, 7  ;;  %s30968_s1 = sld [smem:[#allocation143_spill]] }
  0x8b   : > { %s508_s11 = scalar_lea.vmem [#allocation6], %s15422_s26  ;;  %s30652_s6 = scalar_lea.sflag [#allocation7], %s24770_s15 }
  0x8c   : > { %s518_s23 = sshll.u32 %s508_s11, 4  ;;  %p24787_p3 = pneg %p24765_p8  ;;  %s24780_s23 = int_to_ptr.vmem [resolvable:$true] %s518_s23 }
  0x8e   : > { %s30969_s22 = scalar_select %p24787_p3, 1, 0 }
  0x90   : > { %s24778_s13 = scalar_lea.hbm %s30968_s1, %s15425_s5  ;;  %s24143_s28 = scalar_lea.hbm %s30968_s1, 8192 }
  0x91   : > { %s24138_s9 = scalar_lea.hbm %s24778_s13, 2048  ;;  %p24144_p12 = scmp.lt.u32.totalorder %s24778_s13, %s30968_s1 }
  0x92   : > { %p24139_p1 = scmp.ne.s32.totalorder %s24778_s13, %s24138_s9  ;;  %p24145_p13 = scmp.lt.u32.totalorder %s24143_s28, %s24138_s9 }
  0x93   : > { %p24147_p9 = scmp.lt.u32.totalorder %s24138_s9, %s24778_s13 }
  0x94   : > { %p24141_p10 = pnand %p24787_p3, %p24139_p1  ;;  %p24146_p6 = por %p24145_p13, %p24144_p12 }
  0x96   : > { %p24142_p11 = pneg %p24141_p10  ;;  %p24148_p4 = por %p24147_p9, %p24146_p6 }
  0x98   : > { %p24149_p2 = pnand %p24148_p4, %p24142_p11 }
  0x9a   : > { %24152 = shalt.err (!%p24149_p2)
}
  0x9b   : > { %s24153_s11 = scalar_lea.vmem %s24780_s23, 2048  ;;  %s24501_s17 = smov [#allocation6]  }
  0x9c   : > { %p24154_p1 = scmp.ne.s32.totalorder %s24780_s23, %s24153_s11  ;;  %s24158_s20 = sshll.u32 %s24501_s17, 4  ;;  %s24159_s20 = int_to_ptr.vmem [resolvable:$false] %s24158_s20 }
  0x9d   : > { %s24160_s5 = scalar_lea.vmem %s24159_s20, 4096  ;;  %p24161_p5 = scmp.lt.s32.totalorder %s24780_s23, %s24159_s20 }
  0x9e   : > { %p24156_p10 = pnand %p24154_p1, %p24787_p3  ;;  %p24162_p7 = scmp.lt.s32.totalorder %s24160_s5, %s24153_s11 }
  0xa0   : > { %p24157_p0 = pneg %p24156_p10  ;;  %p24163_p12 = por %p24162_p7, %p24161_p5 }
  0xa2   : > { %p24164_p13 = pnand %p24163_p12, %p24157_p0 }
  0xa4   : > { %24167 = shalt.err (!%p24164_p13)
}
  0xa5   : > { %s24502_s9 = smov 128   ;;  %s24503_s28 = smov 8  }
  0xa6   : > { %23501 = dma.hbm_to_vmem [thread:$0]  (!%p24765_p8), %s24778_s13, 2048, %s24780_s23, %s30652_s6, %s24502_s9, %s24502_s9, %s24503_s28  }
  0xa7   : > { %s24816_s11 = scalar_lea.hbm %s30621_s3, %s24772_s30  ;;  %s556_s20 = scalar_lea.vmem [#allocation9], %s24756_s16 }
  0xa8   : > { %s566_s5 = sshll.u32 %s556_s20, 4  ;;  %s24504_s1 = smov [#allocation17]   ;;  %s24819_s5 = int_to_ptr.vmem [resolvable:$true] %s566_s5 }
  0xa9   : > { %s24821_s7 = sshll.u32 %s24504_s1, 4  ;;  %s30655_s19 = scalar_lea.sflag [#allocation10], %s24770_s15  ;;  %s444_s7 = int_to_ptr.vmem [resolvable:$true] %s24821_s7 }
  0xaa   : > { %s24168_s24 = scalar_lea.hbm %s24816_s11, 1024  ;;  %s24173_s9 = scalar_lea.hbm %s30621_s3, 4096 }
  0xab   : > { %p24169_p5 = scmp.ne.s32.totalorder %s24816_s11, %s24168_s24  ;;  %p24174_p2 = scmp.lt.u32.totalorder %s24816_s11, %s30621_s3 }
  0xac   : > { %p24175_p4 = scmp.lt.u32.totalorder %s24173_s9, %s24168_s24  ;;  %p24177_p6 = scmp.lt.u32.totalorder %s24168_s24, %s24816_s11 }
  0xad   : > { %p24171_p7 = pnand %p24169_p5, %p24787_p3 }
  0xae   : > { %p24176_p11 = por %p24175_p4, %p24174_p2 }
  0xaf   : > { %p24172_p0 = pneg %p24171_p7 }
  0xb0   : > { %p24178_p9 = por %p24177_p6, %p24176_p11 }
  0xb2   : > { %p24179_p1 = pnand %p24178_p9, %p24172_p0 }
  0xb4   : > { %24182 = shalt.err (!%p24179_p1)
}
  0xb5   : > { %s24183_s1 = scalar_lea.vmem %s24819_s5, 1024  ;;  %s24505_s17 = smov [#allocation9]  }
  0xb6   : > { %p24184_p10 = scmp.ne.s32.totalorder %s24819_s5, %s24183_s1  ;;  %s24188_s20 = sshll.u32 %s24505_s17, 4  ;;  %s24189_s20 = int_to_ptr.vmem [resolvable:$false] %s24188_s20 }
  0xb7   : > { %s24190_s23 = scalar_lea.vmem %s24189_s20, 2048  ;;  %p24191_p5 = scmp.lt.s32.totalorder %s24819_s5, %s24189_s20 }
  0xb8   : > { %p24186_p12 = pnand %p24184_p10, %p24787_p3  ;;  %p24192_p7 = scmp.lt.s32.totalorder %s24190_s23, %s24183_s1 }
  0xba   : > { %p24187_p13 = pneg %p24186_p12  ;;  %p24193_p2 = por %p24192_p7, %p24191_p5 }
  0xbc   : > { %p24194_p4 = pnand %p24193_p2, %p24187_p13 }
  0xbe   : > { %24197 = shalt.err (!%p24194_p4)
}
  0xbf   : > { %s24506_s24 = smov 64   ;;  %s24507_s13 = smov 4  }
  0xc0   : > { %23507 = dma.hbm_to_vmem [thread:$0]  (!%p24765_p8), %s24816_s11, 1024, %s24819_s5, %s30655_s19, %s24506_s24, %s24506_s24, %s24507_s13  }
  0xc1   : > { %s24198_s26 = scalar_lea.hbm %s30626_s8, 16  ;;  %p30970_p11 = scmp.ne.s32.totalorder %s30954_s29, 0 }
  0xc2   : > { %p24199_p0 = scmp.ne.s32.totalorder %s30626_s8, %s24198_s26  ;;  %p24205_p1 = scmp.lt.u32.totalorder %s24198_s26, %s30626_s8 }
  0xc4   : > { %p24201_p6 = pnand %p24199_p0, %p30970_p11 }
  0xc6   : > { %p24202_p9 = pneg %p24201_p6 }
  0xc8   : > { %p24207_p10 = pnand %p24205_p1, %p24202_p9 }
  0xca   : > { %24210 = shalt.err (!%p24207_p10)
}
  0xcb   : > { %s24211_s6 = scalar_lea.vmem %s444_s7, 16  ;;  %s24218_s11 = scalar_lea.vmem %s444_s7, 32 }
  0xcc   : > { %p24212_p12 = scmp.ne.s32.totalorder %s444_s7, %s24211_s6  ;;  %p24219_p7 = scmp.lt.s32.totalorder %s444_s7, %s444_s7 }
  0xcd   : > { %p24220_p2 = scmp.lt.s32.totalorder %s24218_s11, %s24211_s6 }
  0xce   : > { %p24214_p13 = pnand %p24212_p12, %p30970_p11 }
  0xcf   : > { %p24221_p4 = por %p24220_p2, %p24219_p7 }
  0xd0   : > { %p24215_p5 = pneg %p24214_p13 }
  0xd2   : > { %p24222_p8 = pnand %p24221_p4, %p24215_p5 }
  0xd4   : > { %24225 = shalt.err (!%p24222_p8)
}
  0xd5   : > { %p30971_p0 = scmp.ne.s32.totalorder %s30952_s12, 0  ;;  %s24508_s28 = smov [#allocation20]  }
  0xd6   : > { %s469_s26 = sshll.u32 %s24508_s28, 4  ;;  %s24226_s20 = scalar_lea.hbm %s30628_s10, 16  ;;  %s470_s26 = int_to_ptr.vmem [resolvable:$true] %s469_s26 }
  0xd7   : > { %23488 = dma.hbm_to_vmem [thread:$0]  (!%p30971_p0), %s30626_s8, 16, %s444_s7, [#allocation16]  }
  0xd8   : > { %p24227_p6 = scmp.ne.s32.totalorder %s30628_s10, %s24226_s20  ;;  %p24233_p1 = scmp.lt.u32.totalorder %s24226_s20, %s30628_s10 }
  0xda   : > { %p24229_p8 = pnand %p24227_p6, %p30970_p11 }
  0xdc   : > { %p24230_p9 = pneg %p24229_p8 }
  0xde   : > { %p24235_p10 = pnand %p24233_p1, %p24230_p9 }
  0xe0   : > { %24238 = shalt.err (!%p24235_p10)
}
  0xe1   : > { %s24239_s7 = scalar_lea.vmem %s470_s26, 16  ;;  %s24246_s5 = scalar_lea.vmem %s470_s26, 32 }
  0xe2   : > { %p24240_p12 = scmp.ne.s32.totalorder %s470_s26, %s24239_s7  ;;  %p24247_p7 = scmp.lt.s32.totalorder %s470_s26, %s470_s26 }
  0xe3   : > { %p24248_p2 = scmp.lt.s32.totalorder %s24246_s5, %s24239_s7 }
  0xe4   : > { %p24242_p13 = pnand %p24240_p12, %p30970_p11 }
  0xe5   : > { %p24249_p4 = por %p24248_p2, %p24247_p7 }
  0xe6   : > { %p24243_p5 = pneg %p24242_p13 }
  0xe8   : > { %p24250_p3 = pnand %p24249_p4, %p24243_p5 }
  0xea   : > { %24253 = shalt.err (!%p24250_p3)
}
  0xeb   : > { %23494 = dma.hbm_to_vmem [thread:$0]  (!%p30971_p0), %s30628_s10, 16, %s470_s26, [#allocation19]  }
  0xec   : > { %s24891_s1 = scalar_lea.hbm %s30618_s0, %s24772_s30  ;;  %s484_s17 = scalar_lea.vmem [#allocation3], %s24756_s16 }
  0xed   : > { %s494_s20 = sshll.u32 %s484_s17, 4  ;;  %s481_s12 = scalar_lea.sflag [#allocation4], %s24753_s21  ;;  %s24894_s20 = int_to_ptr.vmem [resolvable:$true] %s494_s20 }
  0xee   : > { %s24254_s23 = scalar_lea.hbm %s24891_s1, 1024  ;;  %p30972_p11 = scmp.ne.s32.totalorder %s30969_s22, 0 }
  0xef   : > { %p24255_p3 = scmp.ne.s32.totalorder %s24891_s1, %s24254_s23  ;;  %s24259_s11 = scalar_lea.hbm %s30618_s0, 4096 }
  0xf0   : > { %p24260_p0 = scmp.lt.u32.totalorder %s24891_s1, %s30618_s0  ;;  %p24261_p9 = scmp.lt.u32.totalorder %s24259_s11, %s24254_s23 }
  0xf1   : > { %p24257_p6 = pnand %p24255_p3, %p30972_p11  ;;  %p24263_p10 = scmp.lt.u32.totalorder %s24254_s23, %s24891_s1 }
  0xf2   : > { %p24262_p1 = por %p24261_p9, %p24260_p0 }
  0xf3   : > { %p24258_p8 = pneg %p24257_p6 }
  0xf4   : > { %p24264_p12 = por %p24263_p10, %p24262_p1 }
  0xf6   : > { %p24265_p13 = pnand %p24264_p12, %p24258_p8 }
  0xf8   : > { %24268 = shalt.err (!%p24265_p13)
}
  0xf9   : > { %s24269_s19 = scalar_lea.vmem %s24894_s20, 1024  ;;  %s24509_s9 = smov [#allocation3]  }
  0xfa   : > { %p24270_p5 = scmp.ne.s32.totalorder %s24894_s20, %s24269_s19  ;;  %s24274_s28 = sshll.u32 %s24509_s9, 4  ;;  %s24275_s28 = int_to_ptr.vmem [resolvable:$false] %s24274_s28 }
  0xfb   : > { %s24276_s29 = scalar_lea.vmem %s24275_s28, 2048  ;;  %p24277_p4 = scmp.lt.s32.totalorder %s24894_s20, %s24275_s28 }
  0xfc   : > { %p24272_p7 = pnand %p24270_p5, %p30972_p11  ;;  %p24278_p3 = scmp.lt.s32.totalorder %s24276_s29, %s24269_s19 }
  0xfe   : > { %p24273_p2 = pneg %p24272_p7  ;;  %p24279_p6 = por %p24278_p3, %p24277_p4 }
 0x100   : > { %p24280_p0 = pnand %p24279_p6, %p24273_p2 }
 0x102   : > { %24283 = shalt.err (!%p24280_p0)
}
 0x103   : > { %p30973_p8 = scmp.ne.s32.totalorder %s30967_s27, 0  ;;  %s24927_s26 = scalar_lea.hbm %s30620_s2, %s24772_s30 }
 0x104   : > { %s532_s6 = scalar_lea.vmem [#allocation8], %s24756_s16  ;;  %s24284_s21 = scalar_lea.hbm %s24927_s26, 1024 }
 0x105   : > { %23498 = dma.hbm_to_vmem [thread:$0]  (!%p30973_p8), %s24891_s1, 1024, %s24894_s20, %s481_s12, %s24506_s24, %s24506_s24, %s24507_s13  }
 0x106   : > { %s542_s11 = sshll.u32 %s532_s6, 4  ;;  %p24285_p9 = scmp.ne.s32.totalorder %s24927_s26, %s24284_s21  ;;  %s24930_s11 = int_to_ptr.vmem [resolvable:$true] %s542_s11 }
 0x107   : > { %s24289_s20 = scalar_lea.hbm %s30620_s2, 4096  ;;  %p24290_p12 = scmp.lt.u32.totalorder %s24927_s26, %s30620_s2 }
 0x108   : > { %p24287_p1 = pnand %p24285_p9, %p30972_p11  ;;  %p24291_p13 = scmp.lt.u32.totalorder %s24289_s20, %s24284_s21 }
 0x109   : > { %p24293_p7 = scmp.lt.u32.totalorder %s24284_s21, %s24927_s26 }
 0x10a   : > { %p24288_p10 = pneg %p24287_p1  ;;  %p24292_p5 = por %p24291_p13, %p24290_p12 }
 0x10c   : > { %p24294_p2 = por %p24293_p7, %p24292_p5 }
 0x10e   : > { %p24295_p4 = pnand %p24294_p2, %p24288_p10 }
 0x110   : > { %24298 = shalt.err (!%p24295_p4)
}
 0x111   : > { %s24299_s19 = scalar_lea.vmem %s24930_s11, 1024  ;;  %s24510_s9 = smov [#allocation8]  }
 0x112   : > { %p24300_p3 = scmp.ne.s32.totalorder %s24930_s11, %s24299_s19  ;;  %s24304_s28 = sshll.u32 %s24510_s9, 4  ;;  %s24305_s28 = int_to_ptr.vmem [resolvable:$false] %s24304_s28 }
 0x113   : > { %s24306_s29 = scalar_lea.vmem %s24305_s28, 2048  ;;  %p24307_p9 = scmp.lt.s32.totalorder %s24930_s11, %s24305_s28 }
 0x114   : > { %p24302_p6 = pnand %p24300_p3, %p30972_p11  ;;  %p24308_p1 = scmp.lt.s32.totalorder %s24306_s29, %s24299_s19 }
 0x116   : > { %p24303_p0 = pneg %p24302_p6  ;;  %p24309_p12 = por %p24308_p1, %p24307_p9 }
 0x118   : > { %p24310_p13 = pnand %p24309_p12, %p24303_p0 }
 0x11a   : > { %24313 = shalt.err (!%p24310_p13)
}
 0x11b   : > { %s30974_s17 = scalar_lea.sflag [#allocation7], %s24770_s15  ;;  %s24962_s21 = scalar_lea.hbm %s30622_s4, %s24772_s30 }
 0x11c   : > { %23504 = dma.hbm_to_vmem [thread:$0]  (!%p30973_p8), %s24927_s26, 1024, %s24930_s11, %s30974_s17, %s24506_s24, %s24506_s24, %s24507_s13  }
 0x11d   : > { %s580_s7 = scalar_lea.vmem [#allocation11], %s24756_s16  ;;  %s24314_s20 = scalar_lea.hbm %s24962_s21, 1024 }
 0x11e   : > { %s590_s1 = sshll.u32 %s580_s7, 4  ;;  %p24315_p10 = scmp.ne.s32.totalorder %s24962_s21, %s24314_s20  ;;  %s24965_s1 = int_to_ptr.vmem [resolvable:$true] %s590_s1 }
 0x11f   : > { %s24319_s11 = scalar_lea.hbm %s30622_s4, 4096  ;;  %p24320_p2 = scmp.lt.u32.totalorder %s24962_s21, %s30622_s4 }
 0x120   : > { %p24317_p5 = pnand %p24315_p10, %p30972_p11  ;;  %p24321_p4 = scmp.lt.u32.totalorder %s24319_s11, %s24314_s20 }
 0x121   : > { %p24323_p6 = scmp.lt.u32.totalorder %s24314_s20, %s24962_s21 }
 0x122   : > { %p24318_p7 = pneg %p24317_p5  ;;  %p24322_p3 = por %p24321_p4, %p24320_p2 }
 0x124   : > { %p24324_p0 = por %p24323_p6, %p24322_p3 }
 0x126   : > { %p24325_p9 = pnand %p24324_p0, %p24318_p7 }
 0x128   : > { %24328 = shalt.err (!%p24325_p9)
}
 0x129   : > { %s24329_s9 = scalar_lea.vmem %s24965_s1, 1024  ;;  %s24511_s28 = smov [#allocation11]  }
 0x12a   : > { %p24330_p1 = scmp.ne.s32.totalorder %s24965_s1, %s24329_s9  ;;  %s24334_s29 = sshll.u32 %s24511_s28, 4  ;;  %s24335_s29 = int_to_ptr.vmem [resolvable:$false] %s24334_s29 }
 0x12b   : > { %s24336_s17 = scalar_lea.vmem %s24335_s29, 2048  ;;  %p24337_p10 = scmp.lt.s32.totalorder %s24965_s1, %s24335_s29 }
 0x12c   : > { %p24332_p12 = pnand %p24330_p1, %p30972_p11  ;;  %p24338_p5 = scmp.lt.s32.totalorder %s24336_s17, %s24329_s9 }
 0x12e   : > { %p24333_p13 = pneg %p24332_p12  ;;  %p24339_p2 = por %p24338_p5, %p24337_p10 }
 0x130   : > { %p24340_p4 = pnand %p24339_p2, %p24333_p13 }
 0x132   : > { %24343 = shalt.err (!%p24340_p4)
}
 0x133   : > { %s30975_s23 = scalar_lea.sflag [#allocation10], %s24770_s15  ;;  %s30976_s20 = sld [smem:[#allocation144_spill]] }
 0x134   : > { %23510 = dma.hbm_to_vmem [thread:$0]  (!%p30973_p8), %s24962_s21, 1024, %s24965_s1, %s30975_s23, %s24506_s24, %s24506_s24, %s24507_s13  }
 0x135   : > { %s604_s11 = scalar_lea.vmem [#allocation12], %s24756_s16  ;;  %s601_s19 = scalar_lea.sflag [#allocation13], %s24770_s15 }
 0x136   : > { %s614_s5 = sshll.u32 %s604_s11, 4  ;;  %s25000_s5 = int_to_ptr.vmem [resolvable:$true] %s614_s5 }
 0x139   : > { %s30977_s12 = smov %s30976_s20  ;;  %s24997_s26 = scalar_lea.hbm %s30976_s20, %s24772_s30 }
 0x13a   : > { %s24344_s9 = scalar_lea.hbm %s24997_s26, 1024  ;;  %s24349_s28 = scalar_lea.hbm %s30977_s12, 4096 }
 0x13b   : > { %p24345_p7 = scmp.ne.s32.totalorder %s24997_s26, %s24344_s9  ;;  %p24350_p0 = scmp.lt.u32.totalorder %s24997_s26, %s30977_s12 }
 0x13c   : > { %p24351_p9 = scmp.lt.u32.totalorder %s24349_s28, %s24344_s9  ;;  %p24353_p12 = scmp.lt.u32.totalorder %s24344_s9, %s24997_s26 }
 0x13d   : > { %p24347_p3 = pnand %p24345_p7, %p30972_p11 }
 0x13e   : > { %p24352_p1 = por %p24351_p9, %p24350_p0 }
 0x13f   : > { %p24348_p6 = pneg %p24347_p3 }
 0x140   : > { %p24354_p13 = por %p24353_p12, %p24352_p1 }
 0x142   : > { %p24355_p10 = pnand %p24354_p13, %p24348_p6 }
 0x144   : > { %24358 = shalt.err (!%p24355_p10)
}
 0x145   : > { %s24359_s16 = scalar_lea.vmem %s25000_s5, 1024  ;;  %s24512_s17 = smov [#allocation12]  }
 0x146   : > { %p24360_p5 = scmp.ne.s32.totalorder %s25000_s5, %s24359_s16  ;;  %s24364_s23 = sshll.u32 %s24512_s17, 4  ;;  %s24365_s23 = int_to_ptr.vmem [resolvable:$false] %s24364_s23 }
 0x147   : > { %s24366_s6 = scalar_lea.vmem %s24365_s23, 2048  ;;  %p24367_p7 = scmp.lt.s32.totalorder %s25000_s5, %s24365_s23 }
 0x148   : > { %p24362_p2 = pnand %p24360_p5, %p30972_p11  ;;  %p24368_p3 = scmp.lt.s32.totalorder %s24366_s6, %s24359_s16 }
 0x14a   : > { %p24363_p4 = pneg %p24362_p2  ;;  %p24369_p0 = por %p24368_p3, %p24367_p7 }
 0x14c   : > { %p24370_p9 = pnand %p24369_p0, %p24363_p4 }
 0x14e   : > { %24373 = shalt.err (!%p24370_p9)
}
 0x14f   : > { %23513 = dma.hbm_to_vmem [thread:$0]  (!%p30973_p8), %s24997_s26, 1024, %s25000_s5, %s601_s19, %s24506_s24, %s24506_s24, %s24507_s13  }
 0x150   : > { %s30978_s22 = sld [smem:[#allocation37_spill]] }
 0x156   : > { %p30979_p11 = scmp.ne.s32.totalorder %s30978_s22, 0 }
 0x158   : > { %626 = sbr.rel (%p30979_p11) target bundleno = 10297 (0x2839), region = 64 }
 0x15f   : > { %s25032_s7 = sand.u32 1, %s24472_s18   ;;  %p30980_p6 = scmp.ne.s32.totalorder %s30961_s14, 0 }
 0x160   : > { %s15443_s20 = sshll.u32 %s25032_s7, 6  ;;  %s629_s11 = scalar_lea.sflag [#allocation4], %s25032_s7 }
 0x161   : > { %s25036_s27 = scalar_lea.vmem [#allocation3], %s15443_s20 }
 0x162   : > { %24435 = dma.done.wait (%p30980_p6), %s629_s11, 1024  }
 0x163   : > { %24437 = vsyncadd (%p30980_p6), %s629_s11, 4294966272  ;;  %s637_s15 = sand.u32 1, %s24621_s25   ;;  %s15444_s24 = sshll.u32 %s25032_s7, 7 }
 0x164   : > { %s638_s13 = scalar_lea.sflag [#allocation7], %s637_s15  ;;  %s25044_s26 = scalar_lea.vmem [#allocation6], %s15444_s24 }
 0x165   : > { %24439 = dma.done.wait (%p30980_p6), %s638_s13, 3072  }
 0x166   : > { %24441 = vsyncadd (%p30980_p6), %s638_s13, 4294964224  ;;  %s25050_s5 = scalar_lea.vmem [#allocation8], %s15443_s20  ;;  %s656_s19 = scalar_lea.sflag [#allocation10], %s637_s15 }
 0x167   : > { %s25052_s9 = scalar_lea.vmem [#allocation9], %s15443_s20 }
 0x168   : > { %24443 = dma.done.wait (%p30980_p6), %s656_s19, 2048  }
 0x169   : > { %24445 = vsyncadd (%p30980_p6), %s656_s19, 4294965248  ;;  %s25058_s21 = scalar_lea.vmem [#allocation11], %s15443_s20  ;;  %s674_s1 = scalar_lea.sflag [#allocation13], %s637_s15 }
 0x16a   : > { %s25060_s28 = scalar_lea.vmem [#allocation12], %s15443_s20 }
 0x16b   : > { %24447 = dma.done.wait (%p30980_p6), %s674_s1, 1024  }
 0x16c   : > { %24449 = vsyncadd (%p30980_p6), %s674_s1, 4294966272  ;;  %p30981_p8 = scmp.eq.s32.totalorder %s24621_s25, 0 }
 0x16e   : > { %24451 = dma.done.wait (%p30981_p8), [#allocation13], 16   ;;  %p30982_p1 = pmov %p30981_p8 }
 0x170   : > { %24453 = vsyncadd (%p30982_p1), [#allocation13], 4294967280  ;;  %p30983_p12 = pmov %p30982_p1 }
 0x171   : > { %p30984_p13 = pmov %p30982_p1 }
 0x172   : > { %24455 = dma.done.wait (%p30983_p12), [#allocation16], 32  }
 0x173   : > { %24457 = vsyncadd (%p30984_p13), [#allocation16], 4294967264  ;;  %p30985_p10 = pmov %p30982_p1 }
 0x174   : > { %p30986_p5 = pmov %p30982_p1 }
 0x175   : > { %24459 = dma.done.wait (%p30985_p10), [#allocation19], 32  }
 0x176   : > { %24461 = vsyncadd (%p30986_p5), [#allocation19], 4294967264  ;;  %s25078_s14 = scalar_lea.vmem [#allocation21], %s15443_s20  ;;  %s30987_s30 = sld [smem:[#allocation32_spill]] }
 0x17c   : > { %p15455_p2 = scmp.ne.s32.totalorder %s30987_s30, 0 }
 0x17d   : > { %vm772_vm0 = vcmask (!%p15455_p2), 523264   ;;  %v24513_v0 = vmov (!%p15455_p2), 0.0  }
 0x17e   : > { %771 = sbr.rel (%p15455_p2) target bundleno = 390 (0x186), region = 112  ;;  %773 = vst.msk [vmem:[#allocation2] sm:$0xff] (!%p15455_p2), %vm772_vm0, %v24513_v0  ;;  %774 = vst.msk [vmem:[#allocation2 + $0x8] sm:$0xff] (!%p15455_p2), %vm772_vm0, %v24513_v0 }
 0x17f   : > { %775 = vst.msk [vmem:[#allocation2 + $0x10] sm:$0xff] (!%p15455_p2), %vm772_vm0, %v24513_v0  ;;  %776 = vst.msk [vmem:[#allocation2 + $0x18] sm:$0xff] (!%p15455_p2), %vm772_vm0, %v24513_v0 }
 0x180   : > { %777 = vst.msk [vmem:[#allocation2 + $0x20] sm:$0xff] (!%p15455_p2), %vm772_vm0, %v24513_v0  ;;  %778 = vst.msk [vmem:[#allocation2 + $0x28] sm:$0xff] (!%p15455_p2), %vm772_vm0, %v24513_v0 }
 0x181   : > { %779 = vst.msk [vmem:[#allocation2 + $0x30] sm:$0xff] (!%p15455_p2), %vm772_vm0, %v24513_v0  ;;  %780 = vst.msk [vmem:[#allocation2 + $0x38] sm:$0xff] (!%p15455_p2), %vm772_vm0, %v24513_v0 }
 0x182   : > { %781 = vst.msk [vmem:[#allocation2 + $0x40] sm:$0xff] (!%p15455_p2), %vm772_vm0, %v24513_v0  ;;  %782 = vst.msk [vmem:[#allocation2 + $0x48] sm:$0xff] (!%p15455_p2), %vm772_vm0, %v24513_v0 }
 0x183   : > { %783 = vst.msk [vmem:[#allocation2 + $0x50] sm:$0xff] (!%p15455_p2), %vm772_vm0, %v24513_v0  ;;  %784 = vst.msk [vmem:[#allocation2 + $0x58] sm:$0xff] (!%p15455_p2), %vm772_vm0, %v24513_v0 }
 0x184   : > { %785 = vst.msk [vmem:[#allocation2 + $0x60] sm:$0xff] (!%p15455_p2), %vm772_vm0, %v24513_v0  ;;  %786 = vst.msk [vmem:[#allocation2 + $0x68] sm:$0xff] (!%p15455_p2), %vm772_vm0, %v24513_v0 }
 0x185   : > { %787 = vst.msk [vmem:[#allocation2 + $0x70] sm:$0xff] %vm772_vm0, %v24513_v0  ;;  %788 = vst.msk [vmem:[#allocation2 + $0x78] sm:$0xff] %vm772_vm0, %v24513_v0 }
 0x186 PF: > { %v789_v1 = vlaneseq  ;;  %v982_v2 = vld [vmem:[%s25044_s26] sm:$0xff]  ;;  %v983_v3 = vld [vmem:[%s25044_s26 + $0x8] sm:$0xff]  ;;  %v984_v4 = vld [vmem:[%s25044_s26 + $0x10] sm:$0xff]  ;;  %vm24514_vm2 = vmmov 1   ;;  %v30990_v21 = vmov 0  ;;  %vm1078_vm5 = vcmask 523264  }
 0x187   : > { %v1054_v5 = vmul.f32 1.442695, %v982_v2  ;;  %v1056_v6 = vmul.f32 1.442695, %v983_v3  ;;  %v985_v7 = vld [vmem:[%s25044_s26 + $0x18] sm:$0xff]  ;;  %v986_v8 = vld [vmem:[%s25044_s26 + $0x20] sm:$0xff] }
 0x188   : > { %v25102_v9 = vand.u32 127, %v789_v1  ;;  %v1058_v10 = vmul.f32 1.442695, %v984_v4  ;;  %v1060_v11 = vmul.f32 1.442695, %v985_v7  ;;  %v987_v12 = vld [vmem:[%s25044_s26 + $0x28] sm:$0xff] }
 0x189   : > { %23809 = vpow2.f32 %v1054_v5  ;;  %v1062_v13 = vmul.f32 1.442695, %v986_v8  ;;  %v988_v14 = vld [vmem:[%s25044_s26 + $0x30] sm:$0xff]  ;;  %v989_v15 = vld [vmem:[%s25044_s26 + $0x38] sm:$0xff]  ;;  %v1064_v16 = vmul.f32 1.442695, %v987_v12 }
 0x18a   : > { %30988 = vst [vmem:[#allocation43_spill] sm:$0xff] %v25102_v9  ;;  %vm896_vm1 = vcmp.ge.s32.totalorder %v25102_v9, 64  ;;  %23811 = vpow2.f32 %v1056_v6  ;;  %v25109_v17 = vld [vmem:[%s25050_s5] sm:$0xff]   ;;  %v1066_v18 = vmul.f32 1.442695, %v988_v14  ;;  %v25114_v19 = vshrl.u32 %v789_v1, 7 }
 0x18b   : > { %vm913_vm3 = vmxor %vm896_vm1, %vm24514_vm2  ;;  %23813 = vpow2.f32 %v1058_v10  ;;  %v25116_v20 = vld [vmem:[#allocation14] ss:$0 sm:$0xff]  ;;  %v1068_v22 = vmul.f32 1.442695, %v989_v15  ;;  %v16669_v23 = vunpack.c.l.bf16 %v25109_v17  ;;  %v30662_v24 = vmov 1.0|1.0  }
 0x18c   : > { %30989 = vst [vmem:[#allocation44_spill] sm:$0xff] %v25114_v19  ;;  %vm25118_vm4 = vmpackc.low %vm913_vm3, %vm913_vm3  ;;  %23815 = vpow2.f32 %v1060_v11  ;;  %vm800_vm6 = vcmp.ge.s32.totalorder %v25114_v19, %v25102_v9  ;;  %v30658_v25 = vmov 0.0   ;;  %v30994_v40 = vmov 0  ;;  %v25222_v51 = vld [vmem:[%s25050_s5 + $0x8] sm:$0xff]   ;;  %v25241_v56 = vld [vmem:[%s25050_s5 + $0x10] sm:$0xff]   ;;  %s24517_s25 = smov 64  }
 0x18d   : > { %v30991_v21 = vsel %vm25118_vm4, 4294967295, %v30990_v21  ;;  %21414 = vmatprep.subr.msk.bf16.mxu1 %vm25118_vm4, %v30662_v24  ;;  %23817 = vpow2.f32 %v1062_v13  ;;  %v25132_v26 = vsel %vm800_vm6, 1.0, %v30658_v25  ;;  %v25137_v27 = vmul.f32 %v16669_v23, %v25116_v20  ;;  %vm905_vm7 = vmxor %vm24514_vm2, %vm896_vm1  ;;  %v25278_v1 = vld [vmem:[%s25050_s5 + $0x18] sm:$0xff]   ;;  %s31561_s29 = sld [smem:[#allocation32_spill]]  ;;  %s31562_s16 = sld [smem:[#allocation33_spill]] }
 0x18e   : > { %30992 = vst [vmem:[#allocation45_spill] sm:$0xff] %v30991_v21  ;;  %21416 = vmatpush3.bf16.msk.msra.mxu1 %vm25118_vm4, %v30662_v24  ;;  %23819 = vpow2.f32 %v1064_v16  ;;  %30993 = vst [vmem:[#allocation46_spill] sm:$0xff] %v25132_v26  ;;  %18541 = vmatprep.mubr.msk.f32.mxu0 %vm1078_vm5, %v25132_v26  ;;  %v25219_v50 = vadd.s32 8, %v25114_v19  ;;  %v25225_v52 = vadd.s32 16, %v25114_v19  ;;  %v16670_v53 = vunpack.c.h.bf16 %v25109_v17  ;;  %s31566_s22 = sld [smem:[#allocation40_spill]]  ;;  %s15128_s20 = sshll.u32 %s25078_s14, 4  ;;  %s30556_s20 = int_to_ptr.vmem [resolvable:$true] %s15128_s20 }
 0x18f   : > { %21418 = vmatprep.subr.msk.bf16.mxu1 %vm25118_vm4, %v30662_v24  ;;  %23821 = vpow2.f32 %v1066_v18  ;;  %v1286_v28 = vmul.f32 %v25137_v27, %v25137_v27  ;;  %vm921_vm8 = vmxor %vm905_vm7, %vm24514_vm2  ;;  %v16673_v54 = vunpack.c.l.bf16 %v25222_v51  ;;  %v25238_v55 = vadd.s32 24, %v25114_v19  ;;  %s31568_s24 = sld [smem:[#allocation148_spill]]  ;;  %s24374_s19 = scalar_lea.vmem %s30556_s20, 1024 }
 0x190   : > { %23823 = vpow2.f32 %v1068_v22  ;;  %vm25182_vm9 = vmpackc.low %vm921_vm8, %vm921_vm8  ;;  %30997 = vst [vmem:[#allocation48_spill] sm:$0xff] %v25219_v50  ;;  %vm801_vm10 = vcmp.ge.s32.totalorder %v25219_v50, %v25102_v9  ;;  %vm802_vm11 = vcmp.ge.s32.totalorder %v25225_v52, %v25102_v9  ;;  %v25246_v57 = vadd.s32 32, %v25114_v19  ;;  %p24375_p4 = scmp.ne.s32.totalorder %s30556_s20, %s24374_s19 }
 0x191   : > { %18585 = vmatprep.mubr.f32.mxu1 %v1286_v28  ;;  %v30995_v40 = vsel %vm25182_vm9, 4294967295, %v30994_v40  ;;  %30998 = vst [vmem:[#allocation49_spill] sm:$0xff] %v25225_v52  ;;  %30999 = vst [vmem:[#allocation50_spill] sm:$0xff] %v25238_v55  ;;  %v25251_v58 = vmul.f32 %v16670_v53, %v25116_v20  ;;  %v16674_v59 = vunpack.c.h.bf16 %v25222_v51  ;;  %v25258_v60 = vsel %vm801_vm10, 1.0, %v30658_v25 }
 0x192   : > { %21420 = vmatpush3.bf16.msk.msra.mxu1 %vm25118_vm4, %v30662_v24  ;;  %30996 = vst [vmem:[#allocation47_spill] sm:$0xff] %v30995_v40  ;;  %31000 = vst [vmem:[#allocation51_spill] sm:$0xff] %v25246_v57  ;;  %v25263_v61 = vmul.f32 %v16673_v54, %v25116_v20  ;;  %v30681_v62 = vunpack.c.l.bf16 %v25241_v56  ;;  %v25270_v63 = vsel %vm802_vm11, 1.0, %v30658_v25  ;;  %vm803_vm12 = vcmp.ge.s32.totalorder %v25238_v55, %v25102_v9 }
 0x193   : > { %v25152_v29 = vpop.eup %23809  ;;  %21422 = vmatprep.subr.msk.bf16.mxu1 %vm25118_vm4, %v30662_v24  ;;  %31001 = vst [vmem:[#allocation52_spill] sm:$0xff] %v25258_v60  ;;  %31002 = vst [vmem:[#allocation53_spill] sm:$0xff] %v25270_v63  ;;  %v25275_v0 = vadd.s32 40, %v25114_v19  ;;  %vm804_vm13 = vcmp.ge.s32.totalorder %v25246_v57, %v25102_v9  ;;  %v25286_v2 = vadd.s32 48, %v25114_v19  ;;  %v1287_v3 = vmul.f32 %v25251_v58, %v25251_v58  ;;  %s16630_s17 = sshll.u32 %s31561_s29, 4  ;;  %s16631_s23 = sshll.u32 %s31562_s16, 5 }
 0x194   : > { %v25157_v30 = vpop.eup %23811  ;;  %v30670_v31 = vsub.f32 0.0, %v25152_v29  ;;  %v25295_v4 = vmul.f32 %v16674_v59, %v25116_v20  ;;  %v30677_v5 = vunpack.c.h.bf16 %v25241_v56  ;;  %v25304_v6 = vsel %vm803_vm12, 1.0, %v30658_v25  ;;  %vm25600_vm8 = vmpackc.low %vm1078_vm5, %vm1078_vm5  ;;  %s15125_s6 = sadd.s32 %s16631_s23, %s16630_s17  ;;  %p31570_p7 = scmp.ne.s32.totalorder %s31566_s22, 0 }
 0x195   : > { %v25160_v32 = vpop.eup %23813  ;;  %v30672_v33 = vsub.f32 0.0, %v25157_v30  ;;  %31003 = vst [vmem:[#allocation54_spill] sm:$0xff] %v25275_v0  ;;  %31004 = vst [vmem:[#allocation55_spill] sm:$0xff] %v25286_v2  ;;  %v1288_v7 = vmul.f32 %v25263_v61, %v25263_v61  ;;  %v25311_v8 = vmul.f32 %v30681_v62, %v25116_v20  ;;  %v30676_v10 = vunpack.c.l.bf16 %v25278_v1  ;;  %s16632_s11 = sshll.u32 %s15125_s6, 6  ;;  %s31569_s13 = smov %s31568_s24 }
 0x196   : > { %v25164_v34 = vpop.eup %23815  ;;  %21424 = vmatpush3.bf16.msk.msra.mxu1 %vm25118_vm4, %v30662_v24  ;;  %v30667_v35 = vsub.f32 0.0, %v25160_v32  ;;  %31005 = vst [vmem:[#allocation56_spill] sm:$0xff] %v25304_v6  ;;  %v25315_v11 = vsel %vm804_vm13, 1.0, %v30658_v25  ;;  %vm805_vm14 = vcmp.ge.s32.totalorder %v25275_v0, %v25102_v9  ;;  %v25320_v12 = vadd.s32 56, %v25114_v19  ;;  %p24376_p3 = pnand %p24375_p4, %p31570_p7 }
 0x197   : > { %v25170_v36 = vpop.eup %23817  ;;  %v21397_v37 = vpack.c.bf16 %v30672_v33, %v30670_v31  ;;  %21426 = vmatprep.subr.msk.bf16.mxu1 %vm25118_vm4, %v30662_v24  ;;  %v30669_v38 = vsub.f32 0.0, %v25164_v34  ;;  %31006 = vst [vmem:[#allocation57_spill] sm:$0xff] %v25315_v11  ;;  %vm806_vm15 = vcmp.ge.s32.totalorder %v25286_v2, %v25102_v9  ;;  %v1289_v13 = vmul.f32 %v25295_v4, %v25295_v4 }
 0x198   : > { %v25180_v39 = vpop.eup %23819  ;;  %v30664_v41 = vsub.f32 0.0, %v25170_v36  ;;  %31007 = vst [vmem:[#allocation58_spill] sm:$0xff] %v25320_v12  ;;  %v25337_v14 = vmul.f32 %v30677_v5, %v25116_v20  ;;  %v30673_v15 = vunpack.c.h.bf16 %v25278_v1  ;;  %v1290_v16 = vmul.f32 %v25311_v8, %v25311_v8  ;;  %p24377_p0 = pneg %p24376_p3 }
 0x199   : > { %v25187_v42 = vpop.eup %23821  ;;  %21398 = vmatprep.subr.bf16.mxu0 %v21397_v37  ;;  %v21401_v43 = vpack.c.bf16 %v30669_v38, %v30667_v35  ;;  %v30665_v44 = vsub.f32 0.0, %v25180_v39  ;;  %v25345_v18 = vsel %vm805_vm14, 1.0, %v30658_v25  ;;  %v25350_v22 = vmul.f32 %v30676_v10, %v25116_v20  ;;  %v25461_v10 = vld [vmem:[%s25036_s27 + $0x8] sm:$0xff]  }
 0x19a   : > { %v25194_v45 = vpop.eup %23823  ;;  %21400 = vmatpush3.bf16.msra.mxu0 %v21397_v37  ;;  %21428 = vmatpush3.bf16.msk.msra.mxu1 %vm25118_vm4, %v30662_v24  ;;  %v30660_v47 = vsub.f32 0.0, %v25187_v42  ;;  %31008 = vst [vmem:[#allocation59_spill] sm:$0xff] %v25345_v18  ;;  %v25353_v28 = vsel %vm806_vm15, 1.0, %v30658_v25  ;;  %vm807_vm0 = vcmp.ge.s32.totalorder %v25320_v12, %v25102_v9  ;;  %v1291_v37 = vmul.f32 %v25337_v14, %v25337_v14 }
 0x19b   : > { %21402 = vmatprep.subr.bf16.mxu0 %v21401_v43  ;;  %21430 = vmatprep.subr.msk.bf16.mxu1 %vm25182_vm9, %v30662_v24  ;;  %v21405_v46 = vpack.c.bf16 %v30665_v44, %v30664_v41  ;;  %v30661_v48 = vsub.f32 0.0, %v25194_v45  ;;  %31009 = vst [vmem:[#allocation60_spill] sm:$0xff] %v25353_v28  ;;  %v25430_v41 = vld [vmem:[%s25058_s21 + $0x8] sm:$0xff]  }
 0x19c   : > { %v30671_v35 = vunpack.c.l.bf16 %v25430_v41 }
 0x19d   : > { %v21409_v49 = vpack.c.bf16 %v30661_v48, %v30660_v47 }
 0x19e   : > { %21404 = vmatpush3.bf16.msra.mxu0 %v21401_v43  ;;  %21432 = vmatpush3.bf16.msk.msra.mxu1 %vm25182_vm9, %v30662_v24  ;;  %v25370_v43 = vmul.f32 %v30673_v15, %v25116_v20 }
 0x19f   : > { %21406 = vmatprep.subr.bf16.mxu0 %v21405_v46  ;;  %21434 = vmatprep.subr.msk.bf16.mxu1 %vm25182_vm9, %v30662_v24 }
 0x1a0   : > { %v1293_v20 = vmul.f32 %v25370_v43, %v25370_v43 }
 0x1a2   : > { %21408 = vmatpush3.bf16.msra.mxu0 %v21405_v46  ;;  %21436 = vmatpush3.bf16.msk.msra.mxu1 %vm25182_vm9, %v30662_v24  ;;  %v1292_v46 = vmul.f32 %v25350_v22, %v25350_v22 }
 0x1a3   : > { %21410 = vmatprep.subr.bf16.mxu0 %v21409_v49  ;;  %21438 = vmatprep.subr.msk.bf16.mxu1 %vm25182_vm9, %v30662_v24 }
 0x1a6   : > { %21412 = vmatpush3.bf16.msra.mxu0 %v21409_v49  ;;  %21440 = vmatpush3.bf16.msk.msra.mxu1 %vm25182_vm9, %v30662_v24  ;;  %v25377_v49 = vsel %vm807_vm0, 1.0, %v30658_v25 }
 0x1a7   : > { %21442 = vmatprep.subr.msk.bf16.mxu1 %vm25182_vm9, %v30662_v24  ;;  %21446 = vmatprep.subr.msk.bf16.mxu0 %vm25118_vm4, %v30662_v24  ;;  %31010 = vst [vmem:[#allocation61_spill] sm:$0xff] %v25377_v49 }
 0x1a9   : > { %18542 = vmatmul.mubr.msk.f32.vlgmr.msra.gmra.mrb[0].mxu0 %vm1078_vm5, %v25258_v60 }
 0x1aa   : > { %21444 = vmatpush3.bf16.msk.msra.mxu1 %vm25182_vm9, %v30662_v24  ;;  %18544 = vmatprep.mubr.msk.f32.mxu0 %vm1078_vm5, %v25270_v63 }
 0x1ab   : > { %21448 = vmatpush3.bf16.msk.msra.mxu0 %vm25118_vm4, %v30662_v24 }
 0x1ac   : > { %21450 = vmatprep.subr.msk.bf16.mxu0 %vm25118_vm4, %v30662_v24 }
 0x1ad   : > { %18586 = vmatmul.mubr.f32.vlgmr.msra.gmra.mrb[0].mxu1 %v1287_v3  ;;  %18545 = vmatmul.mubr.msk.f32.gmra.mrb[2].mxu0 %vm1078_vm5, %v25304_v6  ;;  %v25417_v3 = vld [vmem:[%s25058_s21] sm:$0xff]  }
 0x1ae   : > { %18588 = vmatprep.mubr.f32.mxu1 %v1288_v7  ;;  %18547 = vmatprep.mubr.msk.f32.mxu0 %vm1078_vm5, %v25315_v11  ;;  %v30666_v7 = vunpack.c.l.bf16 %v25417_v3 }
 0x1af   : > { %21452 = vmatpush3.bf16.msk.msra.mxu0 %vm25118_vm4, %v30662_v24 }
 0x1b0   : > { %21454 = vmatprep.subr.msk.bf16.mxu0 %vm25118_vm4, %v30662_v24 }
 0x1b1   : > { %18589 = vmatmul.mubr.f32.gmra.mrb[2].mxu1 %v1289_v13  ;;  %18548 = vmatmul.mubr.msk.f32.gmra.mrb[4].mxu0 %vm1078_vm5, %v25345_v18  ;;  %v30668_v13 = vunpack.c.h.bf16 %v25417_v3 }
 0x1b2   : > { %18591 = vmatprep.mubr.f32.mxu1 %v1290_v16  ;;  %18550 = vmatprep.mubr.msk.f32.mxu0 %vm1078_vm5, %v25353_v28  ;;  %v15521_v16 = vadd.f32 -1.0, %v30666_v7  ;;  %v25437_v7 = vld [vmem:[%s25036_s27] sm:$0xff]  }
 0x1b3   : > { %21456 = vmatpush3.bf16.msk.msra.mxu0 %vm25118_vm4, %v30662_v24 }
 0x1b4   : > { %21458 = vmatprep.subr.msk.bf16.mxu0 %vm25118_vm4, %v30662_v24 }
 0x1b5   : > { %18592 = vmatmul.mubr.f32.gmra.mrb[4].mxu1 %v1291_v37  ;;  %18551 = vmatmul.mubr.msk.f32.gmra.mrb[6].mxu0 %vm1078_vm5, %v25377_v49  ;;  %v15529_v37 = vld [vmem:[#allocation15] ss:$0 sm:$0xff] }
 0x1b6   : > { %18594 = vmatprep.mubr.f32.mxu1 %v1292_v46  ;;  %v15522_v46 = vadd.f32 -1.0, %v30668_v13  ;;  %v30674_v13 = vunpack.c.l.bf16 %v25437_v7 }
 0x1b7   : > { %21460 = vmatpush3.bf16.msk.msra.mxu0 %vm25118_vm4, %v30662_v24 }
 0x1b8   : > { %21462 = vmatprep.subr.msk.bf16.mxu0 %vm25182_vm9, %v30662_v24  ;;  %v1494_v25 = vmul.f32 %v15529_v37, %v15522_v46 }
 0x1b9   : > { %18595 = vmatmul.mubr.f32.gmra.mrb[6].mxu1 %v1293_v20  ;;  %v1493_v20 = vmul.f32 %v15529_v37, %v15521_v16  ;;  %v30675_v16 = vunpack.c.h.bf16 %v25430_v41 }
 0x1ba   : > { %v1502_v48 = vadd.f32 1.0, %v1494_v25  ;;  %v30678_v25 = vunpack.c.h.bf16 %v25437_v7 }
 0x1bb   : > { %21464 = vmatpush3.bf16.msk.msra.mxu0 %vm25182_vm9, %v30662_v24  ;;  %v1501_v47 = vadd.f32 1.0, %v1493_v20 }
 0x1bc   : > { %21466 = vmatprep.subr.msk.bf16.mxu0 %vm25182_vm9, %v30662_v24  ;;  %v25434_v44 = vmul.f32 %v16670_v53, %v1502_v48  ;;  %v25451_v48 = vld [vmem:[%s25058_s21 + $0x10] sm:$0xff]   ;;  %v15530_v53 = vld [vmem:[#allocation20] ss:$0 sm:$0xff] }
 0x1bd   : > { %v30679_v38 = vunpack.c.l.bf16 %v25451_v48  ;;  %v30680_v33 = vunpack.c.h.bf16 %v25451_v48 }
 0x1be   : > { %v1566_v46 = vmul.f32 %v30678_v25, %v25434_v44 }
 0x1bf   : > { %21468 = vmatpush3.bf16.msk.msra.mxu0 %vm25182_vm9, %v30662_v24  ;;  %v15526_v25 = vadd.f32 -1.0, %v30680_v33 }
 0x1c0   : > { %21470 = vmatprep.subr.msk.bf16.mxu0 %vm25182_vm9, %v30662_v24  ;;  %v1580_v15 = vmul.f32 %v15530_v53, %v1566_v46 }
 0x1c3   : > { %21472 = vmatpush3.bf16.msk.msra.mxu0 %vm25182_vm9, %v30662_v24 }
 0x1c4   : > { %21474 = vmatprep.subr.msk.bf16.mxu0 %vm25182_vm9, %v30662_v24 }
 0x1c7   : > { %21476 = vmatpush3.bf16.msk.msra.mxu0 %vm25182_vm9, %v30662_v24  ;;  %v25427_v24 = vmul.f32 %v16669_v23, %v1501_v47  ;;  %v15523_v23 = vadd.f32 -1.0, %v30671_v35  ;;  %v15524_v47 = vadd.f32 -1.0, %v30675_v16  ;;  %v15525_v16 = vadd.f32 -1.0, %v30679_v38 }
 0x1c8   : > { %v1498_v38 = vmul.f32 %v15529_v37, %v15526_v25 }
 0x1c9   : > { %v1565_v17 = vmul.f32 %v30674_v13, %v25427_v24  ;;  %v1495_v20 = vmul.f32 %v15529_v37, %v15523_v23  ;;  %v1496_v35 = vmul.f32 %v15529_v37, %v15524_v47  ;;  %v25466_v23 = vld [vmem:[%s25058_s21 + $0x18] sm:$0xff]   ;;  %v1497_v46 = vmul.f32 %v15529_v37, %v15525_v16  ;;  %v25489_v16 = vld [vmem:[%s25036_s27 + $0x10] sm:$0xff]  }
 0x1ca   : > { %v30694_v33 = vunpack.c.h.bf16 %v25466_v23  ;;  %v1506_v51 = vadd.f32 1.0, %v1498_v38  ;;  %v30696_v25 = vunpack.c.l.bf16 %v25489_v16  ;;  %v30693_v21 = vunpack.c.h.bf16 %v25489_v16 }
 0x1cb   : > { %v1579_v31 = vmul.f32 %v15530_v53, %v1565_v17  ;;  %v1503_v13 = vadd.f32 1.0, %v1495_v20  ;;  %v1504_v5 = vadd.f32 1.0, %v1496_v35  ;;  %v30682_v17 = vunpack.c.l.bf16 %v25461_v10 }
 0x1cc   : > { %v30685_v20 = vunpack.c.l.bf16 %v25466_v23  ;;  %v1505_v62 = vadd.f32 1.0, %v1497_v46 }
 0x1cd   : > { %18629 = vmatprep.mubr.f32.mxu0 %v1579_v31  ;;  %v25471_v47 = vmul.f32 %v16673_v54, %v1503_v13  ;;  %v30688_v31 = vunpack.c.h.bf16 %v25461_v10  ;;  %v25477_v35 = vmul.f32 %v16674_v59, %v1504_v5  ;;  %v15528_v59 = vadd.f32 -1.0, %v30694_v33 }
 0x1ce   : > { %18630 = vmatmul.mubr.f32.vlgmr.msra.gmra.mrb[8].mxu0 %v1580_v15  ;;  %v15527_v54 = vadd.f32 -1.0, %v30685_v20 }
 0x1cf   : > { %v1567_v15 = vmul.f32 %v30682_v17, %v25471_v47  ;;  %v1568_v13 = vmul.f32 %v30688_v31, %v25477_v35  ;;  %v31011_v17 = vunpack.c.l.bf16 %v25241_v56  ;;  %v31012_v31 = vunpack.c.h.bf16 %v25241_v56 }
 0x1d0   : > { %v1499_v40 = vmul.f32 %v15529_v37, %v15527_v54  ;;  %v1500_v28 = vmul.f32 %v15529_v37, %v15528_v59 }
 0x1d1   : > { %v1581_v5 = vmul.f32 %v15530_v53, %v1567_v15  ;;  %v25496_v46 = vmul.f32 %v31011_v17, %v1505_v62  ;;  %v1582_v20 = vmul.f32 %v15530_v53, %v1568_v13  ;;  %v25501_v49 = vmul.f32 %v31012_v31, %v1506_v51  ;;  %v25510_v17 = vld [vmem:[%s25036_s27 + $0x18] sm:$0xff]  }
 0x1d2   : > { %v1507_v15 = vadd.f32 1.0, %v1499_v40  ;;  %v1508_v54 = vadd.f32 1.0, %v1500_v28  ;;  %v30695_v56 = vunpack.c.l.bf16 %v25510_v17  ;;  %v31013_v31 = vunpack.c.l.bf16 %v25278_v1 }
 0x1d3   : > { %18632 = vmatprep.mubr.f32.mxu0 %v1581_v5  ;;  %v1569_v38 = vmul.f32 %v30696_v25, %v25496_v46  ;;  %v1570_v62 = vmul.f32 %v30693_v21, %v25501_v49  ;;  %v30699_v59 = vunpack.c.h.bf16 %v25510_v17  ;;  %v31014_v40 = vunpack.c.h.bf16 %v25278_v1 }
 0x1d4   : > { %18633 = vmatmul.mubr.f32.gmra.mrb[10].mxu0 %v1582_v20  ;;  %v25515_v37 = vmul.f32 %v31013_v31, %v1507_v15  ;;  %v31015_v1 = vsub.f32 0.0, %v25157_v30 }
 0x1d5   : > { %v1583_v13 = vmul.f32 %v15530_v53, %v1569_v38  ;;  %v1584_v51 = vmul.f32 %v15530_v53, %v1570_v62  ;;  %v25520_v20 = vmul.f32 %v31014_v40, %v1508_v54 }
 0x1d6   : > { %v1571_v5 = vmul.f32 %v30695_v56, %v25515_v37  ;;  %v31016_v56 = vsub.f32 0.0, %v25152_v29  ;;  %v31017_v29 = vsub.f32 0.0, %v25164_v34 }
 0x1d7   : > { %18635 = vmatprep.mubr.f32.mxu0 %v1583_v13  ;;  %v1572_v28 = vmul.f32 %v30699_v59, %v25520_v20 }
 0x1d8   : > { %18636 = vmatmul.mubr.f32.gmra.mrb[12].mxu0 %v1584_v51  ;;  %v1585_v38 = vmul.f32 %v15530_v53, %v1571_v5 }
 0x1d9   : > { %v1586_v15 = vmul.f32 %v15530_v53, %v1572_v28 }
 0x1da   : > { %18638 = vmatprep.mubr.f32.mxu0 %v1585_v38 }
 0x1dc   : > { %18639 = vmatmul.mubr.f32.gmra.mrb[14].mxu0 %v1586_v15 }
 0x27c   : > { %v18543_v62 = vpop.f32.mrb[0].mxu0 }
 0x27d   : > { %v1210_v31 = vmul.f32 1.442695, %v18543_v62  ;;  %v1225_v21 = vsub.f32 0.0, %v18543_v62  ;;  %v1249_v54 = vsub.f32 %v18543_v62, %v31015_v1  ;;  %v1169_v13 = vpop.f32.mrb[1].mxu0 }
 0x27e   : > { %v1208_v40 = vmul.f32 1.442695, %v1169_v13  ;;  %v1224_v33 = vsub.f32 0.0, %v1169_v13  ;;  %v1248_v51 = vsub.f32 %v1169_v13, %v31016_v56 }
 0x27f   : > { %23825 = vpow2.f32 %v1210_v31  ;;  %v1234_v25 = vmul.f32 1.442695, %v1225_v21  ;;  %v1258_v18 = vmul.f32 1.442695, %v1249_v54  ;;  %v31018_v31 = vsub.f32 0.0, %v25160_v32 }
 0x280   : > { %23827 = vpow2.f32 %v1208_v40  ;;  %v1232_v5 = vmul.f32 1.442695, %v1224_v33  ;;  %v1256_v53 = vmul.f32 1.442695, %v1248_v51  ;;  %v25532_v28 = vpop.f32.mrb[0].mxu1  ;;  %v18546_v38 = vpop.f32.mrb[2].mxu0 }
 0x281   : > { %23829 = vpow2.f32 %v1234_v25  ;;  %v25534_v15 = vpop.f32.mrb[1].mxu1  ;;  %v1179_v30 = vpop.f32.mrb[3].mxu0  ;;  %v1214_v62 = vmul.f32 1.442695, %v18546_v38  ;;  %v1227_v1 = vsub.f32 0.0, %v18546_v38  ;;  %v1251_v56 = vsub.f32 %v18546_v38, %v31017_v29 }
 0x282   : > { %23831 = vpow2.f32 %v1258_v18  ;;  %v1226_v21 = vsub.f32 0.0, %v1179_v30  ;;  %v1250_v33 = vsub.f32 %v1179_v30, %v31018_v31  ;;  %v1212_v18 = vmul.f32 1.442695, %v1179_v30 }
 0x283   : > { %23833 = vpow2.f32 %v1232_v5  ;;  %v1238_v25 = vmul.f32 1.442695, %v1227_v1  ;;  %v1262_v40 = vmul.f32 1.442695, %v1251_v56  ;;  %vm1401_vm1 = vcmp.eq.f32.partialorder %v25534_v15, inf }
 0x284   : > { %23835 = vpow2.f32 %v1256_v53  ;;  %v25540_v54 = vpop.f32.mrb[2].mxu1  ;;  %v18549_v13 = vpop.f32.mrb[4].mxu0  ;;  %v1236_v34 = vmul.f32 1.442695, %v1226_v21  ;;  %v1260_v53 = vmul.f32 1.442695, %v1250_v33 }
 0x285   : > { %23837 = vrsqrt.f32 %v25532_v28  ;;  %v25543_v51 = vpop.f32.mrb[3].mxu1  ;;  %v1189_v5 = vpop.f32.mrb[5].mxu0  ;;  %v1229_v59 = vsub.f32 0.0, %v18549_v13  ;;  %vm1408_vm2 = vcmp.eq.f32.partialorder %v25532_v28, inf  ;;  %vm1403_vm3 = vcmp.eq.f32.partialorder %v25534_v15, 0.0 }
 0x286   : > { %23839 = vrsqrt.f32 %v25534_v15  ;;  %vm1410_vm6 = vcmp.eq.f32.partialorder %v25532_v28, 0.0  ;;  %v1216_v12 = vmul.f32 1.442695, %v1189_v5  ;;  %vm1422_vm7 = vcmp.eq.f32.partialorder %v25540_v54, inf }
 0x287   : > { %23841 = vpow2.f32 %v1214_v62  ;;  %v31019_v62 = vsub.f32 0.0, %v25180_v39  ;;  %v1228_v39 = vsub.f32 0.0, %v1189_v5  ;;  %v1242_v60 = vmul.f32 1.442695, %v1229_v59 }
 0x288   : > { %23843 = vpow2.f32 %v1238_v25  ;;  %v25546_v38 = vpop.f32.mrb[4].mxu1  ;;  %v25548_v32 = vpop.f32.mrb[6].mxu0  ;;  %vm1415_vm10 = vcmp.eq.f32.partialorder %v25543_v51, inf  ;;  %vm1417_vm11 = vcmp.eq.f32.partialorder %v25543_v51, 0.0  ;;  %vm1424_vm13 = vcmp.eq.f32.partialorder %v25540_v54, 0.0 }
 0x289   : > { %v23826_v29 = vpop.eup %23825  ;;  %23845 = vpow2.f32 %v1262_v40  ;;  %v25550_v31 = vpop.f32.mrb[5].mxu1  ;;  %v1253_v21 = vsub.f32 %v18549_v13, %v31019_v62  ;;  %vm1436_vm12 = vcmp.eq.f32.partialorder %v25546_v38, inf  ;;  %vm1438_vm14 = vcmp.eq.f32.partialorder %v25546_v38, 0.0 }
 0x28a   : > { %v25552_v1 = vpop.f32.mrb[7].mxu0  ;;  %v25554_v56 = vpop.eup %23827  ;;  %23847 = vpow2.f32 %v1212_v18  ;;  %v1218_v18 = vmul.f32 1.442695, %v18549_v13  ;;  %vm1429_vm15 = vcmp.eq.f32.partialorder %v25550_v31, inf  ;;  %vm1431_vm0 = vcmp.eq.f32.partialorder %v25550_v31, 0.0 }
 0x28b   : > { %v25556_v30 = vpop.eup %23829  ;;  %23849 = vpow2.f32 %v1236_v34  ;;  %v31020_v34 = vsub.f32 0.0, %v25170_v36 }
 0x28c   : > { %v25560_v33 = vpop.eup %23831  ;;  %23851 = vpow2.f32 %v1260_v53  ;;  %v25565_v11 = vpop.f32.mrb[6].mxu1  ;;  %v25592_v59 = vmul.f32 %v25556_v30, %v25434_v44 }
 0x28d   : > { %v25567_v6 = vpop.eup %23833  ;;  %23853 = vrsqrt.f32 %v25540_v54  ;;  %v1252_v62 = vsub.f32 %v1189_v5, %v31020_v34  ;;  %v25573_v63 = vpop.f32.mrb[7].mxu1  ;;  %v1266_v34 = vmul.f32 1.442695, %v1253_v21  ;;  %v1240_v21 = vmul.f32 1.442695, %v1228_v39 }
 0x28e   : > { %v25575_v25 = vpop.eup %23835  ;;  %23855 = vrsqrt.f32 %v25543_v51  ;;  %v25588_v40 = vmul.f32 %v25567_v6, %v25427_v24  ;;  %31022 = vst [vmem:[#allocation63_spill] sm:$0xff] %v25592_v59 }
 0x28f   : > { %v23838_v26 = vpop.eup %23837  ;;  %23857 = vrsqrt.f32 %v25546_v38  ;;  %v1264_v36 = vmul.f32 1.442695, %v1252_v62 }
 0x290   : > { %v23840_v2 = vpop.eup %23839  ;;  %23859 = vrsqrt.f32 %v25550_v31  ;;  %31021 = vst [vmem:[#allocation62_spill] sm:$0xff] %v25588_v40  ;;  %v1407_v44 = vmul.f32 %v23838_v26, %v25532_v28  ;;  %v31025_v26 = vunpack.c.h.bf16 %v25437_v7 }
 0x291   : > { %v25594_v13 = vpop.eup %23841  ;;  %v1400_v53 = vmul.f32 %v23840_v2, %v25534_v15  ;;  %23861 = vpow2.f32 %v1218_v18  ;;  %v25610_v2 = vpack.c.bf16 %v25592_v59, %v25588_v40  ;;  %v1231_v18 = vsub.f32 0.0, %v25548_v32 }
 0x292   : > { %v25604_v24 = vpop.eup %23843  ;;  %23863 = vpow2.f32 %v1242_v60  ;;  %v25620_v57 = vmul.f32 %v23826_v29, %v31025_v26  ;;  %v31027_v60 = vsub.f32 0.0, %v25194_v45  ;;  %v1222_v45 = vmul.f32 1.442695, %v25548_v32 }
 0x293   : > { %v25613_v39 = vpop.eup %23845  ;;  %23865 = vpow2.f32 %v1266_v34  ;;  %v1402_v55 = vsel %vm1401_vm1, %v25534_v15, %v1400_v53  ;;  %21503 = vmatprep.subr.msk.bf16.mxu0 %vm25600_vm8, %v25610_v2  ;;  %v1230_v29 = vsub.f32 0.0, %v25552_v1  ;;  %v31028_v53 = vsub.f32 0.0, %v25187_v42 }
 0x294   : > { %31026 = vst [vmem:[#allocation64_spill] sm:$0xff] %v25620_v57  ;;  %v1255_v0 = vsub.f32 %v25548_v32, %v31027_v60  ;;  %v25625_v52 = vpop.eup %23847  ;;  %23867 = vpow2.f32 %v1216_v12  ;;  %21506 = vmatpush3.bf16.xpose.msk.msra.mxu0 %vm25600_vm8, %v25610_v2  ;;  %v25649_v26 = vmul.f32 %v25604_v24, %v25477_v35  ;;  %v31029_v32 = vunpack.c.l.bf16 %v25437_v7 }
 0x295   : > { %v25638_v34 = vpop.eup %23849  ;;  %23869 = vpow2.f32 %v1240_v21  ;;  %v1254_v12 = vsub.f32 %v25552_v1, %v31028_v53  ;;  %v1409_v21 = vsel %vm1408_vm2, %v25532_v28, %v1407_v44  ;;  %v1246_v50 = vmul.f32 1.442695, %v1231_v18 }
 0x296   : > { %v25654_v60 = vmul.f32 %v25554_v56, %v31029_v32  ;;  %v25656_v62 = vpop.eup %23851  ;;  %23871 = vpow2.f32 %v1264_v36  ;;  %v25663_v42 = vmul.f32 %v25638_v34, %v25471_v47  ;;  %v1270_v35 = vmul.f32 1.442695, %v1255_v0 }
 0x297   : > { %v23854_v53 = vpop.eup %23853  ;;  %23873 = vrsqrt.f32 %v25565_v11  ;;  %v1220_v7 = vmul.f32 1.442695, %v25552_v1  ;;  %v31031_v56 = vand.u32 2147483648, %v25534_v15  ;;  %v1244_v18 = vmul.f32 1.442695, %v1230_v29 }
 0x298   : > { %31030 = vst [vmem:[#allocation65_spill] sm:$0xff] %v25654_v60  ;;  %18657 = vmatprep.mubr.msk.f32.mxu1 %vm1078_vm5, %v25654_v60  ;;  %18685 = vmatprep.mubr.msk.f32.mxu0 %vm1078_vm5, %v25654_v60  ;;  %v23856_v44 = vpop.eup %23855  ;;  %v1421_v47 = vmul.f32 %v23854_v53, %v25540_v54  ;;  %23875 = vrsqrt.f32 %v25573_v63  ;;  %v25679_v0 = vpack.c.bf16 %v25649_v26, %v25663_v42  ;;  %vm1450_vm1 = vcmp.eq.f32.partialorder %v25565_v11, inf }
 0x299   : > { %v1405_v36 = vsel %vm1403_vm3, %v31031_v56, %v1402_v55  ;;  %v23858_v1 = vpop.eup %23857  ;;  %v1414_v32 = vmul.f32 %v23856_v44, %v25543_v51  ;;  %23877 = vpow2.f32 %v1222_v45  ;;  %v1268_v9 = vmul.f32 1.442695, %v1254_v12 }
 0x29a   : > { %v31032_v15 = vand.u32 2147483648, %v25532_v28  ;;  %v23860_v53 = vpop.eup %23859  ;;  %v1423_v29 = vsel %vm1422_vm7, %v25540_v54, %v1421_v47  ;;  %v1435_v56 = vmul.f32 %v23858_v1, %v25546_v38  ;;  %23879 = vpow2.f32 %v1246_v50  ;;  %21509 = vmatprep.subr.msk.bf16.mxu0 %vm25600_vm8, %v25679_v0 }
 0x29b   : > { %v25696_v12 = vpop.eup %23861  ;;  %v1416_v28 = vsel %vm1415_vm10, %v25543_v51, %v1414_v32  ;;  %23881 = vpow2.f32 %v1270_v35  ;;  %v1455_v44 = vmax.f32 %v1405_v36, 1e-12  ;;  %v31034_v32 = vand.u32 2147483648, %v25546_v38 }
 0x29c   : > { %v1412_v55 = vsel %vm1410_vm6, %v31032_v15, %v1409_v21  ;;  %v1428_v21 = vmul.f32 %v23860_v53, %v25550_v31  ;;  %v25702_v47 = vpop.eup %23863  ;;  %v1437_v50 = vsel %vm1436_vm12, %v25546_v38, %v1435_v56  ;;  %23883 = vpow2.f32 %v1220_v7  ;;  %21512 = vmatpush3.bf16.xpose.msk.msra.mxu0 %vm25600_vm8, %v25679_v0 }
 0x29d   : > { %v1456_v1 = vmax.f32 %v1412_v55, 1e-12  ;;  %v31033_v15 = vand.u32 2147483648, %v25543_v51  ;;  %v25711_v60 = vpop.eup %23865  ;;  %v1440_v35 = vsel %vm1438_vm14, %v31034_v32, %v1437_v50  ;;  %23885 = vpow2.f32 %v1244_v18 }
 0x29e   : > { %v1430_v36 = vsel %vm1429_vm15, %v25550_v31, %v1428_v21  ;;  %v31035_v7 = vand.u32 2147483648, %v25540_v54  ;;  %v23868_v55 = vpop.eup %23867  ;;  %v1460_v53 = vmax.f32 %v1440_v35, 1e-12  ;;  %v31036_v56 = vand.u32 2147483648, %v25550_v31 }
 0x29f   : > { %v1419_v45 = vsel %vm1417_vm11, %v31033_v15, %v1416_v28  ;;  %23887 = vpow2.f32 %v1268_v9  ;;  %v25733_v18 = vmul.f32 %v25702_v47, %v25501_v49  ;;  %v25735_v28 = vpop.eup %23869  ;;  %vm1452_vm2 = vcmp.eq.f32.partialorder %v25565_v11, 0.0 }
 0x2a0   : > { %v1426_v51 = vsel %vm1424_vm13, %v31035_v7, %v1423_v29  ;;  %v1433_v38 = vsel %vm1431_vm0, %v31036_v56, %v1430_v36  ;;  %23889 = vrcp.f32 %v1455_v44  ;;  %v1457_v54 = vmax.f32 %v1419_v45, 1e-12  ;;  %v25738_v29 = vpop.eup %23871 }
 0x2a1   : > { %31037 = vst [vmem:[#allocation66_spill] sm:$0xff] %v25733_v18  ;;  %v1459_v21 = vmax.f32 %v1433_v38, 1e-12  ;;  %23891 = vrcp.f32 %v1460_v53  ;;  %v25742_v50 = vmul.f32 %v25735_v28, %v25496_v46  ;;  %v1458_v31 = vmax.f32 %v1426_v51, 1e-12  ;;  %v23874_v49 = vpop.eup %23873 }
 0x2a2   : > { %v1453_v15 = vand.u32 2147483648, %v25565_v11  ;;  %vm1443_vm3 = vcmp.eq.f32.partialorder %v25573_v63, inf  ;;  %v1446_v44 = vand.u32 2147483648, %v25573_v63  ;;  %v23876_v45 = vpop.eup %23875  ;;  %v1449_v32 = vmul.f32 %v23874_v49, %v25565_v11 }
 0x2a3   : > { %31038 = vst [vmem:[#allocation67_spill] sm:$0xff] %v25742_v50  ;;  %23893 = vrcp.f32 %v1459_v21  ;;  %v25752_v35 = vpack.c.bf16 %v25733_v18, %v25742_v50  ;;  %v25756_v36 = vpop.eup %23877  ;;  %v1442_v7 = vmul.f32 %v23876_v45, %v25573_v63  ;;  %vm1445_vm6 = vcmp.eq.f32.partialorder %v25573_v63, 0.0 }
 0x2a4   : > { %23895 = vrcp.f32 %v1456_v1  ;;  %v31039_v51 = vunpack.c.l.bf16 %v25461_v10  ;;  %v25765_v56 = vpop.eup %23879  ;;  %v1451_v1 = vsel %vm1450_vm1, %v25565_v11, %v1449_v32  ;;  %v31041_v38 = vsub.s32 7, %v25114_v19 }
 0x2a5   : > { %23897 = vrcp.f32 %v1457_v54  ;;  %21515 = vmatprep.subr.msk.bf16.mxu0 %vm25600_vm8, %v25752_v35  ;;  %v31043_v54 = vunpack.c.h.bf16 %v25461_v10  ;;  %v25783_v49 = vpop.eup %23881  ;;  %v1454_v45 = vsel %vm1452_vm2, %v1453_v15, %v1451_v1  ;;  %v1444_v32 = vsel %vm1443_vm3, %v25573_v63, %v1442_v7 }
 0x2a6   : > { %v25763_v53 = vmul.f32 %v25625_v52, %v31039_v51  ;;  %v25773_v21 = vrot.slane %v25756_v36, %v31041_v38  ;;  %23899 = vrcp.f32 %v1458_v31  ;;  %v25792_v51 = vmul.f32 %v25765_v56, %v25520_v20  ;;  %21518 = vmatpush3.bf16.xpose.msk.msra.mxu0 %vm25600_vm8, %v25752_v35  ;;  %v23884_v31 = vpop.eup %23883 }
 0x2a7   : > { %v25781_v52 = vmul.f32 %v25594_v13, %v31043_v54  ;;  %v31045_v10 = vunpack.c.l.bf16 %v25489_v16  ;;  %v1462_v38 = vmax.f32 %v1454_v45, 1e-12  ;;  %v1447_v11 = vsel %vm1445_vm6, %v1446_v44, %v1444_v32  ;;  %v25811_v7 = vpop.eup %23885 }
 0x2a8   : > { %31040 = vst [vmem:[#allocation68_spill] sm:$0xff] %v25763_v53  ;;  %31042 = vst [vmem:[#allocation69_spill] sm:$0xff] %v25773_v21  ;;  %v25805_v15 = vmul.f32 %v25773_v21, %v25663_v42  ;;  %v25809_v20 = vmul.f32 %v25773_v21, %v25649_v26  ;;  %v1461_v1 = vmax.f32 %v1447_v11, 1e-12  ;;  %v31049_v54 = vunpack.c.l.bf16 %v25510_v17 }
 0x2a9   : > { %31044 = vst [vmem:[#allocation70_spill] sm:$0xff] %v25781_v52  ;;  %v25799_v13 = vmul.f32 %v23868_v55, %v31045_v10  ;;  %v25819_v45 = vmul.f32 %v25773_v21, %v25792_v51  ;;  %v25823_v63 = vmul.f32 %v25773_v21, %v25588_v40  ;;  %v25825_v44 = vpop.eup %23887  ;;  %23901 = vrcp.f32 %v1462_v38 }
 0x2aa   : > { %31047 = vst [vmem:[#allocation72_spill] sm:$0xff] %v25805_v15  ;;  %31048 = vst [vmem:[#allocation73_spill] sm:$0xff] %v25809_v20  ;;  %v25815_v55 = vmul.f32 %v23884_v31, %v31049_v54  ;;  %v25829_v32 = vmul.f32 %v25811_v7, %v25515_v37  ;;  %v25835_v31 = vmul.f32 %v25773_v21, %v25592_v59  ;;  %v23890_v11 = vpop.eup %23889  ;;  %23903 = vrcp.f32 %v1461_v1 }
 0x2ab   : > { %31046 = vst [vmem:[#allocation71_spill] sm:$0xff] %v25799_v13  ;;  %31051 = vst [vmem:[#allocation75_spill] sm:$0xff] %v25823_v63  ;;  %v25839_v54 = vmul.f32 %v25773_v21, %v25742_v50  ;;  %v25843_v38 = vmul.f32 %v25773_v21, %v25733_v18  ;;  %v25847_v37 = vpack.c.bf16 %v25809_v20, %v25805_v15  ;;  %v23892_v46 = vpop.eup %23891  ;;  %v31057_v1 = vunpack.c.l.bf16 %v25417_v3 }
 0x2ac   : > { %31050 = vst [vmem:[#allocation74_spill] sm:$0xff] %v25815_v55  ;;  %31052 = vst [vmem:[#allocation76_spill] sm:$0xff] %v25835_v31  ;;  %v1464_v9 = vmul.f32 %v23890_v11, %v25137_v27  ;;  %v25852_v10 = vpack.c.bf16 %v25792_v51, %v25829_v32  ;;  %v25858_v50 = vmul.f32 %v25773_v21, %v25829_v32  ;;  %v31058_v11 = vunpack.c.h.bf16 %v25451_v48 }
 0x2ad   : > { %31053 = vst [vmem:[#allocation77_spill] sm:$0xff] %v25839_v54  ;;  %31054 = vst [vmem:[#allocation78_spill] sm:$0xff] %v25843_v38  ;;  %v23894_v18 = vpop.eup %23893  ;;  %v1474_v40 = vmul.f32 %v23892_v46, %v25337_v14 }
 0x2ae   : > { %31055 = vst [vmem:[#allocation79_spill] sm:$0xff] %v25847_v37  ;;  %v25863_v37 = vpack.c.bf16 %v25835_v31, %v25823_v63  ;;  %v23896_v59 = vpop.eup %23895  ;;  %v1525_v19 = vmul.f32 %v31057_v1, %v1464_v9  ;;  %21521 = vmatprep.subr.msk.bf16.mxu0 %vm25600_vm8, %v25852_v10  ;;  %v1472_v14 = vmul.f32 %v23894_v18, %v25311_v8  ;;  %v1517_v46 = vsub.f32 0.0, %v1464_v9 }
 0x2af   : > { %v23898_v15 = vpop.eup %23897  ;;  %v1466_v27 = vmul.f32 %v23896_v59, %v25251_v58  ;;  %21524 = vmatpush3.bf16.xpose.msk.msra.mxu0 %vm25600_vm8, %v25852_v10  ;;  %v1530_v1 = vmul.f32 %v31058_v11, %v1474_v40  ;;  %v1522_v63 = vsub.f32 0.0, %v1474_v40  ;;  %v25885_v31 = vpack.c.bf16 %v25843_v38, %v25839_v54 }
 0x2b0   : > { %31056 = vst [vmem:[#allocation80_spill] sm:$0xff] %v25863_v37  ;;  %v23900_v8 = vpop.eup %23899  ;;  %v1549_v18 = vmul.f32 %v25567_v6, %v1525_v19  ;;  %v1468_v9 = vmul.f32 %v23898_v15, %v25263_v61  ;;  %21551 = vmatprep.subr.msk.bf16.mxu0 %vm25600_vm8, %v25610_v2  ;;  %v31060_v58 = vunpack.c.l.bf16 %v25451_v48  ;;  %v25895_v37 = vmul.f32 %v25575_v25, %v1517_v46 }
 0x2b1   : > { %31059 = vst [vmem:[#allocation81_spill] sm:$0xff] %v25885_v31  ;;  %v1518_v40 = vsub.f32 0.0, %v1466_v27  ;;  %v31061_v11 = vunpack.c.h.bf16 %v25417_v3  ;;  %v1470_v31 = vmul.f32 %v23900_v8, %v25295_v4  ;;  %v1554_v19 = vmul.f32 %v25702_v47, %v1530_v1 }
 0x2b2   : > { %v1529_v59 = vmul.f32 %v31060_v58, %v1472_v14  ;;  %v31062_v61 = vunpack.c.l.bf16 %v25430_v41  ;;  %v1519_v38 = vsub.f32 0.0, %v1468_v9  ;;  %v1521_v20 = vsub.f32 0.0, %v1472_v14 }
 0x2b3   : > { %v1526_v54 = vmul.f32 %v31061_v11, %v1466_v27  ;;  %v25906_v25 = vmul.f32 %v25560_v33, %v1518_v40  ;;  %v31063_v46 = vunpack.c.h.bf16 %v25430_v41  ;;  %v1520_v27 = vsub.f32 0.0, %v1470_v31  ;;  %v23902_v58 = vpop.eup %23901 }
 0x2b4   : > { %v1527_v6 = vmul.f32 %v31062_v61, %v1468_v9  ;;  %v1553_v15 = vmul.f32 %v25735_v28, %v1529_v59  ;;  %v25914_v8 = vmul.f32 %v25656_v62, %v1519_v38  ;;  %v23904_v28 = vpop.eup %23903  ;;  %v1478_v33 = vmul.f32 %v23902_v58, %v25370_v43  ;;  %v31087_v58 = vld [vmem:[#allocation65_spill] sm:$0xff] }
 0x2b5   : > { %v1550_v48 = vmul.f32 %v25556_v30, %v1526_v54  ;;  %v1528_v3 = vmul.f32 %v31063_v46, %v1470_v31  ;;  %v1476_v41 = vmul.f32 %v23904_v28, %v25350_v22  ;;  %v25927_v31 = vmul.f32 %v25738_v29, %v1521_v20 }
 0x2b6   : > { %v1551_v4 = vmul.f32 %v25638_v34, %v1527_v6  ;;  %v23619_v47 = vpack.i.bf16 %v1554_v19, %v1553_v15  ;;  %v25911_v1 = vpack.c.bf16 %v1554_v19, %v1553_v15  ;;  %18686 = vmatmul.mubr.msk.f32.vlgmr.msra.gmra.mrb[16].mxu0 %vm1078_vm5, %v25620_v57  ;;  %v25924_v34 = vmul.f32 %v25613_v39, %v1520_v27 }
 0x2b7   : > { %v23609_v14 = vpack.i.bf16 %v1550_v48, %v1549_v18  ;;  %v25916_v9 = vpack.c.bf16 %v1550_v48, %v1549_v18  ;;  %v1552_v30 = vmul.f32 %v25604_v24, %v1528_v3  ;;  %v25930_v62 = vmul.f32 %v25711_v60, %v1522_v63  ;;  %18688 = vmatprep.mubr.msk.f32.mxu0 %vm1078_vm5, %v25763_v53 }
 0x2b8   : > { %v31064_v22 = vunpack.c.h.bf16 %v25466_v23  ;;  %v1524_v54 = vsub.f32 0.0, %v1478_v33  ;;  %v31065_v60 = vunpack.c.l.bf16 %v25466_v23  ;;  %v1523_v20 = vsub.f32 0.0, %v1476_v41  ;;  %21554 = vmatpush3.bf16.xpose.msk.msra.mxu0 %vm25600_vm8, %v25610_v2 }
 0x2b9   : > { %23610 = vrot.lane.b32.xlu0 %v23609_v14, %s24517_s25  ;;  %21479 = vmatprep.subr.msk.bf16.mxu1 %vm25600_vm8, %v25916_v9  ;;  %v23614_v43 = vpack.i.bf16 %v1552_v30, %v1551_v4  ;;  %v25936_v24 = vpack.c.bf16 %v1552_v30, %v1551_v4  ;;  %v25948_v63 = vmul.f32 %v25773_v21, %v1551_v4  ;;  %v31069_v3 = vunpack.c.h.bf16 %v25489_v16 }
 0x2ba   : > { %v1532_v39 = vmul.f32 %v31064_v22, %v1478_v33  ;;  %21482 = vmatpush3.bf16.xpose.msk.msra.mxu1 %vm25600_vm8, %v25916_v9  ;;  %v1531_v29 = vmul.f32 %v31065_v60, %v1476_v41  ;;  %v25951_v38 = vmul.f32 %v25773_v21, %v1552_v30  ;;  %v25959_v40 = vmul.f32 %v25783_v49, %v1524_v54  ;;  %v26182_v54 = vpop.f32.mrb[8].mxu0 }
 0x2bb   : > { %23615 = vrot.lane.b32.xlu1 %v23614_v43, %s24517_s25  ;;  %21485 = vmatprep.subr.msk.bf16.mxu1 %vm25600_vm8, %v25936_v24  ;;  %v25962_v23 = vmul.f32 %v25773_v21, %v1549_v18  ;;  %v25969_v61 = vmul.f32 %v25825_v44, %v1523_v20  ;;  %v26009_v27 = vmul.f32 %v25773_v21, %v1554_v19  ;;  %v31073_v14 = vunpack.c.h.bf16 %v25510_v17  ;;  %v26063_v17 = vld [vmem:[%s25052_s9 + $0x18] sm:$0xff]   ;;  %v26186_v60 = vpop.f32.mrb[9].mxu0 }
 0x2bc   : > { %v1556_v59 = vmul.f32 %v25765_v56, %v1532_v39  ;;  %v1555_v11 = vmul.f32 %v25811_v7, %v1531_v29  ;;  %v23674_v6 = vpack.i.bf16 %v25951_v38, %v25948_v63  ;;  %v25974_v56 = vmul.f32 %v25773_v21, %v1550_v48  ;;  %21557 = vmatprep.subr.msk.bf16.mxu0 %vm25600_vm8, %v25679_v0  ;;  %v18634_v29 = vpop.f32.mrb[10].mxu0 }
 0x2bd   : > { %31066 = vst [vmem:[#allocation82_spill] sm:$0xff] %v25962_v23  ;;  %18689 = vmatmul.mubr.msk.f32.gmra.mrb[18].mxu0 %vm1078_vm5, %v25781_v52  ;;  %v25986_v49 = vpack.c.bf16 %v25951_v38, %v25948_v63  ;;  %v25989_v7 = vmul.f32 %v25773_v21, %v1553_v15  ;;  %v26006_v15 = vmul.f32 %v25696_v12, %v31069_v3  ;;  %31071 = vst [vmem:[#allocation86_spill] sm:$0xff] %v26009_v27  ;;  %v26027_v12 = vld [vmem:[%s25052_s9 + $0x8] sm:$0xff]  }
 0x2be   : > { %31067 = vst [vmem:[#allocation83_spill] sm:$0xff] %v25974_v56  ;;  %v25982_v2 = vmul.f32 %v25773_v21, %v1556_v59  ;;  %v23624_v44 = vpack.i.bf16 %v1556_v59, %v1555_v11  ;;  %18691 = vmatprep.mubr.msk.f32.mxu0 %vm1078_vm5, %v25799_v13  ;;  %v25993_v18 = vpack.c.bf16 %v1556_v59, %v1555_v11  ;;  %v26052_v33 = vunpack.c.l.bf16 %v26027_v12  ;;  %v1663_v59 = vpop.f32.mrb[11].mxu0 }
 0x2bf   : > { %31068 = vst [vmem:[#allocation84_spill] sm:$0xff] %v25989_v7  ;;  %v25996_v48 = vmul.f32 %v25773_v21, %v1555_v11  ;;  %v26000_v46 = vpack.c.bf16 %v25974_v56, %v25962_v23  ;;  %23620 = vrot.lane.b32.xlu1 %v23619_v47, %s24517_s25  ;;  %31070 = vst [vmem:[#allocation85_spill] sm:$0xff] %v26006_v15  ;;  %v26015_v4 = vpack.c.bf16 %v25819_v45, %v25858_v50  ;;  %v31108_v21 = vld [vmem:[#allocation50_spill] sm:$0xff] }
 0x2c0   : > { %23625 = vrot.lane.b32.xlu0 %v23624_v44, %s24517_s25  ;;  %v26031_v19 = vpack.c.bf16 %v26009_v27, %v25989_v7  ;;  %v26046_v30 = vmul.f32 %v25756_v36, %v31073_v14  ;;  %21560 = vmatpush3.bf16.xpose.msk.msra.mxu0 %vm25600_vm8, %v25679_v0  ;;  %v26055_v41 = vunpack.c.h.bf16 %v26027_v12  ;;  %v26070_v36 = vunpack.c.l.bf16 %v26063_v17  ;;  %31079 = vst [vmem:[#allocation93_spill] sm:$0xff] %v26182_v54  ;;  %v26197_v44 = vpop.f32.mrb[12].mxu0 }
 0x2c1   : > { %31072 = vst [vmem:[#allocation87_spill] sm:$0xff] %v26015_v4  ;;  %v23684_v47 = vpack.i.bf16 %v25982_v2, %v25996_v48  ;;  %v26022_v16 = vpack.c.bf16 %v25982_v2, %v25996_v48  ;;  %18692 = vmatmul.mubr.msk.f32.gmra.mrb[20].mxu0 %vm1078_vm5, %v26006_v15  ;;  %21563 = vmatprep.subr.msk.bf16.mxu0 %vm25600_vm8, %v25752_v35  ;;  %v26073_v43 = vunpack.c.h.bf16 %v26063_v17  ;;  %31080 = vst [vmem:[#allocation94_spill] sm:$0xff] %v26186_v60  ;;  %v31106_v60 = vmov 0.0   ;;  %v31109_v4 = vld [vmem:[#allocation49_spill] sm:$0xff] }
 0x2c2   : > { %21488 = vmatpush3.bf16.xpose.msk.msra.mxu1 %vm25600_vm8, %v25936_v24  ;;  %18694 = vmatprep.mubr.msk.f32.mxu0 %vm1078_vm5, %v25815_v55  ;;  %31074 = vst [vmem:[#allocation88_spill] sm:$0xff] %v26046_v30  ;;  %v23654_v0 = vpack.i.bf16 %v26055_v41, %v26052_v33  ;;  %v26191_v20 = vmul.f32 %v18634_v29, %v26055_v41  ;;  %31083 = vst [vmem:[#allocation97_spill] sm:$0xff] %v26197_v44  ;;  %v31105_v44 = vld [vmem:[#allocation44_spill] sm:$0xff] }
 0x2c3   : > { %21491 = vmatprep.subr.msk.bf16.mxu1 %vm25600_vm8, %v25911_v1  ;;  %v23664_v22 = vpack.i.bf16 %v26073_v43, %v26070_v36  ;;  %v26195_v11 = vmul.f32 %v26052_v33, %v1663_v59  ;;  %v31089_v59 = vpack.i.bf16 %v25792_v51, %v25829_v32  ;;  %v31093_v32 = vpack.i.bf16 %v25819_v45, %v25858_v50 }
 0x2c4   : > { %31081 = vst [vmem:[#allocation95_spill] sm:$0xff] %v26191_v20  ;;  %v31103_v20 = vld [vmem:[#allocation43_spill] sm:$0xff] }
 0x2c5   : > { %18695 = vmatmul.mubr.msk.f32.gmra.mrb[22].mxu0 %vm1078_vm5, %v26046_v30  ;;  %31082 = vst [vmem:[#allocation96_spill] sm:$0xff] %v26195_v11  ;;  %vm824_vm11 = vcmp.gt.s32.totalorder %v31105_v44, %v31103_v20  ;;  %vm848_vm12 = vcmp.eq.s32.totalorder %v31105_v44, %v31103_v20  ;;  %vm827_vm13 = vcmp.gt.s32.totalorder %v31108_v21, %v31103_v20 }
 0x2c6   : > { %18741 = vmatprep.mubr.msk.f32.mxu0 %vm1078_vm5, %v25895_v37  ;;  %vm826_vm14 = vcmp.gt.s32.totalorder %v31109_v4, %v31103_v20  ;;  %v26330_v56 = vsel %vm848_vm12, 1.0, %v31106_v60  ;;  %vm851_vm15 = vcmp.eq.s32.totalorder %v31108_v21, %v31103_v20  ;;  %vm850_vm0 = vcmp.eq.s32.totalorder %v31109_v4, %v31103_v20 }
 0x2c7   : > { %31112 = vst [vmem:[#allocation49_spill] sm:$0xff] %v26330_v56 }
 0x2c8   : > { %21566 = vmatpush3.bf16.xpose.msk.msra.mxu0 %vm25600_vm8, %v25752_v35  ;;  %v26123_v35 = vld [vmem:[%s25052_s9] sm:$0xff]  }
 0x2c9   : > { %21569 = vmatprep.subr.msk.bf16.mxu0 %vm25600_vm8, %v25852_v10 }
 0x2ca   : > { %21494 = vmatpush3.bf16.xpose.msk.msra.mxu1 %vm25600_vm8, %v25911_v1 }
 0x2cb   : > { %21497 = vmatprep.subr.msk.bf16.mxu1 %vm25600_vm8, %v25993_v18 }
 0x2d0   : > { %21572 = vmatpush3.bf16.xpose.msk.msra.mxu0 %vm25600_vm8, %v25852_v10  ;;  %v26136_v10 = vunpack.c.l.bf16 %v26123_v35 }
 0x2d2   : > { %21500 = vmatpush3.bf16.xpose.msk.msra.mxu1 %vm25600_vm8, %v25993_v18  ;;  %31075 = vst [vmem:[#allocation89_spill] sm:$0xff] %v26136_v10 }
 0x2d3   : > { %21527 = vmatprep.subr.msk.bf16.mxu1 %vm25600_vm8, %v25916_v9 }
 0x2d7   : > { %18742 = vmatmul.mubr.msk.f32.vlgmr.msra.gmra.mrb[24].mxu0 %vm1078_vm5, %v25906_v25 }
 0x2d8   : > { %18744 = vmatprep.mubr.msk.f32.mxu0 %vm1078_vm5, %v25914_v8 }
 0x2d9   : > { %18658 = vmatmul.mubr.msk.f32.vlgmr.msra.gmra.mrb[8].mxu1 %vm1078_vm5, %v25620_v57 }
 0x2da   : > { %18660 = vmatprep.mubr.msk.f32.mxu1 %vm1078_vm5, %v25763_v53  ;;  %21530 = vmatpush3.bf16.xpose.msk.msra.mxu1 %vm25600_vm8, %v25916_v9  ;;  %v26148_v9 = vunpack.c.h.bf16 %v26123_v35 }
 0x2db   : > { %21533 = vmatprep.subr.msk.bf16.mxu1 %vm25600_vm8, %v25936_v24  ;;  %18745 = vmatmul.mubr.msk.f32.gmra.mrb[26].mxu0 %vm1078_vm5, %v25924_v34 }
 0x2dc   : > { %18747 = vmatprep.mubr.msk.f32.mxu0 %vm1078_vm5, %v25927_v31  ;;  %31076 = vst [vmem:[#allocation90_spill] sm:$0xff] %v26148_v9 }
 0x2dd   : > { %18661 = vmatmul.mubr.msk.f32.gmra.mrb[10].mxu1 %vm1078_vm5, %v25781_v52 }
 0x2de   : > { %18663 = vmatprep.mubr.msk.f32.mxu1 %vm1078_vm5, %v25799_v13 }
 0x2df   : > { %18748 = vmatmul.mubr.msk.f32.gmra.mrb[28].mxu0 %vm1078_vm5, %v25930_v62 }
 0x2e0   : > { %18750 = vmatprep.mubr.msk.f32.mxu0 %vm1078_vm5, %v25969_v61 }
 0x2e1   : > { %18664 = vmatmul.mubr.msk.f32.gmra.mrb[12].mxu1 %vm1078_vm5, %v26006_v15 }
 0x2e2   : > { %18666 = vmatprep.mubr.msk.f32.mxu1 %vm1078_vm5, %v25815_v55  ;;  %21536 = vmatpush3.bf16.xpose.msk.msra.mxu1 %vm25600_vm8, %v25936_v24  ;;  %v26159_v24 = vld [vmem:[%s25052_s9 + $0x10] sm:$0xff]  }
 0x2e3   : > { %21539 = vmatprep.subr.msk.bf16.mxu1 %vm25600_vm8, %v25911_v1  ;;  %18751 = vmatmul.mubr.msk.f32.gmra.mrb[30].mxu0 %vm1078_vm5, %v25959_v40  ;;  %v26166_v39 = vunpack.c.l.bf16 %v26159_v24  ;;  %v31124_v55 = vld [vmem:[#allocation55_spill] sm:$0xff] }
 0x2e4   : > { %vm854_vm12 = vcmp.eq.s32.totalorder %v31124_v55, %v31103_v20 }
 0x2e5   : > { %18667 = vmatmul.mubr.msk.f32.gmra.mrb[14].mxu1 %vm1078_vm5, %v26046_v30  ;;  %31077 = vst [vmem:[#allocation91_spill] sm:$0xff] %v26166_v39 }
 0x2e6   : > { %18713 = vmatprep.mubr.msk.f32.mxu1 %vm1078_vm5, %v25895_v37 }
 0x2e8   : > { %4445 = vxpose.xlu1.b32.start [1/8] (short) (narrow) %v26136_v10, 64  ;;  %v31115_v10 = vld [vmem:[#allocation54_spill] sm:$0xff] }
 0x2e9   : > { %vm829_vm1 = vcmp.gt.s32.totalorder %v31115_v10, %v31103_v20  ;;  %vm853_vm3 = vcmp.eq.s32.totalorder %v31115_v10, %v31103_v20 }
 0x2ea   : > { %21542 = vmatpush3.bf16.xpose.msk.msra.mxu1 %vm25600_vm8, %v25911_v1  ;;  %v26170_v1 = vunpack.c.h.bf16 %v26159_v24 }
 0x2eb   : > { %21545 = vmatprep.subr.msk.bf16.mxu1 %vm25600_vm8, %v25993_v18 }
 0x2ec   : > { %4446 = vxpose.xlu1.b32.cont [2/8] (short) (narrow) %v26148_v9, 64  ;;  %31078 = vst [vmem:[#allocation92_spill] sm:$0xff] %v26170_v1  ;;  %v26341_v9 = vsel %vm826_vm14, 1.0, %v31106_v60 }
 0x2ed   : > { %31114 = vst [vmem:[#allocation109_spill] sm:$0xff] %v26341_v9 }
 0x2f0   : > { %4447 = vxpose.xlu1.b32.cont [3/8] (short) (narrow) %v26052_v33, 64 }
 0x2f2   : > { %21548 = vmatpush3.bf16.xpose.msk.msra.mxu1 %vm25600_vm8, %v25993_v18  ;;  %v26201_v18 = vpop.f32.mrb[13].mxu0 }
 0x2f3   : > { %31084 = vst [vmem:[#allocation98_spill] sm:$0xff] %v26201_v18  ;;  %v18640_v3 = vpop.f32.mrb[14].mxu0  ;;  %v31104_v18 = vld [vmem:[#allocation48_spill] sm:$0xff] }
 0x2f4   : > { %4448 = vxpose.xlu1.b32.cont [4/8] (short) (narrow) %v26055_v41, 64  ;;  %v26204_v14 = vmul.f32 %v18640_v3, %v26073_v43  ;;  %v1683_v28 = vpop.f32.mrb[15].mxu0  ;;  %vm825_vm7 = vcmp.gt.s32.totalorder %v31104_v18, %v31103_v20  ;;  %vm849_vm10 = vcmp.eq.s32.totalorder %v31104_v18, %v31103_v20  ;;  %v26324_v18 = vsel %vm824_vm11, 1.0, %v31106_v60 }
 0x2f5   : > { %v26207_v29 = vmul.f32 %v26070_v36, %v1683_v28  ;;  %v31088_v28 = vpack.i.bf16 %v25649_v26, %v25663_v42  ;;  %v31090_v26 = vld [vmem:[#allocation73_spill] sm:$0xff]  ;;  %v31091_v42 = vld [vmem:[#allocation72_spill] sm:$0xff]  ;;  %v26314_v54 = vsel %vm825_vm7, 1.0, %v31106_v60  ;;  %v26321_v27 = vsel %vm849_vm10, 1.0, %v31106_v60  ;;  %31111 = vst [vmem:[#allocation50_spill] sm:$0xff] %v26324_v18 }
 0x2f6   : > { %31085 = vst [vmem:[#allocation99_spill] sm:$0xff] %v26204_v14  ;;  %v31092_v51 = vpack.i.bf16 %v31090_v26, %v31091_v42  ;;  %31107 = vst [vmem:[#allocation43_spill] sm:$0xff] %v26314_v54  ;;  %vm830_vm11 = vcmp.gt.s32.totalorder %v31124_v55, %v31103_v20 }
 0x2f7   : > { %31086 = vst [vmem:[#allocation100_spill] sm:$0xff] %v26207_v29  ;;  %31110 = vst [vmem:[#allocation48_spill] sm:$0xff] %v26321_v27  ;;  %v26413_v53 = vsel %vm830_vm11, 1.0, %v31106_v60 }
 0x2f8   : > { %4449 = vxpose.xlu1.b32.cont [5/8] (short) (narrow) %v26166_v39, 64  ;;  %v26338_v39 = vsel %vm827_vm13, 1.0, %v31106_v60  ;;  %31127 = vst [vmem:[#allocation114_spill] sm:$0xff] %v26413_v53 }
 0x2f9   : > { %18714 = vmatmul.mubr.msk.f32.vlgmr.msra.gmra.mrb[16].mxu1 %vm1078_vm5, %v25906_v25  ;;  %31113 = vst [vmem:[#allocation108_spill] sm:$0xff] %v26338_v39 }
 0x2fa   : > { %18716 = vmatprep.mubr.msk.f32.mxu1 %vm1078_vm5, %v25914_v8 }
 0x2fc   : > { %4450 = vxpose.xlu1.b32.cont [6/8] (short) (narrow) %v26170_v1, 64 }
 0x2fd   : > { %18717 = vmatmul.mubr.msk.f32.gmra.mrb[18].mxu1 %vm1078_vm5, %v25924_v34 }
 0x2fe   : > { %18719 = vmatprep.mubr.msk.f32.mxu1 %vm1078_vm5, %v25927_v31 }
 0x300   : > { %4451 = vxpose.xlu1.b32.cont [7/8] (short) (narrow) %v26070_v36, 64 }
 0x301   : > { %18720 = vmatmul.mubr.msk.f32.gmra.mrb[20].mxu1 %vm1078_vm5, %v25930_v62 }
 0x302   : > { %18722 = vmatprep.mubr.msk.f32.mxu1 %vm1078_vm5, %v25969_v61 }
 0x304   : > { %4452 = vxpose.xlu1.b32.end [8/8] (short) (narrow) %v26073_v43, 64 }
 0x305   : > { %18723 = vmatmul.mubr.msk.f32.gmra.mrb[22].mxu1 %vm1078_vm5, %v25959_v40 }
 0x322   : > { %4631 = vrot.lane.b32.xlu1 %v31087_v58, %s24517_s25 }
 0x326   : > { %4637 = vrot.lane.b32.xlu1 %v25781_v52, %s24517_s25 }
 0x32a   : > { %4641 = vrot.lane.b32.xlu1 %v26006_v15, %s24517_s25 }
 0x32e   : > { %4645 = vrot.lane.b32.xlu1 %v26046_v30, %s24517_s25  ;;  %v26383_v30 = vsel %vm853_vm3, 1.0, %v31106_v60 }
 0x32f   : > { %31121 = vst [vmem:[#allocation112_spill] sm:$0xff] %v26383_v30 }
 0x332   : > { %4955 = vrot.lane.b32.xlu1 %v25906_v25, %s24517_s25 }
 0x336   : > { %4959 = vrot.lane.b32.xlu1 %v25924_v34, %s24517_s25 }
 0x33a   : > { %4963 = vrot.lane.b32.xlu1 %v25930_v62, %s24517_s25 }
 0x33e   : > { %4967 = vrot.lane.b32.xlu1 %v25959_v40, %s24517_s25 }
 0x342   : > { %23635 = vrot.lane.b32.xlu1 %v31088_v28, %s24517_s25 }
 0x346   : > { %23645 = vrot.lane.b32.xlu1 %v31089_v59, %s24517_s25 }
 0x34a   : > { %23655 = vrot.lane.b32.xlu1 %v23654_v0, %s24517_s25 }
 0x34e   : > { %23665 = vrot.lane.b32.xlu1 %v23664_v22, %s24517_s25 }
 0x352   : > { %23675 = vrot.lane.b32.xlu1 %v23674_v6, %s24517_s25 }
 0x356   : > { %23685 = vrot.lane.b32.xlu1 %v23684_v47, %s24517_s25 }
 0x35a   : > { %23695 = vrot.lane.b32.xlu1 %v31092_v51, %s24517_s25 }
 0x35e   : > { %23705 = vrot.lane.b32.xlu1 %v31093_v32, %s24517_s25 }
 0x389   : > { %v26257_v33 = vpop.f32.mrb[16].mxu0 }
 0x38a   : > { %31094 = vst [vmem:[#allocation73_spill] sm:$0xff] %v26257_v33  ;;  %v26259_v41 = vpop.f32.mrb[17].mxu0 }
 0x38b   : > { %31095 = vst [vmem:[#allocation72_spill] sm:$0xff] %v26259_v41 }
 0x390   : > { %v26261_v63 = vpop.f32.mrb[18].mxu0 }
 0x391   : > { %31096 = vst [vmem:[#allocation101_spill] sm:$0xff] %v26261_v63  ;;  %v26263_v38 = vpop.f32.mrb[19].mxu0 }
 0x392   : > { %31097 = vst [vmem:[#allocation102_spill] sm:$0xff] %v26263_v38 }
 0x394   : > { %v26265_v6 = vpop.f32.mrb[20].mxu0 }
 0x395   : > { %31098 = vst [vmem:[#allocation103_spill] sm:$0xff] %v26265_v6  ;;  %v26267_v2 = vpop.f32.mrb[21].mxu0 }
 0x396   : > { %31099 = vst [vmem:[#allocation104_spill] sm:$0xff] %v26267_v2  ;;  %v26361_v2 = vsel %vm850_vm0, 1.0, %v31106_v60 }
 0x398   : > { %v26269_v48 = vpop.f32.mrb[22].mxu0 }
 0x399   : > { %31100 = vst [vmem:[#allocation105_spill] sm:$0xff] %v26269_v48  ;;  %v26271_v47 = vpop.f32.mrb[23].mxu0 }
 0x39a   : > { %31101 = vst [vmem:[#allocation106_spill] sm:$0xff] %v26271_v47  ;;  %v31117_v47 = vld [vmem:[#allocation51_spill] sm:$0xff] }
 0x39b   : > { %vm828_vm2 = vcmp.gt.s32.totalorder %v31117_v47, %v31103_v20  ;;  %31118 = vst [vmem:[#allocation51_spill] sm:$0xff] %v26361_v2  ;;  %vm852_vm6 = vcmp.eq.s32.totalorder %v31117_v47, %v31103_v20  ;;  %v31122_v47 = vld [vmem:[#allocation58_spill] sm:$0xff] }
 0x39c   : > { %v26377_v38 = vsel %vm828_vm2, 1.0, %v31106_v60  ;;  %vm831_vm7 = vcmp.gt.s32.totalorder %v31122_v47, %v31103_v20  ;;  %vm855_vm10 = vcmp.eq.s32.totalorder %v31122_v47, %v31103_v20 }
 0x39d   : > { %31120 = vst [vmem:[#allocation111_spill] sm:$0xff] %v26377_v38 }
 0x3aa   : > { %v26277_v45 = vpop.f32.mrb[24].mxu0 }
 0x3ab   : > { %v26279_v36 = vpop.f32.mrb[25].mxu0 }
 0x3ac   : > { %v26273_v0 = vpop.f32.mrb[8].mxu1 }
 0x3ad   : > { %v26275_v50 = vpop.f32.mrb[9].mxu1 }
 0x3ae   : > { %v26285_v3 = vpop.f32.mrb[26].mxu0 }
 0x3af   : > { %v26287_v28 = vpop.f32.mrb[27].mxu0 }
 0x3b0   : > { %v26281_v43 = vpop.f32.mrb[10].mxu1 }
 0x3b1   : > { %v26283_v22 = vpop.f32.mrb[11].mxu1 }
 0x3b2   : > { %v26293_v42 = vpop.f32.mrb[28].mxu0 }
 0x3b3   : > { %v26295_v51 = vpop.f32.mrb[29].mxu0 }
 0x3b4   : > { %v26289_v59 = vpop.f32.mrb[12].mxu1 }
 0x3b5   : > { %v26291_v26 = vpop.f32.mrb[13].mxu1 }
 0x3b6   : > { %v26301_v14 = vpop.f32.mrb[30].mxu0 }
 0x3b7   : > { %v26303_v11 = vpop.f32.mrb[31].mxu0 }
 0x3b8   : > { %v26297_v32 = vpop.f32.mrb[14].mxu1 }
 0x3b9   : > { %31102 = vst [vmem:[#allocation107_spill] sm:$0xff] %v26297_v32  ;;  %v26299_v29 = vpop.f32.mrb[15].mxu1 }
 0x3cc   : > { %v18715_v7 = vpop.f32.mrb[16].mxu1 }
 0x3cd   : > { %v26327_v23 = vmul.f32 %v18715_v7, %v26314_v54  ;;  %v2088_v44 = vpop.f32.mrb[17].mxu1 }
 0x3ce   : > { %v2127_v1 = vmul.f32 %v26324_v18, %v2088_v44  ;;  %v26355_v44 = vsel %vm851_vm15, 1.0, %v31106_v60 }
 0x3cf   : > { %v26345_v7 = vadd.f32 %v26321_v27, %v26327_v23  ;;  %31116 = vst [vmem:[#allocation54_spill] sm:$0xff] %v26355_v44 }
 0x3d0   : > { %v18718_v48 = vpop.f32.mrb[18].mxu1  ;;  %18769 = vmatprep.mubr.msk.f32.mxu1 %vm1078_vm5, %v2127_v1  ;;  %v21573_v21 = vpack.c.bf16 %v26327_v23, %v2127_v1  ;;  %v26352_v4 = vadd.f32 %v26330_v56, %v2127_v1  ;;  %v26371_v56 = vsel %vm829_vm1, 1.0, %v31106_v60 }
 0x3d1   : > { %v2130_v27 = vmul.f32 %v18718_v48, %v26338_v39  ;;  %v2098_v6 = vpop.f32.mrb[19].mxu1  ;;  %31119 = vst [vmem:[#allocation110_spill] sm:$0xff] %v26371_v56 }
 0x3d2   : > { %v2129_v63 = vmul.f32 %v26341_v9, %v2098_v6  ;;  %21574 = vmatprep.subr.bf16.mxu1 %v21573_v21  ;;  %v21589_v1 = vpack.c.bf16 %v26345_v7, %v26352_v4 }
 0x3d3   : > { %21576 = vmatpush3.bf16.msra.mxu1 %v21573_v21  ;;  %v26374_v48 = vadd.f32 %v26355_v44, %v2130_v27  ;;  %v26389_v44 = vsel %vm852_vm6, 1.0, %v31106_v60 }
 0x3d4   : > { %v18721_v10 = vpop.f32.mrb[20].mxu1  ;;  %21590 = vmatprep.subr.bf16.mxu0 %v21589_v1  ;;  %v21577_v6 = vpack.c.bf16 %v2130_v27, %v2129_v63  ;;  %v26380_v33 = vadd.f32 %v26361_v2, %v2129_v63  ;;  %31123 = vst [vmem:[#allocation58_spill] sm:$0xff] %v26389_v44 }
 0x3d5   : > { %v2132_v21 = vmul.f32 %v18721_v10, %v26371_v56  ;;  %v2108_v41 = vpop.f32.mrb[21].mxu1  ;;  %21592 = vmatpush3.bf16.msra.mxu0 %v21589_v1  ;;  %v26404_v10 = vsel %vm831_vm7, 1.0, %v31106_v60 }
 0x3d6   : > { %v2131_v2 = vmul.f32 %v26377_v38, %v2108_v41  ;;  %21578 = vmatprep.subr.bf16.mxu1 %v21577_v6  ;;  %v21593_v15 = vpack.c.bf16 %v26374_v48, %v26380_v33  ;;  %31125 = vst [vmem:[#allocation55_spill] sm:$0xff] %v26404_v10  ;;  %v26410_v41 = vsel %vm855_vm10, 1.0, %v31106_v60 }
 0x3d7   : > { %21580 = vmatpush3.bf16.msra.mxu1 %v21577_v6  ;;  %v26401_v1 = vadd.f32 %v26383_v30, %v2132_v21  ;;  %31126 = vst [vmem:[#allocation113_spill] sm:$0xff] %v26410_v41  ;;  %v26417_v6 = vsel %vm854_vm12, 1.0, %v31106_v60 }
 0x3d8   : > { %v18724_v47 = vpop.f32.mrb[22].mxu1  ;;  %21594 = vmatprep.subr.bf16.mxu0 %v21593_v15  ;;  %v21581_v13 = vpack.c.bf16 %v2132_v21, %v2131_v2  ;;  %v26407_v52 = vadd.f32 %v26389_v44, %v2131_v2  ;;  %31128 = vst [vmem:[#allocation115_spill] sm:$0xff] %v26417_v6 }
 0x3d9   : > { %v2134_v55 = vmul.f32 %v18724_v47, %v26404_v10  ;;  %v2118_v20 = vpop.f32.mrb[23].mxu1  ;;  %21596 = vmatpush3.bf16.msra.mxu0 %v21593_v15 }
 0x3da   : > { %v2133_v30 = vmul.f32 %v26413_v53, %v2118_v20  ;;  %21582 = vmatprep.subr.bf16.mxu1 %v21581_v13  ;;  %v21597_v44 = vpack.c.bf16 %v26401_v1, %v26407_v52 }
 0x3db   : > { %21584 = vmatpush3.bf16.msra.mxu1 %v21581_v13  ;;  %v26423_v57 = vadd.f32 %v26410_v41, %v2134_v55 }
 0x3dc   : > { %21598 = vmatprep.subr.bf16.mxu0 %v21597_v44  ;;  %v21585_v58 = vpack.c.bf16 %v2134_v55, %v2133_v30  ;;  %v26426_v32 = vadd.f32 %v26417_v6, %v2133_v30 }
 0x3dd   : > { %21600 = vmatpush3.bf16.msra.mxu0 %v21597_v44 }
 0x3de   : > { %21586 = vmatprep.subr.bf16.mxu1 %v21585_v58  ;;  %v21601_v15 = vpack.c.bf16 %v26423_v57, %v26426_v32 }
 0x3df   : > { %21588 = vmatpush3.bf16.msra.mxu1 %v21585_v58 }
 0x3e0   : > { %21602 = vmatprep.subr.bf16.mxu0 %v21601_v15 }
 0x3e1   : > { %21604 = vmatpush3.bf16.msra.mxu0 %v21601_v15 }
 0x3e2   : > { %18770 = vmatmul.mubr.msk.f32.vlgmr.msra.gmra.mrb[24].mxu1 %vm1078_vm5, %v26327_v23 }
 0x3e3   : > { %18772 = vmatprep.mubr.msk.f32.mxu1 %vm1078_vm5, %v2129_v63 }
 0x3e6   : > { %18773 = vmatmul.mubr.msk.f32.gmra.mrb[26].mxu1 %vm1078_vm5, %v2130_v27 }
 0x3e7   : > { %18775 = vmatprep.mubr.msk.f32.mxu1 %vm1078_vm5, %v2131_v2 }
 0x3ea   : > { %18776 = vmatmul.mubr.msk.f32.gmra.mrb[28].mxu1 %vm1078_vm5, %v2132_v21 }
 0x3eb   : > { %18778 = vmatprep.mubr.msk.f32.mxu1 %vm1078_vm5, %v2133_v30 }
 0x3ee   : > { %18779 = vmatmul.mubr.msk.f32.gmra.mrb[30].mxu1 %vm1078_vm5, %v2134_v55 }
 0x4b5   : > { %v18771_v13 = vpop.f32.mrb[24].mxu1 }
 0x4b6   : > { %v2346_v60 = vpop.f32.mrb[25].mxu1 }
 0x4b7   : > { %18797 = vmatprep.mubr.msk.f32.mxu0 %vm1078_vm5, %v2346_v60  ;;  %18825 = vmatprep.mubr.msk.f32.mxu1 %vm1078_vm5, %v2346_v60  ;;  %v21605_v58 = vpack.c.bf16 %v18771_v13, %v2346_v60 }
 0x4b8   : > { %18798 = vmatmul.mubr.msk.f32.vlgmr.msra.gmra.mrb[32].mxu0 %vm1078_vm5, %v18771_v13 }
 0x4b9   : > { %v18774_v23 = vpop.f32.mrb[26].mxu1  ;;  %21606 = vmatprep.subr.bf16.mxu1 %v21605_v58 }
 0x4ba   : > { %v2356_v27 = vpop.f32.mrb[27].mxu1  ;;  %21608 = vmatpush3.bf16.msra.mxu1 %v21605_v58 }
 0x4bb   : > { %18800 = vmatprep.mubr.msk.f32.mxu0 %vm1078_vm5, %v2356_v27  ;;  %v21609_v63 = vpack.c.bf16 %v18774_v23, %v2356_v27 }
 0x4bc   : > { %18801 = vmatmul.mubr.msk.f32.gmra.mrb[34].mxu0 %vm1078_vm5, %v18774_v23 }
 0x4bd   : > { %v18777_v30 = vpop.f32.mrb[28].mxu1  ;;  %21610 = vmatprep.subr.bf16.mxu1 %v21609_v63 }
 0x4be   : > { %v2366_v2 = vpop.f32.mrb[29].mxu1  ;;  %21612 = vmatpush3.bf16.msra.mxu1 %v21609_v63 }
 0x4bf   : > { %18803 = vmatprep.mubr.msk.f32.mxu0 %vm1078_vm5, %v2366_v2  ;;  %v21613_v44 = vpack.c.bf16 %v18777_v30, %v2366_v2 }
 0x4c0   : > { %18804 = vmatmul.mubr.msk.f32.gmra.mrb[36].mxu0 %vm1078_vm5, %v18777_v30 }
 0x4c1   : > { %v18780_v21 = vpop.f32.mrb[30].mxu1  ;;  %21614 = vmatprep.subr.bf16.mxu1 %v21613_v44 }
 0x4c2   : > { %v2376_v47 = vpop.f32.mrb[31].mxu1  ;;  %21616 = vmatpush3.bf16.msra.mxu1 %v21613_v44 }
 0x4c3   : > { %18806 = vmatprep.mubr.msk.f32.mxu0 %vm1078_vm5, %v2376_v47  ;;  %v21617_v55 = vpack.c.bf16 %v18780_v21, %v2376_v47 }
 0x4c4   : > { %18807 = vmatmul.mubr.msk.f32.gmra.mrb[38].mxu0 %vm1078_vm5, %v18780_v21 }
 0x4c5   : > { %21618 = vmatprep.subr.bf16.mxu1 %v21617_v55 }
 0x4c6   : > { %21620 = vmatpush3.bf16.msra.mxu1 %v21617_v55 }
 0x4c9   : > { %18826 = vmatmul.mubr.msk.f32.vlgmr.msra.gmra.mrb[32].mxu1 %vm1078_vm5, %v18771_v13 }
 0x4ca   : > { %18828 = vmatprep.mubr.msk.f32.mxu1 %vm1078_vm5, %v2356_v27 }
 0x4cd   : > { %18829 = vmatmul.mubr.msk.f32.gmra.mrb[34].mxu1 %vm1078_vm5, %v18774_v23 }
 0x4ce   : > { %18831 = vmatprep.mubr.msk.f32.mxu1 %vm1078_vm5, %v2366_v2 }
 0x4d1   : > { %18832 = vmatmul.mubr.msk.f32.gmra.mrb[36].mxu1 %vm1078_vm5, %v18777_v30 }
 0x4d2   : > { %18834 = vmatprep.mubr.msk.f32.mxu1 %vm1078_vm5, %v2376_v47 }
 0x4d5   : > { %18835 = vmatmul.mubr.msk.f32.gmra.mrb[38].mxu1 %vm1078_vm5, %v18780_v21 }
 0x58b   : > { %v18799_v20 = vpop.f32.mrb[32].mxu0 }
 0x58c   : > { %v26455_v15 = vadd.f32 %v18799_v20, %v26345_v7  ;;  %v2475_v60 = vpop.f32.mrb[33].mxu0 }
 0x58d   : > { %v26458_v58 = vadd.f32 %v2475_v60, %v26352_v4 }
 0x58f   : > { %v18802_v13 = vpop.f32.mrb[34].mxu0  ;;  %v21621_v23 = vpack.c.bf16 %v26455_v15, %v26458_v58 }
 0x590   : > { %v26463_v27 = vadd.f32 %v18802_v13, %v26374_v48  ;;  %v2485_v63 = vpop.f32.mrb[35].mxu0 }
 0x591   : > { %v26466_v30 = vadd.f32 %v2485_v63, %v26380_v33  ;;  %21622 = vmatprep.subr.bf16.mxu0 %v21621_v23 }
 0x592   : > { %21624 = vmatpush3.bf16.msra.mxu0 %v21621_v23 }
 0x593   : > { %v18805_v2 = vpop.f32.mrb[36].mxu0  ;;  %v21625_v7 = vpack.c.bf16 %v26463_v27, %v26466_v30 }
 0x594   : > { %v26471_v4 = vadd.f32 %v18805_v2, %v26401_v1  ;;  %v2495_v44 = vpop.f32.mrb[37].mxu0 }
 0x595   : > { %v26474_v21 = vadd.f32 %v2495_v44, %v26407_v52  ;;  %21626 = vmatprep.subr.bf16.mxu0 %v21625_v7 }
 0x596   : > { %21628 = vmatpush3.bf16.msra.mxu0 %v21625_v7 }
 0x597   : > { %v18808_v48 = vpop.f32.mrb[38].mxu0  ;;  %v21629_v33 = vpack.c.bf16 %v26471_v4, %v26474_v21 }
 0x598   : > { %v26479_v47 = vadd.f32 %v18808_v48, %v26423_v57  ;;  %v2505_v55 = vpop.f32.mrb[39].mxu0 }
 0x599   : > { %v26482_v20 = vadd.f32 %v2505_v55, %v26426_v32  ;;  %21630 = vmatprep.subr.bf16.mxu0 %v21629_v33 }
 0x59a   : > { %21632 = vmatpush3.bf16.msra.mxu0 %v21629_v33 }
 0x59b   : > { %v21633_v1 = vpack.c.bf16 %v26479_v47, %v26482_v20 }
 0x59c   : > { %v18827_v52 = vpop.f32.mrb[32].mxu1 }
 0x59d   : > { %v2588_v60 = vpop.f32.mrb[33].mxu1  ;;  %21634 = vmatprep.subr.bf16.mxu0 %v21633_v1 }
 0x59e   : > { %21636 = vmatpush3.bf16.msra.mxu0 %v21633_v1  ;;  %18853 = vmatprep.mubr.msk.f32.mxu0 %vm1078_vm5, %v2588_v60  ;;  %v21637_v13 = vpack.c.bf16 %v18827_v52, %v2588_v60 }
 0x59f   : > { %18881 = vmatprep.mubr.msk.f32.mxu1 %vm1078_vm5, %v2588_v60 }
 0x5a0   : > { %v18830_v57 = vpop.f32.mrb[34].mxu1  ;;  %21638 = vmatprep.subr.bf16.mxu1 %v21637_v13 }
 0x5a1   : > { %v2598_v23 = vpop.f32.mrb[35].mxu1  ;;  %18854 = vmatmul.mubr.msk.f32.vlgmr.msra.gmra.mrb[40].mxu0 %vm1078_vm5, %v18827_v52  ;;  %21640 = vmatpush3.bf16.msra.mxu1 %v21637_v13 }
 0x5a2   : > { %18856 = vmatprep.mubr.msk.f32.mxu0 %vm1078_vm5, %v2598_v23  ;;  %v21641_v32 = vpack.c.bf16 %v18830_v57, %v2598_v23 }
 0x5a4   : > { %v18833_v63 = vpop.f32.mrb[36].mxu1  ;;  %21642 = vmatprep.subr.bf16.mxu1 %v21641_v32 }
 0x5a5   : > { %v2608_v2 = vpop.f32.mrb[37].mxu1  ;;  %18857 = vmatmul.mubr.msk.f32.gmra.mrb[42].mxu0 %vm1078_vm5, %v18830_v57  ;;  %21644 = vmatpush3.bf16.msra.mxu1 %v21641_v32 }
 0x5a6   : > { %18859 = vmatprep.mubr.msk.f32.mxu0 %vm1078_vm5, %v2608_v2  ;;  %v21645_v7 = vpack.c.bf16 %v18833_v63, %v2608_v2 }
 0x5a8   : > { %v18836_v44 = vpop.f32.mrb[38].mxu1  ;;  %21646 = vmatprep.subr.bf16.mxu1 %v21645_v7 }
 0x5a9   : > { %v2618_v48 = vpop.f32.mrb[39].mxu1  ;;  %18860 = vmatmul.mubr.msk.f32.gmra.mrb[44].mxu0 %vm1078_vm5, %v18833_v63  ;;  %21648 = vmatpush3.bf16.msra.mxu1 %v21645_v7 }
 0x5aa   : > { %18862 = vmatprep.mubr.msk.f32.mxu0 %vm1078_vm5, %v2618_v48  ;;  %v21649_v33 = vpack.c.bf16 %v18836_v44, %v2618_v48 }
 0x5ac   : > { %21650 = vmatprep.subr.bf16.mxu1 %v21649_v33 }
 0x5ad   : > { %18863 = vmatmul.mubr.msk.f32.gmra.mrb[46].mxu0 %vm1078_vm5, %v18836_v44  ;;  %21652 = vmatpush3.bf16.msra.mxu1 %v21649_v33 }
 0x5b0   : > { %18882 = vmatmul.mubr.msk.f32.vlgmr.msra.gmra.mrb[40].mxu1 %vm1078_vm5, %v18827_v52 }
 0x5b1   : > { %18884 = vmatprep.mubr.msk.f32.mxu1 %vm1078_vm5, %v2598_v23 }
 0x5b4   : > { %18885 = vmatmul.mubr.msk.f32.gmra.mrb[42].mxu1 %vm1078_vm5, %v18830_v57 }
 0x5b5   : > { %18887 = vmatprep.mubr.msk.f32.mxu1 %vm1078_vm5, %v2608_v2 }
 0x5b8   : > { %18888 = vmatmul.mubr.msk.f32.gmra.mrb[44].mxu1 %vm1078_vm5, %v18833_v63 }
 0x5b9   : > { %18890 = vmatprep.mubr.msk.f32.mxu1 %vm1078_vm5, %v2618_v48 }
 0x5bc   : > { %18891 = vmatmul.mubr.msk.f32.gmra.mrb[46].mxu1 %vm1078_vm5, %v18836_v44 }
 0x674   : > { %v18855_v55 = vpop.f32.mrb[40].mxu0 }
 0x675   : > { %v26503_v1 = vadd.f32 %v18855_v55, %v26455_v15  ;;  %v2717_v60 = vpop.f32.mrb[41].mxu0 }
 0x676   : > { %v26506_v13 = vadd.f32 %v2717_v60, %v26458_v58 }
 0x678   : > { %v18858_v52 = vpop.f32.mrb[42].mxu0  ;;  %v21653_v57 = vpack.c.bf16 %v26503_v1, %v26506_v13 }
 0x679   : > { %v26511_v23 = vadd.f32 %v18858_v52, %v26463_v27  ;;  %v2727_v32 = vpop.f32.mrb[43].mxu0 }
 0x67a   : > { %v26514_v63 = vadd.f32 %v2727_v32, %v26466_v30  ;;  %21654 = vmatprep.subr.bf16.mxu0 %v21653_v57 }
 0x67b   : > { %21656 = vmatpush3.bf16.msra.mxu0 %v21653_v57 }
 0x67c   : > { %v18861_v2 = vpop.f32.mrb[44].mxu0  ;;  %v21657_v15 = vpack.c.bf16 %v26511_v23, %v26514_v63 }
 0x67d   : > { %v26519_v58 = vadd.f32 %v18861_v2, %v26471_v4  ;;  %v2737_v7 = vpop.f32.mrb[45].mxu0 }
 0x67e   : > { %v26522_v44 = vadd.f32 %v2737_v7, %v26474_v21  ;;  %21658 = vmatprep.subr.bf16.mxu0 %v21657_v15 }
 0x67f   : > { %21660 = vmatpush3.bf16.msra.mxu0 %v21657_v15 }
 0x680   : > { %v18864_v27 = vpop.f32.mrb[46].mxu0  ;;  %v21661_v30 = vpack.c.bf16 %v26519_v58, %v26522_v44 }
 0x681   : > { %v26527_v48 = vadd.f32 %v18864_v27, %v26479_v47  ;;  %v2747_v33 = vpop.f32.mrb[47].mxu0 }
 0x682   : > { %v26530_v55 = vadd.f32 %v2747_v33, %v26482_v20  ;;  %21662 = vmatprep.subr.bf16.mxu0 %v21661_v30 }
 0x683   : > { %v18883_v4 = vpop.f32.mrb[40].mxu1  ;;  %21664 = vmatpush3.bf16.msra.mxu0 %v21661_v30 }
 0x684   : > { %v2830_v60 = vpop.f32.mrb[41].mxu1  ;;  %v21665_v21 = vpack.c.bf16 %v26527_v48, %v26530_v55 }
 0x685   : > { %18909 = vmatprep.mubr.msk.f32.mxu0 %vm1078_vm5, %v2830_v60  ;;  %18937 = vmatprep.mubr.msk.f32.mxu1 %vm1078_vm5, %v2830_v60  ;;  %v21669_v52 = vpack.c.bf16 %v18883_v4, %v2830_v60 }
 0x686   : > { %21666 = vmatprep.subr.bf16.mxu0 %v21665_v21 }
 0x687   : > { %v18886_v57 = vpop.f32.mrb[42].mxu1  ;;  %21668 = vmatpush3.bf16.msra.mxu0 %v21665_v21  ;;  %21670 = vmatprep.subr.bf16.mxu1 %v21669_v52 }
 0x688   : > { %v2840_v47 = vpop.f32.mrb[43].mxu1  ;;  %21672 = vmatpush3.bf16.msra.mxu1 %v21669_v52 }
 0x689   : > { %v21673_v20 = vpack.c.bf16 %v18886_v57, %v2840_v47 }
 0x68a   : > { %18910 = vmatmul.mubr.msk.f32.vlgmr.msra.gmra.mrb[48].mxu0 %vm1078_vm5, %v18883_v4 }
 0x68b   : > { %v18889_v32 = vpop.f32.mrb[44].mxu1  ;;  %18912 = vmatprep.mubr.msk.f32.mxu0 %vm1078_vm5, %v2840_v47  ;;  %21674 = vmatprep.subr.bf16.mxu1 %v21673_v20 }
 0x68c   : > { %v2850_v2 = vpop.f32.mrb[45].mxu1  ;;  %21676 = vmatpush3.bf16.msra.mxu1 %v21673_v20 }
 0x68d   : > { %v21677_v15 = vpack.c.bf16 %v18889_v32, %v2850_v2 }
 0x68e   : > { %18913 = vmatmul.mubr.msk.f32.gmra.mrb[50].mxu0 %vm1078_vm5, %v18886_v57 }
 0x68f   : > { %v18892_v7 = vpop.f32.mrb[46].mxu1  ;;  %18915 = vmatprep.mubr.msk.f32.mxu0 %vm1078_vm5, %v2850_v2  ;;  %21678 = vmatprep.subr.bf16.mxu1 %v21677_v15 }
 0x690   : > { %v2860_v27 = vpop.f32.mrb[47].mxu1  ;;  %21680 = vmatpush3.bf16.msra.mxu1 %v21677_v15 }
 0x691   : > { %v21681_v30 = vpack.c.bf16 %v18892_v7, %v2860_v27 }
 0x692   : > { %18916 = vmatmul.mubr.msk.f32.gmra.mrb[52].mxu0 %vm1078_vm5, %v18889_v32 }
 0x693   : > { %18918 = vmatprep.mubr.msk.f32.mxu0 %vm1078_vm5, %v2860_v27  ;;  %21682 = vmatprep.subr.bf16.mxu1 %v21681_v30 }
 0x694   : > { %21684 = vmatpush3.bf16.msra.mxu1 %v21681_v30 }
 0x696   : > { %18919 = vmatmul.mubr.msk.f32.gmra.mrb[54].mxu0 %vm1078_vm5, %v18892_v7 }
 0x697   : > { %18938 = vmatmul.mubr.msk.f32.vlgmr.msra.gmra.mrb[48].mxu1 %vm1078_vm5, %v18883_v4 }
 0x698   : > { %18940 = vmatprep.mubr.msk.f32.mxu1 %vm1078_vm5, %v2840_v47 }
 0x69b   : > { %18941 = vmatmul.mubr.msk.f32.gmra.mrb[50].mxu1 %vm1078_vm5, %v18886_v57 }
 0x69c   : > { %18943 = vmatprep.mubr.msk.f32.mxu1 %vm1078_vm5, %v2850_v2 }
 0x69f   : > { %18944 = vmatmul.mubr.msk.f32.gmra.mrb[52].mxu1 %vm1078_vm5, %v18889_v32 }
 0x6a0   : > { %18946 = vmatprep.mubr.msk.f32.mxu1 %vm1078_vm5, %v2860_v27 }
 0x6a3   : > { %18947 = vmatmul.mubr.msk.f32.gmra.mrb[54].mxu1 %vm1078_vm5, %v18892_v7 }
 0x75d   : > { %v18911_v33 = vpop.f32.mrb[48].mxu0 }
 0x75e   : > { %v26551_v60 = vadd.f32 %v18911_v33, %v26503_v1  ;;  %v2959_v21 = vpop.f32.mrb[49].mxu0 }
 0x75f   : > { %v26554_v52 = vadd.f32 %v2959_v21, %v26506_v13 }
 0x761   : > { %v18914_v4 = vpop.f32.mrb[50].mxu0  ;;  %v21685_v57 = vpack.c.bf16 %v26551_v60, %v26554_v52 }
 0x762   : > { %v26559_v47 = vadd.f32 %v18914_v4, %v26511_v23  ;;  %v2969_v20 = vpop.f32.mrb[51].mxu0 }
 0x763   : > { %v26562_v32 = vadd.f32 %v2969_v20, %v26514_v63  ;;  %21686 = vmatprep.subr.bf16.mxu0 %v21685_v57 }
 0x764   : > { %21688 = vmatpush3.bf16.msra.mxu0 %v21685_v57 }
 0x765   : > { %v18917_v2 = vpop.f32.mrb[52].mxu0  ;;  %v21689_v1 = vpack.c.bf16 %v26559_v47, %v26562_v32 }
 0x766   : > { %v26567_v13 = vadd.f32 %v18917_v2, %v26519_v58  ;;  %v2979_v15 = vpop.f32.mrb[53].mxu0 }
 0x767   : > { %v26570_v7 = vadd.f32 %v2979_v15, %v26522_v44  ;;  %21690 = vmatprep.subr.bf16.mxu0 %v21689_v1 }
 0x768   : > { %21692 = vmatpush3.bf16.msra.mxu0 %v21689_v1 }
 0x769   : > { %v18920_v23 = vpop.f32.mrb[54].mxu0  ;;  %v21693_v63 = vpack.c.bf16 %v26567_v13, %v26570_v7 }
 0x76a   : > { %v26575_v27 = vadd.f32 %v18920_v23, %v26527_v48  ;;  %v2989_v30 = vpop.f32.mrb[55].mxu0  ;;  %v18939_v33 = vpop.f32.mrb[48].mxu1 }
 0x76b   : > { %v26578_v21 = vadd.f32 %v2989_v30, %v26530_v55  ;;  %v3072_v58 = vpop.f32.mrb[49].mxu1  ;;  %21694 = vmatprep.subr.bf16.mxu0 %v21693_v63  ;;  %v26603_v30 = vld [vmem:[#allocation2] sm:$0xff] }
 0x76c   : > { %21696 = vmatpush3.bf16.msra.mxu0 %v21693_v63  ;;  %18965 = vmatprep.mubr.msk.f32.mxu0 %vm1078_vm5, %v3072_v58  ;;  %v21701_v44 = vpack.c.bf16 %v18939_v33, %v3072_v58 }
 0x76d   : > { %18993 = vmatprep.mubr.msk.f32.mxu1 %vm1078_vm5, %v3072_v58  ;;  %v21697_v4 = vpack.c.bf16 %v26575_v27, %v26578_v21  ;;  %v2243_v58 = vmul.f32 %v26285_v3, %v26338_v39  ;;  %v2246_v3 = vmul.f32 %v26413_v53, %v26303_v11  ;;  %v26671_v11 = vld [vmem:[#allocation2 + $0x30] sm:$0xff] }
 0x76e   : > { %v18942_v57 = vpop.f32.mrb[50].mxu1  ;;  %21702 = vmatprep.subr.bf16.mxu1 %v21701_v44 }
 0x76f   : > { %v3082_v48 = vpop.f32.mrb[51].mxu1  ;;  %21698 = vmatprep.subr.bf16.mxu0 %v21697_v4  ;;  %21704 = vmatpush3.bf16.msra.mxu1 %v21701_v44  ;;  %v26628_v44 = vld [vmem:[#allocation2 + $0x10] sm:$0xff] }
 0x770   : > { %21700 = vmatpush3.bf16.msra.mxu0 %v21697_v4  ;;  %v21705_v20 = vpack.c.bf16 %v18942_v57, %v3082_v48 }
 0x772   : > { %v18945_v55 = vpop.f32.mrb[52].mxu1  ;;  %21706 = vmatprep.subr.bf16.mxu1 %v21705_v20 }
 0x773   : > { %v3092_v2 = vpop.f32.mrb[53].mxu1  ;;  %18966 = vmatmul.mubr.msk.f32.vlgmr.msra.gmra.mrb[56].mxu0 %vm1078_vm5, %v18939_v33  ;;  %21708 = vmatpush3.bf16.msra.mxu1 %v21705_v20 }
 0x774   : > { %18968 = vmatprep.mubr.msk.f32.mxu0 %vm1078_vm5, %v3082_v48  ;;  %v21709_v1 = vpack.c.bf16 %v18945_v55, %v3092_v2 }
 0x776   : > { %v18948_v15 = vpop.f32.mrb[54].mxu1  ;;  %21710 = vmatprep.subr.bf16.mxu1 %v21709_v1 }
 0x777   : > { %v3102_v23 = vpop.f32.mrb[55].mxu1  ;;  %18969 = vmatmul.mubr.msk.f32.gmra.mrb[58].mxu0 %vm1078_vm5, %v18942_v57  ;;  %21712 = vmatpush3.bf16.msra.mxu1 %v21709_v1 }
 0x778   : > { %18971 = vmatprep.mubr.msk.f32.mxu0 %vm1078_vm5, %v3092_v2  ;;  %v21713_v63 = vpack.c.bf16 %v18948_v15, %v3102_v23 }
 0x77a   : > { %21714 = vmatprep.subr.bf16.mxu1 %v21713_v63 }
 0x77b   : > { %18972 = vmatmul.mubr.msk.f32.gmra.mrb[60].mxu0 %vm1078_vm5, %v18945_v55  ;;  %21716 = vmatpush3.bf16.msra.mxu1 %v21713_v63 }
 0x77c   : > { %18974 = vmatprep.mubr.msk.f32.mxu0 %vm1078_vm5, %v3102_v23  ;;  %21734 = vmatprep.subr.bf16.mxu1 %v26123_v35 }
 0x77e   : > { %18994 = vmatmul.mubr.msk.f32.vlgmr.msra.gmra.mrb[56].mxu1 %vm1078_vm5, %v18939_v33  ;;  %v26605_v33 = vld [vmem:[#allocation2 + $0x8] sm:$0xff] }
 0x77f   : > { %18975 = vmatmul.mubr.msk.f32.gmra.mrb[62].mxu0 %vm1078_vm5, %v18948_v15  ;;  %18996 = vmatprep.mubr.msk.f32.mxu1 %vm1078_vm5, %v3082_v48 }
 0x780   : > { %21736 = vmatpush3.bf16.msra.mxu1 %v26123_v35  ;;  %v2240_v35 = vmul.f32 %v26324_v18, %v26279_v36  ;;  %v2242_v36 = vmul.f32 %v26341_v9, %v26287_v28  ;;  %v2245_v28 = vmul.f32 %v26293_v42, %v26371_v56  ;;  %v26656_v42 = vld [vmem:[#allocation2 + $0x28] sm:$0xff] }
 0x781   : > { %21738 = vmatprep.subr.bf16.mxu1 %v26027_v12 }
 0x782   : > { %18997 = vmatmul.mubr.msk.f32.gmra.mrb[58].mxu1 %vm1078_vm5, %v18942_v57  ;;  %v26654_v57 = vld [vmem:[#allocation2 + $0x20] sm:$0xff] }
 0x783   : > { %18999 = vmatprep.mubr.msk.f32.mxu1 %vm1078_vm5, %v3092_v2  ;;  %v26660_v48 = vpack.c.bf16 %v26656_v42, %v26654_v57 }
 0x784   : > { %21740 = vmatpush3.bf16.msra.mxu1 %v26027_v12  ;;  %v26612_v12 = vpack.c.bf16 %v26605_v33, %v26603_v30 }
 0x785   : > { %21742 = vmatprep.subr.bf16.mxu1 %v26159_v24 }
 0x786   : > { %19000 = vmatmul.mubr.msk.f32.gmra.mrb[60].mxu1 %vm1078_vm5, %v18945_v55 }
 0x787   : > { %19002 = vmatprep.mubr.msk.f32.mxu1 %vm1078_vm5, %v3102_v23 }
 0x788   : > { %21744 = vmatpush3.bf16.msra.mxu1 %v26159_v24  ;;  %v2241_v24 = vmul.f32 %v26277_v45, %v26314_v54  ;;  %v2244_v45 = vmul.f32 %v26377_v38, %v26295_v51  ;;  %v2247_v51 = vmul.f32 %v26301_v14, %v26404_v10  ;;  %v26673_v14 = vld [vmem:[#allocation2 + $0x38] sm:$0xff] }
 0x789   : > { %21746 = vmatprep.subr.bf16.mxu1 %v26063_v17  ;;  %v26677_v20 = vpack.c.bf16 %v26673_v14, %v26671_v11 }
 0x78a   : > { %19003 = vmatmul.mubr.msk.f32.gmra.mrb[62].mxu1 %vm1078_vm5, %v18948_v15 }
 0x78b   : > { %19049 = vmatprep.mubr.msk.f32.mxu1 %vm1078_vm5, %v2240_v35 }
 0x78c   : > { %21748 = vmatpush3.bf16.msra.mxu1 %v26063_v17  ;;  %v26630_v17 = vld [vmem:[#allocation2 + $0x18] sm:$0xff] }
 0x78d   : > { %21751 = vmatprep.subr.msk.bf16.mxu1 %vm25600_vm8, %v26612_v12  ;;  %v26636_v4 = vpack.c.bf16 %v26630_v17, %v26628_v44 }
 0x78f   : > { %19050 = vmatmul.mubr.msk.f32.vlgmr.msra.gmra.mrb[64].mxu1 %vm1078_vm5, %v2241_v24 }
 0x790   : > { %19052 = vmatprep.mubr.msk.f32.mxu1 %vm1078_vm5, %v2242_v36 }
 0x793   : > { %19053 = vmatmul.mubr.msk.f32.gmra.mrb[66].mxu1 %vm1078_vm5, %v2243_v58 }
 0x794   : > { %19055 = vmatprep.mubr.msk.f32.mxu1 %vm1078_vm5, %v2244_v45 }
 0x795   : > { %21754 = vmatpush3.bf16.xpose.msk.msra.mxu1 %vm25600_vm8, %v26612_v12 }
 0x796   : > { %21757 = vmatprep.subr.msk.bf16.mxu1 %vm25600_vm8, %v26636_v4 }
 0x797   : > { %19056 = vmatmul.mubr.msk.f32.gmra.mrb[68].mxu1 %vm1078_vm5, %v2245_v28 }
 0x798   : > { %19058 = vmatprep.mubr.msk.f32.mxu1 %vm1078_vm5, %v2246_v3 }
 0x79b   : > { %19059 = vmatmul.mubr.msk.f32.gmra.mrb[70].mxu1 %vm1078_vm5, %v2247_v51 }
 0x79c   : > { %19077 = vmatprep.mubr.msk.f32.mxu1 %vm1078_vm5, %v25895_v37 }
 0x79d   : > { %21760 = vmatpush3.bf16.xpose.msk.msra.mxu1 %vm25600_vm8, %v26636_v4 }
 0x79e   : > { %21763 = vmatprep.subr.msk.bf16.mxu1 %vm25600_vm8, %v26660_v48 }
 0x7a5   : > { %21766 = vmatpush3.bf16.xpose.msk.msra.mxu1 %vm25600_vm8, %v26660_v48 }
 0x7a6   : > { %21769 = vmatprep.subr.msk.bf16.mxu1 %vm25600_vm8, %v26677_v20 }
 0x7ad   : > { %21772 = vmatpush3.bf16.xpose.msk.msra.mxu1 %vm25600_vm8, %v26677_v20 }
 0x7ae   : > { %21846 = vmatprep.subr.bf16.mxu1 %v26000_v46 }
 0x7b4   : > { %19078 = vmatmul.mubr.msk.f32.vlgmr.msra.gmra.mrb[64].mxu1 %vm1078_vm5, %v25906_v25  ;;  %v31129_v25 = vld [vmem:[#allocation80_spill] sm:$0xff] }
 0x7b5   : > { %19080 = vmatprep.mubr.msk.f32.mxu1 %vm1078_vm5, %v25914_v8  ;;  %21848 = vmatpush3.bf16.msra.mxu1 %v26000_v46 }
 0x7b6   : > { %21850 = vmatprep.subr.bf16.mxu1 %v25986_v49 }
 0x7b8   : > { %19081 = vmatmul.mubr.msk.f32.gmra.mrb[66].mxu1 %vm1078_vm5, %v25924_v34 }
 0x7b9   : > { %19083 = vmatprep.mubr.msk.f32.mxu1 %vm1078_vm5, %v25927_v31  ;;  %21852 = vmatpush3.bf16.msra.mxu1 %v25986_v49 }
 0x7ba   : > { %21854 = vmatprep.subr.bf16.mxu1 %v26031_v19 }
 0x7bc   : > { %19084 = vmatmul.mubr.msk.f32.gmra.mrb[68].mxu1 %vm1078_vm5, %v25930_v62 }
 0x7bd   : > { %19086 = vmatprep.mubr.msk.f32.mxu1 %vm1078_vm5, %v25969_v61  ;;  %21856 = vmatpush3.bf16.msra.mxu1 %v26031_v19 }
 0x7be   : > { %21858 = vmatprep.subr.bf16.mxu1 %v26022_v16 }
 0x7c0   : > { %19087 = vmatmul.mubr.msk.f32.gmra.mrb[70].mxu1 %vm1078_vm5, %v25959_v40 }
 0x7c1   : > { %21860 = vmatpush3.bf16.msra.mxu1 %v26022_v16 }
 0x7c2   : > { %21862 = vmatprep.subr.bf16.mxu1 %v31129_v25 }
 0x846   : > { %v18967_v34 = vpop.f32.mrb[56].mxu0 }
 0x847   : > { %v26712_v49 = vadd.f32 %v18967_v34, %v26551_v60  ;;  %v3201_v46 = vpop.f32.mrb[57].mxu0 }
 0x848   : > { %v26715_v62 = vadd.f32 %v3201_v46, %v26554_v52 }
 0x84a   : > { %v18970_v55 = vpop.f32.mrb[58].mxu0  ;;  %v21717_v19 = vpack.c.bf16 %v26712_v49, %v26715_v62 }
 0x84b   : > { %v26720_v2 = vadd.f32 %v18970_v55, %v26559_v47  ;;  %v3211_v40 = vpop.f32.mrb[59].mxu0 }
 0x84c   : > { %v26723_v16 = vadd.f32 %v3211_v40, %v26562_v32  ;;  %21718 = vmatprep.subr.bf16.mxu0 %v21717_v19 }
 0x84d   : > { %21720 = vmatpush3.bf16.msra.mxu0 %v21717_v19 }
 0x84e   : > { %v18973_v1 = vpop.f32.mrb[60].mxu0  ;;  %v21721_v60 = vpack.c.bf16 %v26720_v2, %v26723_v16 }
 0x84f   : > { %v26728_v52 = vadd.f32 %v18973_v1, %v26567_v13  ;;  %v3221_v15 = vpop.f32.mrb[61].mxu0 }
 0x850   : > { %v26731_v23 = vadd.f32 %v3221_v15, %v26570_v7  ;;  %21722 = vmatprep.subr.bf16.mxu0 %v21721_v60 }
 0x851   : > { %v18995_v47 = vpop.f32.mrb[56].mxu1  ;;  %21724 = vmatpush3.bf16.msra.mxu0 %v21721_v60 }
 0x852   : > { %v18976_v63 = vpop.f32.mrb[62].mxu0  ;;  %v3314_v35 = vpop.f32.mrb[57].mxu1  ;;  %v21725_v32 = vpack.c.bf16 %v26728_v52, %v26731_v23 }
 0x853   : > { %v26736_v24 = vadd.f32 %v18976_v63, %v26575_v27  ;;  %v3231_v36 = vpop.f32.mrb[63].mxu0  ;;  %19021 = vmatprep.mubr.msk.f32.mxu0 %vm1078_vm5, %v3314_v35 }
 0x854   : > { %v3246_v13 = vadd.f32 %v3231_v36, %v26578_v21  ;;  %21726 = vmatprep.subr.bf16.mxu0 %v21725_v32 }
 0x855   : > { %v18998_v58 = vpop.f32.mrb[58].mxu1  ;;  %21728 = vmatpush3.bf16.msra.mxu0 %v21725_v32 }
 0x856   : > { %v3324_v7 = vpop.f32.mrb[59].mxu1  ;;  %v21729_v45 = vpack.c.bf16 %v26736_v24, %v3246_v13 }
 0x858   : > { %21730 = vmatprep.subr.bf16.mxu0 %v21729_v45 }
 0x859   : > { %v19001_v28 = vpop.f32.mrb[60].mxu1  ;;  %21732 = vmatpush3.bf16.msra.mxu0 %v21729_v45 }
 0x85a   : > { %v3334_v3 = vpop.f32.mrb[61].mxu1 }
 0x85c   : > { %19022 = vmatmul.mubr.msk.f32.vlgmr.msra.gmra.mrb[64].mxu0 %vm1078_vm5, %v18995_v47 }
 0x85d   : > { %v19004_v51 = vpop.f32.mrb[62].mxu1  ;;  %19024 = vmatprep.mubr.msk.f32.mxu0 %vm1078_vm5, %v3324_v7 }
 0x85e   : > { %v3344_v27 = vpop.f32.mrb[63].mxu1 }
 0x860   : > { %19025 = vmatmul.mubr.msk.f32.gmra.mrb[66].mxu0 %vm1078_vm5, %v18998_v58 }
 0x861   : > { %19027 = vmatprep.mubr.msk.f32.mxu0 %vm1078_vm5, %v3334_v3 }
 0x864   : > { %19028 = vmatmul.mubr.msk.f32.gmra.mrb[68].mxu0 %vm1078_vm5, %v19001_v28 }
 0x865   : > { %19030 = vmatprep.mubr.msk.f32.mxu0 %vm1078_vm5, %v3344_v27 }
 0x868   : > { %19031 = vmatmul.mubr.msk.f32.gmra.mrb[70].mxu0 %vm1078_vm5, %v19004_v51 }
 0x887   : > { %v19079_v21 = vpop.f32.mrb[64].mxu1 }
 0x888   : > { %v3709_v34 = vpop.f32.mrb[65].mxu1 }
 0x889   : > { %v21773_v46 = vpack.c.bf16 %v19079_v21, %v3709_v34 }
 0x88b   : > { %v19082_v55 = vpop.f32.mrb[66].mxu1  ;;  %21774 = vmatprep.subr.bf16.mxu0 %v21773_v46 }
 0x88c   : > { %v3719_v19 = vpop.f32.mrb[67].mxu1  ;;  %21776 = vmatpush3.bf16.msra.mxu0 %v21773_v46 }
 0x88d   : > { %v21777_v40 = vpack.c.bf16 %v19082_v55, %v3719_v19 }
 0x88f   : > { %v19085_v1 = vpop.f32.mrb[68].mxu1  ;;  %21778 = vmatprep.subr.bf16.mxu0 %v21777_v40 }
 0x890   : > { %v3729_v60 = vpop.f32.mrb[69].mxu1  ;;  %21780 = vmatpush3.bf16.msra.mxu0 %v21777_v40 }
 0x891   : > { %v21781_v15 = vpack.c.bf16 %v19085_v1, %v3729_v60 }
 0x893   : > { %v19088_v47 = vpop.f32.mrb[70].mxu1  ;;  %21782 = vmatprep.subr.bf16.mxu0 %v21781_v15 }
 0x894   : > { %v3739_v63 = vpop.f32.mrb[71].mxu1  ;;  %21784 = vmatpush3.bf16.msra.mxu0 %v21781_v15 }
 0x895   : > { %v21785_v35 = vpack.c.bf16 %v19088_v47, %v3739_v63 }
 0x897   : > { %21786 = vmatprep.subr.bf16.mxu0 %v21785_v35 }
 0x898   : > { %21788 = vmatpush3.bf16.msra.mxu0 %v21785_v35 }
 0x92f   : > { %v19023_v32 = vpop.f32.mrb[64].mxu0 }
 0x930   : > { %v3443_v36 = vpop.f32.mrb[65].mxu0  ;;  %v3483_v7 = vadd.f32 %v19023_v32, %v26712_v49  ;;  %v31131_v32 = vld [vmem:[#allocation52_spill] sm:$0xff] }
 0x931   : > { %v3482_v58 = vadd.f32 %v3443_v36, %v26715_v62  ;;  %v1854_v36 = vmul.f32 %v26273_v0, %v31131_v32  ;;  %v31135_v0 = vld [vmem:[#allocation59_spill] sm:$0xff] }
 0x933   : > { %v19026_v45 = vpop.f32.mrb[66].mxu0  ;;  %19105 = vmatprep.mubr.msk.f32.mxu0 %vm1078_vm5, %v3482_v58  ;;  %v31132_v58 = vld [vmem:[#allocation53_spill] sm:$0xff] }
 0x934   : > { %v3453_v28 = vpop.f32.mrb[67].mxu0  ;;  %19106 = vmatmul.mubr.msk.f32.vlgmr.msra.gmra.mrb[72].mxu0 %vm1078_vm5, %v3483_v7  ;;  %v3485_v51 = vadd.f32 %v19026_v45, %v26720_v2  ;;  %v31130_v2 = vld [vmem:[#allocation46_spill] sm:$0xff]  ;;  %v1855_v7 = vmul.f32 %v31132_v58, %v26283_v22  ;;  %v31133_v45 = vld [vmem:[#allocation56_spill] sm:$0xff]  ;;  %v26786_v22 = vpop.permute.xlu1 %23615 }
 0x935   : > { %v3484_v3 = vadd.f32 %v3453_v28, %v26723_v16  ;;  %v1853_v19 = vmul.f32 %v31130_v2, %v26275_v50  ;;  %v1856_v28 = vmul.f32 %v26281_v43, %v31133_v45  ;;  %v31136_v43 = vld [vmem:[#allocation60_spill] sm:$0xff] }
 0x937   : > { %v19029_v27 = vpop.f32.mrb[68].mxu0  ;;  %19108 = vmatprep.mubr.msk.f32.mxu0 %vm1078_vm5, %v3484_v3  ;;  %v31134_v3 = vld [vmem:[#allocation57_spill] sm:$0xff] }
 0x938   : > { %v3463_v21 = vpop.f32.mrb[69].mxu0  ;;  %19109 = vmatmul.mubr.msk.f32.gmra.mrb[74].mxu0 %vm1078_vm5, %v3485_v51  ;;  %v3487_v49 = vadd.f32 %v19029_v27, %v26728_v52  ;;  %v1857_v51 = vmul.f32 %v31134_v3, %v26291_v26  ;;  %v1858_v27 = vmul.f32 %v26289_v59, %v31135_v0  ;;  %v31137_v59 = vld [vmem:[#allocation61_spill] sm:$0xff]  ;;  %v31138_v26 = vld [vmem:[#allocation107_spill] sm:$0xff] }
 0x939   : > { %v3486_v62 = vadd.f32 %v3463_v21, %v26731_v23  ;;  %v1859_v21 = vmul.f32 %v31136_v43, %v26299_v29 }
 0x93b   : > { %v19032_v34 = vpop.f32.mrb[70].mxu0  ;;  %19111 = vmatprep.mubr.msk.f32.mxu0 %vm1078_vm5, %v3486_v62  ;;  %v1860_v62 = vmul.f32 %v31138_v26, %v31137_v59 }
 0x93c   : > { %v3473_v46 = vpop.f32.mrb[71].mxu0  ;;  %19112 = vmatmul.mubr.msk.f32.gmra.mrb[76].mxu0 %vm1078_vm5, %v3487_v49  ;;  %v3489_v16 = vadd.f32 %v19032_v34, %v26736_v24  ;;  %v31139_v49 = vld [vmem:[#allocation65_spill] sm:$0xff] }
 0x93d   : > { %v3488_v55 = vadd.f32 %v3473_v46, %v3246_v13 }
 0x93f   : > { %19114 = vmatprep.mubr.msk.f32.mxu0 %vm1078_vm5, %v3488_v55 }
 0x940   : > { %19115 = vmatmul.mubr.msk.f32.gmra.mrb[78].mxu0 %vm1078_vm5, %v3489_v16  ;;  %v31140_v16 = vld [vmem:[#allocation64_spill] sm:$0xff] }
 0x941   : > { %19133 = vmatprep.mubr.msk.f32.mxu0 %vm1078_vm5, %v1853_v19  ;;  %v24034_v19 = vld [vmem:[%s25052_s9 + $0x8] sm:$0xff]  }
 0xa07   : > { %v19107_v23 = vpop.f32.mrb[72].mxu0 }
 0xa08   : > { %v3838_v52 = vpop.f32.mrb[73].mxu0 }
 0xa09   : > { %v21789_v40 = vpack.c.bf16 %v19107_v23, %v3838_v52  ;;  %4268 = vxpose.xlu0.b32.start [1/8] (short) (narrow) %v3838_v52, 64  ;;  %v31142_v52 = vld [vmem:[#allocation70_spill] sm:$0xff] }
 0xa0b   : > { %v19110_v1 = vpop.f32.mrb[74].mxu0  ;;  %21790 = vmatprep.subr.bf16.mxu0 %v21789_v40 }
 0xa0c   : > { %v3848_v60 = vpop.f32.mrb[75].mxu0  ;;  %21792 = vmatpush3.bf16.msra.mxu0 %v21789_v40  ;;  %v24035_v40 = vld [vmem:[%s25052_s9 + $0x10] sm:$0xff]  }
 0xa0d   : > { %v21793_v13 = vpack.c.bf16 %v19110_v1, %v3848_v60  ;;  %4269 = vxpose.xlu0.b32.cont [2/8] (short) (narrow) %v19107_v23, 64 }
 0xa0f   : > { %v19113_v24 = vpop.f32.mrb[76].mxu0  ;;  %21794 = vmatprep.subr.bf16.mxu0 %v21793_v13 }
 0xa10   : > { %v3858_v15 = vpop.f32.mrb[77].mxu0  ;;  %21796 = vmatpush3.bf16.msra.mxu0 %v21793_v13 }
 0xa11   : > { %v21797_v50 = vpack.c.bf16 %v19113_v24, %v3858_v15  ;;  %4270 = vxpose.xlu0.b32.cont [3/8] (short) (narrow) %v3848_v60, 64  ;;  %v31145_v60 = vld [vmem:[#allocation74_spill] sm:$0xff] }
 0xa13   : > { %v19116_v47 = vpop.f32.mrb[78].mxu0  ;;  %21798 = vmatprep.subr.bf16.mxu0 %v21797_v50 }
 0xa14   : > { %v3868_v63 = vpop.f32.mrb[79].mxu0  ;;  %21800 = vmatpush3.bf16.msra.mxu0 %v21797_v50 }
 0xa15   : > { %v21801_v35 = vpack.c.bf16 %v19116_v47, %v3868_v63  ;;  %4271 = vxpose.xlu0.b32.cont [4/8] (short) (narrow) %v19110_v1, 64  ;;  %v31144_v1 = vld [vmem:[#allocation85_spill] sm:$0xff] }
 0xa17   : > { %21802 = vmatprep.subr.bf16.mxu0 %v21801_v35 }
 0xa18   : > { %21804 = vmatpush3.bf16.msra.mxu0 %v21801_v35 }
 0xa19   : > { %4272 = vxpose.xlu0.b32.cont [5/8] (short) (narrow) %v3858_v15, 64  ;;  %21807 = vmatprep.subr.msk.bf16.mxu0 %vm25600_vm8, %v26612_v12  ;;  %v31146_v15 = vld [vmem:[#allocation72_spill] sm:$0xff] }
 0xa1a   : > { %v1990_v50 = vmul.f32 %v31130_v2, %v31146_v15  ;;  %v31160_v15 = vld [vmem:[#allocation67_spill] sm:$0xff] }
 0xa1b   : > { %19134 = vmatmul.mubr.msk.f32.vlgmr.msra.gmra.mrb[80].mxu0 %vm1078_vm5, %v1854_v36  ;;  %v31149_v36 = vld [vmem:[#allocation102_spill] sm:$0xff] }
 0xa1c   : > { %19136 = vmatprep.mubr.msk.f32.mxu0 %vm1078_vm5, %v1855_v7  ;;  %v1992_v7 = vmul.f32 %v31132_v58, %v31149_v36  ;;  %v31167_v36 = vld [vmem:[#allocation82_spill] sm:$0xff] }
 0xa1d   : > { %4273 = vxpose.xlu0.b32.cont [6/8] (short) (narrow) %v19113_v24, 64  ;;  %v24036_v24 = vld [vmem:[%s25052_s9 + $0x18] sm:$0xff]  }
 0xa1f   : > { %19137 = vmatmul.mubr.msk.f32.gmra.mrb[82].mxu0 %vm1078_vm5, %v1856_v28 }
 0xa20   : > { %19139 = vmatprep.mubr.msk.f32.mxu0 %vm1078_vm5, %v1857_v51  ;;  %v31150_v51 = vld [vmem:[#allocation101_spill] sm:$0xff] }
 0xa21   : > { %4274 = vxpose.xlu0.b32.cont [7/8] (short) (narrow) %v3868_v63, 64  ;;  %21810 = vmatpush3.bf16.xpose.msk.msra.mxu0 %vm25600_vm8, %v26612_v12  ;;  %v26798_v12 = vpop.permute.xlu1 %23620  ;;  %v31148_v63 = vld [vmem:[#allocation73_spill] sm:$0xff] }
 0xa22   : > { %21813 = vmatprep.subr.msk.bf16.mxu0 %vm25600_vm8, %v26636_v4  ;;  %v1991_v35 = vmul.f32 %v31148_v63, %v31131_v32 }
 0xa23   : > { %19140 = vmatmul.mubr.msk.f32.gmra.mrb[84].mxu0 %vm1078_vm5, %v1858_v27  ;;  %v1993_v27 = vmul.f32 %v31150_v51, %v31133_v45  ;;  %v23611_v51 = vpop.permute.xlu0 %23610 }
 0xa24   : > { %19142 = vmatprep.mubr.msk.f32.mxu0 %vm1078_vm5, %v1859_v21  ;;  %v31151_v21 = vld [vmem:[#allocation104_spill] sm:$0xff] }
 0xa25   : > { %4275 = vxpose.xlu0.b32.end [8/8] (short) (narrow) %v19116_v47, 64  ;;  %v26808_v29 = vpop.trf.xlu1  ;;  %v31147_v47 = vld [vmem:[#allocation88_spill] sm:$0xff]  ;;  %v1994_v26 = vmul.f32 %v31134_v3, %v31151_v21 }
 0xa26   : > { %v31170_v21 = vld [vmem:[#allocation84_spill] sm:$0xff] }
 0xa27   : > { %19143 = vmatmul.mubr.msk.f32.gmra.mrb[86].mxu0 %vm1078_vm5, %v1860_v62 }
 0xa28   : > { %19161 = vmatprep.mubr.msk.f32.mxu0 %vm1078_vm5, %v31139_v49  ;;  %v31152_v49 = vld [vmem:[#allocation103_spill] sm:$0xff] }
 0xa29   : > { %21816 = vmatpush3.bf16.xpose.msk.msra.mxu0 %vm25600_vm8, %v26636_v4  ;;  %v26813_v34 = vpop.trf.xlu1  ;;  %v24033_v4 = vld [vmem:[%s25052_s9] sm:$0xff]  }
 0xa2a   : > { %21819 = vmatprep.subr.msk.bf16.mxu0 %vm25600_vm8, %v26660_v48 }
 0xa2d   : > { %v26818_v46 = vpop.trf.xlu1 }
 0xa31   : > { %21822 = vmatpush3.bf16.xpose.msk.msra.mxu0 %vm25600_vm8, %v26660_v48  ;;  %v26824_v55 = vpop.trf.xlu1  ;;  %v31141_v48 = vld [vmem:[#allocation68_spill] sm:$0xff] }
 0xa32   : > { %21825 = vmatprep.subr.msk.bf16.mxu0 %vm25600_vm8, %v26677_v20 }
 0xa35   : > { %v26831_v23 = vpop.trf.xlu1 }
 0xa39   : > { %21828 = vmatpush3.bf16.xpose.msk.msra.mxu0 %vm25600_vm8, %v26677_v20  ;;  %v31143_v20 = vld [vmem:[#allocation71_spill] sm:$0xff]  ;;  %v26842_v13 = vpop.trf.xlu1 }
 0xa3a   : > { %21830 = vmatprep.subr.bf16.mxu0 %v24033_v4 }
 0xa3d   : > { %v26856_v28 = vpop.trf.xlu1 }
 0xa40   : > { %19162 = vmatmul.mubr.msk.f32.vlgmr.msra.gmra.mrb[80].mxu0 %vm1078_vm5, %v31140_v16 }
 0xa41   : > { %19164 = vmatprep.mubr.msk.f32.mxu0 %vm1078_vm5, %v31141_v48  ;;  %21832 = vmatpush3.bf16.msra.mxu0 %v24033_v4  ;;  %v26868_v62 = vpop.trf.xlu1  ;;  %v1995_v4 = vmul.f32 %v31152_v49, %v31135_v0  ;;  %v23626_v49 = vpop.permute.xlu0 %23625 }
 0xa42   : > { %21834 = vmatprep.subr.bf16.mxu0 %v24034_v19 }
 0xa44   : > { %19165 = vmatmul.mubr.msk.f32.gmra.mrb[82].mxu0 %vm1078_vm5, %v31142_v52 }
 0xa45   : > { %19167 = vmatprep.mubr.msk.f32.mxu0 %vm1078_vm5, %v31143_v20  ;;  %21836 = vmatpush3.bf16.msra.mxu0 %v24034_v19 }
 0xa46   : > { %21838 = vmatprep.subr.bf16.mxu0 %v24035_v40 }
 0xa48   : > { %19168 = vmatmul.mubr.msk.f32.gmra.mrb[84].mxu0 %vm1078_vm5, %v31144_v1  ;;  %v31157_v1 = vld [vmem:[#allocation62_spill] sm:$0xff] }
 0xa49   : > { %19170 = vmatprep.mubr.msk.f32.mxu0 %vm1078_vm5, %v31145_v60  ;;  %21840 = vmatpush3.bf16.msra.mxu0 %v24035_v40  ;;  %v26882_v40 = vpop.permute.xlu1 %4631 }
 0xa4a   : > { %21842 = vmatprep.subr.bf16.mxu0 %v24036_v24  ;;  %31155 = vst [vmem:[#allocation80_spill] sm:$0xff] %v26882_v40 }
 0xa4c   : > { %19171 = vmatmul.mubr.msk.f32.gmra.mrb[86].mxu0 %vm1078_vm5, %v31147_v47  ;;  %v31163_v47 = vld [vmem:[#allocation90_spill] sm:$0xff] }
 0xa4d   : > { %21844 = vmatpush3.bf16.msra.mxu0 %v24036_v24  ;;  %19189 = vmatprep.mubr.msk.f32.mxu0 %vm1078_vm5, %v1990_v50  ;;  %v31159_v24 = vld [vmem:[#allocation66_spill] sm:$0xff] }
 0xa4e   : > { %4633 = vrot.lane.b32.xlu0 %v31140_v16, %s24517_s25  ;;  %v31153_v16 = vld [vmem:[#allocation106_spill] sm:$0xff]  ;;  %v31161_v50 = vpack.i.bf16 %v31159_v24, %v31160_v15  ;;  %v31178_v24 = vld [vmem:[#allocation79_spill] sm:$0xff] }
 0xa4f   : > { %v1996_v19 = vmul.f32 %v31136_v43, %v31153_v16  ;;  %v31173_v16 = vld [vmem:[#allocation75_spill] sm:$0xff] }
 0xa50   : > { %19190 = vmatmul.mubr.msk.f32.vlgmr.msra.gmra.mrb[80].mxu0 %vm1078_vm5, %v1991_v35 }
 0xa51   : > { %19192 = vmatprep.mubr.msk.f32.mxu0 %vm1078_vm5, %v1992_v7 }
 0xa52   : > { %4635 = vrot.lane.b32.xlu0 %v31141_v48, %s24517_s25  ;;  %v31154_v48 = vld [vmem:[#allocation105_spill] sm:$0xff] }
 0xa53   : > { %v1997_v52 = vmul.f32 %v31154_v48, %v31137_v59 }
 0xa54   : > { %19193 = vmatmul.mubr.msk.f32.gmra.mrb[82].mxu0 %vm1078_vm5, %v1993_v27  ;;  %v31169_v27 = vld [vmem:[#allocation86_spill] sm:$0xff] }
 0xa55   : > { %19195 = vmatprep.mubr.msk.f32.mxu0 %vm1078_vm5, %v1994_v26  ;;  %v31171_v26 = vpack.i.bf16 %v31169_v27, %v31170_v21 }
 0xa56   : > { %4639 = vrot.lane.b32.xlu0 %v31143_v20, %s24517_s25  ;;  %v31156_v20 = vld [vmem:[#allocation63_spill] sm:$0xff] }
 0xa58   : > { %19196 = vmatmul.mubr.msk.f32.gmra.mrb[84].mxu0 %vm1078_vm5, %v1995_v4  ;;  %v31172_v4 = vld [vmem:[#allocation76_spill] sm:$0xff] }
 0xa59   : > { %19198 = vmatprep.mubr.msk.f32.mxu0 %vm1078_vm5, %v1996_v19  ;;  %v31174_v19 = vpack.i.bf16 %v31172_v4, %v31173_v16  ;;  %v23617_v4 = vunpack.i.l.bf16 %v26786_v22 }
 0xa5a   : > { %4643 = vrot.lane.b32.xlu0 %v31145_v60, %s24517_s25  ;;  %v31158_v60 = vpack.i.bf16 %v31156_v20, %v31157_v1  ;;  %v31176_v20 = vld [vmem:[#allocation77_spill] sm:$0xff] }
 0xa5c   : > { %19199 = vmatmul.mubr.msk.f32.gmra.mrb[86].mxu0 %vm1078_vm5, %v1997_v52  ;;  %v31175_v52 = vld [vmem:[#allocation78_spill] sm:$0xff] }
 0xa5d   : > { %19301 = vmatprep.mubr.msk.f32.mxu0 %vm1078_vm5, %v26882_v40  ;;  %v31177_v1 = vpack.i.bf16 %v31175_v52, %v31176_v20 }
 0xa5e   : > { %4953 = vrot.lane.b32.xlu0 %v25895_v37, %s24517_s25  ;;  %v31162_v37 = vld [vmem:[#allocation89_spill] sm:$0xff] }
 0xa5f   : > { %v23649_v63 = vpack.i.bf16 %v31163_v47, %v31162_v37 }
 0xa62   : > { %4957 = vrot.lane.b32.xlu0 %v25914_v8, %s24517_s25  ;;  %v31164_v8 = vld [vmem:[#allocation91_spill] sm:$0xff] }
 0xa66   : > { %4961 = vrot.lane.b32.xlu0 %v25927_v31, %s24517_s25  ;;  %v31165_v31 = vld [vmem:[#allocation92_spill] sm:$0xff] }
 0xa67   : > { %v23659_v35 = vpack.i.bf16 %v31165_v31, %v31164_v8 }
 0xa6a   : > { %4965 = vrot.lane.b32.xlu0 %v25969_v61, %s24517_s25  ;;  %v31166_v61 = vld [vmem:[#allocation83_spill] sm:$0xff] }
 0xa6b   : > { %v31168_v7 = vpack.i.bf16 %v31166_v61, %v31167_v36  ;;  %v23612_v61 = vunpack.i.l.bf16 %v23611_v51  ;;  %v31180_v36 = vld [vmem:[#allocation87_spill] sm:$0xff] }
 0xa6e   : > { %23630 = vrot.lane.b32.xlu0 %v31158_v60, %s24517_s25 }
 0xa72   : > { %23640 = vrot.lane.b32.xlu0 %v31161_v50, %s24517_s25  ;;  %v31179_v50 = vld [vmem:[#allocation81_spill] sm:$0xff] }
 0xa76   : > { %23650 = vrot.lane.b32.xlu0 %v23649_v63, %s24517_s25 }
 0xa7a   : > { %23660 = vrot.lane.b32.xlu0 %v23659_v35, %s24517_s25  ;;  %v23613_v35 = vunpack.i.h.bf16 %v23611_v51 }
 0xa7e   : > { %23670 = vrot.lane.b32.xlu0 %v31168_v7, %s24517_s25 }
 0xa82   : > { %23680 = vrot.lane.b32.xlu0 %v31171_v26, %s24517_s25  ;;  %v23618_v26 = vunpack.i.h.bf16 %v26786_v22  ;;  %v23623_v22 = vunpack.i.h.bf16 %v26798_v12 }
 0xa84   : > { %v21883_v16 = vpack.c.bf16 %v23618_v26, %v23617_v4 }
 0xa86   : > { %23690 = vrot.lane.b32.xlu0 %v31174_v19, %s24517_s25  ;;  %v23622_v19 = vunpack.i.l.bf16 %v26798_v12  ;;  %v23628_v12 = vunpack.i.h.bf16 %v23626_v49 }
 0xa89   : > { %v4284_v48 = vpop.trf.xlu0 }
 0xa8a   : > { %23700 = vrot.lane.b32.xlu0 %v31177_v1, %s24517_s25  ;;  %19217 = vmatprep.mubr.msk.f32.mxu1 %vm1078_vm5, %v4284_v48 }
 0xa8d   : > { %v4285_v60 = vpop.trf.xlu0 }
 0xa8e   : > { %19218 = vmatmul.mubr.msk.f32.vlgmr.msra.gmra.mrb[72].mxu1 %vm1078_vm5, %v4285_v60 }
 0xa8f   : > { %21864 = vmatpush3.bf16.msra.mxu1 %v31129_v25  ;;  %v21877_v25 = vpack.c.bf16 %v23613_v35, %v23612_v61 }
 0xa90   : > { %21866 = vmatprep.subr.bf16.mxu1 %v31178_v24 }
 0xa91   : > { %v4286_v15 = vpop.trf.xlu0 }
 0xa92   : > { %19220 = vmatprep.mubr.msk.f32.mxu1 %vm1078_vm5, %v4286_v15 }
 0xa93   : > { %21868 = vmatpush3.bf16.msra.mxu1 %v31178_v24 }
 0xa94   : > { %21870 = vmatprep.subr.bf16.mxu1 %v31179_v50 }
 0xa95   : > { %v4287_v63 = vpop.trf.xlu0 }
 0xa96   : > { %19221 = vmatmul.mubr.msk.f32.gmra.mrb[74].mxu1 %vm1078_vm5, %v4287_v63 }
 0xa97   : > { %21872 = vmatpush3.bf16.msra.mxu1 %v31179_v50 }
 0xa98   : > { %21874 = vmatprep.subr.bf16.mxu1 %v31180_v36 }
 0xa99   : > { %v4288_v7 = vpop.trf.xlu0 }
 0xa9a   : > { %19223 = vmatprep.mubr.msk.f32.mxu1 %vm1078_vm5, %v4288_v7 }
 0xa9b   : > { %21876 = vmatpush3.bf16.msra.mxu1 %v31180_v36 }
 0xa9c   : > { %21879 = vmatprep.subr.msk.bf16.mxu1 %vm25600_vm8, %v21877_v25 }
 0xa9d   : > { %v4289_v27 = vpop.trf.xlu0 }
 0xa9e   : > { %19224 = vmatmul.mubr.msk.f32.gmra.mrb[76].mxu1 %vm1078_vm5, %v4289_v27 }
 0xaa1   : > { %v4290_v21 = vpop.trf.xlu0 }
 0xaa2   : > { %19226 = vmatprep.mubr.msk.f32.mxu1 %vm1078_vm5, %v4290_v21 }
 0xaa5   : > { %v4291_v51 = vpop.trf.xlu0 }
 0xaa6   : > { %19227 = vmatmul.mubr.msk.f32.gmra.mrb[78].mxu1 %vm1078_vm5, %v4291_v51 }
 0xaa7   : > { %19245 = vmatprep.mubr.msk.f32.mxu1 %vm1078_vm5, %v26808_v29  ;;  %v21889_v29 = vpack.c.bf16 %v23623_v22, %v23622_v19 }
 0xaaa   : > { %19246 = vmatmul.mubr.msk.f32.vlgmr.msra.gmra.mrb[72].mxu1 %vm1078_vm5, %v26813_v34  ;;  %v26966_v34 = vpop.permute.xlu1 %4637 }
 0xaab   : > { %21882 = vmatpush3.bf16.xpose.msk.msra.mxu1 %vm25600_vm8, %v21877_v25  ;;  %19248 = vmatprep.mubr.msk.f32.mxu1 %vm1078_vm5, %v26818_v46  ;;  %31181 = vst [vmem:[#allocation107_spill] sm:$0xff] %v26966_v34  ;;  %v23627_v46 = vunpack.i.l.bf16 %v23626_v49 }
 0xaac   : > { %21885 = vmatprep.subr.msk.bf16.mxu1 %vm25600_vm8, %v21883_v16 }
 0xaae   : > { %19249 = vmatmul.mubr.msk.f32.gmra.mrb[74].mxu1 %vm1078_vm5, %v26824_v55  ;;  %v21895_v55 = vpack.c.bf16 %v23628_v12, %v23627_v46 }
 0xaaf   : > { %19251 = vmatprep.mubr.msk.f32.mxu1 %vm1078_vm5, %v26831_v23  ;;  %v26974_v23 = vpop.permute.xlu1 %4641 }
 0xab0   : > { %31182 = vst [vmem:[#allocation65_spill] sm:$0xff] %v26974_v23 }
 0xab2   : > { %19252 = vmatmul.mubr.msk.f32.gmra.mrb[76].mxu1 %vm1078_vm5, %v26842_v13 }
 0xab3   : > { %21888 = vmatpush3.bf16.xpose.msk.msra.mxu1 %vm25600_vm8, %v21883_v16  ;;  %19254 = vmatprep.mubr.msk.f32.mxu1 %vm1078_vm5, %v26856_v28  ;;  %v26980_v13 = vpop.permute.xlu1 %4645 }
 0xab4   : > { %21891 = vmatprep.subr.msk.bf16.mxu1 %vm25600_vm8, %v21889_v29  ;;  %31183 = vst [vmem:[#allocation64_spill] sm:$0xff] %v26980_v13 }
 0xab6   : > { %19255 = vmatmul.mubr.msk.f32.gmra.mrb[78].mxu1 %vm1078_vm5, %v26868_v62 }
 0xab7   : > { %19273 = vmatprep.mubr.msk.f32.mxu1 %vm1078_vm5, %v26882_v40  ;;  %v26990_v49 = vpop.permute.xlu1 %4955 }
 0xabb   : > { %21894 = vmatpush3.bf16.xpose.msk.msra.mxu1 %vm25600_vm8, %v21889_v29  ;;  %v27000_v52 = vpop.permute.xlu1 %4959 }
 0xabc   : > { %21897 = vmatprep.subr.msk.bf16.mxu1 %vm25600_vm8, %v21895_v55 }
 0xabf   : > { %v27012_v60 = vpop.permute.xlu1 %4963 }
 0xac0   : > { %v26982_v28 = vpop.permute.xlu0 %4633 }
 0xac1   : > { %31184 = vst [vmem:[#allocation68_spill] sm:$0xff] %v26982_v28 }
 0xac3   : > { %21900 = vmatpush3.bf16.xpose.msk.msra.mxu1 %vm25600_vm8, %v21895_v55  ;;  %v27028_v15 = vpop.permute.xlu1 %4967 }
 0xac4   : > { %21927 = vmatprep.subr.msk.bf16.mxu1 %vm25600_vm8, %v21877_v25  ;;  %v26988_v62 = vpop.permute.xlu0 %4635 }
 0xac5   : > { %31185 = vst [vmem:[#allocation70_spill] sm:$0xff] %v26988_v62 }
 0xac7   : > { %v23636_v35 = vpop.permute.xlu1 %23635 }
 0xac8   : > { %v26992_v48 = vpop.permute.xlu0 %4639  ;;  %v23638_v36 = vunpack.i.h.bf16 %v23636_v35  ;;  %v23637_v7 = vunpack.i.l.bf16 %v23636_v35 }
 0xac9   : > { %31186 = vst [vmem:[#allocation71_spill] sm:$0xff] %v26992_v48 }
 0xaca   : > { %19274 = vmatmul.mubr.msk.f32.vlgmr.msra.gmra.mrb[80].mxu1 %vm1078_vm5, %v26982_v28  ;;  %v21907_v26 = vpack.c.bf16 %v23638_v36, %v23637_v7 }
 0xacb   : > { %19276 = vmatprep.mubr.msk.f32.mxu1 %vm1078_vm5, %v26988_v62  ;;  %21930 = vmatpush3.bf16.xpose.msk.msra.mxu1 %vm25600_vm8, %v21877_v25  ;;  %v23646_v12 = vpop.permute.xlu1 %23645 }
 0xacc   : > { %21933 = vmatprep.subr.msk.bf16.mxu1 %vm25600_vm8, %v21883_v16  ;;  %v27004_v20 = vpop.permute.xlu0 %4643 }
 0xacd   : > { %31187 = vst [vmem:[#allocation85_spill] sm:$0xff] %v27004_v20 }
 0xace   : > { %19277 = vmatmul.mubr.msk.f32.gmra.mrb[82].mxu1 %vm1078_vm5, %v26966_v34 }
 0xacf   : > { %19279 = vmatprep.mubr.msk.f32.mxu1 %vm1078_vm5, %v26992_v48 }
 0xad0   : > { %v27010_v1 = vpop.permute.xlu0 %4953 }
 0xad2   : > { %19280 = vmatmul.mubr.msk.f32.gmra.mrb[84].mxu1 %vm1078_vm5, %v26974_v23 }
 0xad3   : > { %19282 = vmatprep.mubr.msk.f32.mxu1 %vm1078_vm5, %v27004_v20  ;;  %21936 = vmatpush3.bf16.xpose.msk.msra.mxu1 %vm25600_vm8, %v21883_v16 }
 0xad4   : > { %21939 = vmatprep.subr.msk.bf16.mxu1 %vm25600_vm8, %v21889_v29  ;;  %v27022_v24 = vpop.permute.xlu0 %4957 }
 0xad6   : > { %19283 = vmatmul.mubr.msk.f32.gmra.mrb[86].mxu1 %vm1078_vm5, %v26980_v13 }
 0xad7   : > { %19329 = vmatprep.mubr.msk.f32.mxu1 %vm1078_vm5, %v27010_v1 }
 0xad8   : > { %v27030_v50 = vpop.permute.xlu0 %4961 }
 0xadb   : > { %21942 = vmatpush3.bf16.xpose.msk.msra.mxu1 %vm25600_vm8, %v21889_v29 }
 0xadc   : > { %21945 = vmatprep.subr.msk.bf16.mxu1 %vm25600_vm8, %v21895_v55  ;;  %v27036_v63 = vpop.permute.xlu0 %4965 }
 0xae0   : > { %v23631_v61 = vpop.permute.xlu0 %23630 }
 0xae1   : > { %v23633_v25 = vunpack.i.h.bf16 %v23631_v61  ;;  %v23632_v27 = vunpack.i.l.bf16 %v23631_v61 }
 0xae3   : > { %v21901_v21 = vpack.c.bf16 %v23633_v25, %v23632_v27  ;;  %21948 = vmatpush3.bf16.xpose.msk.msra.mxu1 %vm25600_vm8, %v21895_v55  ;;  %v23648_v25 = vunpack.i.h.bf16 %v23646_v12  ;;  %v23647_v27 = vunpack.i.l.bf16 %v23646_v12 }
 0xae4   : > { %v23641_v51 = vpop.permute.xlu0 %23640 }
 0xae5   : > { %21903 = vmatprep.subr.msk.bf16.mxu0 %vm25600_vm8, %v21901_v21  ;;  %v23643_v16 = vunpack.i.h.bf16 %v23641_v51  ;;  %v23642_v22 = vunpack.i.l.bf16 %v23641_v51  ;;  %v27062_v51 = vpop.permute.xlu1 %23655 }
 0xae6   : > { %21906 = vmatpush3.bf16.xpose.msk.msra.mxu0 %vm25600_vm8, %v21901_v21 }
 0xae7   : > { %21909 = vmatprep.subr.msk.bf16.mxu0 %vm25600_vm8, %v21907_v26  ;;  %v21913_v35 = vpack.c.bf16 %v23643_v16, %v23642_v22  ;;  %v21919_v16 = vpack.c.bf16 %v23648_v25, %v23647_v27  ;;  %v30784_v22 = vunpack.i.h.bf16 %v27062_v51 }
 0xae8   : > { %v23651_v4 = vpop.permute.xlu0 %23650 }
 0xae9   : > { %v23653_v19 = vunpack.i.h.bf16 %v23651_v4  ;;  %v23652_v29 = vunpack.i.l.bf16 %v23651_v4  ;;  %v30785_v4 = vunpack.i.l.bf16 %v27062_v51 }
 0xaea   : > { %19330 = vmatmul.mubr.msk.f32.vlgmr.msra.gmra.mrb[88].mxu1 %vm1078_vm5, %v26990_v49 }
 0xaeb   : > { %v27048_v46 = vpack.c.bf16 %v23653_v19, %v23652_v29  ;;  %19332 = vmatprep.mubr.msk.f32.mxu1 %vm1078_vm5, %v27022_v24  ;;  %7456 = vxpose.xlu1.b32.start [1/8] (short) (narrow) %v23652_v29, 64 }
 0xaec   : > { %v23661_v55 = vpop.permute.xlu0 %23660 }
 0xaed   : > { %v23663_v61 = vunpack.i.h.bf16 %v23661_v55  ;;  %v23662_v36 = vunpack.i.l.bf16 %v23661_v55 }
 0xaee   : > { %19333 = vmatmul.mubr.msk.f32.gmra.mrb[90].mxu1 %vm1078_vm5, %v27000_v52  ;;  %21912 = vmatpush3.bf16.xpose.msk.msra.mxu0 %vm25600_vm8, %v21907_v26 }
 0xaef   : > { %v27056_v7 = vpack.c.bf16 %v23663_v61, %v23662_v36  ;;  %19335 = vmatprep.mubr.msk.f32.mxu1 %vm1078_vm5, %v27030_v50  ;;  %21915 = vmatprep.subr.msk.bf16.mxu0 %vm25600_vm8, %v21913_v35 }
 0xaf0   : > { %7457 = vxpose.xlu1.b32.cont [2/8] (short) (narrow) %v23653_v19, 64  ;;  %v27084_v19 = vpop.permute.xlu1 %23665 }
 0xaf1   : > { %v30783_v29 = vunpack.i.l.bf16 %v27084_v19  ;;  %v30782_v12 = vunpack.i.h.bf16 %v27084_v19 }
 0xaf2   : > { %19336 = vmatmul.mubr.msk.f32.gmra.mrb[92].mxu1 %vm1078_vm5, %v27012_v60 }
 0xaf3   : > { %19338 = vmatprep.mubr.msk.f32.mxu1 %vm1078_vm5, %v27036_v63 }
 0xaf4   : > { %7458 = vxpose.xlu1.b32.cont [3/8] (short) (narrow) %v30785_v4, 64 }
 0xaf6   : > { %19339 = vmatmul.mubr.msk.f32.gmra.mrb[94].mxu1 %vm1078_vm5, %v27028_v15  ;;  %21918 = vmatpush3.bf16.xpose.msk.msra.mxu0 %vm25600_vm8, %v21913_v35 }
 0xaf7   : > { %21921 = vmatprep.subr.msk.bf16.mxu0 %vm25600_vm8, %v21919_v16 }
 0xaf8   : > { %7459 = vxpose.xlu1.b32.cont [4/8] (short) (narrow) %v30784_v22, 64 }
 0xafc   : > { %7460 = vxpose.xlu1.b32.cont [5/8] (short) (narrow) %v23662_v36, 64 }
 0xafe   : > { %21924 = vmatpush3.bf16.xpose.msk.msra.mxu0 %vm25600_vm8, %v21919_v16 }
 0xaff   : > { %21951 = vmatprep.subr.msk.bf16.mxu0 %vm25600_vm8, %v21901_v21 }
 0xb00   : > { %7461 = vxpose.xlu1.b32.cont [6/8] (short) (narrow) %v23663_v61, 64 }
 0xb04   : > { %7462 = vxpose.xlu1.b32.cont [7/8] (short) (narrow) %v30783_v29, 64 }
 0xb05   : > { %19302 = vmatmul.mubr.msk.f32.vlgmr.msra.gmra.mrb[88].mxu0 %vm1078_vm5, %v26982_v28 }
 0xb06   : > { %19304 = vmatprep.mubr.msk.f32.mxu0 %vm1078_vm5, %v26988_v62  ;;  %21954 = vmatpush3.bf16.xpose.msk.msra.mxu0 %vm25600_vm8, %v21901_v21 }
 0xb07   : > { %21957 = vmatprep.subr.msk.bf16.mxu0 %vm25600_vm8, %v21907_v26 }
 0xb08   : > { %7463 = vxpose.xlu1.b32.end [8/8] (short) (narrow) %v30782_v12, 64 }
 0xb09   : > { %19305 = vmatmul.mubr.msk.f32.gmra.mrb[90].mxu0 %vm1078_vm5, %v26966_v34 }
 0xb0a   : > { %19307 = vmatprep.mubr.msk.f32.mxu0 %vm1078_vm5, %v26992_v48 }
 0xb0d   : > { %19308 = vmatmul.mubr.msk.f32.gmra.mrb[92].mxu0 %vm1078_vm5, %v26974_v23 }
 0xb0e   : > { %19310 = vmatprep.mubr.msk.f32.mxu0 %vm1078_vm5, %v27004_v20  ;;  %21960 = vmatpush3.bf16.xpose.msk.msra.mxu0 %vm25600_vm8, %v21907_v26 }
 0xb0f   : > { %21963 = vmatprep.subr.msk.bf16.mxu0 %vm25600_vm8, %v21913_v35 }
 0xb11   : > { %19311 = vmatmul.mubr.msk.f32.gmra.mrb[94].mxu0 %vm1078_vm5, %v26980_v13  ;;  %v31202_v13 = vld [vmem:[#allocation112_spill] sm:$0xff] }
 0xb12   : > { %19357 = vmatprep.mubr.msk.f32.mxu0 %vm1078_vm5, %v27010_v1 }
 0xb16   : > { %21966 = vmatpush3.bf16.xpose.msk.msra.mxu0 %vm25600_vm8, %v21913_v35 }
 0xb17   : > { %21969 = vmatprep.subr.msk.bf16.mxu0 %vm25600_vm8, %v21919_v16 }
 0xb1e   : > { %21972 = vmatpush3.bf16.xpose.msk.msra.mxu0 %vm25600_vm8, %v21919_v16  ;;  %v31196_v16 = vld [vmem:[#allocation69_spill] sm:$0xff] }
 0xb1f   : > { %v4253_v12 = vmul.f32 %v31196_v16, %v26605_v33  ;;  %v4252_v22 = vmul.f32 %v31196_v16, %v26603_v30  ;;  %v4255_v37 = vmul.f32 %v31196_v16, %v26630_v17  ;;  %v4257_v30 = vmul.f32 %v31196_v16, %v26656_v42 }
 0xb20   : > { %v4256_v17 = vmul.f32 %v31196_v16, %v26654_v57  ;;  %v4258_v42 = vmul.f32 %v31196_v16, %v26671_v11 }
 0xb23   : > { %v27122_v21 = vpop.f32.mrb[80].mxu0 }
 0xb24   : > { %31188 = vst [vmem:[#allocation74_spill] sm:$0xff] %v27122_v21  ;;  %v27124_v26 = vpop.f32.mrb[81].mxu0 }
 0xb25   : > { %31189 = vst [vmem:[#allocation72_spill] sm:$0xff] %v27124_v26  ;;  %19358 = vmatmul.mubr.msk.f32.vlgmr.msra.gmra.mrb[96].mxu0 %vm1078_vm5, %v26990_v49 }
 0xb26   : > { %19360 = vmatprep.mubr.msk.f32.mxu0 %vm1078_vm5, %v27022_v24 }
 0xb27   : > { %v27130_v55 = vpop.f32.mrb[82].mxu0 }
 0xb28   : > { %31190 = vst [vmem:[#allocation88_spill] sm:$0xff] %v27130_v55  ;;  %v27132_v61 = vpop.f32.mrb[83].mxu0 }
 0xb29   : > { %31191 = vst [vmem:[#allocation73_spill] sm:$0xff] %v27132_v61  ;;  %19361 = vmatmul.mubr.msk.f32.gmra.mrb[98].mxu0 %vm1078_vm5, %v27000_v52 }
 0xb2a   : > { %19363 = vmatprep.mubr.msk.f32.mxu0 %vm1078_vm5, %v27030_v50 }
 0xb2b   : > { %v27138_v35 = vpop.f32.mrb[84].mxu0 }
 0xb2c   : > { %31192 = vst [vmem:[#allocation102_spill] sm:$0xff] %v27138_v35  ;;  %v27140_v36 = vpop.f32.mrb[85].mxu0 }
 0xb2d   : > { %31193 = vst [vmem:[#allocation101_spill] sm:$0xff] %v27140_v36  ;;  %19364 = vmatmul.mubr.msk.f32.gmra.mrb[100].mxu0 %vm1078_vm5, %v27012_v60 }
 0xb2e   : > { %19366 = vmatprep.mubr.msk.f32.mxu0 %vm1078_vm5, %v27036_v63 }
 0xb2f   : > { %v27146_v25 = vpop.f32.mrb[86].mxu0 }
 0xb30   : > { %31194 = vst [vmem:[#allocation104_spill] sm:$0xff] %v27146_v25  ;;  %v27148_v27 = vpop.f32.mrb[87].mxu0  ;;  %v4254_v25 = vmul.f32 %v31196_v16, %v26628_v44  ;;  %v4259_v44 = vmul.f32 %v31196_v16, %v26673_v14 }
 0xb31   : > { %31195 = vst [vmem:[#allocation103_spill] sm:$0xff] %v27148_v27  ;;  %19367 = vmatmul.mubr.msk.f32.gmra.mrb[102].mxu0 %vm1078_vm5, %v27028_v15 }
 0xb7d   : > { %v19247_v29 = vpop.f32.mrb[72].mxu1 }
 0xb7e   : > { %v23285_v4 = vadd.f32 %v19247_v29, %v4253_v12  ;;  %v4567_v8 = vpop.f32.mrb[73].mxu1 }
 0xb7f   : > { %v23286_v31 = vadd.f32 %v4567_v8, %v4252_v22 }
 0xb80   : > { %4615 = vst.msk [vmem:[#allocation2 + $0x8] sm:$0xff] %vm1078_vm5, %v23285_v4 }
 0xb81   : > { %4614 = vst.msk [vmem:[#allocation2] sm:$0xff] %vm1078_vm5, %v23286_v31  ;;  %v19250_v47 = vpop.f32.mrb[74].mxu1 }
 0xb82   : > { %v23287_v27 = vadd.f32 %v19250_v47, %v4255_v37  ;;  %v4577_v33 = vpop.f32.mrb[75].mxu1 }
 0xb83   : > { %v23288_v35 = vadd.f32 %v4577_v33, %v4254_v25 }
 0xb84   : > { %4617 = vst.msk [vmem:[#allocation2 + $0x18] sm:$0xff] %vm1078_vm5, %v23287_v27 }
 0xb85   : > { %4616 = vst.msk [vmem:[#allocation2 + $0x10] sm:$0xff] %vm1078_vm5, %v23288_v35  ;;  %v19253_v8 = vpop.f32.mrb[76].mxu1 }
 0xb86   : > { %v23289_v4 = vadd.f32 %v19253_v8, %v4257_v30  ;;  %v4587_v31 = vpop.f32.mrb[77].mxu1 }
 0xb87   : > { %v23290_v22 = vadd.f32 %v4587_v31, %v4256_v17 }
 0xb88   : > { %4619 = vst.msk [vmem:[#allocation2 + $0x28] sm:$0xff] %vm1078_vm5, %v23289_v4 }
 0xb89   : > { %4618 = vst.msk [vmem:[#allocation2 + $0x20] sm:$0xff] %vm1078_vm5, %v23290_v22  ;;  %v19256_v37 = vpop.f32.mrb[78].mxu1  ;;  %v31198_v22 = vld [vmem:[#allocation48_spill] sm:$0xff] }
 0xb8a   : > { %v23291_v47 = vadd.f32 %v19256_v37, %v4259_v44  ;;  %v4597_v29 = vpop.f32.mrb[79].mxu1  ;;  %v31199_v37 = vld [vmem:[#allocation49_spill] sm:$0xff] }
 0xb8b   : > { %v23292_v12 = vadd.f32 %v4597_v29, %v4258_v42 }
 0xb8c   : > { %4621 = vst.msk [vmem:[#allocation2 + $0x38] sm:$0xff] %vm1078_vm5, %v23291_v47 }
 0xb8d   : > { %4620 = vst.msk [vmem:[#allocation2 + $0x30] sm:$0xff] %vm1078_vm5, %v23292_v12 }
 0xb9d   : > { %v27176_v57 = vpop.f32.mrb[80].mxu1 }
 0xb9e   : > { %v27178_v35 = vpop.f32.mrb[81].mxu1 }
 0xba1   : > { %v27180_v25 = vpop.f32.mrb[82].mxu1 }
 0xba2   : > { %v27182_v14 = vpop.f32.mrb[83].mxu1 }
 0xba5   : > { %v27184_v27 = vpop.f32.mrb[84].mxu1 }
 0xba6   : > { %v27186_v33 = vpop.f32.mrb[85].mxu1 }
 0xba9   : > { %v27188_v11 = vpop.f32.mrb[86].mxu1 }
 0xbaa   : > { %31197 = vst [vmem:[#allocation106_spill] sm:$0xff] %v27188_v11  ;;  %v27190_v30 = vpop.f32.mrb[87].mxu1 }
 0xbbd   : > { %v19331_v8 = vpop.f32.mrb[88].mxu1 }
 0xbbe   : > { %v5091_v17 = vmul.f32 %v19331_v8, %v26314_v54  ;;  %v5051_v4 = vpop.f32.mrb[89].mxu1 }
 0xbbf   : > { %v5090_v31 = vmul.f32 %v26324_v18, %v5051_v4  ;;  %v31200_v4 = vld [vmem:[#allocation54_spill] sm:$0xff] }
 0xbc0   : > { %v27195_v44 = vadd.f32 %v31198_v22, %v5091_v17  ;;  %v31201_v22 = vld [vmem:[#allocation51_spill] sm:$0xff] }
 0xbc1   : > { %v27198_v42 = vadd.f32 %v31199_v37, %v5090_v31  ;;  %v19334_v47 = vpop.f32.mrb[90].mxu1  ;;  %19385 = vmatprep.mubr.msk.f32.mxu1 %vm1078_vm5, %v5090_v31  ;;  %v21973_v29 = vpack.c.bf16 %v5091_v17, %v5090_v31 }
 0xbc2   : > { %v5093_v12 = vmul.f32 %v19334_v47, %v26338_v39  ;;  %v5061_v16 = vpop.f32.mrb[91].mxu1 }
 0xbc3   : > { %v5092_v36 = vmul.f32 %v26341_v9, %v5061_v16  ;;  %21974 = vmatprep.subr.bf16.mxu1 %v21973_v29  ;;  %v21989_v8 = vpack.c.bf16 %v27195_v44, %v27198_v42 }
 0xbc4   : > { %v27206_v55 = vadd.f32 %v31200_v4, %v5093_v12  ;;  %21976 = vmatpush3.bf16.msra.mxu1 %v21973_v29  ;;  %v31203_v29 = vld [vmem:[#allocation58_spill] sm:$0xff] }
 0xbc5   : > { %v27209_v37 = vadd.f32 %v31201_v22, %v5092_v36  ;;  %v19337_v61 = vpop.f32.mrb[92].mxu1  ;;  %21990 = vmatprep.subr.bf16.mxu0 %v21989_v8  ;;  %v21977_v21 = vpack.c.bf16 %v5093_v12, %v5092_v36 }
 0xbc6   : > { %v5095_v31 = vmul.f32 %v19337_v61, %v26371_v56  ;;  %v5071_v47 = vpop.f32.mrb[93].mxu1  ;;  %21992 = vmatpush3.bf16.msra.mxu0 %v21989_v8 }
 0xbc7   : > { %v5094_v16 = vmul.f32 %v26377_v38, %v5071_v47  ;;  %21978 = vmatprep.subr.bf16.mxu1 %v21977_v21  ;;  %v21993_v26 = vpack.c.bf16 %v27206_v55, %v27209_v37 }
 0xbc8   : > { %v27216_v4 = vadd.f32 %v31202_v13, %v5095_v31  ;;  %21980 = vmatpush3.bf16.msra.mxu1 %v21977_v21 }
 0xbc9   : > { %v27219_v22 = vadd.f32 %v31203_v29, %v5094_v16  ;;  %v19340_v20 = vpop.f32.mrb[94].mxu1  ;;  %21994 = vmatprep.subr.bf16.mxu0 %v21993_v26  ;;  %v21981_v23 = vpack.c.bf16 %v5095_v31, %v5094_v16 }
 0xbca   : > { %v5097_v61 = vmul.f32 %v19340_v20, %v26404_v10  ;;  %v5081_v48 = vpop.f32.mrb[95].mxu1  ;;  %21996 = vmatpush3.bf16.msra.mxu0 %v21993_v26 }
 0xbcb   : > { %v5096_v8 = vmul.f32 %v26413_v53, %v5081_v48  ;;  %21982 = vmatprep.subr.bf16.mxu1 %v21981_v23  ;;  %v21997_v47 = vpack.c.bf16 %v27216_v4, %v27219_v22 }
 0xbcc   : > { %v27226_v13 = vadd.f32 %v26410_v41, %v5097_v61  ;;  %21984 = vmatpush3.bf16.msra.mxu1 %v21981_v23 }
 0xbcd   : > { %v27229_v21 = vadd.f32 %v26417_v6, %v5096_v8  ;;  %21998 = vmatprep.subr.bf16.mxu0 %v21997_v47  ;;  %v21985_v29 = vpack.c.bf16 %v5097_v61, %v5096_v8 }
 0xbce   : > { %22000 = vmatpush3.bf16.msra.mxu0 %v21997_v47 }
 0xbcf   : > { %21986 = vmatprep.subr.bf16.mxu1 %v21985_v29  ;;  %v22001_v20 = vpack.c.bf16 %v27226_v13, %v27229_v21 }
 0xbd0   : > { %21988 = vmatpush3.bf16.msra.mxu1 %v21985_v29 }
 0xbd1   : > { %22002 = vmatprep.subr.bf16.mxu0 %v22001_v20 }
 0xbd2   : > { %22004 = vmatpush3.bf16.msra.mxu0 %v22001_v20 }
 0xbd3   : > { %19386 = vmatmul.mubr.msk.f32.vlgmr.msra.gmra.mrb[96].mxu1 %vm1078_vm5, %v5091_v17 }
 0xbd4   : > { %19388 = vmatprep.mubr.msk.f32.mxu1 %vm1078_vm5, %v5092_v36 }
 0xbd7   : > { %19389 = vmatmul.mubr.msk.f32.gmra.mrb[98].mxu1 %vm1078_vm5, %v5093_v12 }
 0xbd8   : > { %19391 = vmatprep.mubr.msk.f32.mxu1 %vm1078_vm5, %v5094_v16  ;;  %v27237_v23 = vpop.f32.mrb[88].mxu0 }
 0xbd9   : > { %31204 = vst [vmem:[#allocation105_spill] sm:$0xff] %v27237_v23  ;;  %v27239_v48 = vpop.f32.mrb[89].mxu0 }
 0xbda   : > { %31205 = vst [vmem:[#allocation63_spill] sm:$0xff] %v27239_v48 }
 0xbdb   : > { %19392 = vmatmul.mubr.msk.f32.gmra.mrb[100].mxu1 %vm1078_vm5, %v5095_v31 }
 0xbdc   : > { %19394 = vmatprep.mubr.msk.f32.mxu1 %vm1078_vm5, %v5096_v8  ;;  %v27243_v26 = vpop.f32.mrb[90].mxu0 }
 0xbdd   : > { %31206 = vst [vmem:[#allocation62_spill] sm:$0xff] %v27243_v26  ;;  %v27245_v29 = vpop.f32.mrb[91].mxu0 }
 0xbde   : > { %31207 = vst [vmem:[#allocation66_spill] sm:$0xff] %v27245_v29 }
 0xbdf   : > { %19395 = vmatmul.mubr.msk.f32.gmra.mrb[102].mxu1 %vm1078_vm5, %v5097_v61 }
 0xbe0   : > { %v27248_v17 = vpop.f32.mrb[92].mxu0 }
 0xbe1   : > { %31208 = vst [vmem:[#allocation67_spill] sm:$0xff] %v27248_v17  ;;  %v27250_v36 = vpop.f32.mrb[93].mxu0 }
 0xbe2   : > { %31209 = vst [vmem:[#allocation83_spill] sm:$0xff] %v27250_v36 }
 0xbe4   : > { %v27252_v12 = vpop.f32.mrb[94].mxu0 }
 0xbe5   : > { %31210 = vst [vmem:[#allocation82_spill] sm:$0xff] %v27252_v12  ;;  %v27254_v16 = vpop.f32.mrb[95].mxu0 }
 0xbe6   : > { %31211 = vst [vmem:[#allocation86_spill] sm:$0xff] %v27254_v16 }
 0xbf8   : > { %v27256_v47 = vpop.f32.mrb[96].mxu0 }
 0xbf9   : > { %v27258_v20 = vpop.f32.mrb[97].mxu0 }
 0xbfc   : > { %v27260_v31 = vpop.f32.mrb[98].mxu0 }
 0xbfd   : > { %v27262_v8 = vpop.f32.mrb[99].mxu0 }
 0xc00   : > { %v27264_v6 = vpop.f32.mrb[100].mxu0 }
 0xc01   : > { %v27266_v41 = vpop.f32.mrb[101].mxu0 }
 0xc04   : > { %v27268_v61 = vpop.f32.mrb[102].mxu0 }
 0xc05   : > { %v27270_v17 = vpop.f32.mrb[103].mxu0 }
 0xca6   : > { %v19387_v36 = vpop.f32.mrb[96].mxu1 }
 0xca7   : > { %v5309_v12 = vpop.f32.mrb[97].mxu1 }
 0xca8   : > { %v22005_v26 = vpack.c.bf16 %v19387_v36, %v5309_v12  ;;  %19413 = vmatprep.mubr.msk.f32.mxu0 %vm1078_vm5, %v5309_v12  ;;  %19441 = vmatprep.mubr.msk.f32.mxu1 %vm1078_vm5, %v5309_v12 }
 0xca9   : > { %19414 = vmatmul.mubr.msk.f32.vlgmr.msra.gmra.mrb[104].mxu0 %vm1078_vm5, %v19387_v36 }
 0xcaa   : > { %v19390_v16 = vpop.f32.mrb[98].mxu1  ;;  %22006 = vmatprep.subr.bf16.mxu1 %v22005_v26 }
 0xcab   : > { %v5319_v29 = vpop.f32.mrb[99].mxu1  ;;  %22008 = vmatpush3.bf16.msra.mxu1 %v22005_v26 }
 0xcac   : > { %v22009_v23 = vpack.c.bf16 %v19390_v16, %v5319_v29  ;;  %19416 = vmatprep.mubr.msk.f32.mxu0 %vm1078_vm5, %v5319_v29 }
 0xcad   : > { %19417 = vmatmul.mubr.msk.f32.gmra.mrb[106].mxu0 %vm1078_vm5, %v19390_v16 }
 0xcae   : > { %v19393_v48 = vpop.f32.mrb[100].mxu1  ;;  %22010 = vmatprep.subr.bf16.mxu1 %v22009_v23 }
 0xcaf   : > { %v5329_v34 = vpop.f32.mrb[101].mxu1  ;;  %22012 = vmatpush3.bf16.msra.mxu1 %v22009_v23 }
 0xcb0   : > { %v22013_v62 = vpack.c.bf16 %v19393_v48, %v5329_v34  ;;  %19419 = vmatprep.mubr.msk.f32.mxu0 %vm1078_vm5, %v5329_v34 }
 0xcb1   : > { %19420 = vmatmul.mubr.msk.f32.gmra.mrb[108].mxu0 %vm1078_vm5, %v19393_v48 }
 0xcb2   : > { %v19396_v12 = vpop.f32.mrb[102].mxu1  ;;  %22014 = vmatprep.subr.bf16.mxu1 %v22013_v62 }
 0xcb3   : > { %v5339_v28 = vpop.f32.mrb[103].mxu1  ;;  %22016 = vmatpush3.bf16.msra.mxu1 %v22013_v62 }
 0xcb4   : > { %v22017_v40 = vpack.c.bf16 %v19396_v12, %v5339_v28  ;;  %19422 = vmatprep.mubr.msk.f32.mxu0 %vm1078_vm5, %v5339_v28 }
 0xcb5   : > { %19423 = vmatmul.mubr.msk.f32.gmra.mrb[110].mxu0 %vm1078_vm5, %v19396_v12 }
 0xcb6   : > { %22018 = vmatprep.subr.bf16.mxu1 %v22017_v40 }
 0xcb7   : > { %22020 = vmatpush3.bf16.msra.mxu1 %v22017_v40 }
 0xcba   : > { %19442 = vmatmul.mubr.msk.f32.vlgmr.msra.gmra.mrb[104].mxu1 %vm1078_vm5, %v19387_v36 }
 0xcbb   : > { %19444 = vmatprep.mubr.msk.f32.mxu1 %vm1078_vm5, %v5319_v29 }
 0xcbe   : > { %19445 = vmatmul.mubr.msk.f32.gmra.mrb[106].mxu1 %vm1078_vm5, %v19390_v16 }
 0xcbf   : > { %19447 = vmatprep.mubr.msk.f32.mxu1 %vm1078_vm5, %v5329_v34 }
 0xcc2   : > { %19448 = vmatmul.mubr.msk.f32.gmra.mrb[108].mxu1 %vm1078_vm5, %v19393_v48 }
 0xcc3   : > { %19450 = vmatprep.mubr.msk.f32.mxu1 %vm1078_vm5, %v5339_v28 }
 0xcc6   : > { %19451 = vmatmul.mubr.msk.f32.gmra.mrb[110].mxu1 %vm1078_vm5, %v19396_v12 }
 0xd7c   : > { %v19415_v62 = vpop.f32.mrb[104].mxu0 }
 0xd7d   : > { %v27289_v23 = vadd.f32 %v19415_v62, %v27195_v44  ;;  %v5438_v26 = vpop.f32.mrb[105].mxu0 }
 0xd7e   : > { %v27292_v40 = vadd.f32 %v5438_v26, %v27198_v42 }
 0xd80   : > { %v22021_v29 = vpack.c.bf16 %v27289_v23, %v27292_v40  ;;  %v19418_v36 = vpop.f32.mrb[106].mxu0 }
 0xd81   : > { %v27297_v34 = vadd.f32 %v19418_v36, %v27206_v55  ;;  %v5448_v48 = vpop.f32.mrb[107].mxu0 }
 0xd82   : > { %v27300_v28 = vadd.f32 %v5448_v48, %v27209_v37  ;;  %22022 = vmatprep.subr.bf16.mxu0 %v22021_v29 }
 0xd83   : > { %22024 = vmatpush3.bf16.msra.mxu0 %v22021_v29 }
 0xd84   : > { %v22025_v44 = vpack.c.bf16 %v27297_v34, %v27300_v28  ;;  %v19421_v16 = vpop.f32.mrb[108].mxu0 }
 0xd85   : > { %v27305_v42 = vadd.f32 %v19421_v16, %v27216_v4  ;;  %v5458_v12 = vpop.f32.mrb[109].mxu0 }
 0xd86   : > { %v27308_v62 = vadd.f32 %v5458_v12, %v27219_v22  ;;  %22026 = vmatprep.subr.bf16.mxu0 %v22025_v44 }
 0xd87   : > { %22028 = vmatpush3.bf16.msra.mxu0 %v22025_v44 }
 0xd88   : > { %v22029_v55 = vpack.c.bf16 %v27305_v42, %v27308_v62  ;;  %v19424_v37 = vpop.f32.mrb[110].mxu0 }
 0xd89   : > { %v27313_v26 = vadd.f32 %v19424_v37, %v27226_v13  ;;  %v5468_v29 = vpop.f32.mrb[111].mxu0 }
 0xd8a   : > { %v27316_v36 = vadd.f32 %v5468_v29, %v27229_v21  ;;  %22030 = vmatprep.subr.bf16.mxu0 %v22029_v55 }
 0xd8b   : > { %22032 = vmatpush3.bf16.msra.mxu0 %v22029_v55 }
 0xd8c   : > { %v22033_v4 = vpack.c.bf16 %v27313_v26, %v27316_v36 }
 0xd8d   : > { %v19443_v22 = vpop.f32.mrb[104].mxu1 }
 0xd8e   : > { %v5551_v48 = vpop.f32.mrb[105].mxu1  ;;  %22034 = vmatprep.subr.bf16.mxu0 %v22033_v4 }
 0xd8f   : > { %v22037_v44 = vpack.c.bf16 %v19443_v22, %v5551_v48  ;;  %22036 = vmatpush3.bf16.msra.mxu0 %v22033_v4  ;;  %19469 = vmatprep.mubr.msk.f32.mxu0 %vm1078_vm5, %v5551_v48 }
 0xd90   : > { %19497 = vmatprep.mubr.msk.f32.mxu1 %vm1078_vm5, %v5551_v48 }
 0xd91   : > { %v19446_v13 = vpop.f32.mrb[106].mxu1  ;;  %22038 = vmatprep.subr.bf16.mxu1 %v22037_v44 }
 0xd92   : > { %v5561_v16 = vpop.f32.mrb[107].mxu1  ;;  %19470 = vmatmul.mubr.msk.f32.vlgmr.msra.gmra.mrb[112].mxu0 %vm1078_vm5, %v19443_v22  ;;  %22040 = vmatpush3.bf16.msra.mxu1 %v22037_v44 }
 0xd93   : > { %v22041_v21 = vpack.c.bf16 %v19446_v13, %v5561_v16  ;;  %19472 = vmatprep.mubr.msk.f32.mxu0 %vm1078_vm5, %v5561_v16 }
 0xd95   : > { %v19449_v12 = vpop.f32.mrb[108].mxu1  ;;  %22042 = vmatprep.subr.bf16.mxu1 %v22041_v21 }
 0xd96   : > { %v5571_v55 = vpop.f32.mrb[109].mxu1  ;;  %19473 = vmatmul.mubr.msk.f32.gmra.mrb[114].mxu0 %vm1078_vm5, %v19446_v13  ;;  %22044 = vmatpush3.bf16.msra.mxu1 %v22041_v21 }
 0xd97   : > { %v22045_v37 = vpack.c.bf16 %v19449_v12, %v5571_v55  ;;  %19475 = vmatprep.mubr.msk.f32.mxu0 %vm1078_vm5, %v5571_v55 }
 0xd99   : > { %v19452_v29 = vpop.f32.mrb[110].mxu1  ;;  %22046 = vmatprep.subr.bf16.mxu1 %v22045_v37 }
 0xd9a   : > { %v5581_v4 = vpop.f32.mrb[111].mxu1  ;;  %19476 = vmatmul.mubr.msk.f32.gmra.mrb[116].mxu0 %vm1078_vm5, %v19449_v12  ;;  %22048 = vmatpush3.bf16.msra.mxu1 %v22045_v37 }
 0xd9b   : > { %v22049_v48 = vpack.c.bf16 %v19452_v29, %v5581_v4  ;;  %19478 = vmatprep.mubr.msk.f32.mxu0 %vm1078_vm5, %v5581_v4 }
 0xd9d   : > { %22050 = vmatprep.subr.bf16.mxu1 %v22049_v48 }
 0xd9e   : > { %19479 = vmatmul.mubr.msk.f32.gmra.mrb[118].mxu0 %vm1078_vm5, %v19452_v29  ;;  %22052 = vmatpush3.bf16.msra.mxu1 %v22049_v48 }
 0xda1   : > { %19498 = vmatmul.mubr.msk.f32.vlgmr.msra.gmra.mrb[112].mxu1 %vm1078_vm5, %v19443_v22 }
 0xda2   : > { %19500 = vmatprep.mubr.msk.f32.mxu1 %vm1078_vm5, %v5561_v16 }
 0xda5   : > { %19501 = vmatmul.mubr.msk.f32.gmra.mrb[114].mxu1 %vm1078_vm5, %v19446_v13 }
 0xda6   : > { %19503 = vmatprep.mubr.msk.f32.mxu1 %vm1078_vm5, %v5571_v55 }
 0xda9   : > { %19504 = vmatmul.mubr.msk.f32.gmra.mrb[116].mxu1 %vm1078_vm5, %v19449_v12 }
 0xdaa   : > { %19506 = vmatprep.mubr.msk.f32.mxu1 %vm1078_vm5, %v5581_v4 }
 0xdad   : > { %19507 = vmatmul.mubr.msk.f32.gmra.mrb[118].mxu1 %vm1078_vm5, %v19452_v29 }
 0xe65   : > { %v19471_v44 = vpop.f32.mrb[112].mxu0 }
 0xe66   : > { %v27337_v21 = vadd.f32 %v19471_v44, %v27289_v23  ;;  %v5680_v37 = vpop.f32.mrb[113].mxu0 }
 0xe67   : > { %v27340_v48 = vadd.f32 %v5680_v37, %v27292_v40 }
 0xe69   : > { %v22053_v22 = vpack.c.bf16 %v27337_v21, %v27340_v48  ;;  %v19474_v13 = vpop.f32.mrb[114].mxu0 }
 0xe6a   : > { %v27345_v16 = vadd.f32 %v19474_v13, %v27297_v34  ;;  %v5690_v12 = vpop.f32.mrb[115].mxu0 }
 0xe6b   : > { %v27348_v55 = vadd.f32 %v5690_v12, %v27300_v28  ;;  %22054 = vmatprep.subr.bf16.mxu0 %v22053_v22 }
 0xe6c   : > { %22056 = vmatpush3.bf16.msra.mxu0 %v22053_v22 }
 0xe6d   : > { %v22057_v23 = vpack.c.bf16 %v27345_v16, %v27348_v55  ;;  %v19477_v29 = vpop.f32.mrb[116].mxu0 }
 0xe6e   : > { %v27353_v40 = vadd.f32 %v19477_v29, %v27305_v42  ;;  %v5700_v4 = vpop.f32.mrb[117].mxu0 }
 0xe6f   : > { %v27356_v44 = vadd.f32 %v5700_v4, %v27308_v62  ;;  %22058 = vmatprep.subr.bf16.mxu0 %v22057_v23 }
 0xe70   : > { %22060 = vmatpush3.bf16.msra.mxu0 %v22057_v23 }
 0xe71   : > { %v22061_v34 = vpack.c.bf16 %v27353_v40, %v27356_v44  ;;  %v19480_v28 = vpop.f32.mrb[118].mxu0 }
 0xe72   : > { %v27361_v37 = vadd.f32 %v19480_v28, %v27313_v26  ;;  %v5710_v22 = vpop.f32.mrb[119].mxu0 }
 0xe73   : > { %v27364_v13 = vadd.f32 %v5710_v22, %v27316_v36  ;;  %22062 = vmatprep.subr.bf16.mxu0 %v22061_v34 }
 0xe74   : > { %v19499_v42 = vpop.f32.mrb[112].mxu1  ;;  %22064 = vmatpush3.bf16.msra.mxu0 %v22061_v34 }
 0xe75   : > { %v22065_v62 = vpack.c.bf16 %v27361_v37, %v27364_v13  ;;  %v5793_v12 = vpop.f32.mrb[113].mxu1 }
 0xe76   : > { %v22069_v29 = vpack.c.bf16 %v19499_v42, %v5793_v12  ;;  %19525 = vmatprep.mubr.msk.f32.mxu0 %vm1078_vm5, %v5793_v12  ;;  %19553 = vmatprep.mubr.msk.f32.mxu1 %vm1078_vm5, %v5793_v12 }
 0xe77   : > { %22066 = vmatprep.subr.bf16.mxu0 %v22065_v62 }
 0xe78   : > { %v19502_v23 = vpop.f32.mrb[114].mxu1  ;;  %22068 = vmatpush3.bf16.msra.mxu0 %v22065_v62  ;;  %22070 = vmatprep.subr.bf16.mxu1 %v22069_v29 }
 0xe79   : > { %v5803_v26 = vpop.f32.mrb[115].mxu1  ;;  %22072 = vmatpush3.bf16.msra.mxu1 %v22069_v29 }
 0xe7a   : > { %v22073_v36 = vpack.c.bf16 %v19502_v23, %v5803_v26 }
 0xe7b   : > { %19526 = vmatmul.mubr.msk.f32.vlgmr.msra.gmra.mrb[120].mxu0 %vm1078_vm5, %v19499_v42 }
 0xe7c   : > { %v19505_v4 = vpop.f32.mrb[116].mxu1  ;;  %19528 = vmatprep.mubr.msk.f32.mxu0 %vm1078_vm5, %v5803_v26  ;;  %22074 = vmatprep.subr.bf16.mxu1 %v22073_v36 }
 0xe7d   : > { %v5813_v34 = vpop.f32.mrb[117].mxu1  ;;  %22076 = vmatpush3.bf16.msra.mxu1 %v22073_v36 }
 0xe7e   : > { %v22077_v28 = vpack.c.bf16 %v19505_v4, %v5813_v34 }
 0xe7f   : > { %19529 = vmatmul.mubr.msk.f32.gmra.mrb[122].mxu0 %vm1078_vm5, %v19502_v23 }
 0xe80   : > { %v19508_v22 = vpop.f32.mrb[118].mxu1  ;;  %19531 = vmatprep.mubr.msk.f32.mxu0 %vm1078_vm5, %v5813_v34  ;;  %22078 = vmatprep.subr.bf16.mxu1 %v22077_v28 }
 0xe81   : > { %v5823_v62 = vpop.f32.mrb[119].mxu1  ;;  %22080 = vmatpush3.bf16.msra.mxu1 %v22077_v28 }
 0xe82   : > { %v22081_v12 = vpack.c.bf16 %v19508_v22, %v5823_v62 }
 0xe83   : > { %19532 = vmatmul.mubr.msk.f32.gmra.mrb[124].mxu0 %vm1078_vm5, %v19505_v4 }
 0xe84   : > { %19534 = vmatprep.mubr.msk.f32.mxu0 %vm1078_vm5, %v5823_v62  ;;  %22082 = vmatprep.subr.bf16.mxu1 %v22081_v12 }
 0xe85   : > { %22084 = vmatpush3.bf16.msra.mxu1 %v22081_v12 }
 0xe87   : > { %19535 = vmatmul.mubr.msk.f32.gmra.mrb[126].mxu0 %vm1078_vm5, %v19508_v22 }
 0xe88   : > { %19554 = vmatmul.mubr.msk.f32.vlgmr.msra.gmra.mrb[120].mxu1 %vm1078_vm5, %v19499_v42 }
 0xe89   : > { %19556 = vmatprep.mubr.msk.f32.mxu1 %vm1078_vm5, %v5803_v26 }
 0xe8c   : > { %19557 = vmatmul.mubr.msk.f32.gmra.mrb[122].mxu1 %vm1078_vm5, %v19502_v23 }
 0xe8d   : > { %19559 = vmatprep.mubr.msk.f32.mxu1 %vm1078_vm5, %v5813_v34 }
 0xe90   : > { %19560 = vmatmul.mubr.msk.f32.gmra.mrb[124].mxu1 %vm1078_vm5, %v19505_v4 }
 0xe91   : > { %19562 = vmatprep.mubr.msk.f32.mxu1 %vm1078_vm5, %v5823_v62 }
 0xe94   : > { %19563 = vmatmul.mubr.msk.f32.gmra.mrb[126].mxu1 %vm1078_vm5, %v19508_v22 }
 0xf4e   : > { %v19527_v29 = vpop.f32.mrb[120].mxu0 }
 0xf4f   : > { %v27385_v36 = vadd.f32 %v19527_v29, %v27337_v21  ;;  %v5922_v28 = vpop.f32.mrb[121].mxu0 }
 0xf50   : > { %v27388_v12 = vadd.f32 %v5922_v28, %v27340_v48 }
 0xf52   : > { %v22085_v42 = vpack.c.bf16 %v27385_v36, %v27388_v12  ;;  %v19530_v23 = vpop.f32.mrb[122].mxu0 }
 0xf53   : > { %v27393_v26 = vadd.f32 %v19530_v23, %v27345_v16  ;;  %v5932_v4 = vpop.f32.mrb[123].mxu0 }
 0xf54   : > { %v27396_v34 = vadd.f32 %v5932_v4, %v27348_v55  ;;  %22086 = vmatprep.subr.bf16.mxu0 %v22085_v42 }
 0xf55   : > { %22088 = vmatpush3.bf16.msra.mxu0 %v22085_v42 }
 0xf56   : > { %v22089_v21 = vpack.c.bf16 %v27393_v26, %v27396_v34  ;;  %v19533_v22 = vpop.f32.mrb[124].mxu0 }
 0xf57   : > { %v27401_v48 = vadd.f32 %v19533_v22, %v27353_v40  ;;  %v5942_v62 = vpop.f32.mrb[125].mxu0 }
 0xf58   : > { %v27404_v29 = vadd.f32 %v5942_v62, %v27356_v44  ;;  %22090 = vmatprep.subr.bf16.mxu0 %v22089_v21 }
 0xf59   : > { %22092 = vmatpush3.bf16.msra.mxu0 %v22089_v21 }
 0xf5a   : > { %v22093_v16 = vpack.c.bf16 %v27401_v48, %v27404_v29  ;;  %v19536_v55 = vpop.f32.mrb[126].mxu0 }
 0xf5b   : > { %v27409_v28 = vadd.f32 %v19536_v55, %v27361_v37  ;;  %v5952_v42 = vpop.f32.mrb[127].mxu0  ;;  %v19555_v23 = vpop.f32.mrb[120].mxu1 }
 0xf5c   : > { %v27412_v4 = vadd.f32 %v5952_v42, %v27364_v13  ;;  %v6035_v40 = vpop.f32.mrb[121].mxu1  ;;  %22094 = vmatprep.subr.bf16.mxu0 %v22093_v16 }
 0xf5d   : > { %v22101_v22 = vpack.c.bf16 %v19555_v23, %v6035_v40  ;;  %22096 = vmatpush3.bf16.msra.mxu0 %v22093_v16  ;;  %19581 = vmatprep.mubr.msk.f32.mxu0 %vm1078_vm5, %v6035_v40 }
 0xf5e   : > { %v22097_v44 = vpack.c.bf16 %v27409_v28, %v27412_v4  ;;  %19609 = vmatprep.mubr.msk.f32.mxu1 %vm1078_vm5, %v6035_v40 }
 0xf5f   : > { %v19558_v21 = vpop.f32.mrb[122].mxu1  ;;  %22102 = vmatprep.subr.bf16.mxu1 %v22101_v22 }
 0xf60   : > { %v6045_v37 = vpop.f32.mrb[123].mxu1  ;;  %22098 = vmatprep.subr.bf16.mxu0 %v22097_v44  ;;  %22104 = vmatpush3.bf16.msra.mxu1 %v22101_v22  ;;  %v31212_v22 = vunpack.i.l.bf16 %v27062_v51 }
 0xf61   : > { %v22105_v62 = vpack.c.bf16 %v19558_v21, %v6045_v37  ;;  %22100 = vmatpush3.bf16.msra.mxu0 %v22097_v44  ;;  %v31213_v44 = vunpack.i.h.bf16 %v27062_v51  ;;  %v31214_v51 = vunpack.i.l.bf16 %v27084_v19 }
 0xf63   : > { %v19561_v13 = vpop.f32.mrb[124].mxu1  ;;  %22106 = vmatprep.subr.bf16.mxu1 %v22105_v62 }
 0xf64   : > { %v6055_v55 = vpop.f32.mrb[125].mxu1  ;;  %19582 = vmatmul.mubr.msk.f32.vlgmr.msra.gmra.mrb[128].mxu0 %vm1078_vm5, %v19555_v23  ;;  %22108 = vmatpush3.bf16.msra.mxu1 %v22105_v62  ;;  %v27429_v62 = vpack.c.bf16 %v31213_v44, %v31212_v22  ;;  %v5207_v22 = vmul.f32 %v26377_v38, %v27266_v41  ;;  %v5209_v44 = vmul.f32 %v26413_v53, %v27270_v17  ;;  %v4627_v41 = vld [vmem:[#allocation2 + $0x60] sm:$0xff]  ;;  %v4629_v17 = vld [vmem:[#allocation2 + $0x70] sm:$0xff] }
 0xf65   : > { %v22109_v16 = vpack.c.bf16 %v19561_v13, %v6055_v55  ;;  %19584 = vmatprep.mubr.msk.f32.mxu0 %vm1078_vm5, %v6045_v37 }
 0xf67   : > { %v19564_v42 = vpop.f32.mrb[126].mxu1  ;;  %22110 = vmatprep.subr.bf16.mxu1 %v22109_v16 }
 0xf68   : > { %v6065_v11 = vpop.f32.mrb[127].mxu1  ;;  %19585 = vmatmul.mubr.msk.f32.gmra.mrb[130].mxu0 %vm1078_vm5, %v19558_v21  ;;  %22112 = vmatpush3.bf16.msra.mxu1 %v22109_v16  ;;  %v31215_v16 = vunpack.i.h.bf16 %v27084_v19  ;;  %v5204_v19 = vmul.f32 %v27256_v47, %v26314_v54 }
 0xf69   : > { %v22113_v40 = vpack.c.bf16 %v19564_v42, %v6065_v11  ;;  %19587 = vmatprep.mubr.msk.f32.mxu0 %vm1078_vm5, %v6055_v55 }
 0xf6b   : > { %22114 = vmatprep.subr.bf16.mxu1 %v22113_v40 }
 0xf6c   : > { %19588 = vmatmul.mubr.msk.f32.gmra.mrb[132].mxu0 %vm1078_vm5, %v19561_v13  ;;  %22116 = vmatpush3.bf16.msra.mxu1 %v22113_v40  ;;  %v27443_v40 = vpack.c.bf16 %v31215_v16, %v31214_v51  ;;  %v4630_v16 = vld [vmem:[#allocation2 + $0x78] sm:$0xff] }
 0xf6d   : > { %19590 = vmatprep.mubr.msk.f32.mxu0 %vm1078_vm5, %v6065_v11  ;;  %22134 = vmatprep.subr.bf16.mxu1 %v27048_v46 }
 0xf6f   : > { %19610 = vmatmul.mubr.msk.f32.vlgmr.msra.gmra.mrb[128].mxu1 %vm1078_vm5, %v19555_v23  ;;  %v4623_v23 = vld [vmem:[#allocation2 + $0x40] sm:$0xff] }
 0xf70   : > { %19591 = vmatmul.mubr.msk.f32.gmra.mrb[134].mxu0 %vm1078_vm5, %v19564_v42  ;;  %19612 = vmatprep.mubr.msk.f32.mxu1 %vm1078_vm5, %v6045_v37  ;;  %v4624_v37 = vld [vmem:[#allocation2 + $0x48] sm:$0xff] }
 0xf71   : > { %22136 = vmatpush3.bf16.msra.mxu1 %v27048_v46 }
 0xf72   : > { %22138 = vmatprep.subr.bf16.mxu1 %v27429_v62 }
 0xf73   : > { %19613 = vmatmul.mubr.msk.f32.gmra.mrb[130].mxu1 %vm1078_vm5, %v19558_v21  ;;  %v5203_v21 = vmul.f32 %v26324_v18, %v27258_v20  ;;  %v4625_v20 = vld [vmem:[#allocation2 + $0x50] sm:$0xff] }
 0xf74   : > { %19615 = vmatprep.mubr.msk.f32.mxu1 %vm1078_vm5, %v6055_v55  ;;  %v27452_v55 = vpack.c.bf16 %v4624_v37, %v4623_v23  ;;  %v27499_v23 = vpack.c.bf16 %v4630_v16, %v4629_v17 }
 0xf75   : > { %22140 = vmatpush3.bf16.msra.mxu1 %v27429_v62 }
 0xf76   : > { %22142 = vmatprep.subr.bf16.mxu1 %v27056_v7 }
 0xf77   : > { %19616 = vmatmul.mubr.msk.f32.gmra.mrb[132].mxu1 %vm1078_vm5, %v19561_v13  ;;  %v4626_v13 = vld [vmem:[#allocation2 + $0x58] sm:$0xff] }
 0xf78   : > { %19618 = vmatprep.mubr.msk.f32.mxu1 %vm1078_vm5, %v6065_v11  ;;  %v5205_v11 = vmul.f32 %v26341_v9, %v27262_v8  ;;  %v27470_v47 = vpack.c.bf16 %v4626_v13, %v4625_v20  ;;  %v5208_v8 = vmul.f32 %v27264_v6, %v26371_v56  ;;  %v5210_v6 = vmul.f32 %v27268_v61, %v26404_v10  ;;  %v23671_v61 = vpop.permute.xlu0 %23670 }
 0xf79   : > { %22144 = vmatpush3.bf16.msra.mxu1 %v27056_v7  ;;  %v23672_v37 = vunpack.i.l.bf16 %v23671_v61 }
 0xf7a   : > { %22146 = vmatprep.subr.bf16.mxu1 %v27443_v40 }
 0xf7b   : > { %19619 = vmatmul.mubr.msk.f32.gmra.mrb[134].mxu1 %vm1078_vm5, %v19564_v42  ;;  %v5206_v42 = vmul.f32 %v27260_v31, %v26338_v39  ;;  %v4628_v31 = vld [vmem:[#allocation2 + $0x68] sm:$0xff]  ;;  %v28187_v39 = vld [vmem:[%s25058_s21 + $0x38] sm:$0xff]  }
 0xf7c   : > { %19665 = vmatprep.mubr.msk.f32.mxu1 %vm1078_vm5, %v5203_v21  ;;  %v27488_v51 = vpack.c.bf16 %v4628_v31, %v4627_v41  ;;  %v23681_v13 = vpop.permute.xlu0 %23680 }
 0xf7d   : > { %22148 = vmatpush3.bf16.msra.mxu1 %v27443_v40 }
 0xf7e   : > { %22151 = vmatprep.subr.msk.bf16.mxu1 %vm25600_vm8, %v27452_v55 }
 0xf80   : > { %19666 = vmatmul.mubr.msk.f32.vlgmr.msra.gmra.mrb[136].mxu1 %vm1078_vm5, %v5204_v19  ;;  %v23676_v19 = vpop.permute.xlu1 %23675  ;;  %v23691_v17 = vpop.permute.xlu0 %23690 }
 0xf81   : > { %19668 = vmatprep.mubr.msk.f32.mxu1 %vm1078_vm5, %v5205_v11  ;;  %v23678_v11 = vunpack.i.h.bf16 %v23676_v19  ;;  %v23677_v20 = vunpack.i.l.bf16 %v23676_v19  ;;  %v23692_v16 = vunpack.i.l.bf16 %v23691_v17 }
 0xf84   : > { %19669 = vmatmul.mubr.msk.f32.gmra.mrb[138].mxu1 %vm1078_vm5, %v5206_v42  ;;  %v23683_v42 = vunpack.i.h.bf16 %v23681_v13 }
 0xf85   : > { %19671 = vmatprep.mubr.msk.f32.mxu1 %vm1078_vm5, %v5207_v22  ;;  %v23682_v22 = vunpack.i.l.bf16 %v23681_v13 }
 0xf86   : > { %22154 = vmatpush3.bf16.xpose.msk.msra.mxu1 %vm25600_vm8, %v27452_v55 }
 0xf87   : > { %22157 = vmatprep.subr.msk.bf16.mxu1 %vm25600_vm8, %v27470_v47 }
 0xf88   : > { %19672 = vmatmul.mubr.msk.f32.gmra.mrb[140].mxu1 %vm1078_vm5, %v5208_v8  ;;  %v22249_v8 = vpack.c.bf16 %v23678_v11, %v23677_v20 }
 0xf89   : > { %19674 = vmatprep.mubr.msk.f32.mxu1 %vm1078_vm5, %v5209_v44  ;;  %v23686_v44 = vpop.permute.xlu1 %23685 }
 0xf8a   : > { %v23688_v41 = vunpack.i.h.bf16 %v23686_v44  ;;  %v23687_v31 = vunpack.i.l.bf16 %v23686_v44 }
 0xf8c   : > { %19675 = vmatmul.mubr.msk.f32.gmra.mrb[142].mxu1 %vm1078_vm5, %v5210_v6  ;;  %v22253_v6 = vpack.c.bf16 %v23683_v42, %v23682_v22 }
 0xf8d   : > { %19693 = vmatprep.mubr.msk.f32.mxu1 %vm1078_vm5, %v27010_v1  ;;  %v23673_v1 = vunpack.i.h.bf16 %v23671_v61 }
 0xf8e   : > { %22160 = vmatpush3.bf16.xpose.msk.msra.mxu1 %vm25600_vm8, %v27470_v47 }
 0xf8f   : > { %22163 = vmatprep.subr.msk.bf16.mxu1 %vm25600_vm8, %v27488_v51  ;;  %v22245_v21 = vpack.c.bf16 %v23673_v1, %v23672_v37 }
 0xf96   : > { %22166 = vmatpush3.bf16.xpose.msk.msra.mxu1 %vm25600_vm8, %v27488_v51 }
 0xf97   : > { %22169 = vmatprep.subr.msk.bf16.mxu1 %vm25600_vm8, %v27499_v23 }
 0xf9e   : > { %22172 = vmatpush3.bf16.xpose.msk.msra.mxu1 %vm25600_vm8, %v27499_v23 }
 0xf9f   : > { %22246 = vmatprep.subr.bf16.mxu1 %v22245_v21 }
 0xfa5   : > { %19694 = vmatmul.mubr.msk.f32.vlgmr.msra.gmra.mrb[136].mxu1 %vm1078_vm5, %v26990_v49  ;;  %v23693_v49 = vunpack.i.h.bf16 %v23691_v17 }
 0xfa6   : > { %19696 = vmatprep.mubr.msk.f32.mxu1 %vm1078_vm5, %v27022_v24  ;;  %22248 = vmatpush3.bf16.msra.mxu1 %v22245_v21  ;;  %v22257_v24 = vpack.c.bf16 %v23688_v41, %v23687_v31 }
 0xfa7   : > { %22250 = vmatprep.subr.bf16.mxu1 %v22249_v8 }
 0xfa9   : > { %19697 = vmatmul.mubr.msk.f32.gmra.mrb[138].mxu1 %vm1078_vm5, %v27000_v52  ;;  %v27524_v52 = vpack.c.bf16 %v23693_v49, %v23692_v16 }
 0xfaa   : > { %19699 = vmatprep.mubr.msk.f32.mxu1 %vm1078_vm5, %v27030_v50  ;;  %22252 = vmatpush3.bf16.msra.mxu1 %v22249_v8 }
 0xfab   : > { %22254 = vmatprep.subr.bf16.mxu1 %v22253_v6 }
 0xfad   : > { %19700 = vmatmul.mubr.msk.f32.gmra.mrb[140].mxu1 %vm1078_vm5, %v27012_v60 }
 0xfae   : > { %19702 = vmatprep.mubr.msk.f32.mxu1 %vm1078_vm5, %v27036_v63  ;;  %22256 = vmatpush3.bf16.msra.mxu1 %v22253_v6 }
 0xfaf   : > { %22258 = vmatprep.subr.bf16.mxu1 %v22257_v24 }
 0xfb1   : > { %19703 = vmatmul.mubr.msk.f32.gmra.mrb[142].mxu1 %vm1078_vm5, %v27028_v15 }
 0xfb2   : > { %22260 = vmatpush3.bf16.msra.mxu1 %v22257_v24 }
 0xfb3   : > { %22262 = vmatprep.subr.bf16.mxu1 %v27524_v52 }
0x1037   : > { %v19583_v50 = vpop.f32.mrb[128].mxu0 }
0x1038   : > { %v27528_v61 = vadd.f32 %v19583_v50, %v27385_v36  ;;  %v6164_v1 = vpop.f32.mrb[129].mxu0 }
0x1039   : > { %v27531_v60 = vadd.f32 %v6164_v1, %v27388_v12 }
0x103b   : > { %v22117_v63 = vpack.c.bf16 %v27528_v61, %v27531_v60  ;;  %v19586_v37 = vpop.f32.mrb[130].mxu0 }
0x103c   : > { %v27536_v21 = vadd.f32 %v19586_v37, %v27393_v26  ;;  %v6174_v15 = vpop.f32.mrb[131].mxu0 }
0x103d   : > { %v27539_v19 = vadd.f32 %v6174_v15, %v27396_v34  ;;  %22118 = vmatprep.subr.bf16.mxu0 %v22117_v63 }
0x103e   : > { %22120 = vmatpush3.bf16.msra.mxu0 %v22117_v63 }
0x103f   : > { %v22121_v36 = vpack.c.bf16 %v27536_v21, %v27539_v19  ;;  %v19589_v11 = vpop.f32.mrb[132].mxu0 }
0x1040   : > { %v27544_v12 = vadd.f32 %v19589_v11, %v27401_v48  ;;  %v6184_v20 = vpop.f32.mrb[133].mxu0 }
0x1041   : > { %v27547_v13 = vadd.f32 %v6184_v20, %v27404_v29  ;;  %22122 = vmatprep.subr.bf16.mxu0 %v22121_v36 }
0x1042   : > { %v19611_v26 = vpop.f32.mrb[128].mxu1  ;;  %22124 = vmatpush3.bf16.msra.mxu0 %v22121_v36 }
0x1043   : > { %v22125_v34 = vpack.c.bf16 %v27544_v12, %v27547_v13  ;;  %v19592_v42 = vpop.f32.mrb[134].mxu0  ;;  %v6277_v22 = vpop.f32.mrb[129].mxu1 }
0x1044   : > { %v27552_v8 = vadd.f32 %v19592_v42, %v27409_v28  ;;  %v6194_v44 = vpop.f32.mrb[135].mxu0  ;;  %19637 = vmatprep.mubr.msk.f32.mxu0 %vm1078_vm5, %v6277_v22 }
0x1045   : > { %v6209_v48 = vadd.f32 %v6194_v44, %v27412_v4  ;;  %22126 = vmatprep.subr.bf16.mxu0 %v22125_v34 }
0x1046   : > { %v19614_v41 = vpop.f32.mrb[130].mxu1  ;;  %22128 = vmatpush3.bf16.msra.mxu0 %v22125_v34 }
0x1047   : > { %v22129_v29 = vpack.c.bf16 %v27552_v8, %v6209_v48  ;;  %v6287_v31 = vpop.f32.mrb[131].mxu1 }
0x1049   : > { %22130 = vmatprep.subr.bf16.mxu0 %v22129_v29 }
0x104a   : > { %v19617_v6 = vpop.f32.mrb[132].mxu1  ;;  %22132 = vmatpush3.bf16.msra.mxu0 %v22129_v29 }
0x104b   : > { %v6297_v17 = vpop.f32.mrb[133].mxu1 }
0x104d   : > { %19638 = vmatmul.mubr.msk.f32.vlgmr.msra.gmra.mrb[136].mxu0 %vm1078_vm5, %v19611_v26 }
0x104e   : > { %v19620_v49 = vpop.f32.mrb[134].mxu1  ;;  %19640 = vmatprep.mubr.msk.f32.mxu0 %vm1078_vm5, %v6287_v31 }
0x104f   : > { %v6307_v28 = vpop.f32.mrb[135].mxu1 }
0x1051   : > { %19641 = vmatmul.mubr.msk.f32.gmra.mrb[138].mxu0 %vm1078_vm5, %v19614_v41 }
0x1052   : > { %19643 = vmatprep.mubr.msk.f32.mxu0 %vm1078_vm5, %v6297_v17 }
0x1055   : > { %19644 = vmatmul.mubr.msk.f32.gmra.mrb[140].mxu0 %vm1078_vm5, %v19617_v6 }
0x1056   : > { %19646 = vmatprep.mubr.msk.f32.mxu0 %vm1078_vm5, %v6307_v28 }
0x1059   : > { %19647 = vmatmul.mubr.msk.f32.gmra.mrb[142].mxu0 %vm1078_vm5, %v19620_v49 }
0x1078   : > { %v19695_v4 = vpop.f32.mrb[136].mxu1 }
0x1079   : > { %v6704_v16 = vpop.f32.mrb[137].mxu1 }
0x107a   : > { %v22173_v24 = vpack.c.bf16 %v19695_v4, %v6704_v16 }
0x107c   : > { %v19698_v50 = vpop.f32.mrb[138].mxu1  ;;  %22174 = vmatprep.subr.bf16.mxu0 %v22173_v24 }
0x107d   : > { %v6714_v1 = vpop.f32.mrb[139].mxu1  ;;  %22176 = vmatpush3.bf16.msra.mxu0 %v22173_v24 }
0x107e   : > { %v22177_v63 = vpack.c.bf16 %v19698_v50, %v6714_v1 }
0x1080   : > { %v19701_v37 = vpop.f32.mrb[140].mxu1  ;;  %22178 = vmatprep.subr.bf16.mxu0 %v22177_v63 }
0x1081   : > { %v6724_v15 = vpop.f32.mrb[141].mxu1  ;;  %22180 = vmatpush3.bf16.msra.mxu0 %v22177_v63 }
0x1082   : > { %v22181_v36 = vpack.c.bf16 %v19701_v37, %v6724_v15 }
0x1084   : > { %v19704_v11 = vpop.f32.mrb[142].mxu1  ;;  %22182 = vmatprep.subr.bf16.mxu0 %v22181_v36 }
0x1085   : > { %v6734_v20 = vpop.f32.mrb[143].mxu1  ;;  %22184 = vmatpush3.bf16.msra.mxu0 %v22181_v36 }
0x1086   : > { %v22185_v26 = vpack.c.bf16 %v19704_v11, %v6734_v20  ;;  %v4801_v11 = vmul.f32 %v27176_v57, %v31131_v32  ;;  %v4802_v20 = vmul.f32 %v31132_v58, %v27182_v14  ;;  %v4805_v57 = vmul.f32 %v27184_v27, %v31135_v0  ;;  %v31217_v27 = vld [vmem:[#allocation80_spill] sm:$0xff] }
0x1087   : > { %v4806_v14 = vmul.f32 %v31136_v43, %v27190_v30  ;;  %v31218_v30 = vld [vmem:[#allocation68_spill] sm:$0xff] }
0x1088   : > { %22186 = vmatprep.subr.bf16.mxu0 %v22185_v26 }
0x1089   : > { %22188 = vmatpush3.bf16.msra.mxu0 %v22185_v26  ;;  %v4803_v26 = vmul.f32 %v27180_v25, %v31133_v45  ;;  %v31216_v25 = vld [vmem:[#allocation106_spill] sm:$0xff] }
0x1120   : > { %v19639_v34 = vpop.f32.mrb[136].mxu0 }
0x1121   : > { %v6406_v42 = vpop.f32.mrb[137].mxu0  ;;  %v6446_v44 = vadd.f32 %v19639_v34, %v27528_v61  ;;  %v4804_v34 = vmul.f32 %v31134_v3, %v27186_v33  ;;  %v4807_v33 = vmul.f32 %v31216_v25, %v31137_v59 }
0x1122   : > { %v6445_v22 = vadd.f32 %v6406_v42, %v27531_v60  ;;  %v31223_v42 = vld [vmem:[#allocation85_spill] sm:$0xff] }
0x1124   : > { %v19642_v41 = vpop.f32.mrb[138].mxu0  ;;  %19721 = vmatprep.mubr.msk.f32.mxu0 %vm1078_vm5, %v6445_v22 }
0x1125   : > { %v6416_v29 = vpop.f32.mrb[139].mxu0  ;;  %19722 = vmatmul.mubr.msk.f32.vlgmr.msra.gmra.mrb[144].mxu0 %vm1078_vm5, %v6446_v44  ;;  %v6448_v6 = vadd.f32 %v19642_v41, %v27536_v21  ;;  %v4800_v21 = vmul.f32 %v31130_v2, %v27178_v35  ;;  %v31225_v44 = vld [vmem:[#allocation64_spill] sm:$0xff] }
0x1126   : > { %v6447_v31 = vadd.f32 %v6416_v29, %v27539_v19  ;;  %v31227_v29 = vmov 1.0|1.0  }
0x1128   : > { %v19645_v17 = vpop.f32.mrb[140].mxu0  ;;  %19724 = vmatprep.mubr.msk.f32.mxu0 %vm1078_vm5, %v6447_v31 }
0x1129   : > { %v6426_v49 = vpop.f32.mrb[141].mxu0  ;;  %19725 = vmatmul.mubr.msk.f32.gmra.mrb[146].mxu0 %vm1078_vm5, %v6448_v6  ;;  %v6450_v61 = vadd.f32 %v19645_v17, %v27544_v12 }
0x112a   : > { %v6449_v60 = vadd.f32 %v6426_v49, %v27547_v13  ;;  %v31231_v49 = vld [vmem:[#allocation83_spill] sm:$0xff] }
0x112c   : > { %v19648_v28 = vpop.f32.mrb[142].mxu0  ;;  %19727 = vmatprep.mubr.msk.f32.mxu0 %vm1078_vm5, %v6449_v60  ;;  %v4949_v60 = vmul.f32 %v31134_v3, %v31231_v49 }
0x112d   : > { %v6436_v4 = vpop.f32.mrb[143].mxu0  ;;  %19728 = vmatmul.mubr.msk.f32.gmra.mrb[148].mxu0 %vm1078_vm5, %v6450_v61  ;;  %v6452_v19 = vadd.f32 %v19648_v28, %v27552_v8  ;;  %v31232_v61 = vld [vmem:[#allocation67_spill] sm:$0xff] }
0x112e   : > { %v6451_v16 = vadd.f32 %v6436_v4, %v6209_v48  ;;  %v4950_v28 = vmul.f32 %v31232_v61, %v31135_v0  ;;  %v31233_v4 = vld [vmem:[#allocation86_spill] sm:$0xff] }
0x1130   : > { %19730 = vmatprep.mubr.msk.f32.mxu0 %vm1078_vm5, %v6451_v16  ;;  %v4951_v16 = vmul.f32 %v31136_v43, %v31233_v4 }
0x1131   : > { %19731 = vmatmul.mubr.msk.f32.gmra.mrb[150].mxu0 %vm1078_vm5, %v6452_v19  ;;  %v31234_v19 = vld [vmem:[#allocation82_spill] sm:$0xff] }
0x1132   : > { %19749 = vmatprep.mubr.msk.f32.mxu0 %vm1078_vm5, %v4800_v21  ;;  %v4952_v21 = vmul.f32 %v31234_v19, %v31137_v59 }
0x11f8   : > { %v19723_v13 = vpop.f32.mrb[144].mxu0 }
0x11f9   : > { %v6833_v12 = vpop.f32.mrb[145].mxu0 }
0x11fa   : > { %v22189_v24 = vpack.c.bf16 %v19723_v13, %v6833_v12  ;;  %7255 = vxpose.xlu0.b32.start [1/8] (short) (narrow) %v6833_v12, 64  ;;  %v23701_v12 = vpop.permute.xlu0 %23700 }
0x11fc   : > { %v19726_v50 = vpop.f32.mrb[146].mxu0  ;;  %22190 = vmatprep.subr.bf16.mxu0 %v22189_v24 }
0x11fd   : > { %v6843_v1 = vpop.f32.mrb[147].mxu0  ;;  %22192 = vmatpush3.bf16.msra.mxu0 %v22189_v24  ;;  %v23696_v24 = vpop.permute.xlu1 %23695 }
0x11fe   : > { %v22193_v48 = vpack.c.bf16 %v19726_v50, %v6843_v1  ;;  %7256 = vxpose.xlu0.b32.cont [2/8] (short) (narrow) %v19723_v13, 64 }
0x1200   : > { %v19729_v8 = vpop.f32.mrb[148].mxu0  ;;  %22194 = vmatprep.subr.bf16.mxu0 %v22193_v48 }
0x1201   : > { %v6853_v63 = vpop.f32.mrb[149].mxu0  ;;  %22196 = vmatpush3.bf16.msra.mxu0 %v22193_v48  ;;  %v23697_v48 = vunpack.i.l.bf16 %v23696_v24 }
0x1202   : > { %v22197_v35 = vpack.c.bf16 %v19729_v8, %v6853_v63  ;;  %7257 = vxpose.xlu0.b32.cont [3/8] (short) (narrow) %v6843_v1, 64  ;;  %v23698_v1 = vunpack.i.h.bf16 %v23696_v24  ;;  %v16047_v24 = vld [vmem:[%s25044_s26 + $0x50] sm:$0xff] }
0x1204   : > { %v19732_v37 = vpop.f32.mrb[150].mxu0  ;;  %22198 = vmatprep.subr.bf16.mxu0 %v22197_v35 }
0x1205   : > { %v6863_v15 = vpop.f32.mrb[151].mxu0  ;;  %22200 = vmatpush3.bf16.msra.mxu0 %v22197_v35  ;;  %v23702_v35 = vunpack.i.l.bf16 %v23701_v12 }
0x1206   : > { %v22201_v36 = vpack.c.bf16 %v19732_v37, %v6863_v15  ;;  %7258 = vxpose.xlu0.b32.cont [4/8] (short) (narrow) %v19726_v50, 64 }
0x1208   : > { %22202 = vmatprep.subr.bf16.mxu0 %v22201_v36 }
0x1209   : > { %22204 = vmatpush3.bf16.msra.mxu0 %v22201_v36 }
0x120a   : > { %7259 = vxpose.xlu0.b32.cont [5/8] (short) (narrow) %v6853_v63, 64  ;;  %22207 = vmatprep.subr.msk.bf16.mxu0 %vm25600_vm8, %v27452_v55  ;;  %v23703_v63 = vunpack.i.h.bf16 %v23701_v12 }
0x120c   : > { %19750 = vmatmul.mubr.msk.f32.vlgmr.msra.gmra.mrb[152].mxu0 %vm1078_vm5, %v4801_v11 }
0x120d   : > { %19752 = vmatprep.mubr.msk.f32.mxu0 %vm1078_vm5, %v4802_v20  ;;  %v22269_v20 = vpack.c.bf16 %v23703_v63, %v23702_v35  ;;  %v16050_v63 = vld [vmem:[%s25044_s26 + $0x68] sm:$0xff] }
0x120e   : > { %7260 = vxpose.xlu0.b32.cont [6/8] (short) (narrow) %v19729_v8, 64 }
0x1210   : > { %19753 = vmatmul.mubr.msk.f32.gmra.mrb[154].mxu0 %vm1078_vm5, %v4803_v26 }
0x1211   : > { %19755 = vmatprep.mubr.msk.f32.mxu0 %vm1078_vm5, %v4804_v34 }
0x1212   : > { %7261 = vxpose.xlu0.b32.cont [7/8] (short) (narrow) %v6863_v15, 64  ;;  %22210 = vmatpush3.bf16.xpose.msk.msra.mxu0 %vm25600_vm8, %v27452_v55  ;;  %v31219_v55 = vld [vmem:[#allocation70_spill] sm:$0xff]  ;;  %v23706_v15 = vpop.permute.xlu1 %23705 }
0x1213   : > { %22213 = vmatprep.subr.msk.bf16.mxu0 %vm25600_vm8, %v27470_v47  ;;  %v23708_v36 = vunpack.i.h.bf16 %v23706_v15  ;;  %v23707_v11 = vunpack.i.l.bf16 %v23706_v15  ;;  %v16051_v15 = vld [vmem:[%s25044_s26 + $0x70] sm:$0xff] }
0x1214   : > { %19756 = vmatmul.mubr.msk.f32.gmra.mrb[156].mxu0 %vm1078_vm5, %v4805_v57 }
0x1215   : > { %19758 = vmatprep.mubr.msk.f32.mxu0 %vm1078_vm5, %v4806_v14  ;;  %v22273_v26 = vpack.c.bf16 %v23708_v36, %v23707_v11  ;;  %v16052_v36 = vld [vmem:[%s25044_s26 + $0x78] sm:$0xff]  ;;  %v8169_v11 = vmul.f32 1.442695, %v16051_v15 }
0x1216   : > { %7262 = vxpose.xlu0.b32.end [8/8] (short) (narrow) %v19732_v37, 64  ;;  %v22265_v37 = vpack.c.bf16 %v23698_v1, %v23697_v48  ;;  %v7472_v57 = vpop.trf.xlu1  ;;  %v8161_v1 = vmul.f32 1.442695, %v16047_v24 }
0x1218   : > { %19759 = vmatmul.mubr.msk.f32.gmra.mrb[158].mxu0 %vm1078_vm5, %v4807_v33 }
0x1219   : > { %19777 = vmatprep.mubr.msk.f32.mxu0 %vm1078_vm5, %v31217_v27 }
0x121a   : > { %22216 = vmatpush3.bf16.xpose.msk.msra.mxu0 %vm25600_vm8, %v27470_v47  ;;  %v31220_v47 = vld [vmem:[#allocation107_spill] sm:$0xff] }
0x121b   : > { %22219 = vmatprep.subr.msk.bf16.mxu0 %vm25600_vm8, %v27488_v51 }
0x1222   : > { %22222 = vmatpush3.bf16.xpose.msk.msra.mxu0 %vm25600_vm8, %v27488_v51  ;;  %v31221_v51 = vld [vmem:[#allocation71_spill] sm:$0xff] }
0x1223   : > { %22225 = vmatprep.subr.msk.bf16.mxu0 %vm25600_vm8, %v27499_v23  ;;  %31261 = vst [vmem:[#allocation71_spill] sm:$0xff] %v28187_v39 }
0x122a   : > { %22228 = vmatpush3.bf16.xpose.msk.msra.mxu0 %vm25600_vm8, %v27499_v23  ;;  %v31222_v23 = vld [vmem:[#allocation65_spill] sm:$0xff] }
0x122b   : > { %22230 = vmatprep.subr.bf16.mxu0 %v27048_v46 }
0x1231   : > { %19778 = vmatmul.mubr.msk.f32.vlgmr.msra.gmra.mrb[152].mxu0 %vm1078_vm5, %v31218_v30 }
0x1232   : > { %19780 = vmatprep.mubr.msk.f32.mxu0 %vm1078_vm5, %v31219_v55  ;;  %22232 = vmatpush3.bf16.msra.mxu0 %v27048_v46  ;;  %v31224_v46 = vld [vmem:[#allocation63_spill] sm:$0xff] }
0x1233   : > { %22234 = vmatprep.subr.bf16.mxu0 %v27429_v62  ;;  %v4945_v22 = vmul.f32 %v31130_v2, %v31224_v46 }
0x1235   : > { %19781 = vmatmul.mubr.msk.f32.gmra.mrb[154].mxu0 %vm1078_vm5, %v31220_v47 }
0x1236   : > { %19783 = vmatprep.mubr.msk.f32.mxu0 %vm1078_vm5, %v31221_v51  ;;  %22236 = vmatpush3.bf16.msra.mxu0 %v27429_v62  ;;  %v31226_v62 = vld [vmem:[#allocation105_spill] sm:$0xff] }
0x1237   : > { %22238 = vmatprep.subr.bf16.mxu0 %v27056_v7  ;;  %v4946_v41 = vmul.f32 %v31226_v62, %v31131_v32 }
0x1239   : > { %19784 = vmatmul.mubr.msk.f32.gmra.mrb[156].mxu0 %vm1078_vm5, %v31222_v23 }
0x123a   : > { %19786 = vmatprep.mubr.msk.f32.mxu0 %vm1078_vm5, %v31223_v42  ;;  %22240 = vmatpush3.bf16.msra.mxu0 %v27056_v7  ;;  %v31229_v7 = vld [vmem:[#allocation66_spill] sm:$0xff] }
0x123b   : > { %22242 = vmatprep.subr.bf16.mxu0 %v27443_v40  ;;  %v4947_v6 = vmul.f32 %v31132_v58, %v31229_v7 }
0x123d   : > { %19787 = vmatmul.mubr.msk.f32.gmra.mrb[158].mxu0 %vm1078_vm5, %v31225_v44  ;;  %v16046_v44 = vld [vmem:[%s25044_s26 + $0x48] sm:$0xff] }
0x123e   : > { %22244 = vmatpush3.bf16.msra.mxu0 %v27443_v40  ;;  %19805 = vmatprep.mubr.msk.f32.mxu0 %vm1078_vm5, %v4945_v22  ;;  %v31230_v40 = vld [vmem:[#allocation62_spill] sm:$0xff] }
0x123f   : > { %22310 = vmatprep.subr.msk.bf16.mxu0 %vm25118_vm4, %v31227_v29  ;;  %v4948_v17 = vmul.f32 %v31230_v40, %v31133_v45  ;;  %v16045_v22 = vld [vmem:[%s25044_s26 + $0x40] sm:$0xff] }
0x1240   : > { %v8157_v62 = vmul.f32 1.442695, %v16045_v22  ;;  %v31237_v22 = vld [vmem:[#allocation74_spill] sm:$0xff] }
0x1241   : > { %19806 = vmatmul.mubr.msk.f32.vlgmr.msra.gmra.mrb[152].mxu0 %vm1078_vm5, %v4946_v41  ;;  %v8159_v41 = vmul.f32 1.442695, %v16046_v44 }
0x1242   : > { %19808 = vmatprep.mubr.msk.f32.mxu0 %vm1078_vm5, %v4947_v6  ;;  %22312 = vmatpush3.bf16.msk.msra.mxu0 %vm25118_vm4, %v31227_v29  ;;  %23905 = vpow2.f32 %v8157_v62 }
0x1243   : > { %22314 = vmatprep.subr.msk.bf16.mxu0 %vm25118_vm4, %v31227_v29  ;;  %23907 = vpow2.f32 %v8159_v41 }
0x1244   : > { %23909 = vpow2.f32 %v8161_v1  ;;  %v31242_v1 = vld [vmem:[#allocation101_spill] sm:$0xff] }
0x1245   : > { %19809 = vmatmul.mubr.msk.f32.gmra.mrb[154].mxu0 %vm1078_vm5, %v4948_v17 }
0x1246   : > { %19811 = vmatprep.mubr.msk.f32.mxu0 %vm1078_vm5, %v4949_v60  ;;  %22316 = vmatpush3.bf16.msk.msra.mxu0 %vm25118_vm4, %v31227_v29 }
0x1247   : > { %22318 = vmatprep.subr.msk.bf16.mxu0 %vm25118_vm4, %v31227_v29 }
0x1249   : > { %19812 = vmatmul.mubr.msk.f32.gmra.mrb[156].mxu0 %vm1078_vm5, %v4950_v28 }
0x124a   : > { %19814 = vmatprep.mubr.msk.f32.mxu0 %vm1078_vm5, %v4951_v16  ;;  %22320 = vmatpush3.bf16.msk.msra.mxu0 %vm25118_vm4, %v31227_v29 }
0x124b   : > { %22322 = vmatprep.subr.msk.bf16.mxu0 %vm25118_vm4, %v31227_v29 }
0x124c   : > { %v27793_v7 = vpop.eup %23905 }
0x124d   : > { %19815 = vmatmul.mubr.msk.f32.gmra.mrb[158].mxu0 %vm1078_vm5, %v4952_v21  ;;  %v27795_v6 = vpop.eup %23907  ;;  %v30805_v40 = vsub.f32 0.0, %v27793_v7 }
0x124e   : > { %22324 = vmatpush3.bf16.msk.msra.mxu0 %vm25118_vm4, %v31227_v29  ;;  %v30806_v17 = vsub.f32 0.0, %v27795_v6 }
0x124f   : > { %22326 = vmatprep.subr.msk.bf16.mxu0 %vm25182_vm9, %v31227_v29 }
0x1250   : > { %v22341_v49 = vpack.c.bf16 %v30806_v17, %v30805_v40  ;;  %v28092_v17 = vld [vmem:[%s25050_s5 + $0x38] sm:$0xff]  }
0x1251   : > { %v30817_v13 = vunpack.c.h.bf16 %v28092_v17 }
0x1252   : > { %22328 = vmatpush3.bf16.msk.msra.mxu0 %vm25182_vm9, %v31227_v29 }
0x1253   : > { %22330 = vmatprep.subr.msk.bf16.mxu0 %vm25182_vm9, %v31227_v29 }
0x1256   : > { %22332 = vmatpush3.bf16.msk.msra.mxu0 %vm25182_vm9, %v31227_v29 }
0x1257   : > { %22334 = vmatprep.subr.msk.bf16.mxu0 %vm25182_vm9, %v31227_v29 }
0x125a   : > { %22336 = vmatpush3.bf16.msk.msra.mxu0 %vm25182_vm9, %v31227_v29 }
0x125b   : > { %22338 = vmatprep.subr.msk.bf16.mxu0 %vm25182_vm9, %v31227_v29 }
0x125e   : > { %22340 = vmatpush3.bf16.msk.msra.mxu0 %vm25182_vm9, %v31227_v29 }
0x125f   : > { %22358 = vmatprep.subr.msk.bf16.mxu0 %vm25118_vm4, %v31227_v29 }
0x127a   : > { %v7271_v50 = vpop.trf.xlu0 }
0x127b   : > { %19833 = vmatprep.mubr.msk.f32.mxu1 %vm1078_vm5, %v7271_v50  ;;  %v16048_v50 = vld [vmem:[%s25044_s26 + $0x58] sm:$0xff] }
0x127c   : > { %v8163_v48 = vmul.f32 1.442695, %v16048_v50 }
0x127e   : > { %v7272_v8 = vpop.trf.xlu0  ;;  %23911 = vpow2.f32 %v8163_v48 }
0x127f   : > { %19834 = vmatmul.mubr.msk.f32.vlgmr.msra.gmra.mrb[144].mxu1 %vm1078_vm5, %v7272_v8  ;;  %v16049_v8 = vld [vmem:[%s25044_s26 + $0x60] sm:$0xff]  ;;  %s30561_s26 = scalar_lea.hbm %s31568_s24, %s16632_s11 }
0x1280   : > { %22264 = vmatpush3.bf16.msra.mxu1 %v27524_v52  ;;  %v7473_v52 = vpop.trf.xlu1  ;;  %v8165_v35 = vmul.f32 1.442695, %v16049_v8 }
0x1281   : > { %22266 = vmatprep.subr.bf16.mxu1 %v22265_v37 }
0x1282   : > { %v7273_v34 = vpop.trf.xlu0  ;;  %23913 = vpow2.f32 %v8165_v35 }
0x1283   : > { %19836 = vmatprep.mubr.msk.f32.mxu1 %vm1078_vm5, %v7273_v34 }
0x1284   : > { %22268 = vmatpush3.bf16.msra.mxu1 %v22265_v37  ;;  %v7474_v33 = vpop.trf.xlu1  ;;  %v8167_v37 = vmul.f32 1.442695, %v16050_v63  ;;  %v31243_v63 = vld [vmem:[#allocation102_spill] sm:$0xff] }
0x1285   : > { %22270 = vmatprep.subr.bf16.mxu1 %v22269_v20 }
0x1286   : > { %v7274_v14 = vpop.trf.xlu0  ;;  %23915 = vpow2.f32 %v8167_v37 }
0x1287   : > { %19837 = vmatmul.mubr.msk.f32.gmra.mrb[146].mxu1 %vm1078_vm5, %v7274_v14  ;;  %23917 = vpow2.f32 %v8169_v11 }
0x1288   : > { %22272 = vmatpush3.bf16.msra.mxu1 %v22269_v20  ;;  %v7475_v30 = vpop.trf.xlu1  ;;  %v8171_v20 = vmul.f32 1.442695, %v16052_v36 }
0x1289   : > { %22274 = vmatprep.subr.bf16.mxu1 %v22273_v26 }
0x128a   : > { %v7275_v25 = vpop.trf.xlu0  ;;  %23919 = vpow2.f32 %v8171_v20  ;;  %v31246_v20 = vld [vmem:[#allocation103_spill] sm:$0xff] }
0x128b   : > { %19839 = vmatprep.mubr.msk.f32.mxu1 %vm1078_vm5, %v7275_v25 }
0x128c   : > { %22276 = vmatpush3.bf16.msra.mxu1 %v22273_v26  ;;  %v7476_v47 = vpop.trf.xlu1  ;;  %v27817_v26 = vpop.eup %23909 }
0x128d   : > { %22278 = vmatprep.subr.msk.bf16.mxu1 %vm25118_vm4, %v31227_v29  ;;  %v27819_v34 = vpop.eup %23911  ;;  %v30803_v14 = vsub.f32 0.0, %v27817_v26 }
0x128e   : > { %v7276_v27 = vpop.trf.xlu0 }
0x128f   : > { %19840 = vmatmul.mubr.msk.f32.gmra.mrb[148].mxu1 %vm1078_vm5, %v7276_v27 }
0x1290   : > { %v7477_v23 = vpop.trf.xlu1 }
0x1292   : > { %v7277_v55 = vpop.trf.xlu0 }
0x1293   : > { %19842 = vmatprep.mubr.msk.f32.mxu1 %vm1078_vm5, %v7277_v55  ;;  %v31236_v55 = vld [vmem:[#allocation72_spill] sm:$0xff] }
0x1294   : > { %v7478_v42 = vpop.trf.xlu1 }
0x1296   : > { %v7278_v51 = vpop.trf.xlu0 }
0x1297   : > { %19843 = vmatmul.mubr.msk.f32.gmra.mrb[150].mxu1 %vm1078_vm5, %v7278_v51 }
0x1298   : > { %19861 = vmatprep.mubr.msk.f32.mxu1 %vm1078_vm5, %v7472_v57  ;;  %v7479_v46 = vpop.trf.xlu1  ;;  %v27821_v57 = vpop.eup %23913 }
0x1299   : > { %v27825_v25 = vpop.eup %23915 }
0x129b   : > { %19862 = vmatmul.mubr.msk.f32.vlgmr.msra.gmra.mrb[144].mxu1 %vm1078_vm5, %v7473_v52  ;;  %v30804_v52 = vsub.f32 0.0, %v27819_v34 }
0x129c   : > { %19864 = vmatprep.mubr.msk.f32.mxu1 %vm1078_vm5, %v7474_v33  ;;  %22280 = vmatpush3.bf16.msk.msra.mxu1 %vm25118_vm4, %v31227_v29 }
0x129d   : > { %22282 = vmatprep.subr.msk.bf16.mxu1 %vm25118_vm4, %v31227_v29  ;;  %v22345_v51 = vpack.c.bf16 %v30804_v52, %v30803_v14 }
0x129f   : > { %19865 = vmatmul.mubr.msk.f32.gmra.mrb[146].mxu1 %vm1078_vm5, %v7475_v30  ;;  %v27827_v30 = vpop.eup %23917 }
0x12a0   : > { %19867 = vmatprep.mubr.msk.f32.mxu1 %vm1078_vm5, %v7476_v47  ;;  %22284 = vmatpush3.bf16.msk.msra.mxu1 %vm25118_vm4, %v31227_v29 }
0x12a1   : > { %22286 = vmatprep.subr.msk.bf16.mxu1 %vm25118_vm4, %v31227_v29 }
0x12a3   : > { %19868 = vmatmul.mubr.msk.f32.gmra.mrb[148].mxu1 %vm1078_vm5, %v7477_v23  ;;  %v30801_v23 = vsub.f32 0.0, %v27821_v57 }
0x12a4   : > { %19870 = vmatprep.mubr.msk.f32.mxu1 %vm1078_vm5, %v7478_v42  ;;  %22288 = vmatpush3.bf16.msk.msra.mxu1 %vm25118_vm4, %v31227_v29  ;;  %v30802_v42 = vsub.f32 0.0, %v27825_v25 }
0x12a5   : > { %22290 = vmatprep.subr.msk.bf16.mxu1 %vm25118_vm4, %v31227_v29 }
0x12a7   : > { %19871 = vmatmul.mubr.msk.f32.gmra.mrb[150].mxu1 %vm1078_vm5, %v7479_v46  ;;  %v27839_v46 = vpop.eup %23919 }
0x12a8   : > { %22292 = vmatpush3.bf16.msk.msra.mxu1 %vm25118_vm4, %v31227_v29 }
0x12a9   : > { %22294 = vmatprep.subr.msk.bf16.mxu1 %vm25182_vm9, %v31227_v29 }
0x12ac   : > { %22296 = vmatpush3.bf16.msk.msra.mxu1 %vm25182_vm9, %v31227_v29 }
0x12ad   : > { %22298 = vmatprep.subr.msk.bf16.mxu1 %vm25182_vm9, %v31227_v29 }
0x12b0   : > { %22300 = vmatpush3.bf16.msk.msra.mxu1 %vm25182_vm9, %v31227_v29 }
0x12b1   : > { %22302 = vmatprep.subr.msk.bf16.mxu1 %vm25182_vm9, %v31227_v29 }
0x12b4   : > { %22304 = vmatpush3.bf16.msk.msra.mxu1 %vm25182_vm9, %v31227_v29 }
0x12b5   : > { %22306 = vmatprep.subr.msk.bf16.mxu1 %vm25182_vm9, %v31227_v29 }
0x12b8   : > { %22308 = vmatpush3.bf16.msk.msra.mxu1 %vm25182_vm9, %v31227_v29 }
0x12b9   : > { %22342 = vmatprep.subr.bf16.mxu1 %v22341_v49 }
0x1314   : > { %v19807_v60 = vpop.f32.mrb[152].mxu0 }
0x1315   : > { %7675 = vrot.lane.b32.xlu1 %v19807_v60, %s24517_s25  ;;  %v7196_v61 = vpop.f32.mrb[153].mxu0  ;;  %v31238_v60 = vld [vmem:[#allocation73_spill] sm:$0xff] }
0x1316   : > { %7673 = vrot.lane.b32.xlu0 %v7196_v61, %s24517_s25 }
0x1318   : > { %v19810_v28 = vpop.f32.mrb[154].mxu0 }
0x1319   : > { %7679 = vrot.lane.b32.xlu1 %v19810_v28, %s24517_s25  ;;  %v7206_v4 = vpop.f32.mrb[155].mxu0  ;;  %v22349_v28 = vpack.c.bf16 %v30802_v42, %v30801_v23  ;;  %v28073_v23 = vld [vmem:[%s25050_s5 + $0x30] sm:$0xff]  }
0x131a   : > { %7677 = vrot.lane.b32.xlu0 %v7206_v4, %s24517_s25  ;;  %v30799_v4 = vsub.f32 0.0, %v27827_v30  ;;  %v30814_v40 = vunpack.c.l.bf16 %v28073_v23  ;;  %v30815_v31 = vunpack.c.h.bf16 %v28073_v23 }
0x131c   : > { %v19813_v16 = vpop.f32.mrb[156].mxu0 }
0x131d   : > { %7683 = vrot.lane.b32.xlu1 %v19813_v16, %s24517_s25  ;;  %v7216_v19 = vpop.f32.mrb[157].mxu0  ;;  %v30800_v16 = vsub.f32 0.0, %v27839_v46 }
0x131e   : > { %7681 = vrot.lane.b32.xlu0 %v7216_v19, %s24517_s25  ;;  %v31239_v19 = vld [vmem:[#allocation88_spill] sm:$0xff] }
0x131f   : > { %v22353_v8 = vpack.c.bf16 %v30800_v16, %v30799_v4 }
0x1320   : > { %v19816_v21 = vpop.f32.mrb[158].mxu0 }
0x1321   : > { %7687 = vrot.lane.b32.xlu1 %v19816_v21, %s24517_s25  ;;  %v7226_v12 = vpop.f32.mrb[159].mxu0 }
0x1322   : > { %7685 = vrot.lane.b32.xlu0 %v7226_v12, %s24517_s25 }
0x136e   : > { %v27862_v21 = vpop.f32.mrb[144].mxu1 }
0x136f   : > { %31240 = vst [vmem:[#allocation84_spill] sm:$0xff] %v27862_v21  ;;  %v27865_v24 = vpop.f32.mrb[145].mxu1 }
0x1370   : > { %31241 = vst [vmem:[#allocation76_spill] sm:$0xff] %v27865_v24  ;;  %v28148_v24 = vld [vmem:[#allocation15] ss:$0 sm:$0xff] }
0x1372   : > { %v27880_v37 = vpop.f32.mrb[146].mxu1 }
0x1373   : > { %31244 = vst [vmem:[#allocation75_spill] sm:$0xff] %v27880_v37  ;;  %v27883_v36 = vpop.f32.mrb[147].mxu1 }
0x1374   : > { %31245 = vst [vmem:[#allocation78_spill] sm:$0xff] %v27883_v36 }
0x1387   : > { %v7676_v33 = vpop.permute.xlu1 %7675 }
0x1388   : > { %v7674_v27 = vpop.permute.xlu0 %7673  ;;  %v27843_v44 = vsel %vm1078_vm5, %v31237_v22, %v7676_v33 }
0x1389   : > { %v27831_v47 = vsel %vm1078_vm5, %v31236_v55, %v7674_v27  ;;  %v31247_v27 = vld [vmem:[#allocation104_spill] sm:$0xff] }
0x138a   : > { %19905 = vmatprep.mubr.f32.mxu1 %v27831_v47 }
0x138b   : > { %19906 = vmatmul.mubr.f32.vlgmr.msra.gmra.mrb[152].mxu1 %v27843_v44  ;;  %v7680_v62 = vpop.permute.xlu1 %7679 }
0x138c   : > { %22344 = vmatpush3.bf16.msra.mxu1 %v22341_v49  ;;  %v7678_v41 = vpop.permute.xlu0 %7677  ;;  %v27860_v49 = vsel %vm1078_vm5, %v31239_v19, %v7680_v62 }
0x138d   : > { %v27849_v61 = vsel %vm1078_vm5, %v31238_v60, %v7678_v41  ;;  %22346 = vmatprep.subr.bf16.mxu1 %v22345_v51 }
0x138e   : > { %19908 = vmatprep.mubr.f32.mxu1 %v27849_v61 }
0x138f   : > { %19909 = vmatmul.mubr.f32.gmra.mrb[154].mxu1 %v27860_v49  ;;  %v7684_v12 = vpop.permute.xlu1 %7683 }
0x1390   : > { %22348 = vmatpush3.bf16.msra.mxu1 %v22345_v51  ;;  %v7682_v50 = vpop.permute.xlu0 %7681  ;;  %v27878_v35 = vsel %vm1078_vm5, %v31243_v63, %v7684_v12  ;;  %v27894_v51 = vpop.f32.mrb[148].mxu1 }
0x1391   : > { %v27869_v48 = vsel %vm1078_vm5, %v31242_v1, %v7682_v50  ;;  %22350 = vmatprep.subr.bf16.mxu1 %v22349_v28  ;;  %31248 = vst [vmem:[#allocation77_spill] sm:$0xff] %v27894_v51  ;;  %v27897_v22 = vpop.f32.mrb[149].mxu1 }
0x1392   : > { %19911 = vmatprep.mubr.f32.mxu1 %v27869_v48  ;;  %31249 = vst [vmem:[#allocation79_spill] sm:$0xff] %v27897_v22  ;;  %v27904_v62 = vpop.f32.mrb[150].mxu1 }
0x1393   : > { %19912 = vmatmul.mubr.f32.gmra.mrb[156].mxu1 %v27878_v35  ;;  %v7688_v15 = vpop.permute.xlu1 %7687  ;;  %31250 = vst [vmem:[#allocation81_spill] sm:$0xff] %v27904_v62  ;;  %v27908_v41 = vpop.f32.mrb[151].mxu1 }
0x1394   : > { %22352 = vmatpush3.bf16.msra.mxu1 %v22349_v28  ;;  %v7686_v11 = vpop.permute.xlu0 %7685  ;;  %v27892_v55 = vsel %vm1078_vm5, %v31247_v27, %v7688_v15  ;;  %31251 = vst [vmem:[#allocation87_spill] sm:$0xff] %v27908_v41  ;;  %v30816_v41 = vunpack.c.l.bf16 %v28092_v17 }
0x1395   : > { %v27887_v33 = vsel %vm1078_vm5, %v31246_v20, %v7686_v11  ;;  %22354 = vmatprep.subr.bf16.mxu1 %v22353_v8 }
0x1396   : > { %19914 = vmatprep.mubr.f32.mxu1 %v27887_v33 }
0x1397   : > { %19915 = vmatmul.mubr.f32.gmra.mrb[158].mxu1 %v27892_v55 }
0x1398   : > { %22356 = vmatpush3.bf16.msra.mxu1 %v22353_v8  ;;  %19977 = vmatprep.mubr.msk.f32.mxu1 %vm1078_vm5, %v31130_v2 }
0x1399   : > { %22390 = vmatprep.subr.msk.bf16.mxu1 %vm25118_vm4, %v31227_v29 }
0x139b   : > { %19978 = vmatmul.mubr.msk.f32.vlgmr.msra.gmra.mrb[160].mxu1 %vm1078_vm5, %v31131_v32 }
0x139c   : > { %19980 = vmatprep.mubr.msk.f32.mxu1 %vm1078_vm5, %v31132_v58  ;;  %22392 = vmatpush3.bf16.msk.msra.mxu1 %vm25118_vm4, %v31227_v29 }
0x139d   : > { %22394 = vmatprep.subr.msk.bf16.mxu1 %vm25118_vm4, %v31227_v29 }
0x139f   : > { %19981 = vmatmul.mubr.msk.f32.gmra.mrb[162].mxu1 %vm1078_vm5, %v31133_v45 }
0x13a0   : > { %19983 = vmatprep.mubr.msk.f32.mxu1 %vm1078_vm5, %v31134_v3  ;;  %22396 = vmatpush3.bf16.msk.msra.mxu1 %vm25118_vm4, %v31227_v29 }
0x13a1   : > { %22398 = vmatprep.subr.msk.bf16.mxu1 %vm25118_vm4, %v31227_v29 }
0x13a3   : > { %19984 = vmatmul.mubr.msk.f32.gmra.mrb[164].mxu1 %vm1078_vm5, %v31135_v0  ;;  %v28156_v0 = vld [vmem:[%s25058_s21 + $0x30] sm:$0xff]  }
0x13a4   : > { %19986 = vmatprep.mubr.msk.f32.mxu1 %vm1078_vm5, %v31136_v43  ;;  %22400 = vmatpush3.bf16.msk.msra.mxu1 %vm25118_vm4, %v31227_v29  ;;  %31256 = vst [vmem:[#allocation107_spill] sm:$0xff] %v28156_v0 }
0x13a5   : > { %22402 = vmatprep.subr.msk.bf16.mxu1 %vm25118_vm4, %v31227_v29 }
0x13a7   : > { %19987 = vmatmul.mubr.msk.f32.gmra.mrb[166].mxu1 %vm1078_vm5, %v31137_v59 }
0x13a8   : > { %22404 = vmatpush3.bf16.msk.msra.mxu1 %vm25118_vm4, %v31227_v29 }
0x13a9   : > { %22406 = vmatprep.subr.msk.bf16.mxu1 %vm25182_vm9, %v31227_v29 }
0x13ac   : > { %22408 = vmatpush3.bf16.msk.msra.mxu1 %vm25182_vm9, %v31227_v29 }
0x13ad   : > { %22410 = vmatprep.subr.msk.bf16.mxu1 %vm25182_vm9, %v31227_v29 }
0x13b0   : > { %22412 = vmatpush3.bf16.msk.msra.mxu1 %vm25182_vm9, %v31227_v29 }
0x13b1   : > { %22414 = vmatprep.subr.msk.bf16.mxu1 %vm25182_vm9, %v31227_v29 }
0x13b4   : > { %22416 = vmatpush3.bf16.msk.msra.mxu1 %vm25182_vm9, %v31227_v29 }
0x13b5   : > { %22418 = vmatprep.subr.msk.bf16.mxu1 %vm25182_vm9, %v31227_v29 }
0x13b8   : > { %22420 = vmatpush3.bf16.msk.msra.mxu1 %vm25182_vm9, %v31227_v29 }
0x145e   : > { %v19907_v60 = vpop.f32.mrb[152].mxu1 }
0x145f   : > { %v7811_v28 = vmul.f32 0.015625, %v19907_v60  ;;  %v7771_v19 = vpop.f32.mrb[153].mxu1 }
0x1460   : > { %v7810_v12 = vmul.f32 0.015625, %v7771_v19  ;;  %v27981_v19 = vld [vmem:[%s25050_s5 + $0x20] sm:$0xff]  }
0x1461   : > { %v27968_v50 = vsub.f32 %v27843_v44, %v7811_v28 }
0x1462   : > { %v27971_v1 = vsub.f32 %v27831_v47, %v7810_v12  ;;  %v19910_v8 = vpop.f32.mrb[154].mxu1 }
0x1463   : > { %v7813_v63 = vmul.f32 0.015625, %v19910_v8  ;;  %v7781_v15 = vpop.f32.mrb[155].mxu1  ;;  %v7827_v27 = vmul.f32 %v27968_v50, %v27968_v50 }
0x1464   : > { %v7812_v11 = vmul.f32 0.015625, %v7781_v15  ;;  %v7826_v20 = vmul.f32 %v27971_v1, %v27971_v1 }
0x1465   : > { %v27978_v60 = vsub.f32 %v27860_v49, %v7813_v63  ;;  %v30807_v49 = vunpack.c.l.bf16 %v27981_v19 }
0x1466   : > { %v27984_v44 = vsub.f32 %v27849_v61, %v7812_v11  ;;  %v19913_v47 = vpop.f32.mrb[156].mxu1  ;;  %19949 = vmatprep.mubr.f32.mxu0 %v7826_v20 }
0x1467   : > { %v7815_v28 = vmul.f32 0.015625, %v19913_v47  ;;  %v7791_v12 = vpop.f32.mrb[157].mxu1  ;;  %19950 = vmatmul.mubr.f32.vlgmr.msra.gmra.mrb[160].mxu0 %v7827_v27  ;;  %v7829_v61 = vmul.f32 %v27978_v60, %v27978_v60 }
0x1468   : > { %v7814_v8 = vmul.f32 0.015625, %v7791_v12  ;;  %22360 = vmatpush3.bf16.msk.msra.mxu0 %vm25118_vm4, %v31227_v29  ;;  %v7828_v15 = vmul.f32 %v27984_v44, %v27984_v44 }
0x1469   : > { %v27993_v63 = vsub.f32 %v27878_v35, %v7815_v28  ;;  %22362 = vmatprep.subr.msk.bf16.mxu0 %vm25118_vm4, %v31227_v29  ;;  %v24037_v28 = vld [vmem:[#allocation14] ss:$0 sm:$0xff] }
0x146a   : > { %v28001_v11 = vsub.f32 %v27869_v48, %v7814_v8  ;;  %v19916_v20 = vpop.f32.mrb[158].mxu1  ;;  %19952 = vmatprep.mubr.f32.mxu0 %v7828_v15  ;;  %v28010_v4 = vmul.f32 %v24037_v28, %v30807_v49  ;;  %v28108_v62 = vmul.f32 %v24037_v28, %v30814_v40  ;;  %v28115_v51 = vmul.f32 %v24037_v28, %v30815_v31 }
0x146b   : > { %v7817_v27 = vmul.f32 0.015625, %v19916_v20  ;;  %v7801_v47 = vpop.f32.mrb[159].mxu1  ;;  %19953 = vmatmul.mubr.f32.gmra.mrb[162].mxu0 %v7829_v61  ;;  %v7831_v8 = vmul.f32 %v27993_v63, %v27993_v63  ;;  %v28122_v40 = vmul.f32 %v24037_v28, %v30816_v41  ;;  %v28128_v22 = vmul.f32 %v24037_v28, %v30817_v13  ;;  %v28135_v41 = vld [vmem:[%s25058_s21 + $0x20] sm:$0xff]  }
0x146c   : > { %v7816_v12 = vmul.f32 0.015625, %v7801_v47  ;;  %22364 = vmatpush3.bf16.msk.msra.mxu0 %vm25118_vm4, %v31227_v29  ;;  %v7830_v35 = vmul.f32 %v28001_v11, %v28001_v11  ;;  %31252 = vst [vmem:[#allocation106_spill] sm:$0xff] %v28108_v62  ;;  %31253 = vst [vmem:[#allocation80_spill] sm:$0xff] %v28115_v51  ;;  %v30820_v36 = vunpack.c.h.bf16 %v28135_v41  ;;  %v30828_v43 = vunpack.c.l.bf16 %v28135_v41 }
0x146d   : > { %v28013_v48 = vsub.f32 %v27892_v55, %v7817_v27  ;;  %22366 = vmatprep.subr.msk.bf16.mxu0 %vm25118_vm4, %v31227_v29  ;;  %v8358_v27 = vmul.f32 %v28010_v4, %v28010_v4  ;;  %31254 = vst [vmem:[#allocation68_spill] sm:$0xff] %v28122_v40  ;;  %31255 = vst [vmem:[#allocation70_spill] sm:$0xff] %v28128_v22  ;;  %v8365_v31 = vmul.f32 %v28128_v22, %v28128_v22 }
0x146e   : > { %v28021_v15 = vsub.f32 %v27887_v33, %v7816_v12  ;;  %19955 = vmatprep.mubr.f32.mxu0 %v7830_v35  ;;  %v28023_v61 = vpop.f32.mrb[160].mxu1  ;;  %v16110_v13 = vadd.f32 -1.0, %v30820_v36  ;;  %v16109_v45 = vadd.f32 -1.0, %v30828_v43  ;;  %v31271_v22 = vunpack.c.h.bf16 %v28073_v23 }
0x146f   : > { %19956 = vmatmul.mubr.f32.gmra.mrb[164].mxu0 %v7831_v8  ;;  %v28025_v20 = vpop.f32.mrb[161].mxu1  ;;  %v7833_v33 = vmul.f32 %v28013_v48, %v28013_v48 }
0x1470   : > { %22368 = vmatpush3.bf16.msk.msra.mxu0 %vm25118_vm4, %v31227_v29  ;;  %v7832_v55 = vmul.f32 %v28021_v15, %v28021_v15  ;;  %v8302_v37 = vsub.f32 0.0, %v28025_v20  ;;  %v8560_v59 = vmul.f32 %v28148_v24, %v16110_v13 }
0x1471   : > { %22370 = vmatprep.subr.msk.bf16.mxu0 %vm25118_vm4, %v31227_v29 }
0x1472   : > { %19958 = vmatprep.mubr.f32.mxu0 %v7832_v55  ;;  %v28039_v47 = vpop.f32.mrb[162].mxu1  ;;  %v28060_v55 = vld [vmem:[%s25050_s5 + $0x28] sm:$0xff]   ;;  %s15112_s5 = scalar_lea.sflag [#allocation5], %s25032_s7 }
0x1473   : > { %19959 = vmatmul.mubr.f32.gmra.mrb[166].mxu0 %v7833_v33  ;;  %v28041_v12 = vpop.f32.mrb[163].mxu1  ;;  %v30808_v33 = vunpack.c.h.bf16 %v27981_v19  ;;  %v30810_v16 = vunpack.c.l.bf16 %v28060_v55  ;;  %v30811_v14 = vunpack.c.h.bf16 %v28060_v55 }
0x1474   : > { %22372 = vmatpush3.bf16.msk.msra.mxu0 %vm25118_vm4, %v31227_v29  ;;  %20021 = vmatprep.mubr.f32.mxu0 %v8358_v27 }
0x1475   : > { %22374 = vmatprep.subr.msk.bf16.mxu0 %vm25182_vm9, %v31227_v29  ;;  %v28077_v42 = vmul.f32 %v24037_v28, %v30808_v33  ;;  %v28085_v52 = vmul.f32 %v24037_v28, %v30810_v16  ;;  %v28098_v33 = vmul.f32 %v24037_v28, %v30811_v14 }
0x1476   : > { %v28049_v35 = vpop.f32.mrb[164].mxu1 }
0x1477   : > { %v28051_v8 = vpop.f32.mrb[165].mxu1  ;;  %v8359_v49 = vmul.f32 %v28077_v42, %v28077_v42  ;;  %v8360_v16 = vmul.f32 %v28085_v52, %v28085_v52  ;;  %v8361_v14 = vmul.f32 %v28098_v33, %v28098_v33  ;;  %v8307_v13 = vsub.f32 0.0, %v28049_v35 }
0x1478   : > { %22376 = vmatpush3.bf16.msk.msra.mxu0 %vm25182_vm9, %v31227_v29 }
0x1479   : > { %22378 = vmatprep.subr.msk.bf16.mxu0 %vm25182_vm9, %v31227_v29 }
0x147a   : > { %v28062_v27 = vpop.f32.mrb[166].mxu1 }
0x147c   : > { %22380 = vmatpush3.bf16.msk.msra.mxu0 %vm25182_vm9, %v31227_v29 }
0x147d   : > { %22382 = vmatprep.subr.msk.bf16.mxu0 %vm25182_vm9, %v31227_v29 }
0x1480   : > { %22384 = vmatpush3.bf16.msk.msra.mxu0 %vm25182_vm9, %v31227_v29 }
0x1481   : > { %22386 = vmatprep.subr.msk.bf16.mxu0 %vm25182_vm9, %v31227_v29 }
0x1484   : > { %22388 = vmatpush3.bf16.msk.msra.mxu0 %vm25182_vm9, %v31227_v29  ;;  %v8362_v29 = vmul.f32 %v28108_v62, %v28108_v62  ;;  %v28288_v62 = vld [vmem:[%s25036_s27 + $0x30] sm:$0xff]  }
0x1487   : > { %20022 = vmatmul.mubr.f32.vlgmr.msra.gmra.mrb[168].mxu0 %v8359_v49  ;;  %v8363_v49 = vmul.f32 %v28115_v51, %v28115_v51 }
0x1488   : > { %20024 = vmatprep.mubr.f32.mxu0 %v8360_v16  ;;  %v8364_v16 = vmul.f32 %v28122_v40, %v28122_v40 }
0x148b   : > { %20025 = vmatmul.mubr.f32.gmra.mrb[170].mxu0 %v8361_v14  ;;  %v8303_v14 = vsub.f32 0.0, %v28023_v61 }
0x148c   : > { %20027 = vmatprep.mubr.f32.mxu0 %v8362_v29  ;;  %v8310_v29 = vmul.f32 1.442695, %v8302_v37 }
0x148d   : > { %v8312_v28 = vmul.f32 1.442695, %v8303_v14 }
0x148f   : > { %20028 = vmatmul.mubr.f32.gmra.mrb[172].mxu0 %v8363_v49  ;;  %v28143_v49 = vld [vmem:[%s25058_s21 + $0x28] sm:$0xff]   ;;  %23921 = vpow2.f32 %v8312_v28 }
0x1490   : > { %20030 = vmatprep.mubr.f32.mxu0 %v8364_v16  ;;  %v8305_v16 = vsub.f32 0.0, %v28039_v47  ;;  %23923 = vpow2.f32 %v8310_v29  ;;  %v30824_v21 = vunpack.c.l.bf16 %v28143_v49  ;;  %v30827_v14 = vunpack.c.h.bf16 %v28143_v49 }
0x1491   : > { %v8568_v29 = vadd.f32 1.0, %v8560_v59  ;;  %v31259_v59 = vunpack.c.l.bf16 %v27981_v19 }
0x1492   : > { %v8316_v37 = vmul.f32 1.442695, %v8305_v16  ;;  %v16111_v28 = vadd.f32 -1.0, %v30824_v21  ;;  %v16112_v3 = vadd.f32 -1.0, %v30827_v14  ;;  %v8306_v21 = vsub.f32 0.0, %v28051_v8  ;;  %v28176_v16 = vld [vmem:[%s25036_s27 + $0x20] sm:$0xff]  }
0x1493   : > { %20031 = vmatmul.mubr.f32.gmra.mrb[174].mxu0 %v8365_v31  ;;  %v8304_v31 = vsub.f32 0.0, %v28041_v12  ;;  %v31257_v14 = vunpack.c.h.bf16 %v27981_v19 }
0x1494   : > { %23925 = vpow2.f32 %v8316_v37  ;;  %v8561_v58 = vmul.f32 %v28148_v24, %v16111_v28  ;;  %v8562_v37 = vmul.f32 %v28148_v24, %v16112_v3  ;;  %v30844_v28 = vunpack.c.l.bf16 %v28176_v16 }
0x1495   : > { %v8314_v36 = vmul.f32 1.442695, %v8304_v31  ;;  %v8559_v31 = vmul.f32 %v28148_v24, %v16109_v45  ;;  %v8576_v43 = vmul.f32 %v31257_v14, %v8568_v29  ;;  %v8320_v45 = vmul.f32 1.442695, %v8307_v13 }
0x1496   : > { %v8318_v56 = vmul.f32 1.442695, %v8306_v21  ;;  %v8569_v9 = vadd.f32 1.0, %v8561_v58  ;;  %v31260_v14 = vunpack.c.h.bf16 %v28156_v0  ;;  %v30845_v3 = vunpack.c.h.bf16 %v28176_v16  ;;  %v28199_v58 = vld [vmem:[#allocation20] ss:$0 sm:$0xff] }
0x1497   : > { %23927 = vpow2.f32 %v8314_v36  ;;  %v8567_v2 = vadd.f32 1.0, %v8559_v31  ;;  %v31258_v36 = vunpack.c.l.bf16 %v28156_v0  ;;  %v8570_v31 = vadd.f32 1.0, %v8562_v37 }
0x1498   : > { %v16114_v29 = vadd.f32 -1.0, %v31260_v14  ;;  %23929 = vpow2.f32 %v8320_v45  ;;  %v31264_v45 = vunpack.c.l.bf16 %v28060_v55 }
0x1499   : > { %v28168_v32 = vpop.eup %23921  ;;  %v16113_v10 = vadd.f32 -1.0, %v31258_v36  ;;  %v8575_v38 = vmul.f32 %v31259_v59, %v8567_v2  ;;  %v8632_v2 = vmul.f32 %v30845_v3, %v8576_v43  ;;  %23931 = vpow2.f32 %v8318_v56 }
0x149a   : > { %v28173_v53 = vpop.eup %23923  ;;  %v28195_v18 = vmul.f32 %v28168_v32, %v8576_v43  ;;  %v8309_v43 = vsub.f32 0.0, %v28062_v27  ;;  %v8564_v54 = vmul.f32 %v28148_v24, %v16114_v29 }
0x149b   : > { %v28190_v13 = vmul.f32 %v28173_v53, %v8575_v38  ;;  %v8631_v36 = vmul.f32 %v30844_v28, %v8575_v38  ;;  %v8563_v59 = vmul.f32 %v28148_v24, %v16113_v10  ;;  %v30848_v38 = vunpack.c.l.bf16 %v28187_v39 }
0x149c   : > { %31263 = vst [vmem:[#allocation85_spill] sm:$0xff] %v28195_v18  ;;  %v8640_v37 = vmul.f32 %v28199_v58, %v8632_v2  ;;  %v8577_v28 = vmul.f32 %v31264_v45, %v8569_v9  ;;  %v30855_v10 = vunpack.c.h.bf16 %v28187_v39  ;;  %v8572_v29 = vadd.f32 1.0, %v8564_v54  ;;  %v28228_v2 = vpop.f32.mrb[167].mxu1 }
0x149d   : > { %31262 = vst [vmem:[#allocation65_spill] sm:$0xff] %v28190_v13  ;;  %v8639_v21 = vmul.f32 %v28199_v58, %v8631_v36  ;;  %v28204_v19 = vpack.c.bf16 %v28195_v18, %v28190_v13  ;;  %v31265_v36 = vunpack.c.h.bf16 %v28060_v55  ;;  %v8571_v9 = vadd.f32 1.0, %v8563_v59 }
0x149e   : > { %v28209_v14 = vpop.eup %23925  ;;  %v16115_v55 = vadd.f32 -1.0, %v30848_v38  ;;  %v31270_v54 = vunpack.c.l.bf16 %v28073_v23  ;;  %v8580_v0 = vmul.f32 %v31271_v22, %v8572_v29 }
0x149f   : > { %v8578_v3 = vmul.f32 %v31265_v36, %v8570_v31  ;;  %20065 = vmatprep.mubr.f32.mxu1 %v8639_v21  ;;  %22447 = vmatprep.subr.msk.bf16.mxu1 %vm25600_vm8, %v28204_v19  ;;  %v8324_v31 = vmul.f32 1.442695, %v8309_v43  ;;  %v8308_v36 = vsub.f32 0.0, %v28228_v2 }
0x14a0   : > { %20066 = vmatmul.mubr.f32.vlgmr.msra.gmra.mrb[168].mxu1 %v8640_v37  ;;  %v16116_v37 = vadd.f32 -1.0, %v30855_v10  ;;  %v8579_v40 = vmul.f32 %v31270_v54, %v8571_v9  ;;  %v8565_v39 = vmul.f32 %v28148_v24, %v16115_v55  ;;  %v8288_v9 = vmul.f32 1.442695, %v28023_v61  ;;  %v28268_v54 = vld [vmem:[%s25036_s27 + $0x28] sm:$0xff]  }
0x14a1   : > { %v28220_v56 = vpop.eup %23927  ;;  %22450 = vmatpush3.bf16.xpose.msk.msra.mxu1 %vm25600_vm8, %v28204_v19  ;;  %v28234_v45 = vmul.f32 %v28209_v14, %v8578_v3  ;;  %v8322_v38 = vmul.f32 1.442695, %v8308_v36  ;;  %23933 = vpow2.f32 %v8324_v31  ;;  %v8286_v55 = vmul.f32 1.442695, %v28025_v20 }
0x14a2   : > { %31266 = vst [vmem:[#allocation63_spill] sm:$0xff] %v28220_v56  ;;  %v28231_v21 = vmul.f32 %v28220_v56, %v8577_v28  ;;  %v28243_v43 = vpop.eup %23929  ;;  %v8566_v36 = vmul.f32 %v28148_v24, %v16116_v37  ;;  %v8573_v31 = vadd.f32 1.0, %v8565_v39  ;;  %v30863_v39 = vunpack.c.h.bf16 %v28268_v54 }
0x14a3   : > { %31268 = vst [vmem:[#allocation105_spill] sm:$0xff] %v28234_v45  ;;  %31269 = vst [vmem:[#allocation66_spill] sm:$0xff] %v28243_v43  ;;  %v28253_v10 = vpop.eup %23931  ;;  %23935 = vpow2.f32 %v8322_v38  ;;  %v28264_v22 = vmul.f32 %v28243_v43, %v8580_v0  ;;  %v30864_v38 = vunpack.c.l.bf16 %v28268_v54  ;;  %v31275_v37 = vunpack.c.l.bf16 %v28092_v17 }
0x14a4   : > { %31267 = vst [vmem:[#allocation64_spill] sm:$0xff] %v28231_v21  ;;  %v28241_v59 = vpack.c.bf16 %v28234_v45, %v28231_v21  ;;  %31272 = vst [vmem:[#allocation62_spill] sm:$0xff] %v28253_v10  ;;  %v28261_v23 = vmul.f32 %v28253_v10, %v8579_v40  ;;  %v8574_v29 = vadd.f32 1.0, %v8566_v36  ;;  %23937 = vpow2.f32 %v8288_v9 }
0x14a5   : > { %31274 = vst [vmem:[#allocation67_spill] sm:$0xff] %v28264_v22  ;;  %v8581_v10 = vmul.f32 %v31275_v37, %v8573_v31  ;;  %v8633_v36 = vmul.f32 %v30864_v38, %v8577_v28  ;;  %23939 = vpow2.f32 %v8286_v55  ;;  %v31276_v43 = vunpack.c.h.bf16 %v28092_v17  ;;  %v16872_v38 = vld [vmem:[%s25036_s27 + $0x38] sm:$0xff]  }
0x14a6   : > { %22453 = vmatprep.subr.msk.bf16.mxu1 %vm25600_vm8, %v28241_v59  ;;  %31273 = vst [vmem:[#allocation83_spill] sm:$0xff] %v28261_v23  ;;  %v28272_v24 = vpack.c.bf16 %v28264_v22, %v28261_v23  ;;  %v8634_v23 = vmul.f32 %v30863_v39, %v8578_v3  ;;  %v16761_v28 = vunpack.c.l.bf16 %v28288_v62  ;;  %v16765_v56 = vunpack.c.l.bf16 %v16872_v38 }
0x14a7   : > { %v8582_v22 = vmul.f32 %v31276_v43, %v8574_v29  ;;  %v8641_v31 = vmul.f32 %v28199_v58, %v8633_v36  ;;  %v16762_v43 = vunpack.c.h.bf16 %v28288_v62 }
0x14a8   : > { %v8642_v17 = vmul.f32 %v28199_v58, %v8634_v23  ;;  %v8635_v3 = vmul.f32 %v16761_v28, %v8579_v40  ;;  %v8637_v62 = vmul.f32 %v16765_v56, %v8581_v10  ;;  %v16766_v40 = vunpack.c.h.bf16 %v16872_v38 }
0x14a9   : > { %22456 = vmatpush3.bf16.xpose.msk.msra.mxu1 %vm25600_vm8, %v28241_v59  ;;  %20068 = vmatprep.mubr.f32.mxu1 %v8641_v31  ;;  %v8636_v39 = vmul.f32 %v16762_v43, %v8580_v0  ;;  %v31279_v38 = vunpack.c.h.bf16 %v28176_v16 }
0x14aa   : > { %22459 = vmatprep.subr.msk.bf16.mxu1 %vm25600_vm8, %v28272_v24  ;;  %20069 = vmatmul.mubr.f32.gmra.mrb[170].mxu1 %v8642_v17  ;;  %v8643_v36 = vmul.f32 %v28199_v58, %v8635_v3  ;;  %v8645_v0 = vmul.f32 %v28199_v58, %v8637_v62  ;;  %v8638_v17 = vmul.f32 %v16766_v40, %v8582_v22  ;;  %v8290_v62 = vmul.f32 1.442695, %v28041_v12 }
0x14ab   : > { %v28290_v9 = vpop.eup %23933  ;;  %v8644_v23 = vmul.f32 %v28199_v58, %v8636_v39 }
0x14ac   : > { %v28305_v37 = vmul.f32 %v28290_v9, %v8582_v22  ;;  %20071 = vmatprep.mubr.f32.mxu1 %v8643_v36  ;;  %v31281_v36 = vunpack.c.l.bf16 %v28176_v16  ;;  %v8292_v22 = vmul.f32 1.442695, %v28039_v47  ;;  %23941 = vpow2.f32 %v8290_v62 }
0x14ad   : > { %v28297_v55 = vpop.eup %23935  ;;  %v8298_v16 = vmul.f32 1.442695, %v28228_v2 }
0x14ae   : > { %v28302_v29 = vmul.f32 %v28297_v55, %v8581_v10  ;;  %31278 = vst [vmem:[#allocation82_spill] sm:$0xff] %v28305_v37  ;;  %20072 = vmatmul.mubr.f32.gmra.mrb[172].mxu1 %v8644_v23  ;;  %v23938_v31 = vpop.eup %23937  ;;  %v8646_v10 = vmul.f32 %v28199_v58, %v8638_v17  ;;  %v8296_v58 = vmul.f32 1.442695, %v28049_v35  ;;  %23943 = vpow2.f32 %v8292_v22 }
0x14af   : > { %v23940_v3 = vpop.eup %23939  ;;  %20074 = vmatprep.mubr.f32.mxu1 %v8645_v0  ;;  %v28323_v39 = vmul.f32 %v23938_v31, %v31279_v38  ;;  %v8294_v31 = vmul.f32 1.442695, %v28051_v8  ;;  %v8300_v0 = vmul.f32 1.442695, %v28062_v27  ;;  %v31283_v38 = vunpack.c.l.bf16 %v28268_v54 }
0x14b0   : > { %31277 = vst [vmem:[#allocation86_spill] sm:$0xff] %v28302_v29  ;;  %v22463_v51 = vpack.c.bf16 %v28305_v37, %v28302_v29  ;;  %v28327_v23 = vmul.f32 %v23940_v3, %v31281_v36  ;;  %23945 = vpow2.f32 %v8296_v58  ;;  %v31285_v22 = vunpack.c.h.bf16 %v28268_v54 }
0x14b1   : > { %22462 = vmatpush3.bf16.xpose.msk.msra.mxu1 %vm25600_vm8, %v28272_v24  ;;  %31280 = vst [vmem:[#allocation72_spill] sm:$0xff] %v28323_v39  ;;  %23947 = vpow2.f32 %v8294_v31 }
0x14b2   : > { %22465 = vmatprep.subr.msk.bf16.mxu1 %vm25600_vm8, %v22463_v51  ;;  %20075 = vmatmul.mubr.f32.gmra.mrb[174].mxu1 %v8646_v10  ;;  %31282 = vst [vmem:[#allocation74_spill] sm:$0xff] %v28327_v23  ;;  %23949 = vpow2.f32 %v8298_v16 }
0x14b3   : > { %20121 = vmatprep.mubr.msk.f32.mxu1 %vm1078_vm5, %v28327_v23  ;;  %20093 = vmatprep.mubr.msk.f32.mxu0 %vm1078_vm5, %v28327_v23  ;;  %23951 = vpow2.f32 %v8300_v0 }
0x14b9   : > { %22468 = vmatpush3.bf16.xpose.msk.msra.mxu1 %vm25600_vm8, %v22463_v51 }
0x14ba   : > { %22495 = vmatprep.subr.msk.bf16.mxu1 %vm25600_vm8, %v28204_v19 }
0x14c0   : > { %20122 = vmatmul.mubr.msk.f32.vlgmr.msra.gmra.mrb[176].mxu1 %vm1078_vm5, %v28323_v39 }
0x14c1   : > { %22498 = vmatpush3.bf16.xpose.msk.msra.mxu1 %vm25600_vm8, %v28204_v19  ;;  %v23942_v19 = vpop.eup %23941 }
0x14c2   : > { %22501 = vmatprep.subr.msk.bf16.mxu1 %vm25600_vm8, %v28241_v59  ;;  %v23944_v17 = vpop.eup %23943  ;;  %v28355_v36 = vmul.f32 %v23942_v19, %v31283_v38 }
0x14c3   : > { %v23946_v3 = vpop.eup %23945  ;;  %v28359_v58 = vmul.f32 %v23944_v17, %v31285_v22 }
0x14c4   : > { %v23948_v10 = vpop.eup %23947  ;;  %31284 = vst [vmem:[#allocation73_spill] sm:$0xff] %v28355_v36  ;;  %20124 = vmatprep.mubr.msk.f32.mxu1 %vm1078_vm5, %v28355_v36  ;;  %v28372_v31 = vmul.f32 %v23946_v3, %v16762_v43 }
0x14c5   : > { %v23950_v62 = vpop.eup %23949  ;;  %31286 = vst [vmem:[#allocation88_spill] sm:$0xff] %v28359_v58  ;;  %20125 = vmatmul.mubr.msk.f32.gmra.mrb[178].mxu1 %vm1078_vm5, %v28359_v58 }
0x14c6   : > { %31288 = vst [vmem:[#allocation102_spill] sm:$0xff] %v28372_v31  ;;  %v28374_v54 = vmul.f32 %v23950_v62, %v16765_v56  ;;  %v23952_v16 = vpop.eup %23951 }
0x14c8   : > { %31289 = vst [vmem:[#allocation103_spill] sm:$0xff] %v28374_v54 }
0x14c9   : > { %22504 = vmatpush3.bf16.xpose.msk.msra.mxu1 %vm25600_vm8, %v28241_v59  ;;  %v28370_v59 = vmul.f32 %v23948_v10, %v16761_v28  ;;  %v31291_v28 = vld [vmem:[#allocation44_spill] sm:$0xff] }
0x14ca   : > { %22507 = vmatprep.subr.msk.bf16.mxu1 %vm25600_vm8, %v28272_v24  ;;  %v31292_v43 = vsub.s32 7, %v31291_v28 }
0x14cb   : > { %31287 = vst [vmem:[#allocation101_spill] sm:$0xff] %v28370_v59  ;;  %20127 = vmatprep.mubr.msk.f32.mxu1 %vm1078_vm5, %v28370_v59 }
0x14cc   : > { %20128 = vmatmul.mubr.msk.f32.gmra.mrb[180].mxu1 %vm1078_vm5, %v28372_v31  ;;  %v28388_v0 = vrot.slane %v23952_v16, %v31292_v43  ;;  %v16864_v31 = vld [vmem:[%s25060_s28 + $0x10] sm:$0xff]  }
0x14cd   : > { %20130 = vmatprep.mubr.msk.f32.mxu1 %vm1078_vm5, %v28374_v54 }
0x14ce   : > { %31293 = vst [vmem:[#allocation44_spill] sm:$0xff] %v28388_v0  ;;  %v28400_v19 = vmul.f32 %v28388_v0, %v28195_v18  ;;  %v28410_v3 = vmul.f32 %v28388_v0, %v28231_v21  ;;  %v28414_v10 = vmul.f32 %v28388_v0, %v28234_v45  ;;  %v28430_v28 = vmul.f32 %v28388_v0, %v28305_v37 }
0x14d0   : > { %31295 = vst [vmem:[#allocation117_spill] sm:$0xff] %v28400_v19  ;;  %31297 = vst [vmem:[#allocation119_spill] sm:$0xff] %v28410_v3  ;;  %v28422_v22 = vpack.c.bf16 %v28414_v10, %v28410_v3 }
0x14d1   : > { %22510 = vmatpush3.bf16.xpose.msk.msra.mxu1 %vm25600_vm8, %v28272_v24  ;;  %v28380_v24 = vmul.f32 %v23952_v16, %v16766_v40  ;;  %v28396_v40 = vmul.f32 %v28388_v0, %v28190_v13  ;;  %31298 = vst [vmem:[#allocation120_spill] sm:$0xff] %v28414_v10  ;;  %v28426_v16 = vmul.f32 %v28388_v0, %v28302_v29  ;;  %31301 = vst [vmem:[#allocation123_spill] sm:$0xff] %v28430_v28 }
0x14d2   : > { %22513 = vmatprep.subr.msk.bf16.mxu1 %vm25600_vm8, %v22463_v51  ;;  %31299 = vst [vmem:[#allocation121_spill] sm:$0xff] %v28422_v22 }
0x14d3   : > { %31290 = vst [vmem:[#allocation104_spill] sm:$0xff] %v28380_v24  ;;  %20131 = vmatmul.mubr.msk.f32.gmra.mrb[182].mxu1 %vm1078_vm5, %v28380_v24  ;;  %31294 = vst [vmem:[#allocation116_spill] sm:$0xff] %v28396_v40  ;;  %v28438_v38 = vpack.c.bf16 %v28430_v28, %v28426_v16  ;;  %v31306_v28 = vld [vmem:[#allocation89_spill] sm:$0xff] }
0x14d4   : > { %31300 = vst [vmem:[#allocation122_spill] sm:$0xff] %v28426_v16 }
0x14d5   : > { %31302 = vst [vmem:[#allocation124_spill] sm:$0xff] %v28438_v38 }
0x14d9   : > { %22516 = vmatpush3.bf16.xpose.msk.msra.mxu1 %vm25600_vm8, %v22463_v51  ;;  %v28404_v51 = vpack.c.bf16 %v28400_v19, %v28396_v40 }
0x14db   : > { %31296 = vst [vmem:[#allocation118_spill] sm:$0xff] %v28404_v51 }
0x153a   : > { %v19951_v62 = vpop.f32.mrb[160].mxu0 }
0x153b   : > { %v7940_v56 = vmul.f32 0.015625, %v19951_v62  ;;  %v7900_v22 = vpop.f32.mrb[161].mxu0 }
0x153c   : > { %v7939_v40 = vmul.f32 0.015625, %v7900_v22 }
0x153d   : > { %v7948_v19 = vadd.f32 0.00064, %v7940_v56 }
0x153e   : > { %v7947_v21 = vadd.f32 0.00064, %v7939_v40  ;;  %v19954_v45 = vpop.f32.mrb[162].mxu0 }
0x153f   : > { %23953 = vrsqrt.f32 %v7948_v19  ;;  %v7942_v51 = vmul.f32 0.015625, %v19954_v45  ;;  %v7910_v3 = vpop.f32.mrb[163].mxu0 }
0x1540   : > { %23955 = vrsqrt.f32 %v7947_v21  ;;  %v7941_v10 = vmul.f32 0.015625, %v7910_v3  ;;  %v28440_v21 = vld [vmem:[#allocation17] ss:$0 sm:$0xff] }
0x1541   : > { %v7950_v43 = vadd.f32 0.00064, %v7942_v51 }
0x1542   : > { %v7949_v13 = vadd.f32 0.00064, %v7941_v10  ;;  %v19957_v18 = vpop.f32.mrb[164].mxu0 }
0x1543   : > { %23957 = vrsqrt.f32 %v7950_v43  ;;  %v7944_v17 = vmul.f32 0.015625, %v19957_v18  ;;  %v7920_v29 = vpop.f32.mrb[165].mxu0  ;;  %v28443_v43 = vld [vmem:[#allocation18] ss:$0 sm:$0xff] }
0x1544   : > { %23959 = vrsqrt.f32 %v7949_v13  ;;  %v7943_v38 = vmul.f32 0.015625, %v7920_v29  ;;  %v16716_v13 = vld [vmem:[%s25060_s28] sm:$0xff]  }
0x1545   : > { %v7952_v62 = vadd.f32 0.00064, %v7944_v17  ;;  %v16718_v16 = vunpack.c.h.bf16 %v16716_v13 }
0x1546   : > { %v7951_v37 = vadd.f32 0.00064, %v7943_v38  ;;  %v19960_v22 = vpop.f32.mrb[166].mxu0 }
0x1547   : > { %23961 = vrsqrt.f32 %v7952_v62  ;;  %v7946_v56 = vmul.f32 0.015625, %v19960_v22  ;;  %v7930_v40 = vpop.f32.mrb[167].mxu0  ;;  %v31303_v22 = vld [vmem:[#allocation90_spill] sm:$0xff] }
0x1548   : > { %23963 = vrsqrt.f32 %v7951_v37  ;;  %v7945_v45 = vmul.f32 0.015625, %v7930_v40 }
0x1549   : > { %v23954_v19 = vpop.eup %23953  ;;  %v7954_v51 = vadd.f32 0.00064, %v7946_v56  ;;  %v31304_v56 = vld [vmem:[#allocation93_spill] sm:$0xff] }
0x154a   : > { %v23956_v3 = vpop.eup %23955  ;;  %v7964_v10 = vmul.f32 %v23954_v19, %v27968_v50  ;;  %v7953_v18 = vadd.f32 0.00064, %v7945_v45  ;;  %v8000_v40 = vmul.f32 %v31304_v56, %v31303_v22  ;;  %v31305_v19 = vld [vmem:[#allocation94_spill] sm:$0xff] }
0x154b   : > { %v7963_v29 = vmul.f32 %v23956_v3, %v27971_v1  ;;  %23965 = vrsqrt.f32 %v7954_v51  ;;  %v7999_v23 = vmul.f32 %v31306_v28, %v31305_v19  ;;  %v16717_v1 = vunpack.c.l.bf16 %v16716_v13  ;;  %v16863_v3 = vld [vmem:[%s25060_s28 + $0x8] sm:$0xff]  }
0x154c   : > { %v7978_v17 = vmul.f32 %v28440_v21, %v7964_v10  ;;  %23967 = vrsqrt.f32 %v7953_v18 }
0x154d   : > { %v23958_v37 = vpop.eup %23957  ;;  %v7977_v38 = vmul.f32 %v28440_v21, %v7963_v29 }
0x154e   : > { %v23960_v62 = vpop.eup %23959  ;;  %v7992_v50 = vadd.f32 %v28443_v43, %v7978_v17  ;;  %v7966_v45 = vmul.f32 %v23958_v37, %v27978_v60  ;;  %v16722_v60 = vunpack.c.h.bf16 %v16863_v3 }
0x154f   : > { %v7991_v51 = vadd.f32 %v28443_v43, %v7977_v38  ;;  %v7965_v10 = vmul.f32 %v23960_v62, %v27984_v44  ;;  %v16721_v38 = vunpack.c.l.bf16 %v16863_v3  ;;  %v31307_v62 = vld [vmem:[#allocation92_spill] sm:$0xff] }
0x1550   : > { %v8008_v18 = vadd.f32 %v8000_v40, %v7992_v50  ;;  %v7980_v29 = vmul.f32 %v28440_v21, %v7966_v45  ;;  %v31308_v40 = vld [vmem:[#allocation97_spill] sm:$0xff]  ;;  %v31309_v50 = vld [vmem:[#allocation98_spill] sm:$0xff]  ;;  %v31310_v45 = vld [vmem:[#allocation91_spill] sm:$0xff] }
0x1551   : > { %v23962_v24 = vpop.eup %23961  ;;  %v8007_v22 = vadd.f32 %v7999_v23, %v7991_v51  ;;  %v7979_v56 = vmul.f32 %v28440_v21, %v7965_v10  ;;  %v8004_v23 = vmul.f32 %v31308_v40, %v31307_v62  ;;  %v8003_v51 = vmul.f32 %v31310_v45, %v31309_v50  ;;  %v16865_v45 = vld [vmem:[%s25060_s28 + $0x18] sm:$0xff]  }
0x1552   : > { %v23964_v17 = vpop.eup %23963  ;;  %v8016_v54 = vmul.f32 %v16718_v16, %v8008_v18  ;;  %v7994_v37 = vadd.f32 %v28443_v43, %v7980_v29  ;;  %v7968_v28 = vmul.f32 %v23962_v24, %v27993_v63  ;;  %v31311_v16 = vld [vmem:[#allocation95_spill] sm:$0xff]  ;;  %v31312_v24 = vsub.f32 0.0, %v27795_v6  ;;  %v31313_v29 = vld [vmem:[#allocation96_spill] sm:$0xff] }
0x1553   : > { %v8015_v13 = vmul.f32 %v16717_v1, %v8007_v22  ;;  %v7993_v19 = vadd.f32 %v28443_v43, %v7979_v56  ;;  %v7967_v44 = vmul.f32 %v23964_v17, %v28001_v11  ;;  %v16726_v62 = vunpack.c.h.bf16 %v16864_v31 }
0x1554   : > { %v8010_v10 = vadd.f32 %v31311_v16, %v7994_v37  ;;  %v7982_v18 = vmul.f32 %v28440_v21, %v7968_v28  ;;  %v8327_v1 = vsub.f32 %v28023_v61, %v31312_v24  ;;  %v16725_v28 = vunpack.c.l.bf16 %v16864_v31 }
0x1555   : > { %v23966_v63 = vpop.eup %23965  ;;  %v16734_v3 = vpack.c.bf16 %v8016_v54, %v8015_v13  ;;  %v8009_v22 = vadd.f32 %v31313_v29, %v7993_v19  ;;  %v7981_v11 = vmul.f32 %v28440_v21, %v7967_v44  ;;  %v31314_v54 = vsub.f32 0.0, %v27793_v7  ;;  %v31317_v29 = vld [vmem:[#allocation100_spill] sm:$0xff] }
0x1556   : > { %v23968_v56 = vpop.eup %23967  ;;  %v8018_v17 = vmul.f32 %v16722_v60, %v8010_v10  ;;  %v7996_v40 = vadd.f32 %v28443_v43, %v7982_v18  ;;  %v7970_v37 = vmul.f32 %v23966_v63, %v28013_v48  ;;  %v8336_v44 = vmul.f32 1.442695, %v8327_v1 }
0x1557   : > { %16735 = vst [vmem:[%s25078_s14] sm:$0xff] %v16734_v3   ;;  %v8017_v50 = vmul.f32 %v16721_v38, %v8009_v22  ;;  %v7995_v6 = vadd.f32 %v28443_v43, %v7981_v11  ;;  %v7969_v61 = vmul.f32 %v23968_v56, %v28021_v15  ;;  %v8326_v13 = vsub.f32 %v28025_v20, %v31314_v54 }
0x1558   : > { %v8012_v19 = vadd.f32 %v8004_v23, %v7996_v40  ;;  %v7984_v60 = vmul.f32 %v28440_v21, %v7970_v37  ;;  %v31315_v31 = vsub.f32 0.0, %v27819_v34  ;;  %v16730_v63 = vunpack.c.h.bf16 %v16865_v45 }
0x1559   : > { %v16739_v16 = vpack.c.bf16 %v8018_v17, %v8017_v50  ;;  %v8011_v10 = vadd.f32 %v8003_v51, %v7995_v6  ;;  %v7983_v48 = vmul.f32 %v28440_v21, %v7969_v61  ;;  %v16729_v20 = vunpack.c.l.bf16 %v16865_v45  ;;  %v31316_v51 = vld [vmem:[#allocation99_spill] sm:$0xff] }
0x155a   : > { %v8329_v38 = vsub.f32 %v28039_v47, %v31315_v31  ;;  %v8020_v18 = vmul.f32 %v16726_v62, %v8012_v19  ;;  %v7998_v15 = vadd.f32 %v28443_v43, %v7984_v60  ;;  %v20023_v24 = vpop.f32.mrb[168].mxu0  ;;  %v8334_v21 = vmul.f32 1.442695, %v8326_v13 }
0x155b   : > { %16866 = vst [vmem:[%s25078_s14 + $0x8] sm:$0xff] %v16739_v16   ;;  %v8019_v7 = vmul.f32 %v16725_v28, %v8011_v10  ;;  %v7997_v23 = vadd.f32 %v28443_v43, %v7983_v48  ;;  %23969 = vrsqrt.f32 %v20023_v24  ;;  %v8432_v1 = vpop.f32.mrb[169].mxu0  ;;  %v31318_v62 = vsub.f32 0.0, %v27817_v26 }
0x155c   : > { %v8014_v3 = vadd.f32 %v31316_v51, %v7998_v15  ;;  %23971 = vrsqrt.f32 %v8432_v1  ;;  %v8340_v22 = vmul.f32 1.442695, %v8329_v38  ;;  %v31319_v37 = vsub.f32 0.0, %v27825_v25 }
0x155d   : > { %v16744_v34 = vpack.c.bf16 %v8020_v18, %v8019_v7  ;;  %v8013_v47 = vadd.f32 %v31317_v29, %v7997_v23  ;;  %23973 = vpow2.f32 %v8336_v44  ;;  %v8328_v40 = vsub.f32 %v28041_v12, %v31318_v62 }
0x155e   : > { %v8022_v11 = vmul.f32 %v16730_v63, %v8014_v3  ;;  %v28495_v56 = vpop.f32.mrb[170].mxu0  ;;  %v8331_v50 = vsub.f32 %v28049_v35, %v31319_v37  ;;  %v31320_v28 = vsub.f32 0.0, %v27821_v57  ;;  %v31321_v57 = vsub.f32 0.0, %v27839_v46 }
0x155f   : > { %16867 = vst [vmem:[%s25078_s14 + $0x10] sm:$0xff] %v16744_v34   ;;  %v8021_v17 = vmul.f32 %v16729_v20, %v8013_v47  ;;  %23975 = vrsqrt.f32 %v28495_v56  ;;  %v28499_v43 = vpop.f32.mrb[171].mxu0  ;;  %v28517_v12 = vmul.f32 1.442695, %v8328_v40  ;;  %vm8480_vm13 = vcmp.eq.f32.partialorder %v20023_v24, inf }
0x1560   : > { %23977 = vrsqrt.f32 %v28499_v43  ;;  %v8330_v6 = vsub.f32 %v28051_v8, %v31320_v28  ;;  %v28520_v54 = vmul.f32 1.442695, %v8331_v50  ;;  %v28527_v8 = vsub.f32 %v28062_v27, %v31321_v57 }
0x1561   : > { %23979 = vpow2.f32 %v8334_v21  ;;  %v16749_v45 = vpack.c.bf16 %v8022_v11, %v8021_v17  ;;  %vm8482_vm14 = vcmp.eq.f32.partialorder %v20023_v24, 0.0  ;;  %v8483_v60 = vand.u32 2147483648, %v20023_v24 }
0x1562   : > { %23981 = vpow2.f32 %v8340_v22  ;;  %v28511_v61 = vpop.f32.mrb[172].mxu0  ;;  %v28522_v35 = vmul.f32 1.442695, %v8330_v6  ;;  %vm8473_vm15 = vcmp.eq.f32.partialorder %v8432_v1, inf  ;;  %vm8475_vm0 = vcmp.eq.f32.partialorder %v8432_v1, 0.0 }
0x1563   : > { %16868 = vst [vmem:[%s25078_s14 + $0x18] sm:$0xff] %v16749_v45   ;;  %23983 = vrsqrt.f32 %v28511_v61  ;;  %v28515_v26 = vpop.f32.mrb[173].mxu0  ;;  %v8476_v10 = vand.u32 2147483648, %v8432_v1  ;;  %vm8494_vm1 = vcmp.eq.f32.partialorder %v28495_v56, inf  ;;  %vm8496_vm2 = vcmp.eq.f32.partialorder %v28495_v56, 0.0 }
0x1564   : > { %23985 = vrsqrt.f32 %v28515_v26  ;;  %v8497_v63 = vand.u32 2147483648, %v28495_v56  ;;  %vm8487_vm3 = vcmp.eq.f32.partialorder %v28499_v43, inf  ;;  %vm8489_vm6 = vcmp.eq.f32.partialorder %v28499_v43, 0.0 }
0x1565   : > { %v23970_v25 = vpop.eup %23969  ;;  %v8490_v21 = vand.u32 2147483648, %v28499_v43  ;;  %vm8508_vm7 = vcmp.eq.f32.partialorder %v28511_v61, inf  ;;  %vm8510_vm10 = vcmp.eq.f32.partialorder %v28511_v61, 0.0  ;;  %v8511_v29 = vand.u32 2147483648, %v28511_v61 }
0x1566   : > { %v23972_v13 = vpop.eup %23971  ;;  %v8479_v19 = vmul.f32 %v23970_v25, %v20023_v24  ;;  %v28529_v44 = vpop.f32.mrb[174].mxu0  ;;  %vm8501_vm11 = vcmp.eq.f32.partialorder %v28515_v26, inf  ;;  %vm8503_vm12 = vcmp.eq.f32.partialorder %v28515_v26, 0.0 }
0x1567   : > { %v8472_v16 = vmul.f32 %v23972_v13, %v8432_v1  ;;  %23987 = vrsqrt.f32 %v28529_v44  ;;  %v28532_v48 = vpop.f32.mrb[175].mxu0  ;;  %v28534_v31 = vpop.eup %23973 }
0x1568   : > { %v8481_v46 = vsel %vm8480_vm13, %v20023_v24, %v8479_v19  ;;  %23989 = vrsqrt.f32 %v28532_v48  ;;  %vm8522_vm13 = vcmp.eq.f32.partialorder %v28529_v44, inf }
0x1569   : > { %v23976_v27 = vpop.eup %23975  ;;  %v8484_v38 = vsel %vm8482_vm14, %v8483_v60, %v8481_v46  ;;  %v8474_v18 = vsel %vm8473_vm15, %v8432_v1, %v8472_v16  ;;  %vm8524_vm14 = vcmp.eq.f32.partialorder %v28529_v44, 0.0  ;;  %vm8515_vm15 = vcmp.eq.f32.partialorder %v28532_v48, inf }
0x156a   : > { %v23978_v15 = vpop.eup %23977  ;;  %v8528_v7 = vmax.f32 %v8484_v38, 1e-12  ;;  %v8477_v20 = vsel %vm8475_vm0, %v8476_v10, %v8474_v18  ;;  %v8493_v23 = vmul.f32 %v23976_v27, %v28495_v56  ;;  %v8518_v10 = vand.u32 2147483648, %v28532_v48 }
0x156b   : > { %v28544_v24 = vpop.eup %23979  ;;  %v8527_v51 = vmax.f32 %v8477_v20, 1e-12  ;;  %v8486_v3 = vmul.f32 %v23978_v15, %v28499_v43  ;;  %vm8517_vm0 = vcmp.eq.f32.partialorder %v28532_v48, 0.0 }
0x156c   : > { %v28549_v34 = vpop.eup %23981  ;;  %23991 = vrcp.f32 %v8528_v7  ;;  %v8495_v1 = vsel %vm8494_vm1, %v28495_v56, %v8493_v23  ;;  %v8504_v56 = vand.u32 2147483648, %v28515_v26 }
0x156d   : > { %v23984_v47 = vpop.eup %23983  ;;  %23993 = vrcp.f32 %v8527_v51  ;;  %v8498_v22 = vsel %vm8496_vm2, %v8497_v63, %v8495_v1  ;;  %v8488_v11 = vsel %vm8487_vm3, %v28499_v43, %v8486_v3  ;;  %v8525_v43 = vand.u32 2147483648, %v28529_v44 }
0x156e   : > { %v23986_v17 = vpop.eup %23985  ;;  %v8530_v62 = vmax.f32 %v8498_v22, 1e-12  ;;  %v8491_v40 = vsel %vm8489_vm6, %v8490_v21, %v8488_v11  ;;  %v8507_v37 = vmul.f32 %v23984_v47, %v28511_v61  ;;  %v31324_v1 = vunpack.c.l.bf16 %v28135_v41 }
0x156f   : > { %v8529_v50 = vmax.f32 %v8491_v40, 1e-12  ;;  %v8500_v28 = vmul.f32 %v23986_v17, %v28515_v26 }
0x1570   : > { %23995 = vrcp.f32 %v8530_v62  ;;  %v8509_v6 = vsel %vm8508_vm7, %v28511_v61, %v8507_v37  ;;  %v31322_v61 = vsub.f32 0.0, %v27827_v30  ;;  %v8348_v30 = vmul.f32 1.442695, %v28527_v8 }
0x1571   : > { %v23988_v45 = vpop.eup %23987  ;;  %23997 = vrcp.f32 %v8529_v50  ;;  %v8512_v25 = vsel %vm8510_vm10, %v8511_v29, %v8509_v6  ;;  %v8502_v57 = vsel %vm8501_vm11, %v28515_v26, %v8500_v28 }
0x1572   : > { %v23990_v13 = vpop.eup %23989  ;;  %v8532_v19 = vmax.f32 %v8512_v25, 1e-12  ;;  %v8505_v60 = vsel %vm8503_vm12, %v8504_v56, %v8502_v57  ;;  %v8521_v16 = vmul.f32 %v23988_v45, %v28529_v44  ;;  %23999 = vpow2.f32 %v28517_v12 }
0x1573   : > { %v8332_v46 = vsub.f32 %v28228_v2, %v31322_v61  ;;  %v8531_v27 = vmax.f32 %v8505_v60, 1e-12  ;;  %v8514_v38 = vmul.f32 %v23990_v13, %v28532_v48  ;;  %v31330_v13 = vld [vmem:[#allocation63_spill] sm:$0xff] }
0x1574   : > { %24001 = vrcp.f32 %v8532_v19  ;;  %v8523_v18 = vsel %vm8522_vm13, %v28529_v44, %v8521_v16 }
0x1575   : > { %24003 = vrcp.f32 %v8531_v27  ;;  %v8526_v26 = vsel %vm8524_vm14, %v8525_v43, %v8523_v18  ;;  %v8516_v63 = vsel %vm8515_vm15, %v28532_v48, %v8514_v38  ;;  %v8346_v20 = vmul.f32 1.442695, %v8332_v46  ;;  %v31328_v43 = vld [vmem:[#allocation80_spill] sm:$0xff] }
0x1576   : > { %v23992_v12 = vpop.eup %23991  ;;  %24005 = vpow2.f32 %v28520_v54  ;;  %v8534_v2 = vmax.f32 %v8526_v26, 1e-12  ;;  %v8519_v15 = vsel %vm8517_vm0, %v8518_v10, %v8516_v63  ;;  %v31323_v48 = vunpack.c.h.bf16 %v28135_v41  ;;  %v31332_v10 = vld [vmem:[#allocation107_spill] sm:$0xff] }
0x1577   : > { %v23994_v7 = vpop.eup %23993  ;;  %24007 = vpow2.f32 %v28522_v35  ;;  %v8533_v23 = vmax.f32 %v8519_v15, 1e-12  ;;  %v8538_v51 = vmul.f32 %v23992_v12, %v28077_v42  ;;  %v31325_v41 = vunpack.c.h.bf16 %v28143_v49 }
0x1578   : > { %24009 = vrcp.f32 %v8534_v2  ;;  %v8536_v44 = vmul.f32 %v23994_v7, %v28010_v4  ;;  %v31333_v61 = vunpack.c.h.bf16 %v31332_v10 }
0x1579   : > { %24011 = vrcp.f32 %v8533_v23  ;;  %v8584_v3 = vsub.f32 0.0, %v8538_v51  ;;  %v8592_v21 = vmul.f32 %v31323_v48, %v8538_v51  ;;  %v31336_v51 = vld [vmem:[#allocation70_spill] sm:$0xff] }
0x157a   : > { %v23996_v54 = vpop.eup %23995  ;;  %24013 = vpow2.f32 %v8348_v30  ;;  %v8583_v8 = vsub.f32 0.0, %v8536_v44  ;;  %v8591_v29 = vmul.f32 %v31324_v1, %v8536_v44  ;;  %v31334_v30 = vunpack.c.l.bf16 %v31332_v10  ;;  %v31338_v1 = vld [vmem:[#allocation68_spill] sm:$0xff] }
0x157b   : > { %v23998_v47 = vpop.eup %23997  ;;  %24015 = vpow2.f32 %v8346_v20  ;;  %v28606_v35 = vmul.f32 %v28534_v31, %v8584_v3  ;;  %v8616_v42 = vmul.f32 %v28168_v32, %v8592_v21  ;;  %v8542_v4 = vmul.f32 %v23996_v54, %v28098_v33  ;;  %v31335_v20 = vld [vmem:[#allocation66_spill] sm:$0xff] }
0x157c   : > { %v28611_v22 = vmul.f32 %v28544_v24, %v8583_v8  ;;  %v8615_v11 = vmul.f32 %v28173_v53, %v8591_v29  ;;  %v8540_v17 = vmul.f32 %v23998_v47, %v28085_v52  ;;  %v24000_v62 = vpop.eup %23999  ;;  %v31327_v53 = vunpack.c.l.bf16 %v28143_v49  ;;  %v31337_v54 = vld [vmem:[#allocation62_spill] sm:$0xff] }
0x157d   : > { %v8586_v40 = vsub.f32 0.0, %v8542_v4  ;;  %v8594_v37 = vmul.f32 %v31325_v41, %v8542_v4  ;;  %v28618_v50 = vmul.f32 %v28388_v0, %v8616_v42  ;;  %v31339_v4 = vld [vmem:[#allocation71_spill] sm:$0xff] }
0x157e   : > { %v24002_v31 = vpop.eup %24001  ;;  %20177 = vmatprep.mubr.msk.f32.mxu1 %vm1078_vm5, %v28611_v22  ;;  %v23709_v32 = vpack.i.bf16 %v8616_v42, %v8615_v11  ;;  %v28622_v33 = vpack.c.bf16 %v8616_v42, %v8615_v11  ;;  %v8585_v24 = vsub.f32 0.0, %v8540_v17  ;;  %v8593_v28 = vmul.f32 %v31327_v53, %v8540_v17 }
0x157f   : > { %31326 = vst [vmem:[#allocation90_spill] sm:$0xff] %v28618_v50  ;;  %v24004_v52 = vpop.eup %24003  ;;  %20178 = vmatmul.mubr.msk.f32.vlgmr.msra.gmra.mrb[184].mxu1 %vm1078_vm5, %v28606_v35  ;;  %v28629_v56 = vmul.f32 %v28549_v34, %v8586_v40  ;;  %v8618_v6 = vmul.f32 %v28209_v14, %v8594_v37  ;;  %v8546_v45 = vmul.f32 %v24002_v31, %v31328_v43  ;;  %v31331_v34 = vld [vmem:[#allocation106_spill] sm:$0xff]  ;;  %v31368_v40 = vld [vmem:[#allocation85_spill] sm:$0xff] }
0x1580   : > { %v28634_v25 = vmul.f32 %v28388_v0, %v8615_v11  ;;  %v24006_v57 = vpop.eup %24005  ;;  %23710 = vrot.lane.b32.xlu0 %v23709_v32, %s24517_s25  ;;  %22423 = vmatprep.subr.msk.bf16.mxu0 %vm25600_vm8, %v28622_v33  ;;  %v28640_v49 = vmul.f32 %v24000_v62, %v8585_v24  ;;  %v8617_v19 = vmul.f32 %v31330_v13, %v8593_v28  ;;  %v31340_v11 = vunpack.c.h.bf16 %v31339_v4  ;;  %v28682_v62 = vld [vmem:[%s25052_s9 + $0x20] sm:$0xff]  }
0x1581   : > { %v8544_v60 = vmul.f32 %v24004_v52, %v31331_v34  ;;  %v24008_v16 = vpop.eup %24007  ;;  %22426 = vmatpush3.bf16.xpose.msk.msra.mxu0 %vm25600_vm8, %v28622_v33  ;;  %v8588_v14 = vsub.f32 0.0, %v8546_v45  ;;  %v8596_v46 = vmul.f32 %v31333_v61, %v8546_v45  ;;  %v28650_v27 = vmul.f32 %v28388_v0, %v8618_v6 }
0x1582   : > { %31329 = vst [vmem:[#allocation93_spill] sm:$0xff] %v28634_v25  ;;  %v28654_v38 = vpack.c.bf16 %v28618_v50, %v28634_v25  ;;  %v24010_v18 = vpop.eup %24009  ;;  %20180 = vmatprep.mubr.msk.f32.mxu1 %vm1078_vm5, %v28640_v49  ;;  %v23714_v26 = vpack.i.bf16 %v8618_v6, %v8617_v19  ;;  %v28658_v63 = vpack.c.bf16 %v8618_v6, %v8617_v19  ;;  %v31341_v24 = vunpack.c.l.bf16 %v31339_v4 }
0x1583   : > { %v8587_v12 = vsub.f32 0.0, %v8544_v60  ;;  %v8595_v2 = vmul.f32 %v31334_v30, %v8544_v60  ;;  %v24012_v15 = vpop.eup %24011  ;;  %20181 = vmatmul.mubr.msk.f32.gmra.mrb[186].mxu1 %vm1078_vm5, %v28629_v56  ;;  %v28664_v7 = vmul.f32 %v24006_v57, %v8588_v14  ;;  %v8620_v23 = vmul.f32 %v31335_v20, %v8596_v46  ;;  %v28744_v14 = vld [vmem:[%s25052_s9 + $0x30] sm:$0xff]  }
0x1584   : > { %v8550_v44 = vmul.f32 %v24010_v18, %v31336_v51  ;;  %v28669_v3 = vmul.f32 %v28388_v0, %v8617_v19  ;;  %v24014_v48 = vpop.eup %24013  ;;  %23715 = vrot.lane.b32.xlu0 %v23714_v26, %s24517_s25  ;;  %22429 = vmatprep.subr.msk.bf16.mxu0 %vm25600_vm8, %v28658_v63  ;;  %v8548_v29 = vmul.f32 %v24012_v15, %v31338_v1  ;;  %v28716_v13 = vunpack.c.l.bf16 %v28682_v62  ;;  %v31367_v18 = vld [vmem:[#allocation74_spill] sm:$0xff]  ;;  %v31369_v51 = vld [vmem:[#allocation65_spill] sm:$0xff]  ;;  %v31371_v46 = vld [vmem:[#allocation83_spill] sm:$0xff] }
0x1585   : > { %v28675_v21 = vmul.f32 %v24008_v16, %v8587_v12  ;;  %v8619_v8 = vmul.f32 %v31337_v54, %v8595_v2  ;;  %v24016_v47 = vpop.eup %24015  ;;  %v28707_v43 = vmul.f32 %v28388_v0, %v8620_v23  ;;  %v28724_v19 = vunpack.c.h.bf16 %v28682_v62  ;;  %v28769_v2 = vld [vmem:[%s25052_s9 + $0x38] sm:$0xff]   ;;  %v31347_v54 = vld [vmem:[#allocation103_spill] sm:$0xff] }
0x1586   : > { %v8590_v42 = vsub.f32 0.0, %v8550_v44  ;;  %v8598_v17 = vmul.f32 %v31340_v11, %v8550_v44  ;;  %v28688_v41 = vpack.c.bf16 %v28650_v27, %v28669_v3  ;;  %v8589_v32 = vsub.f32 0.0, %v8548_v29  ;;  %v28807_v44 = vld [vmem:[%s25052_s9 + $0x28] sm:$0xff]  }
0x1587   : > { %20183 = vmatprep.mubr.msk.f32.mxu1 %vm1078_vm5, %v28675_v21  ;;  %v23719_v37 = vpack.i.bf16 %v8620_v23, %v8619_v8  ;;  %v28692_v31 = vpack.c.bf16 %v8620_v23, %v8619_v8  ;;  %v8597_v53 = vmul.f32 %v31341_v24, %v8548_v29  ;;  %v28704_v6 = vmul.f32 %v28388_v0, %v8619_v8  ;;  %v20067_v8 = vpop.f32.mrb[168].mxu1 }
0x1588   : > { %20184 = vmatmul.mubr.msk.f32.gmra.mrb[188].mxu1 %vm1078_vm5, %v28664_v7  ;;  %v28698_v28 = vmul.f32 %v24014_v48, %v8590_v42  ;;  %v28701_v52 = vmul.f32 %v28290_v9, %v8598_v17  ;;  %31344 = vst [vmem:[#allocation92_spill] sm:$0xff] %v28707_v43  ;;  %v28710_v45 = vmul.f32 %v24016_v47, %v8589_v32  ;;  %v28763_v12 = vunpack.c.l.bf16 %v28744_v14  ;;  %v31346_v48 = vld [vmem:[#allocation102_spill] sm:$0xff]  ;;  %v8713_v29 = vpop.f32.mrb[169].mxu1  ;;  %v31350_v47 = vld [vmem:[#allocation104_spill] sm:$0xff] }
0x1589   : > { %31343 = vst [vmem:[#allocation89_spill] sm:$0xff] %v28704_v6  ;;  %23720 = vrot.lane.b32.xlu0 %v23719_v37, %s24517_s25  ;;  %v28713_v57 = vmul.f32 %v28297_v55, %v8597_v53  ;;  %22432 = vmatpush3.bf16.xpose.msk.msra.mxu0 %vm25600_vm8, %v28658_v63  ;;  %v28732_v55 = vpack.c.bf16 %v28707_v43, %v28704_v6  ;;  %v28766_v30 = vunpack.c.h.bf16 %v28744_v14  ;;  %v28777_v20 = vunpack.c.l.bf16 %v28769_v2  ;;  %v31405_v43 = vld [vmem:[#allocation43_spill] sm:$0xff] }
0x158a   : > { %31342 = vst [vmem:[#allocation94_spill] sm:$0xff] %v28701_v52  ;;  %v28728_v34 = vmul.f32 %v28388_v0, %v28701_v52  ;;  %22435 = vmatprep.subr.msk.bf16.mxu0 %vm25600_vm8, %v28692_v31  ;;  %20186 = vmatprep.mubr.msk.f32.mxu1 %vm1078_vm5, %v28710_v45  ;;  %v28780_v23 = vunpack.c.h.bf16 %v28769_v2  ;;  %v28824_v1 = vmul.f32 %v20067_v8, %v28724_v19  ;;  %v28839_v11 = vunpack.c.h.bf16 %v28807_v44 }
0x158b   : > { %31345 = vst [vmem:[#allocation97_spill] sm:$0xff] %v28713_v57  ;;  %v22439_v16 = vpack.c.bf16 %v28701_v52, %v28713_v57  ;;  %v28748_v10 = vmul.f32 %v28388_v0, %v28713_v57  ;;  %v28829_v42 = vmul.f32 %v28716_v13, %v8713_v29  ;;  %v31370_v15 = vpack.i.bf16 %v31368_v40, %v31369_v51  ;;  %v31417_v57 = vld [vmem:[#allocation55_spill] sm:$0xff] }
0x158c   : > { %20187 = vmatmul.mubr.msk.f32.gmra.mrb[190].mxu1 %vm1078_vm5, %v28698_v28  ;;  %31349 = vst [vmem:[#allocation91_spill] sm:$0xff] %v28824_v1  ;;  %31354 = vst [vmem:[#allocation100_spill] sm:$0xff] %v28839_v11  ;;  %v31375_v40 = vpack.i.bf16 %v28780_v23, %v28777_v20 }
0x158d   : > { %v28760_v26 = vpack.c.bf16 %v28728_v34, %v28748_v10  ;;  %31351 = vst [vmem:[#allocation95_spill] sm:$0xff] %v28829_v42 }
0x1591   : > { %22438 = vmatpush3.bf16.xpose.msk.msra.mxu0 %vm25600_vm8, %v28692_v31 }
0x1592   : > { %22441 = vmatprep.subr.msk.bf16.mxu0 %vm25600_vm8, %v22439_v16 }
0x1599   : > { %22444 = vmatpush3.bf16.xpose.msk.msra.mxu0 %vm25600_vm8, %v22439_v16 }
0x159a   : > { %22471 = vmatprep.subr.msk.bf16.mxu0 %vm25600_vm8, %v28622_v33 }
0x15a0   : > { %20094 = vmatmul.mubr.msk.f32.vlgmr.msra.gmra.mrb[176].mxu0 %vm1078_vm5, %v28323_v39  ;;  %v31419_v39 = vld [vmem:[#allocation113_spill] sm:$0xff] }
0x15a1   : > { %20096 = vmatprep.mubr.msk.f32.mxu0 %vm1078_vm5, %v28355_v36  ;;  %22474 = vmatpush3.bf16.xpose.msk.msra.mxu0 %vm25600_vm8, %v28622_v33  ;;  %v28821_v33 = vunpack.c.l.bf16 %v28807_v44 }
0x15a2   : > { %22477 = vmatprep.subr.msk.bf16.mxu0 %vm25600_vm8, %v28658_v63 }
0x15a3   : > { %31348 = vst [vmem:[#allocation98_spill] sm:$0xff] %v28821_v33 }
0x15a4   : > { %20097 = vmatmul.mubr.msk.f32.gmra.mrb[178].mxu0 %vm1078_vm5, %v28359_v58 }
0x15a5   : > { %20099 = vmatprep.mubr.msk.f32.mxu0 %vm1078_vm5, %v28370_v59 }
0x15a7   : > { %11505 = vxpose.xlu0.b32.start [1/8] (short) (narrow) %v28716_v13, 64 }
0x15a8   : > { %20100 = vmatmul.mubr.msk.f32.gmra.mrb[180].mxu0 %vm1078_vm5, %v31346_v48 }
0x15a9   : > { %20102 = vmatprep.mubr.msk.f32.mxu0 %vm1078_vm5, %v31347_v54  ;;  %22480 = vmatpush3.bf16.xpose.msk.msra.mxu0 %vm25600_vm8, %v28658_v63  ;;  %v28831_v63 = vpop.f32.mrb[170].mxu1 }
0x15aa   : > { %22483 = vmatprep.subr.msk.bf16.mxu0 %vm25600_vm8, %v28692_v31  ;;  %31352 = vst [vmem:[#allocation96_spill] sm:$0xff] %v28831_v63  ;;  %v28835_v4 = vpop.f32.mrb[171].mxu1 }
0x15ab   : > { %11506 = vxpose.xlu0.b32.cont [2/8] (short) (narrow) %v28724_v19, 64  ;;  %31353 = vst [vmem:[#allocation99_spill] sm:$0xff] %v28835_v4  ;;  %v20073_v17 = vpop.f32.mrb[172].mxu1 }
0x15ac   : > { %20103 = vmatmul.mubr.msk.f32.gmra.mrb[182].mxu0 %vm1078_vm5, %v31350_v47  ;;  %v28845_v37 = vmul.f32 %v20073_v17, %v28766_v30  ;;  %v8733_v32 = vpop.f32.mrb[173].mxu1 }
0x15ad   : > { %20149 = vmatprep.mubr.msk.f32.mxu0 %vm1078_vm5, %v28611_v22  ;;  %v28851_v24 = vmul.f32 %v28763_v12, %v8733_v32  ;;  %v20076_v53 = vpop.f32.mrb[174].mxu1 }
0x15ae   : > { %31355 = vst [vmem:[#allocation80_spill] sm:$0xff] %v28845_v37  ;;  %v28855_v8 = vmul.f32 %v20076_v53, %v28780_v23  ;;  %v8743_v29 = vpop.f32.mrb[175].mxu1  ;;  %v31374_v37 = vpack.i.bf16 %v28766_v30, %v28763_v12 }
0x15af   : > { %11507 = vxpose.xlu0.b32.cont [3/8] (short) (narrow) %v28821_v33, 64  ;;  %31356 = vst [vmem:[#allocation63_spill] sm:$0xff] %v28851_v24  ;;  %v28862_v17 = vpop.f32.mrb[176].mxu1  ;;  %v31373_v24 = vpack.i.bf16 %v28724_v19, %v28716_v13  ;;  %v31378_v13 = vpack.i.bf16 %v28728_v34, %v28748_v10 }
0x15b0   : > { %31357 = vst [vmem:[#allocation106_spill] sm:$0xff] %v28855_v8  ;;  %31359 = vst [vmem:[#allocation66_spill] sm:$0xff] %v28862_v17  ;;  %v28865_v60 = vpop.f32.mrb[177].mxu1 }
0x15b1   : > { %22486 = vmatpush3.bf16.xpose.msk.msra.mxu0 %vm25600_vm8, %v28692_v31  ;;  %v28858_v31 = vmul.f32 %v28777_v20, %v8743_v29  ;;  %31360 = vst [vmem:[#allocation70_spill] sm:$0xff] %v28865_v60 }
0x15b2   : > { %22489 = vmatprep.subr.msk.bf16.mxu0 %vm25600_vm8, %v22439_v16 }
0x15b3   : > { %11508 = vxpose.xlu0.b32.cont [4/8] (short) (narrow) %v28839_v11, 64  ;;  %31358 = vst [vmem:[#allocation107_spill] sm:$0xff] %v28858_v31  ;;  %v31372_v31 = vld [vmem:[#allocation67_spill] sm:$0xff]  ;;  %v31406_v11 = vld [vmem:[#allocation50_spill] sm:$0xff] }
0x15b4   : > { %v23739_v8 = vpack.i.bf16 %v31372_v31, %v31371_v46 }
0x15b7   : > { %11509 = vxpose.xlu0.b32.cont [5/8] (short) (narrow) %v28763_v12, 64  ;;  %v31380_v12 = vld [vmem:[#allocation120_spill] sm:$0xff] }
0x15b9   : > { %22492 = vmatpush3.bf16.xpose.msk.msra.mxu0 %vm25600_vm8, %v22439_v16  ;;  %v28881_v16 = vpop.f32.mrb[178].mxu1 }
0x15ba   : > { %31361 = vst [vmem:[#allocation62_spill] sm:$0xff] %v28881_v16  ;;  %v28885_v32 = vpop.f32.mrb[179].mxu1 }
0x15bb   : > { %11510 = vxpose.xlu0.b32.cont [6/8] (short) (narrow) %v28766_v30, 64  ;;  %31362 = vst [vmem:[#allocation68_spill] sm:$0xff] %v28885_v32  ;;  %v28887_v53 = vpop.f32.mrb[180].mxu1  ;;  %v31381_v30 = vld [vmem:[#allocation119_spill] sm:$0xff] }
0x15bc   : > { %31363 = vst [vmem:[#allocation71_spill] sm:$0xff] %v28887_v53  ;;  %v28889_v29 = vpop.f32.mrb[181].mxu1 }
0x15bd   : > { %31364 = vst [vmem:[#allocation125_spill] sm:$0xff] %v28889_v29  ;;  %v28891_v9 = vpop.f32.mrb[182].mxu1  ;;  %v31409_v29 = vld [vmem:[#allocation108_spill] sm:$0xff] }
0x15be   : > { %31365 = vst [vmem:[#allocation126_spill] sm:$0xff] %v28891_v9  ;;  %v28893_v61 = vpop.f32.mrb[183].mxu1 }
0x15bf   : > { %11511 = vxpose.xlu0.b32.cont [7/8] (short) (narrow) %v28777_v20, 64  ;;  %31366 = vst [vmem:[#allocation127_spill] sm:$0xff] %v28893_v61  ;;  %v31383_v20 = vld [vmem:[#allocation123_spill] sm:$0xff] }
0x15c0   : > { %20150 = vmatmul.mubr.msk.f32.vlgmr.msra.gmra.mrb[184].mxu0 %vm1078_vm5, %v28606_v35 }
0x15c1   : > { %20152 = vmatprep.mubr.msk.f32.mxu0 %vm1078_vm5, %v28640_v49 }
0x15c3   : > { %11512 = vxpose.xlu0.b32.end [8/8] (short) (narrow) %v28780_v23, 64  ;;  %v31384_v23 = vld [vmem:[#allocation122_spill] sm:$0xff] }
0x15c4   : > { %20153 = vmatmul.mubr.msk.f32.gmra.mrb[186].mxu0 %vm1078_vm5, %v28629_v56 }
0x15c5   : > { %20155 = vmatprep.mubr.msk.f32.mxu0 %vm1078_vm5, %v28675_v21 }
0x15c8   : > { %20156 = vmatmul.mubr.msk.f32.gmra.mrb[188].mxu0 %vm1078_vm5, %v28664_v7 }
0x15c9   : > { %20158 = vmatprep.mubr.msk.f32.mxu0 %vm1078_vm5, %v28710_v45 }
0x15cc   : > { %20159 = vmatmul.mubr.msk.f32.gmra.mrb[190].mxu0 %vm1078_vm5, %v28698_v28 }
0x15ec   : > { %11690 = vrot.lane.b32.xlu0 %v31367_v18, %s24517_s25 }
0x15f0   : > { %11698 = vrot.lane.b32.xlu0 %v28370_v59, %s24517_s25 }
0x15f2   : > { %v28932_v51 = vpop.permute.xlu0 %23710 }
0x15f3   : > { %31377 = vst [vmem:[#allocation85_spill] sm:$0xff] %v28932_v51 }
0x15f4   : > { %11702 = vrot.lane.b32.xlu0 %v31347_v54, %s24517_s25  ;;  %v31414_v54 = vld [vmem:[#allocation111_spill] sm:$0xff] }
0x15f6   : > { %v28938_v19 = vpop.permute.xlu0 %23715 }
0x15f7   : > { %31379 = vst [vmem:[#allocation65_spill] sm:$0xff] %v28938_v19 }
0x15f8   : > { %12012 = vrot.lane.b32.xlu0 %v28611_v22, %s24517_s25 }
0x15fc   : > { %12016 = vrot.lane.b32.xlu0 %v28640_v49, %s24517_s25 }
0x1600   : > { %12020 = vrot.lane.b32.xlu0 %v28675_v21, %s24517_s25 }
0x1604   : > { %12024 = vrot.lane.b32.xlu0 %v28710_v45, %s24517_s25 }
0x1608   : > { %23730 = vrot.lane.b32.xlu0 %v31370_v15, %s24517_s25  ;;  %v31376_v15 = vpack.i.bf16 %v28650_v27, %v28669_v3  ;;  %v28948_v27 = vpop.permute.xlu0 %23720 }
0x1609   : > { %31386 = vst [vmem:[#allocation120_spill] sm:$0xff] %v28948_v27 }
0x160c   : > { %23740 = vrot.lane.b32.xlu0 %v23739_v8, %s24517_s25 }
0x1610   : > { %23750 = vrot.lane.b32.xlu0 %v31373_v24, %s24517_s25  ;;  %v31385_v24 = vpack.i.bf16 %v31383_v20, %v31384_v23 }
0x1614   : > { %23760 = vrot.lane.b32.xlu0 %v31374_v37, %s24517_s25  ;;  %v31382_v37 = vpack.i.bf16 %v31380_v12, %v31381_v30 }
0x1618   : > { %23765 = vrot.lane.b32.xlu0 %v31375_v40, %s24517_s25 }
0x161c   : > { %23775 = vrot.lane.b32.xlu0 %v31376_v15, %s24517_s25 }
0x1620   : > { %23785 = vrot.lane.b32.xlu0 %v31378_v13, %s24517_s25 }
0x1624   : > { %23795 = vrot.lane.b32.xlu0 %v31382_v37, %s24517_s25 }
0x1627   : > { %v28950_v3 = vpop.trf.xlu0 }
0x1628   : > { %23805 = vrot.lane.b32.xlu0 %v31385_v24, %s24517_s25  ;;  %31387 = vst [vmem:[#allocation119_spill] sm:$0xff] %v28950_v3 }
0x162b   : > { %v28952_v8 = vpop.trf.xlu0 }
0x162c   : > { %31388 = vst [vmem:[#allocation123_spill] sm:$0xff] %v28952_v8 }
0x162f   : > { %v28954_v34 = vpop.trf.xlu0 }
0x1630   : > { %31389 = vst [vmem:[#allocation122_spill] sm:$0xff] %v28954_v34 }
0x1633   : > { %v28956_v10 = vpop.trf.xlu0 }
0x1634   : > { %31390 = vst [vmem:[#allocation128_spill] sm:$0xff] %v28956_v10 }
0x1637   : > { %v28958_v40 = vpop.trf.xlu0 }
0x1638   : > { %31391 = vst [vmem:[#allocation129_spill] sm:$0xff] %v28958_v40 }
0x163b   : > { %v28960_v15 = vpop.trf.xlu0 }
0x163c   : > { %31392 = vst [vmem:[#allocation130_spill] sm:$0xff] %v28960_v15 }
0x163f   : > { %v28962_v13 = vpop.trf.xlu0 }
0x1640   : > { %31393 = vst [vmem:[#allocation131_spill] sm:$0xff] %v28962_v13 }
0x1643   : > { %v28972_v23 = vpop.trf.xlu0 }
0x1644   : > { %31394 = vst [vmem:[#allocation132_spill] sm:$0xff] %v28972_v23 }
0x1652   : > { %v28964_v12 = vpop.f32.mrb[184].mxu1 }
0x1653   : > { %v28966_v30 = vpop.f32.mrb[185].mxu1 }
0x1656   : > { %v28968_v37 = vpop.f32.mrb[186].mxu1 }
0x1657   : > { %v28970_v20 = vpop.f32.mrb[187].mxu1 }
0x165b   : > { %v28974_v24 = vpop.f32.mrb[188].mxu1 }
0x165c   : > { %v28976_v42 = vpop.f32.mrb[189].mxu1 }
0x165e   : > { %v28978_v4 = vpop.permute.xlu0 %11690 }
0x165f   : > { %31395 = vst [vmem:[#allocation133_spill] sm:$0xff] %v28978_v4  ;;  %v28980_v63 = vpop.f32.mrb[190].mxu1  ;;  %v31407_v4 = vld [vmem:[#allocation48_spill] sm:$0xff] }
0x1660   : > { %v28982_v1 = vpop.f32.mrb[191].mxu1 }
0x1662   : > { %v28984_v13 = vpop.permute.xlu0 %11698 }
0x1663   : > { %31396 = vst [vmem:[#allocation134_spill] sm:$0xff] %v28984_v13 }
0x1666   : > { %v28986_v15 = vpop.permute.xlu0 %11702 }
0x1667   : > { %31397 = vst [vmem:[#allocation135_spill] sm:$0xff] %v28986_v15 }
0x166a   : > { %v28988_v40 = vpop.permute.xlu0 %12012 }
0x166b   : > { %31398 = vst [vmem:[#allocation136_spill] sm:$0xff] %v28988_v40 }
0x166e   : > { %v28990_v10 = vpop.permute.xlu0 %12016 }
0x166f   : > { %31399 = vst [vmem:[#allocation137_spill] sm:$0xff] %v28990_v10 }
0x1672   : > { %v28992_v27 = vpop.permute.xlu0 %12020 }
0x1673   : > { %31400 = vst [vmem:[#allocation138_spill] sm:$0xff] %v28992_v27  ;;  %v28994_v23 = vpop.f32.mrb[176].mxu0 }
0x1674   : > { %v28996_v34 = vpop.f32.mrb[177].mxu0 }
0x1676   : > { %v28998_v8 = vpop.permute.xlu0 %12024 }
0x1677   : > { %31401 = vst [vmem:[#allocation139_spill] sm:$0xff] %v28998_v8  ;;  %v29000_v3 = vpop.f32.mrb[178].mxu0 }
0x1678   : > { %v29002_v19 = vpop.f32.mrb[179].mxu0 }
0x167a   : > { %v29004_v51 = vpop.permute.xlu0 %23730 }
0x167b   : > { %31402 = vst [vmem:[#allocation140_spill] sm:$0xff] %v29004_v51  ;;  %v29006_v13 = vpop.f32.mrb[180].mxu0  ;;  %v31415_v51 = vld [vmem:[#allocation112_spill] sm:$0xff] }
0x167c   : > { %v29008_v15 = vpop.f32.mrb[181].mxu0 }
0x167e   : > { %v29010_v40 = vpop.permute.xlu0 %23740 }
0x167f   : > { %31403 = vst [vmem:[#allocation141_spill] sm:$0xff] %v29010_v40  ;;  %v29012_v10 = vpop.f32.mrb[182].mxu0  ;;  %v31408_v40 = vld [vmem:[#allocation49_spill] sm:$0xff] }
0x1680   : > { %v29014_v27 = vpop.f32.mrb[183].mxu0 }
0x1682   : > { %v23751_v31 = vpop.permute.xlu0 %23750 }
0x1683   : > { %v23753_v0 = vunpack.i.h.bf16 %v23751_v31  ;;  %v23752_v46 = vunpack.i.l.bf16 %v23751_v31 }
0x1685   : > { %v29016_v8 = vpack.c.bf16 %v23753_v0, %v23752_v46  ;;  %14515 = vxpose.xlu0.b32.start [1/8] (short) (narrow) %v23752_v46, 64 }
0x1687   : > { %31404 = vst [vmem:[#allocation142_spill] sm:$0xff] %v29016_v8 }
0x1689   : > { %14516 = vxpose.xlu0.b32.cont [2/8] (short) (narrow) %v23753_v0, 64  ;;  %v31410_v0 = vld [vmem:[#allocation109_spill] sm:$0xff] }
0x1693   : > { %v20151_v6 = vpop.f32.mrb[184].mxu0 }
0x1694   : > { %v9188_v25 = vmul.f32 %v20151_v6, %v31405_v43  ;;  %v9148_v50 = vpop.f32.mrb[185].mxu0 }
0x1695   : > { %v9187_v33 = vmul.f32 %v31406_v11, %v9148_v50  ;;  %v31411_v50 = vld [vmem:[#allocation54_spill] sm:$0xff] }
0x1696   : > { %v29021_v9 = vadd.f32 %v31407_v4, %v9188_v25  ;;  %v31412_v4 = vld [vmem:[#allocation51_spill] sm:$0xff] }
0x1697   : > { %v29024_v61 = vadd.f32 %v31408_v40, %v9187_v33  ;;  %v20154_v53 = vpop.f32.mrb[186].mxu0  ;;  %20205 = vmatprep.mubr.msk.f32.mxu0 %vm1078_vm5, %v9187_v33  ;;  %v22517_v31 = vpack.c.bf16 %v9188_v25, %v9187_v33  ;;  %v31413_v33 = vld [vmem:[#allocation110_spill] sm:$0xff] }
0x1698   : > { %v9190_v8 = vmul.f32 %v20154_v53, %v31409_v29  ;;  %v9158_v46 = vpop.f32.mrb[187].mxu0 }
0x1699   : > { %v9189_v16 = vmul.f32 %v31410_v0, %v9158_v46  ;;  %22518 = vmatprep.subr.bf16.mxu0 %v22517_v31  ;;  %v22533_v6 = vpack.c.bf16 %v29021_v9, %v29024_v61 }
0x169a   : > { %v29032_v32 = vadd.f32 %v31411_v50, %v9190_v8  ;;  %22520 = vmatpush3.bf16.msra.mxu0 %v22517_v31  ;;  %v31416_v31 = vld [vmem:[#allocation58_spill] sm:$0xff] }
0x169b   : > { %v29035_v40 = vadd.f32 %v31412_v4, %v9189_v16  ;;  %v20157_v17 = vpop.f32.mrb[188].mxu0  ;;  %22534 = vmatprep.subr.bf16.mxu1 %v22533_v6  ;;  %v22521_v47 = vpack.c.bf16 %v9190_v8, %v9189_v16 }
0x169c   : > { %v9192_v60 = vmul.f32 %v20157_v17, %v31413_v33  ;;  %v9168_v53 = vpop.f32.mrb[189].mxu0  ;;  %22536 = vmatpush3.bf16.msra.mxu1 %v22533_v6  ;;  %v31418_v6 = vld [vmem:[#allocation114_spill] sm:$0xff] }
0x169d   : > { %v9191_v46 = vmul.f32 %v31414_v54, %v9168_v53  ;;  %22522 = vmatprep.subr.bf16.mxu0 %v22521_v47  ;;  %v22537_v48 = vpack.c.bf16 %v29032_v32, %v29035_v40 }
0x169e   : > { %v29042_v50 = vadd.f32 %v31415_v51, %v9192_v60  ;;  %22524 = vmatpush3.bf16.msra.mxu0 %v22521_v47  ;;  %v31420_v47 = vld [vmem:[#allocation115_spill] sm:$0xff] }
0x169f   : > { %v29045_v4 = vadd.f32 %v31416_v31, %v9191_v46  ;;  %v20160_v59 = vpop.f32.mrb[190].mxu0  ;;  %22538 = vmatprep.subr.bf16.mxu1 %v22537_v48  ;;  %v22525_v58 = vpack.c.bf16 %v9192_v60, %v9191_v46 }
0x16a0   : > { %v9194_v17 = vmul.f32 %v20160_v59, %v31417_v57  ;;  %v9178_v52 = vpop.f32.mrb[191].mxu0  ;;  %22540 = vmatpush3.bf16.msra.mxu1 %v22537_v48 }
0x16a1   : > { %v9193_v53 = vmul.f32 %v31418_v6, %v9178_v52  ;;  %22526 = vmatprep.subr.bf16.mxu0 %v22525_v58  ;;  %v22541_v36 = vpack.c.bf16 %v29042_v50, %v29045_v4 }
0x16a2   : > { %v29052_v51 = vadd.f32 %v31419_v39, %v9194_v17  ;;  %22528 = vmatpush3.bf16.msra.mxu0 %v22525_v58 }
0x16a3   : > { %v29055_v31 = vadd.f32 %v31420_v47, %v9193_v53  ;;  %22542 = vmatprep.subr.bf16.mxu1 %v22541_v36  ;;  %v22529_v18 = vpack.c.bf16 %v9194_v17, %v9193_v53 }
0x16a4   : > { %22544 = vmatpush3.bf16.msra.mxu1 %v22541_v36 }
0x16a5   : > { %22530 = vmatprep.subr.bf16.mxu0 %v22529_v18  ;;  %v22545_v59 = vpack.c.bf16 %v29052_v51, %v29055_v31 }
0x16a6   : > { %22532 = vmatpush3.bf16.msra.mxu0 %v22529_v18 }
0x16a7   : > { %22546 = vmatprep.subr.bf16.mxu1 %v22545_v59 }
0x16a8   : > { %22548 = vmatpush3.bf16.msra.mxu1 %v22545_v59 }
0x16a9   : > { %20206 = vmatmul.mubr.msk.f32.vlgmr.msra.gmra.mrb[192].mxu0 %vm1078_vm5, %v9188_v25 }
0x16aa   : > { %20208 = vmatprep.mubr.msk.f32.mxu0 %vm1078_vm5, %v9189_v16 }
0x16ad   : > { %20209 = vmatmul.mubr.msk.f32.gmra.mrb[194].mxu0 %vm1078_vm5, %v9190_v8 }
0x16ae   : > { %20211 = vmatprep.mubr.msk.f32.mxu0 %vm1078_vm5, %v9191_v46 }
0x16b1   : > { %20212 = vmatmul.mubr.msk.f32.gmra.mrb[196].mxu0 %vm1078_vm5, %v9192_v60 }
0x16b2   : > { %20214 = vmatprep.mubr.msk.f32.mxu0 %vm1078_vm5, %v9193_v53 }
0x16b5   : > { %20215 = vmatmul.mubr.msk.f32.gmra.mrb[198].mxu0 %vm1078_vm5, %v9194_v17 }
0x177c   : > { %v20207_v36 = vpop.f32.mrb[192].mxu0 }
0x177d   : > { %v9406_v58 = vpop.f32.mrb[193].mxu0 }
0x177e   : > { %v22549_v52 = vpack.c.bf16 %v20207_v36, %v9406_v58  ;;  %20233 = vmatprep.mubr.msk.f32.mxu1 %vm1078_vm5, %v9406_v58  ;;  %20261 = vmatprep.mubr.msk.f32.mxu0 %vm1078_vm5, %v9406_v58 }
0x177f   : > { %20234 = vmatmul.mubr.msk.f32.vlgmr.msra.gmra.mrb[192].mxu1 %vm1078_vm5, %v20207_v36 }
0x1780   : > { %v20210_v25 = vpop.f32.mrb[194].mxu0  ;;  %22550 = vmatprep.subr.bf16.mxu0 %v22549_v52 }
0x1781   : > { %v9416_v18 = vpop.f32.mrb[195].mxu0  ;;  %22552 = vmatpush3.bf16.msra.mxu0 %v22549_v52 }
0x1782   : > { %v22553_v48 = vpack.c.bf16 %v20210_v25, %v9416_v18  ;;  %20236 = vmatprep.mubr.msk.f32.mxu1 %vm1078_vm5, %v9416_v18 }
0x1783   : > { %20237 = vmatmul.mubr.msk.f32.gmra.mrb[194].mxu1 %vm1078_vm5, %v20210_v25 }
0x1784   : > { %v20213_v60 = vpop.f32.mrb[196].mxu0  ;;  %22554 = vmatprep.subr.bf16.mxu0 %v22553_v48 }
0x1785   : > { %v9426_v16 = vpop.f32.mrb[197].mxu0  ;;  %22556 = vmatpush3.bf16.msra.mxu0 %v22553_v48 }
0x1786   : > { %v22557_v8 = vpack.c.bf16 %v20213_v60, %v9426_v16  ;;  %20239 = vmatprep.mubr.msk.f32.mxu1 %vm1078_vm5, %v9426_v16 }
0x1787   : > { %20240 = vmatmul.mubr.msk.f32.gmra.mrb[196].mxu1 %vm1078_vm5, %v20213_v60 }
0x1788   : > { %v20216_v46 = vpop.f32.mrb[198].mxu0  ;;  %22558 = vmatprep.subr.bf16.mxu0 %v22557_v8 }
0x1789   : > { %v9436_v17 = vpop.f32.mrb[199].mxu0  ;;  %22560 = vmatpush3.bf16.msra.mxu0 %v22557_v8 }
0x178a   : > { %v22561_v53 = vpack.c.bf16 %v20216_v46, %v9436_v17  ;;  %20242 = vmatprep.mubr.msk.f32.mxu1 %vm1078_vm5, %v9436_v17 }
0x178b   : > { %20243 = vmatmul.mubr.msk.f32.gmra.mrb[198].mxu1 %vm1078_vm5, %v20216_v46 }
0x178c   : > { %22562 = vmatprep.subr.bf16.mxu0 %v22561_v53 }
0x178d   : > { %22564 = vmatpush3.bf16.msra.mxu0 %v22561_v53 }
0x1790   : > { %20262 = vmatmul.mubr.msk.f32.vlgmr.msra.gmra.mrb[200].mxu0 %vm1078_vm5, %v20207_v36 }
0x1791   : > { %20264 = vmatprep.mubr.msk.f32.mxu0 %vm1078_vm5, %v9416_v18 }
0x1794   : > { %20265 = vmatmul.mubr.msk.f32.gmra.mrb[202].mxu0 %vm1078_vm5, %v20210_v25 }
0x1795   : > { %20267 = vmatprep.mubr.msk.f32.mxu0 %vm1078_vm5, %v9426_v16 }
0x1798   : > { %20268 = vmatmul.mubr.msk.f32.gmra.mrb[204].mxu0 %vm1078_vm5, %v20213_v60 }
0x1799   : > { %20270 = vmatprep.mubr.msk.f32.mxu0 %vm1078_vm5, %v9436_v17 }
0x179c   : > { %20271 = vmatmul.mubr.msk.f32.gmra.mrb[206].mxu0 %vm1078_vm5, %v20216_v46 }
0x1852   : > { %v20235_v59 = vpop.f32.mrb[192].mxu1 }
0x1853   : > { %v29083_v58 = vadd.f32 %v20235_v59, %v29021_v9  ;;  %v9535_v52 = vpop.f32.mrb[193].mxu1 }
0x1854   : > { %v29086_v48 = vadd.f32 %v9535_v52, %v29024_v61 }
0x1856   : > { %v22565_v36 = vpack.c.bf16 %v29083_v58, %v29086_v48  ;;  %v20238_v25 = vpop.f32.mrb[194].mxu1 }
0x1857   : > { %v29091_v18 = vadd.f32 %v20238_v25, %v29032_v32  ;;  %v9545_v60 = vpop.f32.mrb[195].mxu1 }
0x1858   : > { %v29094_v16 = vadd.f32 %v9545_v60, %v29035_v40  ;;  %22566 = vmatprep.subr.bf16.mxu1 %v22565_v36 }
0x1859   : > { %22568 = vmatpush3.bf16.msra.mxu1 %v22565_v36 }
0x185a   : > { %v22569_v9 = vpack.c.bf16 %v29091_v18, %v29094_v16  ;;  %v20241_v8 = vpop.f32.mrb[196].mxu1 }
0x185b   : > { %v29099_v61 = vadd.f32 %v20241_v8, %v29042_v50  ;;  %v9555_v46 = vpop.f32.mrb[197].mxu1 }
0x185c   : > { %v29102_v17 = vadd.f32 %v9555_v46, %v29045_v4  ;;  %22570 = vmatprep.subr.bf16.mxu1 %v22569_v9 }
0x185d   : > { %22572 = vmatpush3.bf16.msra.mxu1 %v22569_v9 }
0x185e   : > { %v22573_v32 = vpack.c.bf16 %v29099_v61, %v29102_v17  ;;  %v20244_v40 = vpop.f32.mrb[198].mxu1 }
0x185f   : > { %v29107_v53 = vadd.f32 %v20244_v40, %v29052_v51  ;;  %v9565_v59 = vpop.f32.mrb[199].mxu1 }
0x1860   : > { %v29110_v52 = vadd.f32 %v9565_v59, %v29055_v31  ;;  %22574 = vmatprep.subr.bf16.mxu1 %v22573_v32 }
0x1861   : > { %22576 = vmatpush3.bf16.msra.mxu1 %v22573_v32 }
0x1862   : > { %v22577_v50 = vpack.c.bf16 %v29107_v53, %v29110_v52 }
0x1863   : > { %v20263_v4 = vpop.f32.mrb[200].mxu0 }
0x1864   : > { %v9648_v36 = vpop.f32.mrb[201].mxu0  ;;  %22578 = vmatprep.subr.bf16.mxu1 %v22577_v50 }
0x1865   : > { %v22581_v25 = vpack.c.bf16 %v20263_v4, %v9648_v36  ;;  %22580 = vmatpush3.bf16.msra.mxu1 %v22577_v50  ;;  %20289 = vmatprep.mubr.msk.f32.mxu1 %vm1078_vm5, %v9648_v36 }
0x1866   : > { %20317 = vmatprep.mubr.msk.f32.mxu0 %vm1078_vm5, %v9648_v36 }
0x1867   : > { %v20266_v51 = vpop.f32.mrb[202].mxu0  ;;  %22582 = vmatprep.subr.bf16.mxu0 %v22581_v25 }
0x1868   : > { %v9658_v60 = vpop.f32.mrb[203].mxu0  ;;  %20290 = vmatmul.mubr.msk.f32.vlgmr.msra.gmra.mrb[200].mxu1 %vm1078_vm5, %v20263_v4  ;;  %22584 = vmatpush3.bf16.msra.mxu0 %v22581_v25 }
0x1869   : > { %v22585_v31 = vpack.c.bf16 %v20266_v51, %v9658_v60  ;;  %20292 = vmatprep.mubr.msk.f32.mxu1 %vm1078_vm5, %v9658_v60 }
0x186b   : > { %v20269_v9 = vpop.f32.mrb[204].mxu0  ;;  %22586 = vmatprep.subr.bf16.mxu0 %v22585_v31 }
0x186c   : > { %v9668_v8 = vpop.f32.mrb[205].mxu0  ;;  %20293 = vmatmul.mubr.msk.f32.gmra.mrb[202].mxu1 %vm1078_vm5, %v20266_v51  ;;  %22588 = vmatpush3.bf16.msra.mxu0 %v22585_v31 }
0x186d   : > { %v22589_v46 = vpack.c.bf16 %v20269_v9, %v9668_v8  ;;  %20295 = vmatprep.mubr.msk.f32.mxu1 %vm1078_vm5, %v9668_v8 }
0x186f   : > { %v20272_v32 = vpop.f32.mrb[206].mxu0  ;;  %22590 = vmatprep.subr.bf16.mxu0 %v22589_v46 }
0x1870   : > { %v9678_v40 = vpop.f32.mrb[207].mxu0  ;;  %20296 = vmatmul.mubr.msk.f32.gmra.mrb[204].mxu1 %vm1078_vm5, %v20269_v9  ;;  %22592 = vmatpush3.bf16.msra.mxu0 %v22589_v46 }
0x1871   : > { %v22593_v59 = vpack.c.bf16 %v20272_v32, %v9678_v40  ;;  %20298 = vmatprep.mubr.msk.f32.mxu1 %vm1078_vm5, %v9678_v40 }
0x1873   : > { %22594 = vmatprep.subr.bf16.mxu0 %v22593_v59 }
0x1874   : > { %20299 = vmatmul.mubr.msk.f32.gmra.mrb[206].mxu1 %vm1078_vm5, %v20272_v32  ;;  %22596 = vmatpush3.bf16.msra.mxu0 %v22593_v59 }
0x1877   : > { %20318 = vmatmul.mubr.msk.f32.vlgmr.msra.gmra.mrb[208].mxu0 %vm1078_vm5, %v20263_v4 }
0x1878   : > { %20320 = vmatprep.mubr.msk.f32.mxu0 %vm1078_vm5, %v9658_v60 }
0x187b   : > { %20321 = vmatmul.mubr.msk.f32.gmra.mrb[210].mxu0 %vm1078_vm5, %v20266_v51 }
0x187c   : > { %20323 = vmatprep.mubr.msk.f32.mxu0 %vm1078_vm5, %v9668_v8 }
0x187f   : > { %20324 = vmatmul.mubr.msk.f32.gmra.mrb[212].mxu0 %vm1078_vm5, %v20269_v9 }
0x1880   : > { %20326 = vmatprep.mubr.msk.f32.mxu0 %vm1078_vm5, %v9678_v40 }
0x1883   : > { %20327 = vmatmul.mubr.msk.f32.gmra.mrb[214].mxu0 %vm1078_vm5, %v20272_v32 }
0x193b   : > { %v20291_v50 = vpop.f32.mrb[200].mxu1 }
0x193c   : > { %v29131_v36 = vadd.f32 %v20291_v50, %v29083_v58  ;;  %v9777_v25 = vpop.f32.mrb[201].mxu1 }
0x193d   : > { %v29134_v31 = vadd.f32 %v9777_v25, %v29086_v48 }
0x193f   : > { %v22597_v4 = vpack.c.bf16 %v29131_v36, %v29134_v31  ;;  %v20294_v51 = vpop.f32.mrb[202].mxu1 }
0x1940   : > { %v29139_v60 = vadd.f32 %v20294_v51, %v29091_v18  ;;  %v9787_v9 = vpop.f32.mrb[203].mxu1 }
0x1941   : > { %v29142_v8 = vadd.f32 %v9787_v9, %v29094_v16  ;;  %22598 = vmatprep.subr.bf16.mxu1 %v22597_v4 }
0x1942   : > { %22600 = vmatpush3.bf16.msra.mxu1 %v22597_v4 }
0x1943   : > { %v22601_v58 = vpack.c.bf16 %v29139_v60, %v29142_v8  ;;  %v20297_v46 = vpop.f32.mrb[204].mxu1 }
0x1944   : > { %v29147_v48 = vadd.f32 %v20297_v46, %v29099_v61  ;;  %v9797_v32 = vpop.f32.mrb[205].mxu1 }
0x1945   : > { %v29150_v40 = vadd.f32 %v9797_v32, %v29102_v17  ;;  %22602 = vmatprep.subr.bf16.mxu1 %v22601_v58 }
0x1946   : > { %22604 = vmatpush3.bf16.msra.mxu1 %v22601_v58 }
0x1947   : > { %v22605_v18 = vpack.c.bf16 %v29147_v48, %v29150_v40  ;;  %v20300_v16 = vpop.f32.mrb[206].mxu1 }
0x1948   : > { %v29155_v59 = vadd.f32 %v20300_v16, %v29107_v53  ;;  %v9807_v50 = vpop.f32.mrb[207].mxu1 }
0x1949   : > { %v29158_v25 = vadd.f32 %v9807_v50, %v29110_v52  ;;  %22606 = vmatprep.subr.bf16.mxu1 %v22605_v18 }
0x194a   : > { %v20319_v61 = vpop.f32.mrb[208].mxu0  ;;  %22608 = vmatpush3.bf16.msra.mxu1 %v22605_v18 }
0x194b   : > { %v22609_v17 = vpack.c.bf16 %v29155_v59, %v29158_v25  ;;  %v9890_v4 = vpop.f32.mrb[209].mxu0 }
0x194c   : > { %v22613_v51 = vpack.c.bf16 %v20319_v61, %v9890_v4  ;;  %20345 = vmatprep.mubr.msk.f32.mxu1 %vm1078_vm5, %v9890_v4  ;;  %20373 = vmatprep.mubr.msk.f32.mxu0 %vm1078_vm5, %v9890_v4 }
0x194d   : > { %22610 = vmatprep.subr.bf16.mxu1 %v22609_v17 }
0x194e   : > { %v20322_v9 = vpop.f32.mrb[210].mxu0  ;;  %22612 = vmatpush3.bf16.msra.mxu1 %v22609_v17  ;;  %22614 = vmatprep.subr.bf16.mxu0 %v22613_v51 }
0x194f   : > { %v9900_v53 = vpop.f32.mrb[211].mxu0  ;;  %22616 = vmatpush3.bf16.msra.mxu0 %v22613_v51 }
0x1950   : > { %v22617_v52 = vpack.c.bf16 %v20322_v9, %v9900_v53 }
0x1951   : > { %20346 = vmatmul.mubr.msk.f32.vlgmr.msra.gmra.mrb[208].mxu1 %vm1078_vm5, %v20319_v61 }
0x1952   : > { %v20325_v58 = vpop.f32.mrb[212].mxu0  ;;  %20348 = vmatprep.mubr.msk.f32.mxu1 %vm1078_vm5, %v9900_v53  ;;  %22618 = vmatprep.subr.bf16.mxu0 %v22617_v52 }
0x1953   : > { %v9910_v46 = vpop.f32.mrb[213].mxu0  ;;  %22620 = vmatpush3.bf16.msra.mxu0 %v22617_v52 }
0x1954   : > { %v22621_v32 = vpack.c.bf16 %v20325_v58, %v9910_v46 }
0x1955   : > { %20349 = vmatmul.mubr.msk.f32.gmra.mrb[210].mxu1 %vm1078_vm5, %v20322_v9 }
0x1956   : > { %v20328_v18 = vpop.f32.mrb[214].mxu0  ;;  %20351 = vmatprep.mubr.msk.f32.mxu1 %vm1078_vm5, %v9910_v46  ;;  %22622 = vmatprep.subr.bf16.mxu0 %v22621_v32 }
0x1957   : > { %v9920_v16 = vpop.f32.mrb[215].mxu0  ;;  %22624 = vmatpush3.bf16.msra.mxu0 %v22621_v32 }
0x1958   : > { %v22625_v50 = vpack.c.bf16 %v20328_v18, %v9920_v16 }
0x1959   : > { %20352 = vmatmul.mubr.msk.f32.gmra.mrb[212].mxu1 %vm1078_vm5, %v20325_v58 }
0x195a   : > { %20354 = vmatprep.mubr.msk.f32.mxu1 %vm1078_vm5, %v9920_v16  ;;  %22626 = vmatprep.subr.bf16.mxu0 %v22625_v50 }
0x195b   : > { %22628 = vmatpush3.bf16.msra.mxu0 %v22625_v50 }
0x195d   : > { %20355 = vmatmul.mubr.msk.f32.gmra.mrb[214].mxu1 %vm1078_vm5, %v20328_v18 }
0x195e   : > { %20374 = vmatmul.mubr.msk.f32.vlgmr.msra.gmra.mrb[216].mxu0 %vm1078_vm5, %v20319_v61 }
0x195f   : > { %20376 = vmatprep.mubr.msk.f32.mxu0 %vm1078_vm5, %v9900_v53 }
0x1962   : > { %20377 = vmatmul.mubr.msk.f32.gmra.mrb[218].mxu0 %vm1078_vm5, %v20322_v9 }
0x1963   : > { %20379 = vmatprep.mubr.msk.f32.mxu0 %vm1078_vm5, %v9910_v46 }
0x1966   : > { %20380 = vmatmul.mubr.msk.f32.gmra.mrb[220].mxu0 %vm1078_vm5, %v20325_v58 }
0x1967   : > { %20382 = vmatprep.mubr.msk.f32.mxu0 %vm1078_vm5, %v9920_v16 }
0x196a   : > { %20383 = vmatmul.mubr.msk.f32.gmra.mrb[222].mxu0 %vm1078_vm5, %v20328_v18 }
0x1a24   : > { %v20347_v17 = vpop.f32.mrb[208].mxu1 }
0x1a25   : > { %v29179_v4 = vadd.f32 %v20347_v17, %v29131_v36  ;;  %v10019_v51 = vpop.f32.mrb[209].mxu1 }
0x1a26   : > { %v29182_v52 = vadd.f32 %v10019_v51, %v29134_v31 }
0x1a28   : > { %v22629_v61 = vpack.c.bf16 %v29179_v4, %v29182_v52  ;;  %v20350_v9 = vpop.f32.mrb[210].mxu1 }
0x1a29   : > { %v29187_v53 = vadd.f32 %v20350_v9, %v29139_v60  ;;  %v10029_v58 = vpop.f32.mrb[211].mxu1 }
0x1a2a   : > { %v29190_v46 = vadd.f32 %v10029_v58, %v29142_v8  ;;  %22630 = vmatprep.subr.bf16.mxu1 %v22629_v61 }
0x1a2b   : > { %22632 = vmatpush3.bf16.msra.mxu1 %v22629_v61 }
0x1a2c   : > { %v22633_v36 = vpack.c.bf16 %v29187_v53, %v29190_v46  ;;  %v20353_v32 = vpop.f32.mrb[212].mxu1 }
0x1a2d   : > { %v29195_v31 = vadd.f32 %v20353_v32, %v29147_v48  ;;  %v10039_v18 = vpop.f32.mrb[213].mxu1 }
0x1a2e   : > { %v29198_v16 = vadd.f32 %v10039_v18, %v29150_v40  ;;  %22634 = vmatprep.subr.bf16.mxu1 %v22633_v36 }
0x1a2f   : > { %22636 = vmatpush3.bf16.msra.mxu1 %v22633_v36 }
0x1a30   : > { %v22637_v60 = vpack.c.bf16 %v29195_v31, %v29198_v16  ;;  %v20356_v8 = vpop.f32.mrb[214].mxu1 }
0x1a31   : > { %v29203_v50 = vadd.f32 %v20356_v8, %v29155_v59  ;;  %v10049_v17 = vpop.f32.mrb[215].mxu1  ;;  %v20375_v51 = vpop.f32.mrb[216].mxu0 }
0x1a32   : > { %v29206_v61 = vadd.f32 %v10049_v17, %v29158_v25  ;;  %v10132_v48 = vpop.f32.mrb[217].mxu0  ;;  %22638 = vmatprep.subr.bf16.mxu1 %v22637_v60 }
0x1a33   : > { %v22645_v9 = vpack.c.bf16 %v20375_v51, %v10132_v48  ;;  %22640 = vmatpush3.bf16.msra.mxu1 %v22637_v60  ;;  %20401 = vmatprep.mubr.msk.f32.mxu1 %vm1078_vm5, %v10132_v48 }
0x1a34   : > { %v22641_v40 = vpack.c.bf16 %v29203_v50, %v29206_v61  ;;  %20429 = vmatprep.mubr.msk.f32.mxu0 %vm1078_vm5, %v10132_v48  ;;  %v29233_v48 = vld [vmem:[#allocation2 + $0x8] sm:$0xff] }
0x1a35   : > { %v20378_v58 = vpop.f32.mrb[218].mxu0  ;;  %22646 = vmatprep.subr.bf16.mxu0 %v22645_v9 }
0x1a36   : > { %v10142_v59 = vpop.f32.mrb[219].mxu0  ;;  %22642 = vmatprep.subr.bf16.mxu1 %v22641_v40  ;;  %22648 = vmatpush3.bf16.msra.mxu0 %v22645_v9  ;;  %v9303_v9 = vmul.f32 %v28968_v37, %v31409_v29  ;;  %v9306_v37 = vmul.f32 %v31418_v6, %v28982_v1 }
0x1a37   : > { %v22649_v36 = vpack.c.bf16 %v20378_v58, %v10142_v59  ;;  %22644 = vmatpush3.bf16.msra.mxu1 %v22641_v40  ;;  %v29256_v40 = vld [vmem:[#allocation2 + $0x10] sm:$0xff] }
0x1a39   : > { %v20381_v25 = vpop.f32.mrb[220].mxu0  ;;  %22650 = vmatprep.subr.bf16.mxu0 %v22649_v36 }
0x1a3a   : > { %v10152_v32 = vpop.f32.mrb[221].mxu0  ;;  %20402 = vmatmul.mubr.msk.f32.vlgmr.msra.gmra.mrb[216].mxu1 %vm1078_vm5, %v20375_v51  ;;  %22652 = vmatpush3.bf16.msra.mxu0 %v22649_v36  ;;  %v29301_v36 = vld [vmem:[#allocation2 + $0x38] sm:$0xff] }
0x1a3b   : > { %v22653_v18 = vpack.c.bf16 %v20381_v25, %v10152_v32  ;;  %20404 = vmatprep.mubr.msk.f32.mxu1 %vm1078_vm5, %v10142_v59 }
0x1a3d   : > { %v20384_v60 = vpop.f32.mrb[222].mxu0  ;;  %22654 = vmatprep.subr.bf16.mxu0 %v22653_v18 }
0x1a3e   : > { %v10162_v8 = vpop.f32.mrb[223].mxu0  ;;  %20405 = vmatmul.mubr.msk.f32.gmra.mrb[218].mxu1 %vm1078_vm5, %v20378_v58  ;;  %22656 = vmatpush3.bf16.msra.mxu0 %v22653_v18 }
0x1a3f   : > { %v22657_v17 = vpack.c.bf16 %v20384_v60, %v10162_v8  ;;  %20407 = vmatprep.mubr.msk.f32.mxu1 %vm1078_vm5, %v10152_v32 }
0x1a41   : > { %22658 = vmatprep.subr.bf16.mxu0 %v22657_v17 }
0x1a42   : > { %20408 = vmatmul.mubr.msk.f32.gmra.mrb[220].mxu1 %vm1078_vm5, %v20381_v25  ;;  %22660 = vmatpush3.bf16.msra.mxu0 %v22657_v17 }
0x1a43   : > { %20410 = vmatprep.mubr.msk.f32.mxu1 %vm1078_vm5, %v10162_v8  ;;  %22678 = vmatprep.subr.bf16.mxu0 %v28682_v62 }
0x1a45   : > { %20430 = vmatmul.mubr.msk.f32.vlgmr.msra.gmra.mrb[224].mxu0 %vm1078_vm5, %v20375_v51  ;;  %v29231_v51 = vld [vmem:[#allocation2] sm:$0xff] }
0x1a46   : > { %20411 = vmatmul.mubr.msk.f32.gmra.mrb[222].mxu1 %vm1078_vm5, %v20384_v60  ;;  %20432 = vmatprep.mubr.msk.f32.mxu0 %vm1078_vm5, %v10142_v59  ;;  %v29282_v59 = vld [vmem:[#allocation2 + $0x20] sm:$0xff] }
0x1a47   : > { %22680 = vmatpush3.bf16.msra.mxu0 %v28682_v62  ;;  %v9300_v62 = vmul.f32 %v31406_v11, %v28966_v30  ;;  %v9302_v30 = vmul.f32 %v31410_v0, %v28970_v20 }
0x1a48   : > { %22682 = vmatprep.subr.bf16.mxu0 %v28807_v44 }
0x1a49   : > { %20433 = vmatmul.mubr.msk.f32.gmra.mrb[226].mxu0 %vm1078_vm5, %v20378_v58  ;;  %v9305_v58 = vmul.f32 %v28974_v24, %v31413_v33  ;;  %v29284_v24 = vld [vmem:[#allocation2 + $0x28] sm:$0xff] }
0x1a4a   : > { %20435 = vmatprep.mubr.msk.f32.mxu0 %vm1078_vm5, %v10152_v32  ;;  %v29291_v1 = vpack.c.bf16 %v29284_v24, %v29282_v59 }
0x1a4b   : > { %22684 = vmatpush3.bf16.msra.mxu0 %v28807_v44  ;;  %v29242_v44 = vpack.c.bf16 %v29233_v48, %v29231_v51 }
0x1a4c   : > { %22686 = vmatprep.subr.bf16.mxu0 %v28744_v14 }
0x1a4d   : > { %20436 = vmatmul.mubr.msk.f32.gmra.mrb[228].mxu0 %vm1078_vm5, %v20381_v25 }
0x1a4e   : > { %20438 = vmatprep.mubr.msk.f32.mxu0 %vm1078_vm5, %v10162_v8 }
0x1a4f   : > { %22688 = vmatpush3.bf16.msra.mxu0 %v28744_v14  ;;  %v9301_v14 = vmul.f32 %v28964_v12, %v31405_v43  ;;  %v9304_v12 = vmul.f32 %v31414_v54, %v28976_v42  ;;  %v9307_v42 = vmul.f32 %v28980_v63, %v31417_v57  ;;  %v29299_v63 = vld [vmem:[#allocation2 + $0x30] sm:$0xff] }
0x1a50   : > { %22690 = vmatprep.subr.bf16.mxu0 %v28769_v2  ;;  %v29305_v25 = vpack.c.bf16 %v29301_v36, %v29299_v63 }
0x1a51   : > { %20439 = vmatmul.mubr.msk.f32.gmra.mrb[230].mxu0 %vm1078_vm5, %v20384_v60 }
0x1a52   : > { %20485 = vmatprep.mubr.msk.f32.mxu0 %vm1078_vm5, %v9300_v62 }
0x1a53   : > { %22692 = vmatpush3.bf16.msra.mxu0 %v28769_v2  ;;  %v29258_v2 = vld [vmem:[#allocation2 + $0x18] sm:$0xff] }
0x1a54   : > { %22695 = vmatprep.subr.msk.bf16.mxu0 %vm25600_vm8, %v29242_v44  ;;  %v29266_v20 = vpack.c.bf16 %v29258_v2, %v29256_v40 }
0x1a56   : > { %20486 = vmatmul.mubr.msk.f32.vlgmr.msra.gmra.mrb[232].mxu0 %vm1078_vm5, %v9301_v14 }
0x1a57   : > { %20488 = vmatprep.mubr.msk.f32.mxu0 %vm1078_vm5, %v9302_v30 }
0x1a5a   : > { %20489 = vmatmul.mubr.msk.f32.gmra.mrb[234].mxu0 %vm1078_vm5, %v9303_v9 }
0x1a5b   : > { %20491 = vmatprep.mubr.msk.f32.mxu0 %vm1078_vm5, %v9304_v12 }
0x1a5c   : > { %22698 = vmatpush3.bf16.xpose.msk.msra.mxu0 %vm25600_vm8, %v29242_v44 }
0x1a5d   : > { %22701 = vmatprep.subr.msk.bf16.mxu0 %vm25600_vm8, %v29266_v20 }
0x1a5e   : > { %20492 = vmatmul.mubr.msk.f32.gmra.mrb[236].mxu0 %vm1078_vm5, %v9305_v58 }
0x1a5f   : > { %20494 = vmatprep.mubr.msk.f32.mxu0 %vm1078_vm5, %v9306_v37 }
0x1a62   : > { %20495 = vmatmul.mubr.msk.f32.gmra.mrb[238].mxu0 %vm1078_vm5, %v9307_v42 }
0x1a63   : > { %20513 = vmatprep.mubr.msk.f32.mxu0 %vm1078_vm5, %v28611_v22  ;;  %v31421_v22 = vld [vmem:[#allocation118_spill] sm:$0xff] }
0x1a64   : > { %22704 = vmatpush3.bf16.xpose.msk.msra.mxu0 %vm25600_vm8, %v29266_v20 }
0x1a65   : > { %22707 = vmatprep.subr.msk.bf16.mxu0 %vm25600_vm8, %v29291_v1 }
0x1a6c   : > { %22710 = vmatpush3.bf16.xpose.msk.msra.mxu0 %vm25600_vm8, %v29291_v1 }
0x1a6d   : > { %22713 = vmatprep.subr.msk.bf16.mxu0 %vm25600_vm8, %v29305_v25 }
0x1a74   : > { %22716 = vmatpush3.bf16.xpose.msk.msra.mxu0 %vm25600_vm8, %v29305_v25 }
0x1a75   : > { %22790 = vmatprep.subr.bf16.mxu0 %v28654_v38 }
0x1a7b   : > { %20514 = vmatmul.mubr.msk.f32.vlgmr.msra.gmra.mrb[232].mxu0 %vm1078_vm5, %v28606_v35 }
0x1a7c   : > { %20516 = vmatprep.mubr.msk.f32.mxu0 %vm1078_vm5, %v28640_v49  ;;  %22792 = vmatpush3.bf16.msra.mxu0 %v28654_v38 }
0x1a7d   : > { %22794 = vmatprep.subr.bf16.mxu0 %v28688_v41 }
0x1a7f   : > { %20517 = vmatmul.mubr.msk.f32.gmra.mrb[234].mxu0 %vm1078_vm5, %v28629_v56 }
0x1a80   : > { %20519 = vmatprep.mubr.msk.f32.mxu0 %vm1078_vm5, %v28675_v21  ;;  %22796 = vmatpush3.bf16.msra.mxu0 %v28688_v41 }
0x1a81   : > { %22798 = vmatprep.subr.bf16.mxu0 %v28732_v55 }
0x1a83   : > { %20520 = vmatmul.mubr.msk.f32.gmra.mrb[236].mxu0 %vm1078_vm5, %v28664_v7 }
0x1a84   : > { %20522 = vmatprep.mubr.msk.f32.mxu0 %vm1078_vm5, %v28710_v45  ;;  %22800 = vmatpush3.bf16.msra.mxu0 %v28732_v55 }
0x1a85   : > { %22802 = vmatprep.subr.bf16.mxu0 %v28760_v26 }
0x1a87   : > { %20523 = vmatmul.mubr.msk.f32.gmra.mrb[238].mxu0 %vm1078_vm5, %v28698_v28 }
0x1a88   : > { %22804 = vmatpush3.bf16.msra.mxu0 %v28760_v26 }
0x1a89   : > { %22806 = vmatprep.subr.bf16.mxu0 %v31421_v22 }
0x1b0d   : > { %v20403_v49 = vpop.f32.mrb[216].mxu1 }
0x1b0e   : > { %v29340_v38 = vadd.f32 %v20403_v49, %v29179_v4  ;;  %v10261_v21 = vpop.f32.mrb[217].mxu1 }
0x1b0f   : > { %v29343_v41 = vadd.f32 %v10261_v21, %v29182_v52 }
0x1b11   : > { %v22661_v45 = vpack.c.bf16 %v29340_v38, %v29343_v41  ;;  %v20406_v55 = vpop.f32.mrb[218].mxu1 }
0x1b12   : > { %v29348_v32 = vadd.f32 %v20406_v55, %v29187_v53  ;;  %v10271_v18 = vpop.f32.mrb[219].mxu1 }
0x1b13   : > { %v29351_v26 = vadd.f32 %v10271_v18, %v29190_v46  ;;  %22662 = vmatprep.subr.bf16.mxu1 %v22661_v45 }
0x1b14   : > { %22664 = vmatpush3.bf16.msra.mxu1 %v22661_v45 }
0x1b15   : > { %v22665_v4 = vpack.c.bf16 %v29348_v32, %v29351_v26  ;;  %v20409_v60 = vpop.f32.mrb[220].mxu1 }
0x1b16   : > { %v29356_v52 = vadd.f32 %v20409_v60, %v29195_v31  ;;  %v10281_v8 = vpop.f32.mrb[221].mxu1 }
0x1b17   : > { %v29359_v17 = vadd.f32 %v10281_v8, %v29198_v16  ;;  %22666 = vmatprep.subr.bf16.mxu1 %v22665_v4 }
0x1b18   : > { %v20431_v53 = vpop.f32.mrb[224].mxu0  ;;  %22668 = vmatpush3.bf16.msra.mxu1 %v22665_v4 }
0x1b19   : > { %v22669_v46 = vpack.c.bf16 %v29356_v52, %v29359_v17  ;;  %v20412_v62 = vpop.f32.mrb[222].mxu1  ;;  %v10374_v14 = vpop.f32.mrb[225].mxu0 }
0x1b1a   : > { %v29364_v30 = vadd.f32 %v20412_v62, %v29203_v50  ;;  %v10291_v9 = vpop.f32.mrb[223].mxu1  ;;  %20457 = vmatprep.mubr.msk.f32.mxu1 %vm1078_vm5, %v10374_v14 }
0x1b1b   : > { %v10306_v31 = vadd.f32 %v10291_v9, %v29206_v61  ;;  %22670 = vmatprep.subr.bf16.mxu1 %v22669_v46 }
0x1b1c   : > { %v20434_v12 = vpop.f32.mrb[226].mxu0  ;;  %22672 = vmatpush3.bf16.msra.mxu1 %v22669_v46 }
0x1b1d   : > { %v22673_v16 = vpack.c.bf16 %v29364_v30, %v10306_v31  ;;  %v10384_v58 = vpop.f32.mrb[227].mxu0 }
0x1b1f   : > { %22674 = vmatprep.subr.bf16.mxu1 %v22673_v16 }
0x1b20   : > { %v20437_v37 = vpop.f32.mrb[228].mxu0  ;;  %22676 = vmatpush3.bf16.msra.mxu1 %v22673_v16 }
0x1b21   : > { %v10394_v42 = vpop.f32.mrb[229].mxu0 }
0x1b23   : > { %20458 = vmatmul.mubr.msk.f32.vlgmr.msra.gmra.mrb[224].mxu1 %vm1078_vm5, %v20431_v53 }
0x1b24   : > { %v20440_v49 = vpop.f32.mrb[230].mxu0  ;;  %20460 = vmatprep.mubr.msk.f32.mxu1 %vm1078_vm5, %v10384_v58 }
0x1b25   : > { %v10404_v50 = vpop.f32.mrb[231].mxu0 }
0x1b27   : > { %20461 = vmatmul.mubr.msk.f32.gmra.mrb[226].mxu1 %vm1078_vm5, %v20434_v12 }
0x1b28   : > { %20463 = vmatprep.mubr.msk.f32.mxu1 %vm1078_vm5, %v10394_v42 }
0x1b2b   : > { %20464 = vmatmul.mubr.msk.f32.gmra.mrb[228].mxu1 %vm1078_vm5, %v20437_v37 }
0x1b2c   : > { %20466 = vmatprep.mubr.msk.f32.mxu1 %vm1078_vm5, %v10404_v50 }
0x1b2f   : > { %20467 = vmatmul.mubr.msk.f32.gmra.mrb[230].mxu1 %vm1078_vm5, %v20440_v49 }
0x1b4e   : > { %v20515_v61 = vpop.f32.mrb[232].mxu0 }
0x1b4f   : > { %v10769_v21 = vpop.f32.mrb[233].mxu0 }
0x1b50   : > { %v22717_v45 = vpack.c.bf16 %v20515_v61, %v10769_v21 }
0x1b52   : > { %v20518_v55 = vpop.f32.mrb[234].mxu0  ;;  %22718 = vmatprep.subr.bf16.mxu1 %v22717_v45 }
0x1b53   : > { %v10779_v18 = vpop.f32.mrb[235].mxu0  ;;  %22720 = vmatpush3.bf16.msra.mxu1 %v22717_v45 }
0x1b54   : > { %v22721_v4 = vpack.c.bf16 %v20518_v55, %v10779_v18 }
0x1b56   : > { %v20521_v60 = vpop.f32.mrb[236].mxu0  ;;  %22722 = vmatprep.subr.bf16.mxu1 %v22721_v4 }
0x1b57   : > { %v10789_v8 = vpop.f32.mrb[237].mxu0  ;;  %22724 = vmatpush3.bf16.msra.mxu1 %v22721_v4 }
0x1b58   : > { %v22725_v53 = vpack.c.bf16 %v20521_v60, %v10789_v8 }
0x1b5a   : > { %v20524_v46 = vpop.f32.mrb[238].mxu0  ;;  %22726 = vmatprep.subr.bf16.mxu1 %v22725_v53 }
0x1b5b   : > { %v10799_v62 = vpop.f32.mrb[239].mxu0  ;;  %22728 = vmatpush3.bf16.msra.mxu1 %v22725_v53 }
0x1b5c   : > { %v22729_v14 = vpack.c.bf16 %v20524_v46, %v10799_v62 }
0x1b5e   : > { %22730 = vmatprep.subr.bf16.mxu1 %v22729_v14 }
0x1b5f   : > { %22732 = vmatpush3.bf16.msra.mxu1 %v22729_v14 }
0x1bf6   : > { %v20459_v9 = vpop.f32.mrb[224].mxu1 }
0x1bf7   : > { %v10503_v12 = vpop.f32.mrb[225].mxu1  ;;  %v10543_v58 = vadd.f32 %v20459_v9, %v29340_v38 }
0x1bf8   : > { %v10542_v16 = vadd.f32 %v10503_v12, %v29343_v41  ;;  %v31423_v12 = vld [vmem:[#allocation52_spill] sm:$0xff] }
0x1bfa   : > { %v20462_v37 = vpop.f32.mrb[226].mxu1  ;;  %20541 = vmatprep.mubr.msk.f32.mxu1 %vm1078_vm5, %v10542_v16  ;;  %v8914_v16 = vmul.f32 %v28994_v23, %v31423_v12  ;;  %v31427_v23 = vld [vmem:[#allocation59_spill] sm:$0xff] }
0x1bfb   : > { %v10513_v42 = vpop.f32.mrb[227].mxu1  ;;  %20542 = vmatmul.mubr.msk.f32.vlgmr.msra.gmra.mrb[232].mxu1 %vm1078_vm5, %v10543_v58  ;;  %v10545_v50 = vadd.f32 %v20462_v37, %v29348_v32  ;;  %v31422_v32 = vld [vmem:[#allocation46_spill] sm:$0xff]  ;;  %v31424_v58 = vld [vmem:[#allocation53_spill] sm:$0xff] }
0x1bfc   : > { %v10544_v49 = vadd.f32 %v10513_v42, %v29351_v26  ;;  %v8913_v4 = vmul.f32 %v31422_v32, %v28996_v34  ;;  %v8915_v37 = vmul.f32 %v31424_v58, %v29002_v19  ;;  %v31425_v42 = vld [vmem:[#allocation56_spill] sm:$0xff] }
0x1bfd   : > { %v31428_v19 = vld [vmem:[#allocation60_spill] sm:$0xff] }
0x1bfe   : > { %v20465_v61 = vpop.f32.mrb[228].mxu1  ;;  %20544 = vmatprep.mubr.msk.f32.mxu1 %vm1078_vm5, %v10544_v49  ;;  %v8916_v49 = vmul.f32 %v29000_v3, %v31425_v42  ;;  %v8919_v3 = vmul.f32 %v31428_v19, %v29014_v27  ;;  %v24040_v27 = vld [vmem:[%s25052_s9 + $0x20] sm:$0xff]  }
0x1bff   : > { %v10523_v21 = vpop.f32.mrb[229].mxu1  ;;  %20545 = vmatmul.mubr.msk.f32.gmra.mrb[234].mxu1 %vm1078_vm5, %v10545_v50  ;;  %v10547_v38 = vadd.f32 %v20465_v61, %v29356_v52  ;;  %v31426_v50 = vld [vmem:[#allocation57_spill] sm:$0xff] }
0x1c00   : > { %v10546_v41 = vadd.f32 %v10523_v21, %v29359_v17  ;;  %v8917_v61 = vmul.f32 %v31426_v50, %v29008_v15  ;;  %v8918_v21 = vmul.f32 %v29006_v13, %v31427_v23  ;;  %v31429_v15 = vld [vmem:[#allocation61_spill] sm:$0xff] }
0x1c01   : > { %v8920_v13 = vmul.f32 %v29012_v10, %v31429_v15  ;;  %v31431_v10 = vld [vmem:[#allocation72_spill] sm:$0xff] }
0x1c02   : > { %v20468_v45 = vpop.f32.mrb[230].mxu1  ;;  %20547 = vmatprep.mubr.msk.f32.mxu1 %vm1078_vm5, %v10546_v41  ;;  %v31430_v41 = vld [vmem:[#allocation74_spill] sm:$0xff] }
0x1c03   : > { %v10533_v55 = vpop.f32.mrb[231].mxu1  ;;  %20548 = vmatmul.mubr.msk.f32.gmra.mrb[236].mxu1 %vm1078_vm5, %v10547_v38  ;;  %v10549_v26 = vadd.f32 %v20468_v45, %v29364_v30  ;;  %v31434_v38 = vld [vmem:[#allocation97_spill] sm:$0xff] }
0x1c04   : > { %v10548_v18 = vadd.f32 %v10533_v55, %v10306_v31  ;;  %v31436_v55 = vld [vmem:[#allocation88_spill] sm:$0xff] }
0x1c06   : > { %20550 = vmatprep.mubr.msk.f32.mxu1 %vm1078_vm5, %v10548_v18  ;;  %v24042_v18 = vld [vmem:[%s25052_s9 + $0x30] sm:$0xff]  }
0x1c07   : > { %20551 = vmatmul.mubr.msk.f32.gmra.mrb[238].mxu1 %vm1078_vm5, %v10549_v26  ;;  %v31438_v26 = vld [vmem:[#allocation140_spill] sm:$0xff] }
0x1c08   : > { %20569 = vmatprep.mubr.msk.f32.mxu1 %vm1078_vm5, %v8913_v4  ;;  %v23733_v4 = vunpack.i.h.bf16 %v31438_v26 }
0x1cce   : > { %v20543_v17 = vpop.f32.mrb[232].mxu1 }
0x1ccf   : > { %v10898_v52 = vpop.f32.mrb[233].mxu1 }
0x1cd0   : > { %v22733_v60 = vpack.c.bf16 %v20543_v17, %v10898_v52  ;;  %11328 = vxpose.xlu1.b32.start [1/8] (short) (narrow) %v10898_v52, 64  ;;  %v31439_v52 = vld [vmem:[#allocation102_spill] sm:$0xff] }
0x1cd2   : > { %v20546_v8 = vpop.f32.mrb[234].mxu1  ;;  %22734 = vmatprep.subr.bf16.mxu1 %v22733_v60 }
0x1cd3   : > { %v10908_v53 = vpop.f32.mrb[235].mxu1  ;;  %22736 = vmatpush3.bf16.msra.mxu1 %v22733_v60  ;;  %v31440_v60 = vld [vmem:[#allocation103_spill] sm:$0xff] }
0x1cd4   : > { %v22737_v31 = vpack.c.bf16 %v20546_v8, %v10908_v53  ;;  %11329 = vxpose.xlu1.b32.cont [2/8] (short) (narrow) %v20543_v17, 64  ;;  %v23732_v17 = vunpack.i.l.bf16 %v31438_v26 }
0x1cd6   : > { %v20549_v30 = vpop.f32.mrb[236].mxu1  ;;  %22738 = vmatprep.subr.bf16.mxu1 %v22737_v31 }
0x1cd7   : > { %v10918_v46 = vpop.f32.mrb[237].mxu1  ;;  %22740 = vmatpush3.bf16.msra.mxu1 %v22737_v31 }
0x1cd8   : > { %v22741_v34 = vpack.c.bf16 %v20549_v30, %v10918_v46  ;;  %11330 = vxpose.xlu1.b32.cont [3/8] (short) (narrow) %v10908_v53, 64  ;;  %v31441_v53 = vld [vmem:[#allocation70_spill] sm:$0xff] }
0x1cd9   : > { %v9050_v31 = vmul.f32 %v31422_v32, %v31441_v53  ;;  %v31467_v53 = vld [vmem:[#allocation44_spill] sm:$0xff] }
0x1cda   : > { %v20552_v62 = vpop.f32.mrb[238].mxu1  ;;  %22742 = vmatprep.subr.bf16.mxu1 %v22741_v34 }
0x1cdb   : > { %v10928_v14 = vpop.f32.mrb[239].mxu1  ;;  %22744 = vmatpush3.bf16.msra.mxu1 %v22741_v34  ;;  %v31443_v34 = vld [vmem:[#allocation66_spill] sm:$0xff] }
0x1cdc   : > { %v22745_v9 = vpack.c.bf16 %v20552_v62, %v10928_v14  ;;  %11331 = vxpose.xlu1.b32.cont [4/8] (short) (narrow) %v20546_v8, 64  ;;  %v24043_v8 = vld [vmem:[%s25052_s9 + $0x38] sm:$0xff]  }
0x1cde   : > { %22746 = vmatprep.subr.bf16.mxu1 %v22745_v9 }
0x1cdf   : > { %22748 = vmatpush3.bf16.msra.mxu1 %v22745_v9 }
0x1ce0   : > { %11332 = vxpose.xlu1.b32.cont [5/8] (short) (narrow) %v10918_v46, 64  ;;  %22751 = vmatprep.subr.msk.bf16.mxu1 %vm25600_vm8, %v29242_v44  ;;  %v31442_v46 = vld [vmem:[#allocation104_spill] sm:$0xff] }
0x1ce2   : > { %20570 = vmatmul.mubr.msk.f32.vlgmr.msra.gmra.mrb[240].mxu1 %vm1078_vm5, %v8914_v16  ;;  %v31445_v16 = vld [vmem:[#allocation62_spill] sm:$0xff] }
0x1ce3   : > { %20572 = vmatprep.mubr.msk.f32.mxu1 %vm1078_vm5, %v8915_v37  ;;  %v9053_v37 = vmul.f32 %v31445_v16, %v31425_v42 }
0x1ce4   : > { %11333 = vxpose.xlu1.b32.cont [6/8] (short) (narrow) %v20549_v30, 64  ;;  %v29469_v30 = vpack.c.bf16 %v23733_v4, %v23732_v17  ;;  %v31463_v17 = vld [vmem:[#allocation92_spill] sm:$0xff] }
0x1ce6   : > { %20573 = vmatmul.mubr.msk.f32.gmra.mrb[242].mxu1 %vm1078_vm5, %v8916_v49  ;;  %v31446_v49 = vld [vmem:[#allocation125_spill] sm:$0xff] }
0x1ce7   : > { %20575 = vmatprep.mubr.msk.f32.mxu1 %vm1078_vm5, %v8917_v61  ;;  %v9054_v61 = vmul.f32 %v31426_v50, %v31446_v49 }
0x1ce8   : > { %11334 = vxpose.xlu1.b32.cont [7/8] (short) (narrow) %v10928_v14, 64  ;;  %22754 = vmatpush3.bf16.xpose.msk.msra.mxu1 %vm25600_vm8, %v29242_v44  ;;  %v31432_v44 = vld [vmem:[#allocation73_spill] sm:$0xff]  ;;  %v31444_v14 = vld [vmem:[#allocation68_spill] sm:$0xff] }
0x1ce9   : > { %22757 = vmatprep.subr.msk.bf16.mxu1 %vm25600_vm8, %v29266_v20  ;;  %v9052_v9 = vmul.f32 %v31424_v58, %v31444_v14  ;;  %v31470_v14 = vld [vmem:[#allocation116_spill] sm:$0xff]  ;;  %v31498_v58 = vld [vmem:[#allocation81_spill] sm:$0xff] }
0x1cea   : > { %20576 = vmatmul.mubr.msk.f32.gmra.mrb[244].mxu1 %vm1078_vm5, %v8918_v21  ;;  %v31447_v21 = vld [vmem:[#allocation71_spill] sm:$0xff] }
0x1ceb   : > { %20578 = vmatprep.mubr.msk.f32.mxu1 %vm1078_vm5, %v8919_v3  ;;  %v9055_v3 = vmul.f32 %v31447_v21, %v31427_v23  ;;  %v31494_v23 = vld [vmem:[#allocation75_spill] sm:$0xff] }
0x1cec   : > { %11335 = vxpose.xlu1.b32.end [8/8] (short) (narrow) %v20552_v62, 64  ;;  %v9051_v62 = vmul.f32 %v31443_v34, %v31423_v12 }
0x1cee   : > { %20579 = vmatmul.mubr.msk.f32.gmra.mrb[246].mxu1 %vm1078_vm5, %v8920_v13  ;;  %v31448_v13 = vld [vmem:[#allocation127_spill] sm:$0xff] }
0x1cef   : > { %20597 = vmatprep.mubr.msk.f32.mxu1 %vm1078_vm5, %v31430_v41  ;;  %v9056_v41 = vmul.f32 %v31428_v19, %v31448_v13  ;;  %v31493_v19 = vld [vmem:[#allocation78_spill] sm:$0xff] }
0x1cf0   : > { %22760 = vmatpush3.bf16.xpose.msk.msra.mxu1 %vm25600_vm8, %v29266_v20  ;;  %v24041_v20 = vld [vmem:[%s25052_s9 + $0x28] sm:$0xff]   ;;  %s24518_s9 = smov [#allocation21]  }
0x1cf1   : > { %22763 = vmatprep.subr.msk.bf16.mxu1 %vm25600_vm8, %v29291_v1  ;;  %s24378_s21 = sshll.u32 %s24518_s9, 4  ;;  %s24379_s21 = int_to_ptr.vmem [resolvable:$false] %s24378_s21 }
0x1cf2   : > { %s24380_s1 = scalar_lea.vmem %s24379_s21, 2048  ;;  %p24381_p9 = scmp.lt.s32.totalorder %s30556_s20, %s24379_s21 }
0x1cf3   : > { %p24382_p11 = scmp.lt.s32.totalorder %s24380_s1, %s24374_s19 }
0x1cf5   : > { %p24383_p6 = por %p24382_p11, %p24381_p9 }
0x1cf7   : > { %p24384_p8 = pnand %p24383_p6, %p24377_p0 }
0x1cf8   : > { %22766 = vmatpush3.bf16.xpose.msk.msra.mxu1 %vm25600_vm8, %v29291_v1  ;;  %v31433_v1 = vld [vmem:[#allocation94_spill] sm:$0xff] }
0x1cf9   : > { %22769 = vmatprep.subr.msk.bf16.mxu1 %vm25600_vm8, %v29305_v25  ;;  %v31435_v45 = vpack.i.bf16 %v31433_v1, %v31434_v38  ;;  %v31452_v1 = vld [vmem:[#allocation64_spill] sm:$0xff] }
0x1d00   : > { %22772 = vmatpush3.bf16.xpose.msk.msra.mxu1 %vm25600_vm8, %v29305_v25  ;;  %v31437_v25 = vld [vmem:[#allocation101_spill] sm:$0xff] }
0x1d01   : > { %22774 = vmatprep.subr.bf16.mxu1 %v24040_v27 }
0x1d07   : > { %20598 = vmatmul.mubr.msk.f32.vlgmr.msra.gmra.mrb[240].mxu1 %vm1078_vm5, %v31431_v10 }
0x1d08   : > { %20600 = vmatprep.mubr.msk.f32.mxu1 %vm1078_vm5, %v31432_v44  ;;  %22776 = vmatpush3.bf16.msra.mxu1 %v24040_v27  ;;  %v31449_v27 = vld [vmem:[#allocation126_spill] sm:$0xff] }
0x1d09   : > { %22778 = vmatprep.subr.bf16.mxu1 %v24041_v20 }
0x1d0a   : > { %23725 = vrot.lane.b32.xlu1 %v31435_v45, %s24517_s25  ;;  %v31455_v45 = vld [vmem:[#allocation86_spill] sm:$0xff] }
0x1d0b   : > { %20601 = vmatmul.mubr.msk.f32.gmra.mrb[242].mxu1 %vm1078_vm5, %v31436_v55 }
0x1d0c   : > { %20603 = vmatprep.mubr.msk.f32.mxu1 %vm1078_vm5, %v31437_v25  ;;  %22780 = vmatpush3.bf16.msra.mxu1 %v24041_v20  ;;  %v31451_v20 = vld [vmem:[#allocation105_spill] sm:$0xff]  ;;  %v31457_v25 = vld [vmem:[#allocation98_spill] sm:$0xff] }
0x1d0d   : > { %22782 = vmatprep.subr.bf16.mxu1 %v24042_v18  ;;  %v31453_v38 = vpack.i.bf16 %v31451_v20, %v31452_v1  ;;  %v31474_v20 = vld [vmem:[#allocation124_spill] sm:$0xff] }
0x1d0e   : > { %11692 = vrot.lane.b32.xlu1 %v31431_v10, %s24517_s25  ;;  %v9057_v10 = vmul.f32 %v31449_v27, %v31429_v15  ;;  %v31492_v15 = vld [vmem:[#allocation84_spill] sm:$0xff] }
0x1d0f   : > { %20604 = vmatmul.mubr.msk.f32.gmra.mrb[244].mxu1 %vm1078_vm5, %v31439_v52 }
0x1d10   : > { %20606 = vmatprep.mubr.msk.f32.mxu1 %vm1078_vm5, %v31440_v60  ;;  %22784 = vmatpush3.bf16.msra.mxu1 %v24042_v18  ;;  %v31458_v18 = vld [vmem:[#allocation100_spill] sm:$0xff] }
0x1d11   : > { %22786 = vmatprep.subr.bf16.mxu1 %v24043_v8  ;;  %v23754_v26 = vpack.i.bf16 %v31458_v18, %v31457_v25  ;;  %v24050_v18 = vld [vmem:[#allocation2 + $0x70] sm:$0xff] }
0x1d12   : > { %11694 = vrot.lane.b32.xlu1 %v31432_v44, %s24517_s25  ;;  %v31450_v44 = vld [vmem:[#allocation133_spill] sm:$0xff] }
0x1d13   : > { %20607 = vmatmul.mubr.msk.f32.gmra.mrb[246].mxu1 %vm1078_vm5, %v31442_v46 }
0x1d14   : > { %22788 = vmatpush3.bf16.msra.mxu1 %v24043_v8  ;;  %20625 = vmatprep.mubr.msk.f32.mxu1 %vm1078_vm5, %v9050_v31  ;;  %v31466_v8 = vld [vmem:[#allocation83_spill] sm:$0xff] }
0x1d15   : > { %22847 = vmatprep.subr.msk.bf16.mxu1 %vm25600_vm8, %v29469_v30  ;;  %v11501_v31 = vmul.f32 %v31467_v53, %v31466_v8 }
0x1d16   : > { %11696 = vrot.lane.b32.xlu1 %v31436_v55, %s24517_s25 }
0x1d17   : > { %20626 = vmatmul.mubr.msk.f32.vlgmr.msra.gmra.mrb[240].mxu1 %vm1078_vm5, %v9051_v62  ;;  %v31469_v62 = vld [vmem:[#allocation117_spill] sm:$0xff] }
0x1d18   : > { %20628 = vmatprep.mubr.msk.f32.mxu1 %vm1078_vm5, %v9052_v9  ;;  %v31471_v9 = vpack.i.bf16 %v31469_v62, %v31470_v14  ;;  %v31482_v62 = vld [vmem:[#allocation130_spill] sm:$0xff]  ;;  %v31483_v14 = vld [vmem:[#allocation131_spill] sm:$0xff] }
0x1d1a   : > { %11700 = vrot.lane.b32.xlu1 %v31439_v52, %s24517_s25  ;;  %v31464_v52 = vld [vmem:[#allocation89_spill] sm:$0xff] }
0x1d1b   : > { %20629 = vmatmul.mubr.msk.f32.gmra.mrb[242].mxu1 %vm1078_vm5, %v9053_v37  ;;  %v31465_v60 = vpack.i.bf16 %v31463_v17, %v31464_v52  ;;  %v31478_v17 = vld [vmem:[#allocation122_spill] sm:$0xff]  ;;  %v31479_v52 = vld [vmem:[#allocation120_spill] sm:$0xff] }
0x1d1c   : > { %20631 = vmatprep.mubr.msk.f32.mxu1 %vm1078_vm5, %v9054_v61  ;;  %v31472_v61 = vld [vmem:[#allocation121_spill] sm:$0xff]  ;;  %v23722_v8 = vunpack.i.l.bf16 %v31479_v52 }
0x1d1d   : > { %22850 = vmatpush3.bf16.xpose.msk.msra.mxu1 %vm25600_vm8, %v29469_v30 }
0x1d1e   : > { %11704 = vrot.lane.b32.xlu1 %v31442_v46, %s24517_s25  ;;  %v31468_v46 = vld [vmem:[#allocation67_spill] sm:$0xff] }
0x1d1f   : > { %20632 = vmatmul.mubr.msk.f32.gmra.mrb[244].mxu1 %vm1078_vm5, %v9055_v3  ;;  %v11502_v34 = vmul.f32 %v31467_v53, %v31468_v46  ;;  %v31481_v46 = vld [vmem:[#allocation129_spill] sm:$0xff] }
0x1d20   : > { %20634 = vmatprep.mubr.msk.f32.mxu1 %vm1078_vm5, %v9056_v41  ;;  %v31473_v41 = vld [vmem:[#allocation85_spill] sm:$0xff] }
0x1d21   : > { %v23799_v16 = vpack.i.bf16 %v11502_v34, %v11501_v31  ;;  %v22813_v3 = vpack.c.bf16 %v11502_v34, %v11501_v31  ;;  %v23713_v27 = vunpack.i.h.bf16 %v31473_v41  ;;  %v31480_v31 = vld [vmem:[#allocation128_spill] sm:$0xff] }
0x1d22   : > { %12014 = vrot.lane.b32.xlu1 %v28606_v35, %s24517_s25  ;;  %v31454_v35 = vld [vmem:[#allocation82_spill] sm:$0xff] }
0x1d23   : > { %20635 = vmatmul.mubr.msk.f32.gmra.mrb[246].mxu1 %vm1078_vm5, %v9057_v10  ;;  %v31456_v55 = vpack.i.bf16 %v31454_v35, %v31455_v45  ;;  %v23712_v10 = vunpack.i.l.bf16 %v31473_v41 }
0x1d24   : > { %20737 = vmatprep.mubr.msk.f32.mxu1 %vm1078_vm5, %v31450_v44 }
0x1d25   : > { %v22821_v1 = vpack.c.bf16 %v23713_v27, %v23712_v10 }
0x1d26   : > { %12018 = vrot.lane.b32.xlu1 %v28629_v56, %s24517_s25  ;;  %v31459_v56 = vld [vmem:[#allocation69_spill] sm:$0xff] }
0x1d2a   : > { %12022 = vrot.lane.b32.xlu1 %v28664_v7, %s24517_s25  ;;  %v31460_v7 = vld [vmem:[#allocation90_spill] sm:$0xff] }
0x1d2e   : > { %12026 = vrot.lane.b32.xlu1 %v28698_v28, %s24517_s25  ;;  %v31461_v28 = vld [vmem:[#allocation93_spill] sm:$0xff] }
0x1d2f   : > { %v31462_v4 = vpack.i.bf16 %v31460_v7, %v31461_v28  ;;  %v31476_v7 = vld [vmem:[#allocation119_spill] sm:$0xff] }
0x1d32   : > { %23735 = vrot.lane.b32.xlu1 %v31453_v38, %s24517_s25 }
0x1d36   : > { %23745 = vrot.lane.b32.xlu1 %v31456_v55, %s24517_s25  ;;  %v31475_v55 = vld [vmem:[#allocation65_spill] sm:$0xff] }
0x1d3a   : > { %23755 = vrot.lane.b32.xlu1 %v23754_v26, %s24517_s25  ;;  %v23718_v26 = vunpack.i.h.bf16 %v31475_v55 }
0x1d3e   : > { %7244 = vrot.lane.b32.xlu1 %v31459_v56, %s24517_s25  ;;  %v23717_v56 = vunpack.i.l.bf16 %v31475_v55 }
0x1d40   : > { %v22827_v28 = vpack.c.bf16 %v23718_v26, %v23717_v56  ;;  %v31489_v26 = vld [vmem:[#allocation141_spill] sm:$0xff] }
0x1d41   : > { %v23743_v56 = vunpack.i.h.bf16 %v31489_v26 }
0x1d42   : > { %23770 = vrot.lane.b32.xlu1 %v31462_v4, %s24517_s25  ;;  %v31477_v4 = vld [vmem:[#allocation123_spill] sm:$0xff] }
0x1d46   : > { %23780 = vrot.lane.b32.xlu1 %v31465_v60, %s24517_s25  ;;  %v23723_v60 = vunpack.i.h.bf16 %v31479_v52 }
0x1d48   : > { %v22833_v34 = vpack.c.bf16 %v23723_v60, %v23722_v8 }
0x1d4a   : > { %23790 = vrot.lane.b32.xlu1 %v31471_v9, %s24517_s25 }
0x1d4e   : > { %23800 = vrot.lane.b32.xlu1 %v23799_v16, %s24517_s25 }
0x1d50   : > { %v11344_v37 = vpop.trf.xlu1 }
0x1d51   : > { %20653 = vmatprep.mubr.msk.f32.mxu0 %vm1078_vm5, %v11344_v37 }
0x1d54   : > { %v11345_v49 = vpop.trf.xlu1 }
0x1d55   : > { %20654 = vmatmul.mubr.msk.f32.vlgmr.msra.gmra.mrb[240].mxu0 %vm1078_vm5, %v11345_v49  ;;  %v31484_v49 = vld [vmem:[#allocation132_spill] sm:$0xff] }
0x1d56   : > { %22808 = vmatpush3.bf16.msra.mxu0 %v31421_v22 }
0x1d57   : > { %22810 = vmatprep.subr.bf16.mxu0 %v31472_v61 }
0x1d58   : > { %v11346_v21 = vpop.trf.xlu1 }
0x1d59   : > { %20656 = vmatprep.mubr.msk.f32.mxu0 %vm1078_vm5, %v11346_v21 }
0x1d5a   : > { %22812 = vmatpush3.bf16.msra.mxu0 %v31472_v61 }
0x1d5b   : > { %22814 = vmatprep.subr.bf16.mxu0 %v22813_v3 }
0x1d5c   : > { %v11347_v13 = vpop.trf.xlu1 }
0x1d5d   : > { %20657 = vmatmul.mubr.msk.f32.gmra.mrb[242].mxu0 %vm1078_vm5, %v11347_v13 }
0x1d5e   : > { %22816 = vmatpush3.bf16.msra.mxu0 %v22813_v3 }
0x1d5f   : > { %22818 = vmatprep.subr.bf16.mxu0 %v31474_v20 }
0x1d60   : > { %v11348_v22 = vpop.trf.xlu1 }
0x1d61   : > { %20659 = vmatprep.mubr.msk.f32.mxu0 %vm1078_vm5, %v11348_v22 }
0x1d62   : > { %22820 = vmatpush3.bf16.msra.mxu0 %v31474_v20  ;;  %v31486_v20 = vld [vmem:[#allocation134_spill] sm:$0xff] }
0x1d63   : > { %22823 = vmatprep.subr.msk.bf16.mxu0 %vm25600_vm8, %v22821_v1 }
0x1d64   : > { %v11349_v38 = vpop.trf.xlu1 }
0x1d65   : > { %20660 = vmatmul.mubr.msk.f32.gmra.mrb[244].mxu0 %vm1078_vm5, %v11349_v38  ;;  %v31487_v38 = vld [vmem:[#allocation135_spill] sm:$0xff] }
0x1d68   : > { %v11350_v35 = vpop.trf.xlu1 }
0x1d69   : > { %20662 = vmatprep.mubr.msk.f32.mxu0 %vm1078_vm5, %v11350_v35  ;;  %v31488_v35 = vld [vmem:[#allocation136_spill] sm:$0xff] }
0x1d6c   : > { %v11351_v45 = vpop.trf.xlu1 }
0x1d6d   : > { %20663 = vmatmul.mubr.msk.f32.gmra.mrb[246].mxu0 %vm1078_vm5, %v11351_v45 }
0x1d6e   : > { %20681 = vmatprep.mubr.msk.f32.mxu0 %vm1078_vm5, %v31476_v7  ;;  %v23742_v7 = vunpack.i.l.bf16 %v31489_v26  ;;  %v24046_v26 = vld [vmem:[#allocation2 + $0x50] sm:$0xff] }
0x1d70   : > { %v29652_v60 = vpack.c.bf16 %v23743_v56, %v23742_v7  ;;  %v24047_v7 = vld [vmem:[#allocation2 + $0x58] sm:$0xff] }
0x1d71   : > { %20682 = vmatmul.mubr.msk.f32.vlgmr.msra.gmra.mrb[240].mxu0 %vm1078_vm5, %v31477_v4 }
0x1d72   : > { %22826 = vmatpush3.bf16.xpose.msk.msra.mxu0 %vm25600_vm8, %v22821_v1  ;;  %20684 = vmatprep.mubr.msk.f32.mxu0 %vm1078_vm5, %v31478_v17 }
0x1d73   : > { %22829 = vmatprep.subr.msk.bf16.mxu0 %vm25600_vm8, %v22827_v28 }
0x1d75   : > { %20685 = vmatmul.mubr.msk.f32.gmra.mrb[242].mxu0 %vm1078_vm5, %v31480_v31 }
0x1d76   : > { %20687 = vmatprep.mubr.msk.f32.mxu0 %vm1078_vm5, %v31481_v46 }
0x1d79   : > { %20688 = vmatmul.mubr.msk.f32.gmra.mrb[244].mxu0 %vm1078_vm5, %v31482_v62 }
0x1d7a   : > { %22832 = vmatpush3.bf16.xpose.msk.msra.mxu0 %vm25600_vm8, %v22827_v28  ;;  %20690 = vmatprep.mubr.msk.f32.mxu0 %vm1078_vm5, %v31483_v14 }
0x1d7b   : > { %22835 = vmatprep.subr.msk.bf16.mxu0 %vm25600_vm8, %v22833_v34 }
0x1d7c   : > { %v23726_v9 = vpop.permute.xlu1 %23725 }
0x1d7d   : > { %v23728_v16 = vunpack.i.h.bf16 %v23726_v9  ;;  %v23727_v37 = vunpack.i.l.bf16 %v23726_v9  ;;  %20691 = vmatmul.mubr.msk.f32.gmra.mrb[246].mxu0 %vm1078_vm5, %v31484_v49 }
0x1d7e   : > { %20709 = vmatprep.mubr.msk.f32.mxu0 %vm1078_vm5, %v31450_v44  ;;  %v31490_v44 = vld [vmem:[#allocation137_spill] sm:$0xff] }
0x1d7f   : > { %v22839_v61 = vpack.c.bf16 %v23728_v16, %v23727_v37  ;;  %v24044_v37 = vld [vmem:[#allocation2 + $0x40] sm:$0xff] }
0x1d80   : > { %v29594_v21 = vpop.permute.xlu1 %11692 }
0x1d82   : > { %22838 = vmatpush3.bf16.xpose.msk.msra.mxu0 %vm25600_vm8, %v22833_v34 }
0x1d83   : > { %22841 = vmatprep.subr.msk.bf16.mxu0 %vm25600_vm8, %v22839_v61 }
0x1d84   : > { %v29600_v3 = vpop.permute.xlu1 %11694 }
0x1d88   : > { %v29602_v13 = vpop.permute.xlu1 %11696 }
0x1d8a   : > { %22844 = vmatpush3.bf16.xpose.msk.msra.mxu0 %vm25600_vm8, %v22839_v61 }
0x1d8b   : > { %22871 = vmatprep.subr.msk.bf16.mxu0 %vm25600_vm8, %v22821_v1 }
0x1d8c   : > { %v29608_v41 = vpop.permute.xlu1 %11700 }
0x1d90   : > { %v29610_v27 = vpop.permute.xlu1 %11704 }
0x1d91   : > { %31485 = vst [vmem:[#allocation43_spill] sm:$0xff] %v29610_v27  ;;  %20710 = vmatmul.mubr.msk.f32.vlgmr.msra.gmra.mrb[248].mxu0 %vm1078_vm5, %v29594_v21 }
0x1d92   : > { %20712 = vmatprep.mubr.msk.f32.mxu0 %vm1078_vm5, %v29600_v3  ;;  %22874 = vmatpush3.bf16.xpose.msk.msra.mxu0 %vm25600_vm8, %v22821_v1 }
0x1d93   : > { %22877 = vmatprep.subr.msk.bf16.mxu0 %vm25600_vm8, %v22827_v28 }
0x1d94   : > { %v29620_v10 = vpop.permute.xlu1 %12014 }
0x1d95   : > { %20713 = vmatmul.mubr.msk.f32.gmra.mrb[250].mxu0 %vm1078_vm5, %v29602_v13 }
0x1d96   : > { %20715 = vmatprep.mubr.msk.f32.mxu0 %vm1078_vm5, %v31486_v20 }
0x1d98   : > { %v29626_v22 = vpop.permute.xlu1 %12018 }
0x1d99   : > { %20716 = vmatmul.mubr.msk.f32.gmra.mrb[252].mxu0 %vm1078_vm5, %v29608_v41 }
0x1d9a   : > { %20718 = vmatprep.mubr.msk.f32.mxu0 %vm1078_vm5, %v31487_v38  ;;  %22880 = vmatpush3.bf16.xpose.msk.msra.mxu0 %vm25600_vm8, %v22827_v28 }
0x1d9b   : > { %22883 = vmatprep.subr.msk.bf16.mxu0 %vm25600_vm8, %v22833_v34 }
0x1d9c   : > { %v29636_v1 = vpop.permute.xlu1 %12022 }
0x1d9d   : > { %20719 = vmatmul.mubr.msk.f32.gmra.mrb[254].mxu0 %vm1078_vm5, %v29610_v27 }
0x1d9e   : > { %20765 = vmatprep.mubr.msk.f32.mxu0 %vm1078_vm5, %v31488_v35 }
0x1da0   : > { %v29642_v45 = vpop.permute.xlu1 %12026 }
0x1da2   : > { %22886 = vmatpush3.bf16.xpose.msk.msra.mxu0 %vm25600_vm8, %v22833_v34 }
0x1da3   : > { %22889 = vmatprep.subr.msk.bf16.mxu0 %vm25600_vm8, %v22839_v61 }
0x1da4   : > { %v23736_v55 = vpop.permute.xlu1 %23735 }
0x1da5   : > { %v23738_v28 = vunpack.i.h.bf16 %v23736_v55  ;;  %v23737_v4 = vunpack.i.l.bf16 %v23736_v55 }
0x1da7   : > { %v29650_v17 = vpack.c.bf16 %v23738_v28, %v23737_v4  ;;  %v24048_v4 = vld [vmem:[#allocation2 + $0x60] sm:$0xff] }
0x1da8   : > { %v23746_v52 = vpop.permute.xlu1 %23745 }
0x1da9   : > { %22853 = vmatprep.subr.msk.bf16.mxu1 %vm25600_vm8, %v29650_v17  ;;  %v23748_v8 = vunpack.i.h.bf16 %v23746_v52  ;;  %v23747_v31 = vunpack.i.l.bf16 %v23746_v52 }
0x1daa   : > { %22892 = vmatpush3.bf16.xpose.msk.msra.mxu0 %vm25600_vm8, %v22839_v61  ;;  %22856 = vmatpush3.bf16.xpose.msk.msra.mxu1 %vm25600_vm8, %v29650_v17  ;;  %v24045_v61 = vld [vmem:[#allocation2 + $0x48] sm:$0xff] }
0x1dab   : > { %22859 = vmatprep.subr.msk.bf16.mxu1 %vm25600_vm8, %v29652_v60  ;;  %v29667_v9 = vpack.c.bf16 %v23748_v8, %v23747_v31  ;;  %v24051_v8 = vld [vmem:[#allocation2 + $0x78] sm:$0xff] }
0x1dac   : > { %v23756_v46 = vpop.permute.xlu1 %23755 }
0x1dad   : > { %v23758_v34 = vunpack.i.h.bf16 %v23756_v46  ;;  %v23757_v62 = vunpack.i.l.bf16 %v23756_v46  ;;  %v24049_v46 = vld [vmem:[#allocation2 + $0x68] sm:$0xff] }
0x1daf   : > { %v29665_v14 = vpack.c.bf16 %v23758_v34, %v23757_v62  ;;  %14517 = vxpose.xlu0.b32.cont [3/8] (short) (narrow) %v23757_v62, 64 }
0x1db0   : > { %v7245_v16 = vpop.permute.xlu1 %7244 }
0x1db1   : > { %v7247_v49 = vmul.f32 %v24044_v37, %v7245_v16  ;;  %v7248_v55 = vmul.f32 %v24045_v61, %v7245_v16  ;;  %v7249_v56 = vmul.f32 %v24046_v26, %v7245_v16  ;;  %v7250_v28 = vmul.f32 %v24047_v7, %v7245_v16  ;;  %20766 = vmatmul.mubr.msk.f32.vlgmr.msra.gmra.mrb[0].mxu0 %vm1078_vm5, %v29620_v10  ;;  %v31491_v37 = vld [vmem:[#allocation76_spill] sm:$0xff] }
0x1db2   : > { %v7251_v52 = vmul.f32 %v24048_v4, %v7245_v16  ;;  %v7252_v25 = vmul.f32 %v24049_v46, %v7245_v16  ;;  %v7253_v62 = vmul.f32 %v24050_v18, %v7245_v16  ;;  %v7254_v31 = vmul.f32 %v24051_v8, %v7245_v16  ;;  %20768 = vmatprep.mubr.msk.f32.mxu0 %vm1078_vm5, %v31490_v44  ;;  %v31495_v4 = vld [vmem:[#allocation79_spill] sm:$0xff]  ;;  %v31496_v18 = vld [vmem:[#allocation77_spill] sm:$0xff] }
0x1db3   : > { %v23294_v61 = vadd.f32 %v31491_v37, %v7247_v49  ;;  %v23293_v26 = vadd.f32 %v31492_v15, %v7248_v55  ;;  %v23296_v7 = vadd.f32 %v31493_v19, %v7249_v56  ;;  %v23295_v50 = vadd.f32 %v31494_v23, %v7250_v28  ;;  %22862 = vmatpush3.bf16.xpose.msk.msra.mxu1 %vm25600_vm8, %v29652_v60  ;;  %v31497_v16 = vld [vmem:[#allocation87_spill] sm:$0xff]  ;;  %v29693_v23 = vpop.permute.xlu0 %23760 }
0x1db4   : > { %v23298_v46 = vadd.f32 %v31495_v4, %v7251_v52  ;;  %v23297_v42 = vadd.f32 %v31496_v18, %v7252_v25  ;;  %v23300_v8 = vadd.f32 %v31497_v16, %v7253_v62  ;;  %v23299_v12 = vadd.f32 %v31498_v58, %v7254_v31  ;;  %22865 = vmatprep.subr.msk.bf16.mxu1 %vm25600_vm8, %v29667_v9  ;;  %v31499_v58 = vld [vmem:[#allocation138_spill] sm:$0xff] }
0x1db5   : > { %7657 = vst.msk [vmem:[#allocation2 + $0x40] sm:$0xff] %vm1078_vm5, %v23294_v61  ;;  %7658 = vst.msk [vmem:[#allocation2 + $0x48] sm:$0xff] %vm1078_vm5, %v23293_v26  ;;  %20769 = vmatmul.mubr.msk.f32.gmra.mrb[2].mxu0 %vm1078_vm5, %v29626_v22  ;;  %14518 = vxpose.xlu0.b32.cont [4/8] (short) (narrow) %v23758_v34, 64  ;;  %v30934_v19 = vunpack.i.l.bf16 %v29693_v23  ;;  %v11313_v28 = vmul.f32 %v31467_v53, %v29233_v48  ;;  %v11312_v62 = vmul.f32 %v31467_v53, %v29231_v51 }
0x1db6   : > { %7659 = vst.msk [vmem:[#allocation2 + $0x50] sm:$0xff] %vm1078_vm5, %v23296_v7  ;;  %7660 = vst.msk [vmem:[#allocation2 + $0x58] sm:$0xff] %vm1078_vm5, %v23295_v50  ;;  %20771 = vmatprep.mubr.msk.f32.mxu0 %vm1078_vm5, %v31499_v58  ;;  %v31500_v50 = vld [vmem:[#allocation139_spill] sm:$0xff]  ;;  %v11315_v26 = vmul.f32 %v31467_v53, %v29258_v2  ;;  %v11314_v4 = vmul.f32 %v31467_v53, %v29256_v40  ;;  %v11317_v51 = vmul.f32 %v31467_v53, %v29284_v24 }
0x1db7   : > { %7661 = vst.msk [vmem:[#allocation2 + $0x60] sm:$0xff] %vm1078_vm5, %v23298_v46  ;;  %7662 = vst.msk [vmem:[#allocation2 + $0x68] sm:$0xff] %vm1078_vm5, %v23297_v42  ;;  %v30933_v42 = vunpack.i.h.bf16 %v29693_v23  ;;  %v11316_v2 = vmul.f32 %v31467_v53, %v29282_v59  ;;  %v11319_v40 = vmul.f32 %v31467_v53, %v29301_v36  ;;  %v11318_v24 = vmul.f32 %v31467_v53, %v29299_v63 }
0x1db8   : > { %7663 = vst.msk [vmem:[#allocation2 + $0x70] sm:$0xff] %vm1078_vm5, %v23300_v8  ;;  %7664 = vst.msk [vmem:[#allocation2 + $0x78] sm:$0xff] %vm1078_vm5, %v23299_v12  ;;  %v29719_v12 = vpop.permute.xlu0 %23765 }
0x1db9   : > { %20772 = vmatmul.mubr.msk.f32.gmra.mrb[4].mxu0 %vm1078_vm5, %v29636_v1  ;;  %14519 = vxpose.xlu0.b32.cont [5/8] (short) (narrow) %v30934_v19, 64  ;;  %v30932_v15 = vunpack.i.l.bf16 %v29719_v12  ;;  %v30931_v25 = vunpack.i.h.bf16 %v29719_v12 }
0x1dba   : > { %20774 = vmatprep.mubr.msk.f32.mxu0 %vm1078_vm5, %v31500_v50 }
0x1dbb   : > { %22868 = vmatpush3.bf16.xpose.msk.msra.mxu1 %vm25600_vm8, %v29667_v9 }
0x1dbc   : > { %22895 = vmatprep.subr.msk.bf16.mxu1 %vm25600_vm8, %v29469_v30 }
0x1dbd   : > { %20775 = vmatmul.mubr.msk.f32.gmra.mrb[6].mxu0 %vm1078_vm5, %v29642_v45  ;;  %14520 = vxpose.xlu0.b32.cont [6/8] (short) (narrow) %v30933_v42, 64 }
0x1dc1   : > { %14521 = vxpose.xlu0.b32.cont [7/8] (short) (narrow) %v30932_v15, 64 }
0x1dc2   : > { %20738 = vmatmul.mubr.msk.f32.vlgmr.msra.gmra.mrb[248].mxu1 %vm1078_vm5, %v29594_v21 }
0x1dc3   : > { %20740 = vmatprep.mubr.msk.f32.mxu1 %vm1078_vm5, %v29600_v3  ;;  %22898 = vmatpush3.bf16.xpose.msk.msra.mxu1 %vm25600_vm8, %v29469_v30 }
0x1dc4   : > { %22901 = vmatprep.subr.msk.bf16.mxu1 %vm25600_vm8, %v29650_v17 }
0x1dc5   : > { %14522 = vxpose.xlu0.b32.end [8/8] (short) (narrow) %v30931_v25, 64 }
0x1dc6   : > { %20741 = vmatmul.mubr.msk.f32.gmra.mrb[250].mxu1 %vm1078_vm5, %v29602_v13 }
0x1dc7   : > { %20743 = vmatprep.mubr.msk.f32.mxu1 %vm1078_vm5, %v31486_v20 }
0x1dca   : > { %20744 = vmatmul.mubr.msk.f32.gmra.mrb[252].mxu1 %vm1078_vm5, %v29608_v41 }
0x1dcb   : > { %20746 = vmatprep.mubr.msk.f32.mxu1 %vm1078_vm5, %v31487_v38  ;;  %22904 = vmatpush3.bf16.xpose.msk.msra.mxu1 %vm25600_vm8, %v29650_v17 }
0x1dcc   : > { %22907 = vmatprep.subr.msk.bf16.mxu1 %vm25600_vm8, %v29652_v60 }
0x1dce   : > { %20747 = vmatmul.mubr.msk.f32.gmra.mrb[254].mxu1 %vm1078_vm5, %v29610_v27 }
0x1dcf   : > { %20793 = vmatprep.mubr.msk.f32.mxu1 %vm1078_vm5, %v31488_v35 }
0x1dd3   : > { %22910 = vmatpush3.bf16.xpose.msk.msra.mxu1 %vm25600_vm8, %v29652_v60 }
0x1dd4   : > { %22913 = vmatprep.subr.msk.bf16.mxu1 %vm25600_vm8, %v29667_v9 }
0x1ddb   : > { %22916 = vmatpush3.bf16.xpose.msk.msra.mxu1 %vm25600_vm8, %v29667_v9 }
0x1de2   : > { %20794 = vmatmul.mubr.msk.f32.vlgmr.msra.gmra.mrb[0].mxu1 %vm1078_vm5, %v29620_v10 }
0x1de3   : > { %20796 = vmatprep.mubr.msk.f32.mxu1 %vm1078_vm5, %v31490_v44 }
0x1de6   : > { %20797 = vmatmul.mubr.msk.f32.gmra.mrb[2].mxu1 %vm1078_vm5, %v29626_v22 }
0x1de7   : > { %20799 = vmatprep.mubr.msk.f32.mxu1 %vm1078_vm5, %v31499_v58 }
0x1dea   : > { %20800 = vmatmul.mubr.msk.f32.gmra.mrb[4].mxu1 %vm1078_vm5, %v29636_v1  ;;  %v29774_v30 = vpop.f32.mrb[240].mxu1 }
0x1deb   : > { %31501 = vst [vmem:[#allocation50_spill] sm:$0xff] %v29774_v30  ;;  %20802 = vmatprep.mubr.msk.f32.mxu1 %vm1078_vm5, %v31500_v50  ;;  %v29778_v17 = vpop.f32.mrb[241].mxu1 }
0x1dec   : > { %31502 = vst [vmem:[#allocation108_spill] sm:$0xff] %v29778_v17 }
0x1dee   : > { %20803 = vmatmul.mubr.msk.f32.gmra.mrb[6].mxu1 %vm1078_vm5, %v29642_v45  ;;  %v29782_v60 = vpop.f32.mrb[242].mxu1 }
0x1def   : > { %31503 = vst [vmem:[#allocation109_spill] sm:$0xff] %v29782_v60  ;;  %v29784_v34 = vpop.f32.mrb[243].mxu1 }
0x1df0   : > { %31504 = vst [vmem:[#allocation110_spill] sm:$0xff] %v29784_v34 }
0x1df2   : > { %v29786_v9 = vpop.f32.mrb[244].mxu1 }
0x1df3   : > { %31505 = vst [vmem:[#allocation111_spill] sm:$0xff] %v29786_v9  ;;  %v29788_v49 = vpop.f32.mrb[245].mxu1 }
0x1df4   : > { %31506 = vst [vmem:[#allocation55_spill] sm:$0xff] %v29788_v49 }
0x1df6   : > { %v29790_v55 = vpop.f32.mrb[246].mxu1 }
0x1df7   : > { %31507 = vst [vmem:[#allocation114_spill] sm:$0xff] %v29790_v55  ;;  %v29792_v56 = vpop.f32.mrb[247].mxu1 }
0x1df8   : > { %31508 = vst [vmem:[#allocation113_spill] sm:$0xff] %v29792_v56  ;;  %v31513_v56 = vld [vmem:[#allocation112_spill] sm:$0xff] }
0x1e44   : > { %v20683_v52 = vpop.f32.mrb[240].mxu0 }
0x1e45   : > { %v23301_v31 = vadd.f32 %v20683_v52, %v11313_v28  ;;  %v11627_v37 = vpop.f32.mrb[241].mxu0 }
0x1e46   : > { %v23302_v61 = vadd.f32 %v11627_v37, %v11312_v62 }
0x1e47   : > { %11675 = vst.msk [vmem:[#allocation2 + $0x8] sm:$0xff] %vm1078_vm5, %v23301_v31 }
0x1e48   : > { %11674 = vst.msk [vmem:[#allocation2] sm:$0xff] %vm1078_vm5, %v23302_v61  ;;  %v20686_v7 = vpop.f32.mrb[242].mxu0 }
0x1e49   : > { %v23303_v46 = vadd.f32 %v20686_v7, %v11315_v26  ;;  %v11637_v48 = vpop.f32.mrb[243].mxu0 }
0x1e4a   : > { %v23304_v18 = vadd.f32 %v11637_v48, %v11314_v4 }
0x1e4b   : > { %11677 = vst.msk [vmem:[#allocation2 + $0x18] sm:$0xff] %vm1078_vm5, %v23303_v46 }
0x1e4c   : > { %11676 = vst.msk [vmem:[#allocation2 + $0x10] sm:$0xff] %vm1078_vm5, %v23304_v18  ;;  %v20689_v16 = vpop.f32.mrb[244].mxu0 }
0x1e4d   : > { %v23305_v8 = vadd.f32 %v20689_v16, %v11317_v51  ;;  %v11647_v28 = vpop.f32.mrb[245].mxu0 }
0x1e4e   : > { %v23306_v52 = vadd.f32 %v11647_v28, %v11316_v2 }
0x1e4f   : > { %11679 = vst.msk [vmem:[#allocation2 + $0x28] sm:$0xff] %vm1078_vm5, %v23305_v8  ;;  %v31509_v8 = vld [vmem:[#allocation48_spill] sm:$0xff] }
0x1e50   : > { %11678 = vst.msk [vmem:[#allocation2 + $0x20] sm:$0xff] %vm1078_vm5, %v23306_v52  ;;  %v20692_v62 = vpop.f32.mrb[246].mxu0  ;;  %v31510_v52 = vld [vmem:[#allocation49_spill] sm:$0xff] }
0x1e51   : > { %v23307_v31 = vadd.f32 %v20692_v62, %v11319_v40  ;;  %v11657_v37 = vpop.f32.mrb[247].mxu0 }
0x1e52   : > { %v23308_v61 = vadd.f32 %v11657_v37, %v11318_v24 }
0x1e53   : > { %11681 = vst.msk [vmem:[#allocation2 + $0x38] sm:$0xff] %vm1078_vm5, %v23307_v31 }
0x1e54   : > { %11680 = vst.msk [vmem:[#allocation2 + $0x30] sm:$0xff] %vm1078_vm5, %v23308_v61 }
0x1e64   : > { %v29818_v59 = vpop.f32.mrb[248].mxu0 }
0x1e65   : > { %v29820_v26 = vpop.f32.mrb[249].mxu0 }
0x1e68   : > { %v29822_v7 = vpop.f32.mrb[250].mxu0 }
0x1e69   : > { %v29824_v36 = vpop.f32.mrb[251].mxu0 }
0x1e6c   : > { %v29826_v4 = vpop.f32.mrb[252].mxu0 }
0x1e6d   : > { %v29828_v46 = vpop.f32.mrb[253].mxu0 }
0x1e70   : > { %v29830_v63 = vpop.f32.mrb[254].mxu0 }
0x1e71   : > { %v29832_v48 = vpop.f32.mrb[255].mxu0 }
0x1e84   : > { %v20767_v18 = vpop.f32.mrb[0].mxu0 }
0x1e85   : > { %v12150_v51 = vmul.f32 %v20767_v18, %v31405_v43  ;;  %v12110_v16 = vpop.f32.mrb[1].mxu0 }
0x1e86   : > { %v12149_v2 = vmul.f32 %v31406_v11, %v12110_v16  ;;  %v31511_v16 = vld [vmem:[#allocation54_spill] sm:$0xff] }
0x1e87   : > { %v29837_v28 = vadd.f32 %v31509_v8, %v12150_v51  ;;  %v31512_v8 = vld [vmem:[#allocation51_spill] sm:$0xff] }
0x1e88   : > { %v29840_v40 = vadd.f32 %v31510_v52, %v12149_v2  ;;  %v20770_v62 = vpop.f32.mrb[2].mxu0  ;;  %20821 = vmatprep.mubr.msk.f32.mxu0 %vm1078_vm5, %v12149_v2  ;;  %v22917_v24 = vpack.c.bf16 %v12150_v51, %v12149_v2 }
0x1e89   : > { %v12152_v31 = vmul.f32 %v20770_v62, %v31409_v29  ;;  %v12120_v37 = vpop.f32.mrb[3].mxu0 }
0x1e8a   : > { %v12151_v61 = vmul.f32 %v31410_v0, %v12120_v37  ;;  %22918 = vmatprep.subr.bf16.mxu0 %v22917_v24  ;;  %v22933_v18 = vpack.c.bf16 %v29837_v28, %v29840_v40 }
0x1e8b   : > { %v29848_v25 = vadd.f32 %v31511_v16, %v12152_v31  ;;  %22920 = vmatpush3.bf16.msra.mxu0 %v22917_v24  ;;  %v31514_v24 = vld [vmem:[#allocation58_spill] sm:$0xff] }
0x1e8c   : > { %v29851_v52 = vadd.f32 %v31512_v8, %v12151_v61  ;;  %v20773_v15 = vpop.f32.mrb[4].mxu0  ;;  %22934 = vmatprep.subr.bf16.mxu1 %v22933_v18  ;;  %v22921_v42 = vpack.c.bf16 %v12152_v31, %v12151_v61 }
0x1e8d   : > { %v12154_v2 = vmul.f32 %v20773_v15, %v31413_v33  ;;  %v12130_v62 = vpop.f32.mrb[5].mxu0  ;;  %22936 = vmatpush3.bf16.msra.mxu1 %v22933_v18 }
0x1e8e   : > { %v12153_v37 = vmul.f32 %v31414_v54, %v12130_v62  ;;  %22922 = vmatprep.subr.bf16.mxu0 %v22921_v42  ;;  %v22937_v19 = vpack.c.bf16 %v29848_v25, %v29851_v52 }
0x1e8f   : > { %v29858_v16 = vadd.f32 %v31513_v56, %v12154_v2  ;;  %22924 = vmatpush3.bf16.msra.mxu0 %v22921_v42 }
0x1e90   : > { %v29861_v8 = vadd.f32 %v31514_v24, %v12153_v37  ;;  %v20776_v55 = vpop.f32.mrb[6].mxu0  ;;  %22938 = vmatprep.subr.bf16.mxu1 %v22937_v19  ;;  %v22925_v49 = vpack.c.bf16 %v12154_v2, %v12153_v37 }
0x1e91   : > { %v12156_v15 = vmul.f32 %v20776_v55, %v31417_v57  ;;  %v12140_v9 = vpop.f32.mrb[7].mxu0  ;;  %22940 = vmatpush3.bf16.msra.mxu1 %v22937_v19 }
0x1e92   : > { %v12155_v18 = vmul.f32 %v31418_v6, %v12140_v9  ;;  %22926 = vmatprep.subr.bf16.mxu0 %v22925_v49  ;;  %v22941_v62 = vpack.c.bf16 %v29858_v16, %v29861_v8 }
0x1e93   : > { %v29868_v56 = vadd.f32 %v31419_v39, %v12156_v15  ;;  %22928 = vmatpush3.bf16.msra.mxu0 %v22925_v49 }
0x1e94   : > { %v29871_v42 = vadd.f32 %v31420_v47, %v12155_v18  ;;  %22942 = vmatprep.subr.bf16.mxu1 %v22941_v62  ;;  %v22929_v24 = vpack.c.bf16 %v12156_v15, %v12155_v18 }
0x1e95   : > { %v29873_v34 = vpop.f32.mrb[248].mxu1  ;;  %22944 = vmatpush3.bf16.msra.mxu1 %v22941_v62 }
0x1e96   : > { %31515 = vst [vmem:[#allocation115_spill] sm:$0xff] %v29873_v34  ;;  %v29875_v55 = vpop.f32.mrb[249].mxu1  ;;  %22930 = vmatprep.subr.bf16.mxu0 %v22929_v24  ;;  %v22945_v19 = vpack.c.bf16 %v29868_v56, %v29871_v42 }
0x1e97   : > { %22932 = vmatpush3.bf16.msra.mxu0 %v22929_v24  ;;  %v12004_v5 = vmul.f32 %v31422_v32, %v29875_v55 }
0x1e98   : > { %22946 = vmatprep.subr.bf16.mxu1 %v22945_v19 }
0x1e99   : > { %v29879_v9 = vpop.f32.mrb[250].mxu1  ;;  %22948 = vmatpush3.bf16.msra.mxu1 %v22945_v19 }
0x1e9a   : > { %31516 = vst [vmem:[#allocation118_spill] sm:$0xff] %v29879_v9  ;;  %v29881_v39 = vpop.f32.mrb[251].mxu1  ;;  %20822 = vmatmul.mubr.msk.f32.vlgmr.msra.gmra.mrb[8].mxu0 %vm1078_vm5, %v12150_v51 }
0x1e9b   : > { %31517 = vst [vmem:[#allocation46_spill] sm:$0xff] %v29881_v39  ;;  %20824 = vmatprep.mubr.msk.f32.mxu0 %vm1078_vm5, %v12151_v61 }
0x1e9d   : > { %v29885_v47 = vpop.f32.mrb[252].mxu1 }
0x1e9e   : > { %31518 = vst [vmem:[#allocation74_spill] sm:$0xff] %v29885_v47  ;;  %v29887_v49 = vpop.f32.mrb[253].mxu1  ;;  %20825 = vmatmul.mubr.msk.f32.gmra.mrb[10].mxu0 %vm1078_vm5, %v12152_v31 }
0x1e9f   : > { %31519 = vst [vmem:[#allocation72_spill] sm:$0xff] %v29887_v49  ;;  %20827 = vmatprep.mubr.msk.f32.mxu0 %vm1078_vm5, %v12153_v37 }
0x1ea1   : > { %v29891_v62 = vpop.f32.mrb[254].mxu1 }
0x1ea2   : > { %31520 = vst [vmem:[#allocation73_spill] sm:$0xff] %v29891_v62  ;;  %v29893_v24 = vpop.f32.mrb[255].mxu1  ;;  %20828 = vmatmul.mubr.msk.f32.gmra.mrb[12].mxu0 %vm1078_vm5, %v12154_v2 }
0x1ea3   : > { %31521 = vst [vmem:[#allocation94_spill] sm:$0xff] %v29893_v24  ;;  %20830 = vmatprep.mubr.msk.f32.mxu0 %vm1078_vm5, %v12155_v18 }
0x1ea6   : > { %20831 = vmatmul.mubr.msk.f32.gmra.mrb[14].mxu0 %vm1078_vm5, %v12156_v15 }
0x1eb5   : > { %v29898_v51 = vpop.f32.mrb[0].mxu1 }
0x1eb6   : > { %v29900_v61 = vpop.f32.mrb[1].mxu1 }
0x1eb9   : > { %v29902_v19 = vpop.f32.mrb[2].mxu1 }
0x1eba   : > { %v29904_v60 = vpop.f32.mrb[3].mxu1 }
0x1ebd   : > { %v29906_v31 = vpop.f32.mrb[4].mxu1 }
0x1ebe   : > { %v29908_v37 = vpop.f32.mrb[5].mxu1 }
0x1ec1   : > { %v29910_v30 = vpop.f32.mrb[6].mxu1 }
0x1ec2   : > { %v29912_v17 = vpop.f32.mrb[7].mxu1 }
0x1f6d   : > { %v20823_v2 = vpop.f32.mrb[8].mxu0 }
0x1f6e   : > { %v12368_v18 = vpop.f32.mrb[9].mxu0 }
0x1f6f   : > { %v22949_v53 = vpack.c.bf16 %v20823_v2, %v12368_v18  ;;  %20849 = vmatprep.mubr.msk.f32.mxu1 %vm1078_vm5, %v12368_v18  ;;  %20877 = vmatprep.mubr.msk.f32.mxu0 %vm1078_vm5, %v12368_v18 }
0x1f70   : > { %20850 = vmatmul.mubr.msk.f32.vlgmr.msra.gmra.mrb[8].mxu1 %vm1078_vm5, %v20823_v2 }
0x1f71   : > { %v20826_v15 = vpop.f32.mrb[10].mxu0  ;;  %22950 = vmatprep.subr.bf16.mxu0 %v22949_v53 }
0x1f72   : > { %v12378_v62 = vpop.f32.mrb[11].mxu0  ;;  %22952 = vmatpush3.bf16.msra.mxu0 %v22949_v53 }
0x1f73   : > { %v22953_v24 = vpack.c.bf16 %v20826_v15, %v12378_v62  ;;  %20852 = vmatprep.mubr.msk.f32.mxu1 %vm1078_vm5, %v12378_v62 }
0x1f74   : > { %20853 = vmatmul.mubr.msk.f32.gmra.mrb[10].mxu1 %vm1078_vm5, %v20826_v15 }
0x1f75   : > { %v20829_v47 = vpop.f32.mrb[12].mxu0  ;;  %22954 = vmatprep.subr.bf16.mxu0 %v22953_v24 }
0x1f76   : > { %v12388_v49 = vpop.f32.mrb[13].mxu0  ;;  %22956 = vmatpush3.bf16.msra.mxu0 %v22953_v24 }
0x1f77   : > { %v22957_v9 = vpack.c.bf16 %v20829_v47, %v12388_v49  ;;  %20855 = vmatprep.mubr.msk.f32.mxu1 %vm1078_vm5, %v12388_v49 }
0x1f78   : > { %20856 = vmatmul.mubr.msk.f32.gmra.mrb[12].mxu1 %vm1078_vm5, %v20829_v47 }
0x1f79   : > { %v20832_v18 = vpop.f32.mrb[14].mxu0  ;;  %22958 = vmatprep.subr.bf16.mxu0 %v22957_v9 }
0x1f7a   : > { %v12398_v39 = vpop.f32.mrb[15].mxu0  ;;  %22960 = vmatpush3.bf16.msra.mxu0 %v22957_v9 }
0x1f7b   : > { %v22961_v34 = vpack.c.bf16 %v20832_v18, %v12398_v39  ;;  %20858 = vmatprep.mubr.msk.f32.mxu1 %vm1078_vm5, %v12398_v39 }
0x1f7c   : > { %20859 = vmatmul.mubr.msk.f32.gmra.mrb[14].mxu1 %vm1078_vm5, %v20832_v18 }
0x1f7d   : > { %22962 = vmatprep.subr.bf16.mxu0 %v22961_v34 }
0x1f7e   : > { %22964 = vmatpush3.bf16.msra.mxu0 %v22961_v34 }
0x1f81   : > { %20878 = vmatmul.mubr.msk.f32.vlgmr.msra.gmra.mrb[16].mxu0 %vm1078_vm5, %v20823_v2 }
0x1f82   : > { %20880 = vmatprep.mubr.msk.f32.mxu0 %vm1078_vm5, %v12378_v62 }
0x1f85   : > { %20881 = vmatmul.mubr.msk.f32.gmra.mrb[18].mxu0 %vm1078_vm5, %v20826_v15 }
0x1f86   : > { %20883 = vmatprep.mubr.msk.f32.mxu0 %vm1078_vm5, %v12388_v49 }
0x1f89   : > { %20884 = vmatmul.mubr.msk.f32.gmra.mrb[20].mxu0 %vm1078_vm5, %v20829_v47 }
0x1f8a   : > { %20886 = vmatprep.mubr.msk.f32.mxu0 %vm1078_vm5, %v12398_v39 }
0x1f8d   : > { %20887 = vmatmul.mubr.msk.f32.gmra.mrb[22].mxu0 %vm1078_vm5, %v20832_v18 }
0x2043   : > { %v20851_v53 = vpop.f32.mrb[8].mxu1 }
0x2044   : > { %v29931_v9 = vadd.f32 %v20851_v53, %v29837_v28  ;;  %v12497_v24 = vpop.f32.mrb[9].mxu1 }
0x2045   : > { %v29934_v34 = vadd.f32 %v12497_v24, %v29840_v40 }
0x2047   : > { %v22965_v62 = vpack.c.bf16 %v29931_v9, %v29934_v34  ;;  %v20854_v2 = vpop.f32.mrb[10].mxu1 }
0x2048   : > { %v29939_v49 = vadd.f32 %v20854_v2, %v29848_v25  ;;  %v12507_v47 = vpop.f32.mrb[11].mxu1 }
0x2049   : > { %v29942_v39 = vadd.f32 %v12507_v47, %v29851_v52  ;;  %22966 = vmatprep.subr.bf16.mxu1 %v22965_v62 }
0x204a   : > { %22968 = vmatpush3.bf16.msra.mxu1 %v22965_v62 }
0x204b   : > { %v22969_v28 = vpack.c.bf16 %v29939_v49, %v29942_v39  ;;  %v20857_v15 = vpop.f32.mrb[12].mxu1 }
0x204c   : > { %v29947_v40 = vadd.f32 %v20857_v15, %v29858_v16  ;;  %v12517_v18 = vpop.f32.mrb[13].mxu1 }
0x204d   : > { %v29950_v53 = vadd.f32 %v12517_v18, %v29861_v8  ;;  %22970 = vmatprep.subr.bf16.mxu1 %v22969_v28 }
0x204e   : > { %22972 = vmatpush3.bf16.msra.mxu1 %v22969_v28 }
0x204f   : > { %v22973_v25 = vpack.c.bf16 %v29947_v40, %v29950_v53  ;;  %v20860_v52 = vpop.f32.mrb[14].mxu1 }
0x2050   : > { %v29955_v24 = vadd.f32 %v20860_v52, %v29868_v56  ;;  %v12527_v62 = vpop.f32.mrb[15].mxu1 }
0x2051   : > { %v29958_v2 = vadd.f32 %v12527_v62, %v29871_v42  ;;  %22974 = vmatprep.subr.bf16.mxu1 %v22973_v25 }
0x2052   : > { %22976 = vmatpush3.bf16.msra.mxu1 %v22973_v25 }
0x2053   : > { %v22977_v16 = vpack.c.bf16 %v29955_v24, %v29958_v2 }
0x2054   : > { %v20879_v8 = vpop.f32.mrb[16].mxu0 }
0x2055   : > { %v12610_v47 = vpop.f32.mrb[17].mxu0  ;;  %22978 = vmatprep.subr.bf16.mxu1 %v22977_v16 }
0x2056   : > { %v22981_v28 = vpack.c.bf16 %v20879_v8, %v12610_v47  ;;  %22980 = vmatpush3.bf16.msra.mxu1 %v22977_v16  ;;  %20905 = vmatprep.mubr.msk.f32.mxu1 %vm1078_vm5, %v12610_v47 }
0x2057   : > { %20933 = vmatprep.mubr.msk.f32.mxu0 %vm1078_vm5, %v12610_v47 }
0x2058   : > { %v20882_v56 = vpop.f32.mrb[18].mxu0  ;;  %22982 = vmatprep.subr.bf16.mxu0 %v22981_v28 }
0x2059   : > { %v12620_v15 = vpop.f32.mrb[19].mxu0  ;;  %20906 = vmatmul.mubr.msk.f32.vlgmr.msra.gmra.mrb[16].mxu1 %vm1078_vm5, %v20879_v8  ;;  %22984 = vmatpush3.bf16.msra.mxu0 %v22981_v28 }
0x205a   : > { %v22985_v42 = vpack.c.bf16 %v20882_v56, %v12620_v15  ;;  %20908 = vmatprep.mubr.msk.f32.mxu1 %vm1078_vm5, %v12620_v15 }
0x205c   : > { %v20885_v18 = vpop.f32.mrb[20].mxu0  ;;  %22986 = vmatprep.subr.bf16.mxu0 %v22985_v42 }
0x205d   : > { %v12630_v25 = vpop.f32.mrb[21].mxu0  ;;  %20909 = vmatmul.mubr.msk.f32.gmra.mrb[18].mxu1 %vm1078_vm5, %v20882_v56  ;;  %22988 = vmatpush3.bf16.msra.mxu0 %v22985_v42 }
0x205e   : > { %v22989_v52 = vpack.c.bf16 %v20885_v18, %v12630_v25  ;;  %20911 = vmatprep.mubr.msk.f32.mxu1 %vm1078_vm5, %v12630_v25 }
0x2060   : > { %v20888_v62 = vpop.f32.mrb[22].mxu0  ;;  %22990 = vmatprep.subr.bf16.mxu0 %v22989_v52 }
0x2061   : > { %v12640_v16 = vpop.f32.mrb[23].mxu0  ;;  %20912 = vmatmul.mubr.msk.f32.gmra.mrb[20].mxu1 %vm1078_vm5, %v20885_v18  ;;  %22992 = vmatpush3.bf16.msra.mxu0 %v22989_v52 }
0x2062   : > { %v22993_v47 = vpack.c.bf16 %v20888_v62, %v12640_v16  ;;  %20914 = vmatprep.mubr.msk.f32.mxu1 %vm1078_vm5, %v12640_v16 }
0x2064   : > { %22994 = vmatprep.subr.bf16.mxu0 %v22993_v47 }
0x2065   : > { %20915 = vmatmul.mubr.msk.f32.gmra.mrb[22].mxu1 %vm1078_vm5, %v20888_v62  ;;  %22996 = vmatpush3.bf16.msra.mxu0 %v22993_v47 }
0x2068   : > { %20934 = vmatmul.mubr.msk.f32.vlgmr.msra.gmra.mrb[24].mxu0 %vm1078_vm5, %v20879_v8 }
0x2069   : > { %20936 = vmatprep.mubr.msk.f32.mxu0 %vm1078_vm5, %v12620_v15 }
0x206c   : > { %20937 = vmatmul.mubr.msk.f32.gmra.mrb[26].mxu0 %vm1078_vm5, %v20882_v56 }
0x206d   : > { %20939 = vmatprep.mubr.msk.f32.mxu0 %vm1078_vm5, %v12630_v25 }
0x2070   : > { %20940 = vmatmul.mubr.msk.f32.gmra.mrb[28].mxu0 %vm1078_vm5, %v20885_v18 }
0x2071   : > { %20942 = vmatprep.mubr.msk.f32.mxu0 %vm1078_vm5, %v12640_v16 }
0x2074   : > { %20943 = vmatmul.mubr.msk.f32.gmra.mrb[30].mxu0 %vm1078_vm5, %v20888_v62 }
0x212c   : > { %v20907_v28 = vpop.f32.mrb[16].mxu1 }
0x212d   : > { %v29979_v42 = vadd.f32 %v20907_v28, %v29931_v9  ;;  %v12739_v52 = vpop.f32.mrb[17].mxu1 }
0x212e   : > { %v29982_v47 = vadd.f32 %v12739_v52, %v29934_v34 }
0x2130   : > { %v22997_v8 = vpack.c.bf16 %v29979_v42, %v29982_v47  ;;  %v20910_v56 = vpop.f32.mrb[18].mxu1 }
0x2131   : > { %v29987_v15 = vadd.f32 %v20910_v56, %v29939_v49  ;;  %v12749_v18 = vpop.f32.mrb[19].mxu1 }
0x2132   : > { %v29990_v25 = vadd.f32 %v12749_v18, %v29942_v39  ;;  %22998 = vmatprep.subr.bf16.mxu1 %v22997_v8 }
0x2133   : > { %23000 = vmatpush3.bf16.msra.mxu1 %v22997_v8 }
0x2134   : > { %v23001_v9 = vpack.c.bf16 %v29987_v15, %v29990_v25  ;;  %v20913_v62 = vpop.f32.mrb[20].mxu1 }
0x2135   : > { %v29995_v34 = vadd.f32 %v20913_v62, %v29947_v40  ;;  %v12759_v16 = vpop.f32.mrb[21].mxu1 }
0x2136   : > { %v29998_v28 = vadd.f32 %v12759_v16, %v29950_v53  ;;  %23002 = vmatprep.subr.bf16.mxu1 %v23001_v9 }
0x2137   : > { %23004 = vmatpush3.bf16.msra.mxu1 %v23001_v9 }
0x2138   : > { %v23005_v49 = vpack.c.bf16 %v29995_v34, %v29998_v28  ;;  %v20916_v39 = vpop.f32.mrb[22].mxu1 }
0x2139   : > { %v30003_v52 = vadd.f32 %v20916_v39, %v29955_v24  ;;  %v12769_v8 = vpop.f32.mrb[23].mxu1 }
0x213a   : > { %v30006_v56 = vadd.f32 %v12769_v8, %v29958_v2  ;;  %23006 = vmatprep.subr.bf16.mxu1 %v23005_v49 }
0x213b   : > { %v20935_v40 = vpop.f32.mrb[24].mxu0  ;;  %23008 = vmatpush3.bf16.msra.mxu1 %v23005_v49 }
0x213c   : > { %v23009_v53 = vpack.c.bf16 %v30003_v52, %v30006_v56  ;;  %v12852_v18 = vpop.f32.mrb[25].mxu0 }
0x213d   : > { %v23013_v62 = vpack.c.bf16 %v20935_v40, %v12852_v18  ;;  %20961 = vmatprep.mubr.msk.f32.mxu1 %vm1078_vm5, %v12852_v18  ;;  %20989 = vmatprep.mubr.msk.f32.mxu0 %vm1078_vm5, %v12852_v18 }
0x213e   : > { %23010 = vmatprep.subr.bf16.mxu1 %v23009_v53 }
0x213f   : > { %v20938_v9 = vpop.f32.mrb[26].mxu0  ;;  %23012 = vmatpush3.bf16.msra.mxu1 %v23009_v53  ;;  %23014 = vmatprep.subr.bf16.mxu0 %v23013_v62 }
0x2140   : > { %v12862_v24 = vpop.f32.mrb[27].mxu0  ;;  %23016 = vmatpush3.bf16.msra.mxu0 %v23013_v62 }
0x2141   : > { %v23017_v2 = vpack.c.bf16 %v20938_v9, %v12862_v24 }
0x2142   : > { %20962 = vmatmul.mubr.msk.f32.vlgmr.msra.gmra.mrb[24].mxu1 %vm1078_vm5, %v20935_v40 }
0x2143   : > { %v20941_v16 = vpop.f32.mrb[28].mxu0  ;;  %20964 = vmatprep.mubr.msk.f32.mxu1 %vm1078_vm5, %v12862_v24  ;;  %23018 = vmatprep.subr.bf16.mxu0 %v23017_v2 }
0x2144   : > { %v12872_v49 = vpop.f32.mrb[29].mxu0  ;;  %23020 = vmatpush3.bf16.msra.mxu0 %v23017_v2 }
0x2145   : > { %v23021_v39 = vpack.c.bf16 %v20941_v16, %v12872_v49 }
0x2146   : > { %20965 = vmatmul.mubr.msk.f32.gmra.mrb[26].mxu1 %vm1078_vm5, %v20938_v9 }
0x2147   : > { %v20944_v8 = vpop.f32.mrb[30].mxu0  ;;  %20967 = vmatprep.mubr.msk.f32.mxu1 %vm1078_vm5, %v12872_v49  ;;  %23022 = vmatprep.subr.bf16.mxu0 %v23021_v39 }
0x2148   : > { %v12882_v53 = vpop.f32.mrb[31].mxu0  ;;  %23024 = vmatpush3.bf16.msra.mxu0 %v23021_v39 }
0x2149   : > { %v23025_v18 = vpack.c.bf16 %v20944_v8, %v12882_v53 }
0x214a   : > { %20968 = vmatmul.mubr.msk.f32.gmra.mrb[28].mxu1 %vm1078_vm5, %v20941_v16 }
0x214b   : > { %20970 = vmatprep.mubr.msk.f32.mxu1 %vm1078_vm5, %v12882_v53  ;;  %23026 = vmatprep.subr.bf16.mxu0 %v23025_v18 }
0x214c   : > { %23028 = vmatpush3.bf16.msra.mxu0 %v23025_v18 }
0x214e   : > { %20971 = vmatmul.mubr.msk.f32.gmra.mrb[30].mxu1 %vm1078_vm5, %v20944_v8 }
0x214f   : > { %20990 = vmatmul.mubr.msk.f32.vlgmr.msra.gmra.mrb[32].mxu0 %vm1078_vm5, %v20935_v40 }
0x2150   : > { %20992 = vmatprep.mubr.msk.f32.mxu0 %vm1078_vm5, %v12862_v24 }
0x2153   : > { %20993 = vmatmul.mubr.msk.f32.gmra.mrb[34].mxu0 %vm1078_vm5, %v20938_v9 }
0x2154   : > { %20995 = vmatprep.mubr.msk.f32.mxu0 %vm1078_vm5, %v12872_v49 }
0x2157   : > { %20996 = vmatmul.mubr.msk.f32.gmra.mrb[36].mxu0 %vm1078_vm5, %v20941_v16 }
0x2158   : > { %20998 = vmatprep.mubr.msk.f32.mxu0 %vm1078_vm5, %v12882_v53 }
0x215b   : > { %20999 = vmatmul.mubr.msk.f32.gmra.mrb[38].mxu0 %vm1078_vm5, %v20944_v8 }
0x2215   : > { %v20963_v62 = vpop.f32.mrb[24].mxu1 }
0x2216   : > { %v30027_v2 = vadd.f32 %v20963_v62, %v29979_v42  ;;  %v12981_v39 = vpop.f32.mrb[25].mxu1 }
0x2217   : > { %v30030_v18 = vadd.f32 %v12981_v39, %v29982_v47 }
0x2219   : > { %v23029_v40 = vpack.c.bf16 %v30027_v2, %v30030_v18  ;;  %v20966_v9 = vpop.f32.mrb[26].mxu1 }
0x221a   : > { %v30035_v24 = vadd.f32 %v20966_v9, %v29987_v15  ;;  %v12991_v16 = vpop.f32.mrb[27].mxu1 }
0x221b   : > { %v30038_v49 = vadd.f32 %v12991_v16, %v29990_v25  ;;  %23030 = vmatprep.subr.bf16.mxu1 %v23029_v40 }
0x221c   : > { %23032 = vmatpush3.bf16.msra.mxu1 %v23029_v40 }
0x221d   : > { %v23033_v42 = vpack.c.bf16 %v30035_v24, %v30038_v49  ;;  %v20969_v8 = vpop.f32.mrb[28].mxu1 }
0x221e   : > { %v30043_v47 = vadd.f32 %v20969_v8, %v29995_v34  ;;  %v13001_v53 = vpop.f32.mrb[29].mxu1 }
0x221f   : > { %v30046_v62 = vadd.f32 %v13001_v53, %v29998_v28  ;;  %23034 = vmatprep.subr.bf16.mxu1 %v23033_v42 }
0x2220   : > { %23036 = vmatpush3.bf16.msra.mxu1 %v23033_v42 }
0x2221   : > { %v23037_v15 = vpack.c.bf16 %v30043_v47, %v30046_v62  ;;  %v20972_v25 = vpop.f32.mrb[30].mxu1 }
0x2222   : > { %v30051_v39 = vadd.f32 %v20972_v25, %v30003_v52  ;;  %v13011_v40 = vpop.f32.mrb[31].mxu1  ;;  %v20991_v9 = vpop.f32.mrb[32].mxu0 }
0x2223   : > { %v30054_v16 = vadd.f32 %v13011_v40, %v30006_v56  ;;  %v13094_v34 = vpop.f32.mrb[33].mxu0  ;;  %23038 = vmatprep.subr.bf16.mxu1 %v23037_v15 }
0x2224   : > { %v23045_v8 = vpack.c.bf16 %v20991_v9, %v13094_v34  ;;  %23040 = vmatpush3.bf16.msra.mxu1 %v23037_v15  ;;  %21017 = vmatprep.mubr.msk.f32.mxu1 %vm1078_vm5, %v13094_v34 }
0x2225   : > { %v23041_v28 = vpack.c.bf16 %v30051_v39, %v30054_v16  ;;  %21045 = vmatprep.mubr.msk.f32.mxu0 %vm1078_vm5, %v13094_v34 }
0x2226   : > { %v20994_v42 = vpop.f32.mrb[34].mxu0  ;;  %23046 = vmatprep.subr.bf16.mxu0 %v23045_v8 }
0x2227   : > { %v13104_v52 = vpop.f32.mrb[35].mxu0  ;;  %23042 = vmatprep.subr.bf16.mxu1 %v23041_v28  ;;  %23048 = vmatpush3.bf16.msra.mxu0 %v23045_v8  ;;  %v31522_v8 = vld [vmem:[#allocation142_spill] sm:$0xff] }
0x2228   : > { %v23049_v53 = vpack.c.bf16 %v20994_v42, %v13104_v52  ;;  %23044 = vmatpush3.bf16.msra.mxu1 %v23041_v28  ;;  %v31523_v28 = vunpack.i.l.bf16 %v29693_v23 }
0x222a   : > { %v20997_v56 = vpop.f32.mrb[36].mxu0  ;;  %23050 = vmatprep.subr.bf16.mxu0 %v23049_v53 }
0x222b   : > { %v13114_v25 = vpop.f32.mrb[37].mxu0  ;;  %21018 = vmatmul.mubr.msk.f32.vlgmr.msra.gmra.mrb[32].mxu1 %vm1078_vm5, %v20991_v9  ;;  %23052 = vmatpush3.bf16.msra.mxu0 %v23049_v53  ;;  %v31524_v53 = vunpack.i.h.bf16 %v29693_v23  ;;  %v30091_v23 = vld [vmem:[#allocation2 + $0x40] sm:$0xff] }
0x222c   : > { %v23053_v15 = vpack.c.bf16 %v20997_v56, %v13114_v25  ;;  %21020 = vmatprep.mubr.msk.f32.mxu1 %vm1078_vm5, %v13104_v52 }
0x222e   : > { %v21000_v40 = vpop.f32.mrb[38].mxu0  ;;  %23054 = vmatprep.subr.bf16.mxu0 %v23053_v15 }
0x222f   : > { %v13124_v27 = vpop.f32.mrb[39].mxu0  ;;  %21021 = vmatmul.mubr.msk.f32.gmra.mrb[34].mxu1 %vm1078_vm5, %v20994_v42  ;;  %23056 = vmatpush3.bf16.msra.mxu0 %v23053_v15  ;;  %v30075_v15 = vpack.c.bf16 %v31524_v53, %v31523_v28  ;;  %v23776_v28 = vpop.permute.xlu0 %23775 }
0x2230   : > { %v23057_v34 = vpack.c.bf16 %v21000_v40, %v13124_v27  ;;  %21023 = vmatprep.mubr.msk.f32.mxu1 %vm1078_vm5, %v13114_v25  ;;  %v23778_v53 = vunpack.i.h.bf16 %v23776_v28 }
0x2232   : > { %23058 = vmatprep.subr.bf16.mxu0 %v23057_v34 }
0x2233   : > { %21024 = vmatmul.mubr.msk.f32.gmra.mrb[36].mxu1 %vm1078_vm5, %v20997_v56  ;;  %23060 = vmatpush3.bf16.msra.mxu0 %v23057_v34 }
0x2234   : > { %21026 = vmatprep.mubr.msk.f32.mxu1 %vm1078_vm5, %v13124_v27  ;;  %23078 = vmatprep.subr.bf16.mxu0 %v31522_v8 }
0x2236   : > { %21046 = vmatmul.mubr.msk.f32.vlgmr.msra.gmra.mrb[40].mxu0 %vm1078_vm5, %v20991_v9  ;;  %v31525_v9 = vunpack.i.l.bf16 %v29719_v12 }
0x2237   : > { %21027 = vmatmul.mubr.msk.f32.gmra.mrb[38].mxu1 %vm1078_vm5, %v21000_v40  ;;  %21048 = vmatprep.mubr.msk.f32.mxu0 %vm1078_vm5, %v13104_v52  ;;  %v31526_v52 = vunpack.i.h.bf16 %v29719_v12 }
0x2238   : > { %23080 = vmatpush3.bf16.msra.mxu0 %v31522_v8 }
0x2239   : > { %23082 = vmatprep.subr.bf16.mxu0 %v29665_v14  ;;  %v30085_v34 = vpack.c.bf16 %v31526_v52, %v31525_v9  ;;  %v23777_v9 = vunpack.i.l.bf16 %v23776_v28 }
0x223a   : > { %21049 = vmatmul.mubr.msk.f32.gmra.mrb[42].mxu0 %vm1078_vm5, %v20994_v42  ;;  %v30093_v42 = vld [vmem:[#allocation2 + $0x48] sm:$0xff] }
0x223b   : > { %21051 = vmatprep.mubr.msk.f32.mxu0 %vm1078_vm5, %v13114_v25  ;;  %v12262_v25 = vmul.f32 %v31406_v11, %v29900_v61  ;;  %v30102_v12 = vpack.c.bf16 %v30093_v42, %v30091_v23  ;;  %v12264_v11 = vmul.f32 %v31410_v0, %v29904_v60  ;;  %v12265_v61 = vmul.f32 %v29902_v19, %v31409_v29 }
0x223c   : > { %23084 = vmatpush3.bf16.msra.mxu0 %v29665_v14  ;;  %v12267_v60 = vmul.f32 %v29906_v31, %v31413_v33  ;;  %v12268_v29 = vmul.f32 %v31418_v6, %v29912_v17  ;;  %v30144_v33 = vld [vmem:[#allocation2 + $0x68] sm:$0xff] }
0x223d   : > { %23086 = vmatprep.subr.bf16.mxu0 %v30075_v15 }
0x223e   : > { %21052 = vmatmul.mubr.msk.f32.gmra.mrb[44].mxu0 %vm1078_vm5, %v20997_v56  ;;  %v30116_v56 = vld [vmem:[#allocation2 + $0x50] sm:$0xff] }
0x223f   : > { %21054 = vmatprep.mubr.msk.f32.mxu0 %vm1078_vm5, %v13124_v27  ;;  %v12263_v27 = vmul.f32 %v29898_v51, %v31405_v43  ;;  %v12266_v43 = vmul.f32 %v31414_v54, %v29908_v37  ;;  %v12269_v54 = vmul.f32 %v29910_v30, %v31417_v57  ;;  %v30142_v51 = vld [vmem:[#allocation2 + $0x60] sm:$0xff]  ;;  %v30159_v57 = vld [vmem:[#allocation2 + $0x70] sm:$0xff]  ;;  %v30161_v30 = vld [vmem:[#allocation2 + $0x78] sm:$0xff] }
0x2240   : > { %23088 = vmatpush3.bf16.msra.mxu0 %v30075_v15  ;;  %v30151_v6 = vpack.c.bf16 %v30144_v33, %v30142_v51  ;;  %v30165_v17 = vpack.c.bf16 %v30161_v30, %v30159_v57 }
0x2241   : > { %23090 = vmatprep.subr.bf16.mxu0 %v30085_v34 }
0x2242   : > { %21055 = vmatmul.mubr.msk.f32.gmra.mrb[46].mxu0 %vm1078_vm5, %v21000_v40  ;;  %v30118_v40 = vld [vmem:[#allocation2 + $0x58] sm:$0xff] }
0x2243   : > { %21101 = vmatprep.mubr.msk.f32.mxu0 %vm1078_vm5, %v12262_v25  ;;  %v30126_v0 = vpack.c.bf16 %v30118_v40, %v30116_v56  ;;  %v23193_v25 = vpack.c.bf16 %v23778_v53, %v23777_v9 }
0x2244   : > { %23092 = vmatpush3.bf16.msra.mxu0 %v30085_v34 }
0x2245   : > { %23095 = vmatprep.subr.msk.bf16.mxu0 %vm25600_vm8, %v30102_v12 }
0x2247   : > { %21102 = vmatmul.mubr.msk.f32.vlgmr.msra.gmra.mrb[48].mxu0 %vm1078_vm5, %v12263_v27 }
0x2248   : > { %21104 = vmatprep.mubr.msk.f32.mxu0 %vm1078_vm5, %v12264_v11 }
0x224b   : > { %21105 = vmatmul.mubr.msk.f32.gmra.mrb[50].mxu0 %vm1078_vm5, %v12265_v61  ;;  %v23786_v61 = vpop.permute.xlu0 %23785 }
0x224c   : > { %21107 = vmatprep.mubr.msk.f32.mxu0 %vm1078_vm5, %v12266_v43  ;;  %v23788_v43 = vunpack.i.h.bf16 %v23786_v61 }
0x224d   : > { %23098 = vmatpush3.bf16.xpose.msk.msra.mxu0 %vm25600_vm8, %v30102_v12 }
0x224e   : > { %23101 = vmatprep.subr.msk.bf16.mxu0 %vm25600_vm8, %v30126_v0 }
0x224f   : > { %21108 = vmatmul.mubr.msk.f32.gmra.mrb[52].mxu0 %vm1078_vm5, %v12267_v60  ;;  %v23787_v60 = vunpack.i.l.bf16 %v23786_v61 }
0x2250   : > { %21110 = vmatprep.mubr.msk.f32.mxu0 %vm1078_vm5, %v12268_v29 }
0x2253   : > { %21111 = vmatmul.mubr.msk.f32.gmra.mrb[54].mxu0 %vm1078_vm5, %v12269_v54 }
0x2254   : > { %21129 = vmatprep.mubr.msk.f32.mxu0 %vm1078_vm5, %v31488_v35  ;;  %v23771_v35 = vpop.permute.xlu1 %23770 }
0x2255   : > { %23104 = vmatpush3.bf16.xpose.msk.msra.mxu0 %vm25600_vm8, %v30126_v0  ;;  %v23773_v19 = vunpack.i.h.bf16 %v23771_v35  ;;  %v23772_v31 = vunpack.i.l.bf16 %v23771_v35  ;;  %v23201_v35 = vpack.c.bf16 %v23788_v43, %v23787_v60 }
0x2256   : > { %23107 = vmatprep.subr.msk.bf16.mxu0 %vm25600_vm8, %v30151_v6 }
0x2257   : > { %v23189_v37 = vpack.c.bf16 %v23773_v19, %v23772_v31 }
0x2258   : > { %v23781_v52 = vpop.permute.xlu1 %23780 }
0x2259   : > { %v23783_v27 = vunpack.i.h.bf16 %v23781_v52  ;;  %v23782_v11 = vunpack.i.l.bf16 %v23781_v52 }
0x225b   : > { %v23197_v29 = vpack.c.bf16 %v23783_v27, %v23782_v11 }
0x225c   : > { %v23791_v54 = vpop.permute.xlu1 %23790 }
0x225d   : > { %23110 = vmatpush3.bf16.xpose.msk.msra.mxu0 %vm25600_vm8, %v30151_v6  ;;  %v23792_v19 = vunpack.i.l.bf16 %v23791_v54 }
0x225e   : > { %23113 = vmatprep.subr.msk.bf16.mxu0 %vm25600_vm8, %v30165_v17 }
0x2265   : > { %23116 = vmatpush3.bf16.xpose.msk.msra.mxu0 %vm25600_vm8, %v30165_v17 }
0x2266   : > { %23190 = vmatprep.subr.bf16.mxu0 %v23189_v37 }
0x226c   : > { %21130 = vmatmul.mubr.msk.f32.vlgmr.msra.gmra.mrb[48].mxu0 %vm1078_vm5, %v29620_v10  ;;  %v23793_v10 = vunpack.i.h.bf16 %v23791_v54 }
0x226d   : > { %21132 = vmatprep.mubr.msk.f32.mxu0 %vm1078_vm5, %v31490_v44  ;;  %23192 = vmatpush3.bf16.msra.mxu0 %v23189_v37 }
0x226e   : > { %23194 = vmatprep.subr.bf16.mxu0 %v23193_v25  ;;  %v30188_v44 = vpack.c.bf16 %v23793_v10, %v23792_v19 }
0x2270   : > { %21133 = vmatmul.mubr.msk.f32.gmra.mrb[50].mxu0 %vm1078_vm5, %v29626_v22 }
0x2271   : > { %21135 = vmatprep.mubr.msk.f32.mxu0 %vm1078_vm5, %v31499_v58  ;;  %23196 = vmatpush3.bf16.msra.mxu0 %v23193_v25 }
0x2272   : > { %23198 = vmatprep.subr.bf16.mxu0 %v23197_v29 }
0x2274   : > { %21136 = vmatmul.mubr.msk.f32.gmra.mrb[52].mxu0 %vm1078_vm5, %v29636_v1 }
0x2275   : > { %21138 = vmatprep.mubr.msk.f32.mxu0 %vm1078_vm5, %v31500_v50  ;;  %23200 = vmatpush3.bf16.msra.mxu0 %v23197_v29 }
0x2276   : > { %23202 = vmatprep.subr.bf16.mxu0 %v23201_v35 }
0x2278   : > { %21139 = vmatmul.mubr.msk.f32.gmra.mrb[54].mxu0 %vm1078_vm5, %v29642_v45 }
0x2279   : > { %23204 = vmatpush3.bf16.msra.mxu0 %v23201_v35 }
0x227a   : > { %23206 = vmatprep.subr.bf16.mxu0 %v30188_v44 }
0x22fe   : > { %v21019_v22 = vpop.f32.mrb[32].mxu1 }
0x22ff   : > { %v30194_v58 = vadd.f32 %v21019_v22, %v30027_v2  ;;  %v13223_v31 = vpop.f32.mrb[33].mxu1 }
0x2300   : > { %v30197_v1 = vadd.f32 %v13223_v31, %v30030_v18 }
0x2302   : > { %v23061_v50 = vpack.c.bf16 %v30194_v58, %v30197_v1  ;;  %v21022_v37 = vpop.f32.mrb[34].mxu1 }
0x2303   : > { %v30202_v28 = vadd.f32 %v21022_v37, %v30035_v24  ;;  %v13233_v53 = vpop.f32.mrb[35].mxu1 }
0x2304   : > { %v30205_v45 = vadd.f32 %v13233_v53, %v30038_v49  ;;  %23062 = vmatprep.subr.bf16.mxu1 %v23061_v50 }
0x2305   : > { %23064 = vmatpush3.bf16.msra.mxu1 %v23061_v50 }
0x2306   : > { %v23065_v2 = vpack.c.bf16 %v30202_v28, %v30205_v45  ;;  %v21025_v9 = vpop.f32.mrb[36].mxu1 }
0x2307   : > { %v30210_v18 = vadd.f32 %v21025_v9, %v30043_v47  ;;  %v13243_v52 = vpop.f32.mrb[37].mxu1 }
0x2308   : > { %v30213_v25 = vadd.f32 %v13243_v52, %v30046_v62  ;;  %23066 = vmatprep.subr.bf16.mxu1 %v23065_v2 }
0x2309   : > { %v21047_v24 = vpop.f32.mrb[40].mxu0  ;;  %23068 = vmatpush3.bf16.msra.mxu1 %v23065_v2 }
0x230a   : > { %v23069_v49 = vpack.c.bf16 %v30210_v18, %v30213_v25  ;;  %v21028_v27 = vpop.f32.mrb[38].mxu1  ;;  %v13336_v11 = vpop.f32.mrb[41].mxu0 }
0x230b   : > { %v30218_v61 = vadd.f32 %v21028_v27, %v30051_v39  ;;  %v13253_v43 = vpop.f32.mrb[39].mxu1  ;;  %21073 = vmatprep.mubr.msk.f32.mxu1 %vm1078_vm5, %v13336_v11 }
0x230c   : > { %v13268_v47 = vadd.f32 %v13253_v43, %v30054_v16  ;;  %23070 = vmatprep.subr.bf16.mxu1 %v23069_v49 }
0x230d   : > { %v21050_v60 = vpop.f32.mrb[42].mxu0  ;;  %23072 = vmatpush3.bf16.msra.mxu1 %v23069_v49 }
0x230e   : > { %v23073_v62 = vpack.c.bf16 %v30218_v61, %v13268_v47  ;;  %v13346_v29 = vpop.f32.mrb[43].mxu0 }
0x2310   : > { %23074 = vmatprep.subr.bf16.mxu1 %v23073_v62 }
0x2311   : > { %v21053_v54 = vpop.f32.mrb[44].mxu0  ;;  %23076 = vmatpush3.bf16.msra.mxu1 %v23073_v62 }
0x2312   : > { %v13356_v35 = vpop.f32.mrb[45].mxu0 }
0x2314   : > { %21074 = vmatmul.mubr.msk.f32.vlgmr.msra.gmra.mrb[40].mxu1 %vm1078_vm5, %v21047_v24 }
0x2315   : > { %v21056_v10 = vpop.f32.mrb[46].mxu0  ;;  %21076 = vmatprep.mubr.msk.f32.mxu1 %vm1078_vm5, %v13346_v29 }
0x2316   : > { %v13366_v39 = vpop.f32.mrb[47].mxu0 }
0x2318   : > { %21077 = vmatmul.mubr.msk.f32.gmra.mrb[42].mxu1 %vm1078_vm5, %v21050_v60 }
0x2319   : > { %21079 = vmatprep.mubr.msk.f32.mxu1 %vm1078_vm5, %v13356_v35 }
0x231c   : > { %21080 = vmatmul.mubr.msk.f32.gmra.mrb[44].mxu1 %vm1078_vm5, %v21053_v54 }
0x231d   : > { %21082 = vmatprep.mubr.msk.f32.mxu1 %vm1078_vm5, %v13366_v39 }
0x2320   : > { %21083 = vmatmul.mubr.msk.f32.gmra.mrb[46].mxu1 %vm1078_vm5, %v21056_v10 }
0x233f   : > { %v21131_v16 = vpop.f32.mrb[48].mxu0 }
0x2340   : > { %v13763_v19 = vpop.f32.mrb[49].mxu0 }
0x2341   : > { %v23117_v22 = vpack.c.bf16 %v21131_v16, %v13763_v19 }
0x2343   : > { %v21134_v31 = vpop.f32.mrb[50].mxu0  ;;  %23118 = vmatprep.subr.bf16.mxu1 %v23117_v22 }
0x2344   : > { %v13773_v50 = vpop.f32.mrb[51].mxu0  ;;  %23120 = vmatpush3.bf16.msra.mxu1 %v23117_v22 }
0x2345   : > { %v23121_v37 = vpack.c.bf16 %v21134_v31, %v13773_v50 }
0x2347   : > { %v21137_v53 = vpop.f32.mrb[52].mxu0  ;;  %23122 = vmatprep.subr.bf16.mxu1 %v23121_v37 }
0x2348   : > { %v13783_v2 = vpop.f32.mrb[53].mxu0  ;;  %23124 = vmatpush3.bf16.msra.mxu1 %v23121_v37 }
0x2349   : > { %v23125_v9 = vpack.c.bf16 %v21137_v53, %v13783_v2 }
0x234b   : > { %v21140_v52 = vpop.f32.mrb[54].mxu0  ;;  %23126 = vmatprep.subr.bf16.mxu1 %v23125_v9 }
0x234c   : > { %v13793_v24 = vpop.f32.mrb[55].mxu0  ;;  %23128 = vmatpush3.bf16.msra.mxu1 %v23125_v9 }
0x234d   : > { %v23129_v49 = vpack.c.bf16 %v21140_v52, %v13793_v24  ;;  %v31527_v24 = vld [vmem:[#allocation52_spill] sm:$0xff] }
0x234f   : > { %23130 = vmatprep.subr.bf16.mxu1 %v23129_v49 }
0x2350   : > { %23132 = vmatpush3.bf16.msra.mxu1 %v23129_v49  ;;  %v11860_v49 = vmul.f32 %v29818_v59, %v31527_v24  ;;  %v31531_v59 = vld [vmem:[#allocation59_spill] sm:$0xff] }
0x23e7   : > { %v21075_v27 = vpop.f32.mrb[40].mxu1 }
0x23e8   : > { %v13465_v11 = vpop.f32.mrb[41].mxu1  ;;  %v13505_v60 = vadd.f32 %v21075_v27, %v30194_v58  ;;  %v31528_v27 = vld [vmem:[#allocation53_spill] sm:$0xff] }
0x23e9   : > { %v13504_v43 = vadd.f32 %v13465_v11, %v30197_v1  ;;  %v11861_v11 = vmul.f32 %v31528_v27, %v29824_v36  ;;  %v31532_v36 = vld [vmem:[#allocation60_spill] sm:$0xff] }
0x23eb   : > { %v21078_v62 = vpop.f32.mrb[42].mxu1  ;;  %21157 = vmatprep.mubr.msk.f32.mxu1 %vm1078_vm5, %v13504_v43  ;;  %v31529_v43 = vld [vmem:[#allocation56_spill] sm:$0xff] }
0x23ec   : > { %v13475_v29 = vpop.f32.mrb[43].mxu1  ;;  %21158 = vmatmul.mubr.msk.f32.vlgmr.msra.gmra.mrb[48].mxu1 %vm1078_vm5, %v13505_v60  ;;  %v13507_v35 = vadd.f32 %v21078_v62, %v30202_v28  ;;  %v11859_v28 = vmul.f32 %v31422_v32, %v29820_v26  ;;  %v11862_v60 = vmul.f32 %v29822_v7, %v31529_v43  ;;  %v31530_v62 = vld [vmem:[#allocation57_spill] sm:$0xff]  ;;  %v31540_v32 = vld [vmem:[#allocation118_spill] sm:$0xff] }
0x23ed   : > { %v13506_v54 = vadd.f32 %v13475_v29, %v30205_v45  ;;  %v11863_v29 = vmul.f32 %v31530_v62, %v29828_v46  ;;  %v31533_v7 = vld [vmem:[#allocation61_spill] sm:$0xff] }
0x23ee   : > { %v11866_v46 = vmul.f32 %v29830_v63, %v31533_v7  ;;  %v12007_v63 = vmul.f32 %v31540_v32, %v31529_v43 }
0x23ef   : > { %v21081_v10 = vpop.f32.mrb[44].mxu1  ;;  %21160 = vmatprep.mubr.msk.f32.mxu1 %vm1078_vm5, %v13506_v54  ;;  %v11864_v54 = vmul.f32 %v29826_v4, %v31531_v59  ;;  %v31534_v4 = vld [vmem:[#allocation133_spill] sm:$0xff] }
0x23f0   : > { %v13485_v39 = vpop.f32.mrb[45].mxu1  ;;  %21161 = vmatmul.mubr.msk.f32.gmra.mrb[50].mxu1 %vm1078_vm5, %v13507_v35  ;;  %v13509_v58 = vadd.f32 %v21081_v10, %v30210_v18  ;;  %v11865_v35 = vmul.f32 %v31532_v36, %v29832_v48  ;;  %v31541_v48 = vld [vmem:[#allocation72_spill] sm:$0xff]  ;;  %v23796_v10 = vpop.permute.xlu0 %23795 }
0x23f1   : > { %v13508_v1 = vadd.f32 %v13485_v39, %v30213_v25  ;;  %v12008_v55 = vmul.f32 %v31530_v62, %v31541_v48  ;;  %v31547_v48 = vld [vmem:[#allocation108_spill] sm:$0xff] }
0x23f3   : > { %v21084_v16 = vpop.f32.mrb[46].mxu1  ;;  %21163 = vmatprep.mubr.msk.f32.mxu1 %vm1078_vm5, %v13508_v1  ;;  %v23801_v1 = vpop.permute.xlu1 %23800 }
0x23f4   : > { %v13495_v19 = vpop.f32.mrb[47].mxu1  ;;  %21164 = vmatmul.mubr.msk.f32.gmra.mrb[52].mxu1 %vm1078_vm5, %v13509_v58  ;;  %v13511_v45 = vadd.f32 %v21084_v16, %v30218_v61  ;;  %v23806_v39 = vpop.permute.xlu0 %23805 }
0x23f5   : > { %v13510_v22 = vadd.f32 %v13495_v19, %v13268_v47  ;;  %v23798_v19 = vunpack.i.h.bf16 %v23796_v10 }
0x23f7   : > { %21166 = vmatprep.mubr.msk.f32.mxu1 %vm1078_vm5, %v13510_v22  ;;  %v23797_v22 = vunpack.i.l.bf16 %v23796_v10 }
0x23f8   : > { %21167 = vmatmul.mubr.msk.f32.gmra.mrb[54].mxu1 %vm1078_vm5, %v13511_v45  ;;  %v14531_v16 = vpop.trf.xlu0 }
0x23f9   : > { %21185 = vmatprep.mubr.msk.f32.mxu1 %vm1078_vm5, %v11859_v28  ;;  %v23209_v28 = vpack.c.bf16 %v23798_v19, %v23797_v22  ;;  %v31552_v19 = vld [vmem:[#allocation55_spill] sm:$0xff] }
0x24bf   : > { %v21159_v25 = vpop.f32.mrb[48].mxu1 }
0x24c0   : > { %v13892_v18 = vpop.f32.mrb[49].mxu1 }
0x24c1   : > { %v23133_v31 = vpack.c.bf16 %v21159_v25, %v13892_v18  ;;  %14314 = vxpose.xlu1.b32.start [1/8] (short) (narrow) %v13892_v18, 64  ;;  %v23802_v18 = vunpack.i.l.bf16 %v23801_v1 }
0x24c3   : > { %v21162_v50 = vpop.f32.mrb[50].mxu1  ;;  %23134 = vmatprep.subr.bf16.mxu1 %v23133_v31 }
0x24c4   : > { %v13902_v37 = vpop.f32.mrb[51].mxu1  ;;  %23136 = vmatpush3.bf16.msra.mxu1 %v23133_v31  ;;  %v14532_v31 = vpop.trf.xlu0 }
0x24c5   : > { %v23137_v47 = vpack.c.bf16 %v21162_v50, %v13902_v37  ;;  %14315 = vxpose.xlu1.b32.cont [2/8] (short) (narrow) %v21159_v25, 64  ;;  %v23803_v25 = vunpack.i.h.bf16 %v23801_v1 }
0x24c7   : > { %v21165_v61 = vpop.f32.mrb[52].mxu1  ;;  %23138 = vmatprep.subr.bf16.mxu1 %v23137_v47 }
0x24c8   : > { %v13912_v53 = vpop.f32.mrb[53].mxu1  ;;  %23140 = vmatpush3.bf16.msra.mxu1 %v23137_v47  ;;  %v23807_v47 = vunpack.i.l.bf16 %v23806_v39 }
0x24c9   : > { %v23141_v26 = vpack.c.bf16 %v21165_v61, %v13912_v53  ;;  %14316 = vxpose.xlu1.b32.cont [3/8] (short) (narrow) %v13902_v37, 64  ;;  %v23808_v37 = vunpack.i.h.bf16 %v23806_v39 }
0x24cb   : > { %v21168_v2 = vpop.f32.mrb[54].mxu1  ;;  %23142 = vmatprep.subr.bf16.mxu1 %v23141_v26 }
0x24cc   : > { %v13922_v9 = vpop.f32.mrb[55].mxu1  ;;  %23144 = vmatpush3.bf16.msra.mxu1 %v23141_v26  ;;  %v14533_v26 = vpop.trf.xlu0 }
0x24cd   : > { %v23145_v52 = vpack.c.bf16 %v21168_v2, %v13922_v9  ;;  %14317 = vxpose.xlu1.b32.cont [4/8] (short) (narrow) %v21162_v50, 64 }
0x24cf   : > { %23146 = vmatprep.subr.bf16.mxu1 %v23145_v52 }
0x24d0   : > { %23148 = vmatpush3.bf16.msra.mxu1 %v23145_v52 }
0x24d1   : > { %14318 = vxpose.xlu1.b32.cont [5/8] (short) (narrow) %v13912_v53, 64  ;;  %23151 = vmatprep.subr.msk.bf16.mxu1 %vm25600_vm8, %v30102_v12 }
0x24d3   : > { %21186 = vmatmul.mubr.msk.f32.vlgmr.msra.gmra.mrb[56].mxu1 %vm1078_vm5, %v11860_v49 }
0x24d4   : > { %21188 = vmatprep.mubr.msk.f32.mxu1 %vm1078_vm5, %v11861_v11 }
0x24d5   : > { %14319 = vxpose.xlu1.b32.cont [6/8] (short) (narrow) %v21165_v61, 64  ;;  %v23213_v61 = vpack.c.bf16 %v23803_v25, %v23802_v18  ;;  %v31553_v25 = vld [vmem:[#allocation114_spill] sm:$0xff] }
0x24d7   : > { %21189 = vmatmul.mubr.msk.f32.gmra.mrb[58].mxu1 %vm1078_vm5, %v11862_v60 }
0x24d8   : > { %21191 = vmatprep.mubr.msk.f32.mxu1 %vm1078_vm5, %v11863_v29 }
0x24d9   : > { %14320 = vxpose.xlu1.b32.cont [7/8] (short) (narrow) %v13922_v9, 64  ;;  %23154 = vmatpush3.bf16.xpose.msk.msra.mxu1 %vm25600_vm8, %v30102_v12 }
0x24da   : > { %23157 = vmatprep.subr.msk.bf16.mxu1 %vm25600_vm8, %v30126_v0 }
0x24db   : > { %21192 = vmatmul.mubr.msk.f32.gmra.mrb[60].mxu1 %vm1078_vm5, %v11864_v54 }
0x24dc   : > { %21194 = vmatprep.mubr.msk.f32.mxu1 %vm1078_vm5, %v11865_v35 }
0x24dd   : > { %14321 = vxpose.xlu1.b32.end [8/8] (short) (narrow) %v21168_v2, 64  ;;  %v23217_v2 = vpack.c.bf16 %v23808_v37, %v23807_v47 }
0x24df   : > { %21195 = vmatmul.mubr.msk.f32.gmra.mrb[62].mxu1 %vm1078_vm5, %v11866_v46 }
0x24e0   : > { %21213 = vmatprep.mubr.msk.f32.mxu1 %vm1078_vm5, %v31534_v4  ;;  %v31546_v4 = vld [vmem:[#allocation44_spill] sm:$0xff] }
0x24e1   : > { %23160 = vmatpush3.bf16.xpose.msk.msra.mxu1 %vm25600_vm8, %v30126_v0  ;;  %v31544_v0 = vld [vmem:[#allocation73_spill] sm:$0xff] }
0x24e2   : > { %23163 = vmatprep.subr.msk.bf16.mxu1 %vm25600_vm8, %v30151_v6 }
0x24e9   : > { %23166 = vmatpush3.bf16.xpose.msk.msra.mxu1 %vm25600_vm8, %v30151_v6  ;;  %v12011_v6 = vmul.f32 %v31544_v0, %v31533_v7  ;;  %v31549_v0 = vld [vmem:[#allocation109_spill] sm:$0xff] }
0x24ea   : > { %23169 = vmatprep.subr.msk.bf16.mxu1 %vm25600_vm8, %v30165_v17 }
0x24f1   : > { %23172 = vmatpush3.bf16.xpose.msk.msra.mxu1 %vm25600_vm8, %v30165_v17  ;;  %v31550_v17 = vld [vmem:[#allocation110_spill] sm:$0xff] }
0x24f2   : > { %23174 = vmatprep.subr.bf16.mxu1 %v31522_v8 }
0x24f8   : > { %21214 = vmatmul.mubr.msk.f32.vlgmr.msra.gmra.mrb[56].mxu1 %vm1078_vm5, %v29594_v21  ;;  %v31535_v21 = vld [vmem:[#allocation43_spill] sm:$0xff] }
0x24f9   : > { %21216 = vmatprep.mubr.msk.f32.mxu1 %vm1078_vm5, %v29600_v3  ;;  %23176 = vmatpush3.bf16.msra.mxu1 %v31522_v8  ;;  %v31536_v3 = vld [vmem:[#allocation115_spill] sm:$0xff]  ;;  %v31542_v8 = vld [vmem:[#allocation74_spill] sm:$0xff] }
0x24fa   : > { %23178 = vmatprep.subr.bf16.mxu1 %v29665_v14 }
0x24fc   : > { %21217 = vmatmul.mubr.msk.f32.gmra.mrb[58].mxu1 %vm1078_vm5, %v29602_v13  ;;  %v12005_v13 = vmul.f32 %v31536_v3, %v31527_v24 }
0x24fd   : > { %21219 = vmatprep.mubr.msk.f32.mxu1 %vm1078_vm5, %v31486_v20  ;;  %23180 = vmatpush3.bf16.msra.mxu1 %v29665_v14 }
0x24fe   : > { %23182 = vmatprep.subr.bf16.mxu1 %v30075_v15 }
0x2500   : > { %21220 = vmatmul.mubr.msk.f32.gmra.mrb[60].mxu1 %vm1078_vm5, %v29608_v41  ;;  %v31537_v41 = vmov 1.0|1.0  }
0x2501   : > { %21222 = vmatprep.mubr.msk.f32.mxu1 %vm1078_vm5, %v31487_v38  ;;  %23184 = vmatpush3.bf16.msra.mxu1 %v30075_v15  ;;  %v31539_v38 = vld [vmem:[#allocation46_spill] sm:$0xff]  ;;  %v12009_v15 = vmul.f32 %v31542_v8, %v31531_v59 }
0x2502   : > { %23186 = vmatprep.subr.bf16.mxu1 %v30085_v34  ;;  %v12006_v14 = vmul.f32 %v31528_v27, %v31539_v38  ;;  %v31548_v8 = vld [vmem:[#allocation50_spill] sm:$0xff] }
0x2504   : > { %21223 = vmatmul.mubr.msk.f32.gmra.mrb[62].mxu1 %vm1078_vm5, %v31535_v21 }
0x2505   : > { %23188 = vmatpush3.bf16.msra.mxu1 %v30085_v34  ;;  %21241 = vmatprep.mubr.msk.f32.mxu1 %vm1078_vm5, %v12004_v5  ;;  %v31543_v34 = vld [vmem:[#allocation94_spill] sm:$0xff] }
0x2506   : > { %23254 = vmatprep.subr.msk.bf16.mxu1 %vm25118_vm4, %v31537_v41  ;;  %v12010_v12 = vmul.f32 %v31532_v36, %v31543_v34 }
0x2508   : > { %21242 = vmatmul.mubr.msk.f32.vlgmr.msra.gmra.mrb[56].mxu1 %vm1078_vm5, %v12005_v13 }
0x2509   : > { %21244 = vmatprep.mubr.msk.f32.mxu1 %vm1078_vm5, %v12006_v14  ;;  %23256 = vmatpush3.bf16.msk.msra.mxu1 %vm25118_vm4, %v31537_v41 }
0x250a   : > { %23258 = vmatprep.subr.msk.bf16.mxu1 %vm25118_vm4, %v31537_v41 }
0x250c   : > { %21245 = vmatmul.mubr.msk.f32.gmra.mrb[58].mxu1 %vm1078_vm5, %v12007_v63 }
0x250d   : > { %21247 = vmatprep.mubr.msk.f32.mxu1 %vm1078_vm5, %v12008_v55  ;;  %23260 = vmatpush3.bf16.msk.msra.mxu1 %vm25118_vm4, %v31537_v41 }
0x250e   : > { %23262 = vmatprep.subr.msk.bf16.mxu1 %vm25118_vm4, %v31537_v41 }
0x2510   : > { %21248 = vmatmul.mubr.msk.f32.gmra.mrb[60].mxu1 %vm1078_vm5, %v12009_v15 }
0x2511   : > { %21250 = vmatprep.mubr.msk.f32.mxu1 %vm1078_vm5, %v12010_v12  ;;  %23264 = vmatpush3.bf16.msk.msra.mxu1 %vm25118_vm4, %v31537_v41 }
0x2512   : > { %23266 = vmatprep.subr.msk.bf16.mxu1 %vm25118_vm4, %v31537_v41 }
0x2514   : > { %21251 = vmatmul.mubr.msk.f32.gmra.mrb[62].mxu1 %vm1078_vm5, %v12011_v6 }
0x2515   : > { %23268 = vmatpush3.bf16.msk.msra.mxu1 %vm25118_vm4, %v31537_v41 }
0x2516   : > { %23270 = vmatprep.subr.msk.bf16.mxu1 %vm25182_vm9, %v31537_v41 }
0x2519   : > { %23272 = vmatpush3.bf16.msk.msra.mxu1 %vm25182_vm9, %v31537_v41 }
0x251a   : > { %23274 = vmatprep.subr.msk.bf16.mxu1 %vm25182_vm9, %v31537_v41 }
0x251d   : > { %23276 = vmatpush3.bf16.msk.msra.mxu1 %vm25182_vm9, %v31537_v41 }
0x251e   : > { %23278 = vmatprep.subr.msk.bf16.mxu1 %vm25182_vm9, %v31537_v41 }
0x2521   : > { %23280 = vmatpush3.bf16.msk.msra.mxu1 %vm25182_vm9, %v31537_v41 }
0x2522   : > { %23282 = vmatprep.subr.msk.bf16.mxu1 %vm25182_vm9, %v31537_v41 }
0x2525   : > { %23284 = vmatpush3.bf16.msk.msra.mxu1 %vm25182_vm9, %v31537_v41 }
0x2541   : > { %v14330_v58 = vpop.trf.xlu1 }
0x2542   : > { %21269 = vmatprep.mubr.msk.f32.mxu0 %vm1078_vm5, %v14330_v58  ;;  %v31551_v58 = vld [vmem:[#allocation111_spill] sm:$0xff] }
0x2545   : > { %v14331_v45 = vpop.trf.xlu1 }
0x2546   : > { %21270 = vmatmul.mubr.msk.f32.vlgmr.msra.gmra.mrb[56].mxu0 %vm1078_vm5, %v14331_v45 }
0x2547   : > { %23208 = vmatpush3.bf16.msra.mxu0 %v30188_v44  ;;  %v14534_v44 = vpop.trf.xlu0 }
0x2548   : > { %23210 = vmatprep.subr.bf16.mxu0 %v23209_v28 }
0x2549   : > { %v14332_v50 = vpop.trf.xlu1 }
0x254a   : > { %21272 = vmatprep.mubr.msk.f32.mxu0 %vm1078_vm5, %v14332_v50 }
0x254b   : > { %23212 = vmatpush3.bf16.msra.mxu0 %v23209_v28  ;;  %v14535_v49 = vpop.trf.xlu0 }
0x254c   : > { %23214 = vmatprep.subr.bf16.mxu0 %v23213_v61 }
0x254d   : > { %v14333_v53 = vpop.trf.xlu1 }
0x254e   : > { %21273 = vmatmul.mubr.msk.f32.gmra.mrb[58].mxu0 %vm1078_vm5, %v14333_v53 }
0x254f   : > { %23216 = vmatpush3.bf16.msra.mxu0 %v23213_v61  ;;  %v14536_v11 = vpop.trf.xlu0 }
0x2550   : > { %23218 = vmatprep.subr.bf16.mxu0 %v23217_v2 }
0x2551   : > { %v14334_v9 = vpop.trf.xlu1 }
0x2552   : > { %21275 = vmatprep.mubr.msk.f32.mxu0 %vm1078_vm5, %v14334_v9 }
0x2553   : > { %23220 = vmatpush3.bf16.msra.mxu0 %v23217_v2  ;;  %v14537_v43 = vpop.trf.xlu0 }
0x2554   : > { %23222 = vmatprep.subr.msk.bf16.mxu0 %vm25118_vm4, %v31537_v41 }
0x2555   : > { %v14335_v52 = vpop.trf.xlu1 }
0x2556   : > { %21276 = vmatmul.mubr.msk.f32.gmra.mrb[60].mxu0 %vm1078_vm5, %v14335_v52 }
0x2557   : > { %v14538_v60 = vpop.trf.xlu0 }
0x2559   : > { %v14336_v24 = vpop.trf.xlu1 }
0x255a   : > { %21278 = vmatprep.mubr.msk.f32.mxu0 %vm1078_vm5, %v14336_v24 }
0x255d   : > { %v14337_v27 = vpop.trf.xlu1 }
0x255e   : > { %21279 = vmatmul.mubr.msk.f32.gmra.mrb[62].mxu0 %vm1078_vm5, %v14337_v27 }
0x255f   : > { %21297 = vmatprep.mubr.msk.f32.mxu0 %vm1078_vm5, %v14531_v16 }
0x2562   : > { %21298 = vmatmul.mubr.msk.f32.vlgmr.msra.gmra.mrb[56].mxu0 %vm1078_vm5, %v14532_v31  ;;  %v31554_v31 = vld [vmem:[#allocation113_spill] sm:$0xff] }
0x2563   : > { %21300 = vmatprep.mubr.msk.f32.mxu0 %vm1078_vm5, %v14533_v26  ;;  %23224 = vmatpush3.bf16.msk.msra.mxu0 %vm25118_vm4, %v31537_v41 }
0x2564   : > { %23226 = vmatprep.subr.msk.bf16.mxu0 %vm25118_vm4, %v31537_v41 }
0x2566   : > { %21301 = vmatmul.mubr.msk.f32.gmra.mrb[58].mxu0 %vm1078_vm5, %v14534_v44 }
0x2567   : > { %21303 = vmatprep.mubr.msk.f32.mxu0 %vm1078_vm5, %v14535_v49  ;;  %23228 = vmatpush3.bf16.msk.msra.mxu0 %vm25118_vm4, %v31537_v41 }
0x2568   : > { %23230 = vmatprep.subr.msk.bf16.mxu0 %vm25118_vm4, %v31537_v41 }
0x256a   : > { %21304 = vmatmul.mubr.msk.f32.gmra.mrb[60].mxu0 %vm1078_vm5, %v14536_v11 }
0x256b   : > { %21306 = vmatprep.mubr.msk.f32.mxu0 %vm1078_vm5, %v14537_v43  ;;  %23232 = vmatpush3.bf16.msk.msra.mxu0 %vm25118_vm4, %v31537_v41 }
0x256c   : > { %23234 = vmatprep.subr.msk.bf16.mxu0 %vm25118_vm4, %v31537_v41 }
0x256e   : > { %21307 = vmatmul.mubr.msk.f32.gmra.mrb[62].mxu0 %vm1078_vm5, %v14538_v60 }
0x256f   : > { %23236 = vmatpush3.bf16.msk.msra.mxu0 %vm25118_vm4, %v31537_v41 }
0x2570   : > { %23238 = vmatprep.subr.msk.bf16.mxu0 %vm25182_vm9, %v31537_v41 }
0x2573   : > { %23240 = vmatpush3.bf16.msk.msra.mxu0 %vm25182_vm9, %v31537_v41 }
0x2574   : > { %23242 = vmatprep.subr.msk.bf16.mxu0 %vm25182_vm9, %v31537_v41 }
0x2577   : > { %23244 = vmatpush3.bf16.msk.msra.mxu0 %vm25182_vm9, %v31537_v41 }
0x2578   : > { %23246 = vmatprep.subr.msk.bf16.mxu0 %vm25182_vm9, %v31537_v41 }
0x257b   : > { %23248 = vmatpush3.bf16.msk.msra.mxu0 %vm25182_vm9, %v31537_v41 }
0x257c   : > { %23250 = vmatprep.subr.msk.bf16.mxu0 %vm25182_vm9, %v31537_v41 }
0x257f   : > { %23252 = vmatpush3.bf16.msk.msra.mxu0 %vm25182_vm9, %v31537_v41 }
0x25db   : > { %v21243_v62 = vpop.f32.mrb[56].mxu1 }
0x25dc   : > { %14734 = vrot.lane.b32.xlu1 %v21243_v62, %s24517_s25  ;;  %v14255_v29 = vpop.f32.mrb[57].mxu1 }
0x25dd   : > { %14732 = vrot.lane.b32.xlu0 %v14255_v29, %s24517_s25 }
0x25df   : > { %v21246_v59 = vpop.f32.mrb[58].mxu1 }
0x25e0   : > { %v14265_v54 = vpop.f32.mrb[59].mxu1 }
0x25e1   : > { %14738 = vrot.lane.b32.xlu0 %v21246_v59, %s24517_s25  ;;  %14736 = vrot.lane.b32.xlu1 %v14265_v54, %s24517_s25 }
0x25e3   : > { %v21249_v36 = vpop.f32.mrb[60].mxu1 }
0x25e4   : > { %v14275_v35 = vpop.f32.mrb[61].mxu1 }
0x25e5   : > { %14742 = vrot.lane.b32.xlu0 %v21249_v36, %s24517_s25  ;;  %14740 = vrot.lane.b32.xlu1 %v14275_v35, %s24517_s25 }
0x25e7   : > { %v21252_v7 = vpop.f32.mrb[62].mxu1 }
0x25e8   : > { %v14285_v46 = vpop.f32.mrb[63].mxu1 }
0x25e9   : > { %14746 = vrot.lane.b32.xlu0 %v21252_v7, %s24517_s25  ;;  %14744 = vrot.lane.b32.xlu1 %v14285_v46, %s24517_s25 }
0x25ed   : > { %14303 = vrot.lane.b32.xlu1 %v31546_v4, %s24517_s25 }
0x2635   : > { %v21299_v5 = vpop.f32.mrb[56].mxu0 }
0x2636   : > { %v14669_v21 = vpop.f32.mrb[57].mxu0 }
0x2639   : > { %v21302_v3 = vpop.f32.mrb[58].mxu0 }
0x263a   : > { %v14679_v13 = vpop.f32.mrb[59].mxu0 }
0x263d   : > { %v21305_v41 = vpop.f32.mrb[60].mxu0 }
0x263e   : > { %v14689_v20 = vpop.f32.mrb[61].mxu0 }
0x2641   : > { %v21308_v38 = vpop.f32.mrb[62].mxu0 }
0x2642   : > { %v14699_v14 = vpop.f32.mrb[63].mxu0 }
0x264e   : > { %v14735_v32 = vpop.permute.xlu1 %14734 }
0x264f   : > { %v14733_v63 = vpop.permute.xlu0 %14732  ;;  %v14757_v15 = vsel %vm1078_vm5, %v31548_v8, %v14735_v32 }
0x2650   : > { %v14756_v55 = vsel %vm1078_vm5, %v31547_v48, %v14733_v63 }
0x2651   : > { %21341 = vmatprep.mubr.f32.mxu0 %v14756_v55 }
0x2652   : > { %21342 = vmatmul.mubr.f32.vlgmr.msra.gmra.mrb[64].mxu0 %v14757_v15 }
0x2653   : > { %v14739_v34 = vpop.permute.xlu0 %14738  ;;  %v14737_v12 = vpop.permute.xlu1 %14736 }
0x2654   : > { %v14759_v6 = vsel %vm1078_vm5, %v31549_v0, %v14739_v34  ;;  %v14758_v10 = vsel %vm1078_vm5, %v31550_v17, %v14737_v12 }
0x2655   : > { %21344 = vmatprep.mubr.f32.mxu0 %v14758_v10 }
0x2656   : > { %21345 = vmatmul.mubr.f32.gmra.mrb[66].mxu0 %v14759_v6 }
0x2657   : > { %v14743_v39 = vpop.permute.xlu0 %14742  ;;  %v14741_v1 = vpop.permute.xlu1 %14740 }
0x2658   : > { %v14761_v16 = vsel %vm1078_vm5, %v31551_v58, %v14743_v39  ;;  %v14760_v22 = vsel %vm1078_vm5, %v31552_v19, %v14741_v1 }
0x2659   : > { %21347 = vmatprep.mubr.f32.mxu0 %v14760_v22 }
0x265a   : > { %21348 = vmatmul.mubr.f32.gmra.mrb[68].mxu0 %v14761_v16 }
0x265b   : > { %v14747_v45 = vpop.permute.xlu0 %14746  ;;  %v14745_v28 = vpop.permute.xlu1 %14744 }
0x265c   : > { %v14763_v18 = vsel %vm1078_vm5, %v31553_v25, %v14747_v45  ;;  %v14762_v50 = vsel %vm1078_vm5, %v31554_v31, %v14745_v28 }
0x265d   : > { %21350 = vmatprep.mubr.f32.mxu0 %v14762_v50 }
0x265e   : > { %21351 = vmatmul.mubr.f32.gmra.mrb[70].mxu0 %v14763_v18 }
0x265f   : > { %v14304_v37 = vpop.permute.xlu1 %14303 }
0x2660   : > { %v14306_v47 = vmul.f32 %v14304_v37, %v30091_v23  ;;  %v14307_v61 = vmul.f32 %v14304_v37, %v30093_v42  ;;  %v14308_v53 = vmul.f32 %v14304_v37, %v30116_v56  ;;  %v14309_v26 = vmul.f32 %v14304_v37, %v30118_v40 }
0x2661   : > { %v14310_v2 = vmul.f32 %v14304_v37, %v30142_v51  ;;  %v14311_v9 = vmul.f32 %v14304_v37, %v30144_v33  ;;  %v14313_v44 = vmul.f32 %v14304_v37, %v30161_v30  ;;  %v14312_v52 = vmul.f32 %v14304_v37, %v30159_v57 }
0x2662   : > { %v23310_v24 = vadd.f32 %v14669_v21, %v14306_v47  ;;  %v23309_v49 = vadd.f32 %v21299_v5, %v14307_v61  ;;  %v23312_v27 = vadd.f32 %v14679_v13, %v14308_v53  ;;  %v23311_v11 = vadd.f32 %v21302_v3, %v14309_v26 }
0x2663   : > { %v23314_v43 = vadd.f32 %v14689_v20, %v14310_v2  ;;  %v23313_v23 = vadd.f32 %v21305_v41, %v14311_v9  ;;  %v23315_v60 = vadd.f32 %v21308_v38, %v14313_v44  ;;  %v23316_v42 = vadd.f32 %v14699_v14, %v14312_v52 }
0x2664   : > { %14716 = vst.msk [vmem:[#allocation2 + $0x40] sm:$0xff] %vm1078_vm5, %v23310_v24  ;;  %14717 = vst.msk [vmem:[#allocation2 + $0x48] sm:$0xff] %vm1078_vm5, %v23309_v49 }
0x2665   : > { %14718 = vst.msk [vmem:[#allocation2 + $0x50] sm:$0xff] %vm1078_vm5, %v23312_v27  ;;  %14719 = vst.msk [vmem:[#allocation2 + $0x58] sm:$0xff] %vm1078_vm5, %v23311_v11  ;;  %v16885_v11 = vld [vmem:[%s25060_s28 + $0x20] sm:$0xff]  }
0x2666   : > { %14720 = vst.msk [vmem:[#allocation2 + $0x60] sm:$0xff] %vm1078_vm5, %v23314_v43  ;;  %14721 = vst.msk [vmem:[#allocation2 + $0x68] sm:$0xff] %vm1078_vm5, %v23313_v23  ;;  %v24052_v23 = vld [vmem:[#allocation17] ss:$0 sm:$0xff] }
0x2667   : > { %14723 = vst.msk [vmem:[#allocation2 + $0x78] sm:$0xff] %vm1078_vm5, %v23315_v60  ;;  %14722 = vst.msk [vmem:[#allocation2 + $0x70] sm:$0xff] %vm1078_vm5, %v23316_v42 }
0x2725   : > { %v21343_v56 = vpop.f32.mrb[64].mxu0 }
0x2726   : > { %v14870_v40 = vmul.f32 0.015625, %v21343_v56  ;;  %v14830_v51 = vpop.f32.mrb[65].mxu0 }
0x2727   : > { %v14869_v33 = vmul.f32 0.015625, %v14830_v51  ;;  %v16818_v51 = vunpack.c.h.bf16 %v16885_v11 }
0x2728   : > { %v30496_v57 = vsub.f32 %v14757_v15, %v14870_v40 }
0x2729   : > { %v30498_v30 = vsub.f32 %v14756_v55, %v14869_v33  ;;  %v21346_v62 = vpop.f32.mrb[66].mxu0  ;;  %v24053_v33 = vld [vmem:[#allocation18] ss:$0 sm:$0xff] }
0x272a   : > { %v14872_v29 = vmul.f32 0.015625, %v21346_v62  ;;  %v14840_v59 = vpop.f32.mrb[67].mxu0  ;;  %v14886_v35 = vmul.f32 %v30496_v57, %v30496_v57 }
0x272b   : > { %v14871_v54 = vmul.f32 0.015625, %v14840_v59  ;;  %v14885_v36 = vmul.f32 %v30498_v30, %v30498_v30  ;;  %v16817_v59 = vunpack.c.l.bf16 %v16885_v11 }
0x272c   : > { %v30504_v7 = vsub.f32 %v14759_v6, %v14872_v29 }
0x272d   : > { %v30506_v46 = vsub.f32 %v14758_v10, %v14871_v54  ;;  %v21349_v4 = vpop.f32.mrb[68].mxu0  ;;  %21385 = vmatprep.mubr.f32.mxu1 %v14885_v36 }
0x272e   : > { %v14874_v5 = vmul.f32 0.015625, %v21349_v4  ;;  %v14850_v21 = vpop.f32.mrb[69].mxu0  ;;  %21386 = vmatmul.mubr.f32.vlgmr.msra.gmra.mrb[64].mxu1 %v14886_v35  ;;  %v14888_v41 = vmul.f32 %v30504_v7, %v30504_v7  ;;  %v31555_v35 = vld [vmem:[#allocation91_spill] sm:$0xff] }
0x272f   : > { %v14873_v3 = vmul.f32 0.015625, %v14850_v21  ;;  %v14887_v13 = vmul.f32 %v30506_v46, %v30506_v46  ;;  %v31556_v21 = vld [vmem:[#allocation100_spill] sm:$0xff] }
0x2730   : > { %v30512_v20 = vsub.f32 %v14761_v16, %v14874_v5 }
0x2731   : > { %v30514_v38 = vsub.f32 %v14760_v22, %v14873_v3  ;;  %v21352_v14 = vpop.f32.mrb[70].mxu0  ;;  %21388 = vmatprep.mubr.f32.mxu1 %v14887_v13  ;;  %v31557_v3 = vld [vmem:[#allocation96_spill] sm:$0xff] }
0x2732   : > { %v14876_v32 = vmul.f32 0.015625, %v21352_v14  ;;  %v14860_v63 = vpop.f32.mrb[71].mxu0  ;;  %21389 = vmatmul.mubr.f32.gmra.mrb[66].mxu1 %v14888_v41  ;;  %v14890_v8 = vmul.f32 %v30512_v20, %v30512_v20  ;;  %v15049_v13 = vmul.f32 %v31557_v3, %v31556_v21  ;;  %v31558_v41 = vld [vmem:[#allocation99_spill] sm:$0xff]  ;;  %v31559_v14 = vld [vmem:[#allocation98_spill] sm:$0xff] }
0x2733   : > { %v14875_v48 = vmul.f32 0.015625, %v14860_v63  ;;  %v14889_v55 = vmul.f32 %v30514_v38, %v30514_v38  ;;  %v31560_v63 = vld [vmem:[#allocation95_spill] sm:$0xff] }
0x2734   : > { %v30520_v15 = vsub.f32 %v14763_v18, %v14876_v32  ;;  %v15048_v32 = vmul.f32 %v31559_v14, %v31558_v41 }
0x2735   : > { %v30522_v34 = vsub.f32 %v14762_v50, %v14875_v48  ;;  %21391 = vmatprep.mubr.f32.mxu1 %v14889_v55 }
0x2736   : > { %21392 = vmatmul.mubr.f32.gmra.mrb[68].mxu1 %v14890_v8  ;;  %v14892_v0 = vmul.f32 %v30520_v15, %v30520_v15 }
0x2737   : > { %v14891_v12 = vmul.f32 %v30522_v34, %v30522_v34 }
0x2739   : > { %21394 = vmatprep.mubr.f32.mxu1 %v14891_v12 }
0x273a   : > { %21395 = vmatmul.mubr.f32.gmra.mrb[70].mxu1 %v14892_v0 }
0x2801   : > { %v21387_v6 = vpop.f32.mrb[64].mxu1 }
0x2802   : > { %v14999_v17 = vmul.f32 0.015625, %v21387_v6  ;;  %v14959_v10 = vpop.f32.mrb[65].mxu1 }
0x2803   : > { %v14998_v39 = vmul.f32 0.015625, %v14959_v10 }
0x2804   : > { %v15007_v1 = vadd.f32 0.00064, %v14999_v17 }
0x2805   : > { %v15006_v58 = vadd.f32 0.00064, %v14998_v39  ;;  %v21390_v16 = vpop.f32.mrb[66].mxu1  ;;  %v16887_v39 = vld [vmem:[%s25060_s28 + $0x30] sm:$0xff]  }
0x2806   : > { %24017 = vrsqrt.f32 %v15007_v1  ;;  %v15001_v19 = vmul.f32 0.015625, %v21390_v16  ;;  %v14969_v22 = vpop.f32.mrb[67].mxu1 }
0x2807   : > { %24019 = vrsqrt.f32 %v15006_v58  ;;  %v15000_v45 = vmul.f32 0.015625, %v14969_v22 }
0x2808   : > { %v15009_v28 = vadd.f32 0.00064, %v15001_v19 }
0x2809   : > { %v15008_v25 = vadd.f32 0.00064, %v15000_v45  ;;  %v21393_v18 = vpop.f32.mrb[68].mxu1 }
0x280a   : > { %24021 = vrsqrt.f32 %v15009_v28  ;;  %v15003_v31 = vmul.f32 0.015625, %v21393_v18  ;;  %v14979_v50 = vpop.f32.mrb[69].mxu1 }
0x280b   : > { %24023 = vrsqrt.f32 %v15008_v25  ;;  %v15002_v37 = vmul.f32 0.015625, %v14979_v50 }
0x280c   : > { %v15011_v47 = vadd.f32 0.00064, %v15003_v31  ;;  %v16826_v31 = vunpack.c.h.bf16 %v16887_v39 }
0x280d   : > { %v15010_v61 = vadd.f32 0.00064, %v15002_v37  ;;  %v21396_v53 = vpop.f32.mrb[70].mxu1 }
0x280e   : > { %24025 = vrsqrt.f32 %v15011_v47  ;;  %v15005_v26 = vmul.f32 0.015625, %v21396_v53  ;;  %v14989_v2 = vpop.f32.mrb[71].mxu1  ;;  %v16825_v47 = vunpack.c.l.bf16 %v16887_v39 }
0x280f   : > { %24027 = vrsqrt.f32 %v15010_v61  ;;  %v15004_v9 = vmul.f32 0.015625, %v14989_v2  ;;  %v16888_v61 = vld [vmem:[%s25060_s28 + $0x38] sm:$0xff]  }
0x2810   : > { %v24018_v44 = vpop.eup %24017  ;;  %v15013_v52 = vadd.f32 0.00064, %v15005_v26  ;;  %v31563_v26 = vld [vmem:[#allocation80_spill] sm:$0xff] }
0x2811   : > { %v24020_v24 = vpop.eup %24019  ;;  %v15023_v49 = vmul.f32 %v24018_v44, %v30496_v57  ;;  %v15012_v27 = vadd.f32 0.00064, %v15004_v9  ;;  %v16886_v57 = vld [vmem:[%s25060_s28 + $0x28] sm:$0xff]  }
0x2812   : > { %v15022_v43 = vmul.f32 %v24020_v24, %v30498_v30  ;;  %24029 = vrsqrt.f32 %v15013_v52  ;;  %v16822_v12 = vunpack.c.h.bf16 %v16886_v57  ;;  %v16821_v17 = vunpack.c.l.bf16 %v16886_v57  ;;  %v31564_v52 = vld [vmem:[#allocation63_spill] sm:$0xff] }
0x2813   : > { %v15031_v60 = vmul.f32 %v24052_v23, %v15023_v49  ;;  %24031 = vrsqrt.f32 %v15012_v27  ;;  %v16830_v27 = vunpack.c.h.bf16 %v16888_v61 }
0x2814   : > { %v24022_v42 = vpop.eup %24021  ;;  %v15030_v56 = vmul.f32 %v24052_v23, %v15022_v43 }
0x2815   : > { %v24024_v40 = vpop.eup %24023  ;;  %v15039_v62 = vadd.f32 %v24053_v33, %v15031_v60  ;;  %v15025_v29 = vmul.f32 %v24022_v42, %v30504_v7  ;;  %v16829_v60 = vunpack.c.l.bf16 %v16888_v61  ;;  %v31565_v42 = vld [vmem:[#allocation106_spill] sm:$0xff] }
0x2816   : > { %v15038_v54 = vadd.f32 %v24053_v33, %v15030_v56  ;;  %v15024_v36 = vmul.f32 %v24024_v40, %v30506_v46 }
0x2817   : > { %v15055_v30 = vadd.f32 %v31555_v35, %v15039_v62  ;;  %v15033_v4 = vmul.f32 %v24052_v23, %v15025_v29 }
0x2818   : > { %v24026_v5 = vpop.eup %24025  ;;  %v15054_v48 = vadd.f32 %v31560_v63, %v15038_v54  ;;  %v15032_v55 = vmul.f32 %v24052_v23, %v15024_v36 }
0x2819   : > { %v24028_v7 = vpop.eup %24027  ;;  %v15063_v8 = vmul.f32 %v16818_v51, %v15055_v30  ;;  %v15041_v0 = vadd.f32 %v24053_v33, %v15033_v4  ;;  %v15027_v46 = vmul.f32 %v24026_v5, %v30512_v20  ;;  %v31567_v51 = vld [vmem:[#allocation107_spill] sm:$0xff] }
0x281a   : > { %v15062_v6 = vmul.f32 %v16817_v59, %v15054_v48  ;;  %v15040_v10 = vadd.f32 %v24053_v33, %v15032_v55  ;;  %v15026_v1 = vmul.f32 %v24028_v7, %v30514_v38 }
0x281b   : > { %v15057_v58 = vadd.f32 %v15049_v13, %v15041_v0  ;;  %v15035_v16 = vmul.f32 %v24052_v23, %v15027_v46 }
0x281c   : > { %v24030_v19 = vpop.eup %24029  ;;  %v16834_v22 = vpack.c.bf16 %v15063_v8, %v15062_v6  ;;  %v15056_v45 = vadd.f32 %v15048_v32, %v15040_v10  ;;  %v15034_v28 = vmul.f32 %v24052_v23, %v15026_v1 }
0x281d   : > { %v24032_v25 = vpop.eup %24031  ;;  %v15065_v18 = vmul.f32 %v16822_v12, %v15057_v58  ;;  %v15043_v20 = vadd.f32 %v24053_v33, %v15035_v16  ;;  %v15029_v50 = vmul.f32 %v24030_v19, %v30520_v15 }
0x281e   : > { %16889 = vst [vmem:[%s25078_s14 + $0x20] sm:$0xff] %v16834_v22   ;;  %v15064_v37 = vmul.f32 %v16821_v17, %v15056_v45  ;;  %v15042_v38 = vadd.f32 %v24053_v33, %v15034_v28  ;;  %v15028_v53 = vmul.f32 %v24032_v25, %v30522_v34 }
0x281f   : > { %v15059_v2 = vadd.f32 %v31563_v26, %v15043_v20  ;;  %v15037_v9 = vmul.f32 %v24052_v23, %v15029_v50 }
0x2820   : > { %v16839_v44 = vpack.c.bf16 %v15065_v18, %v15064_v37  ;;  %v15058_v24 = vadd.f32 %v31564_v52, %v15042_v38  ;;  %v15036_v49 = vmul.f32 %v24052_v23, %v15028_v53 }
0x2821   : > { %v15067_v15 = vmul.f32 %v16826_v31, %v15059_v2  ;;  %v15045_v11 = vadd.f32 %v24053_v33, %v15037_v9 }
0x2822   : > { %16890 = vst [vmem:[%s25078_s14 + $0x28] sm:$0xff] %v16839_v44   ;;  %v15066_v43 = vmul.f32 %v16825_v47, %v15058_v24  ;;  %v15044_v34 = vadd.f32 %v24053_v33, %v15036_v49 }
0x2823   : > { %v15061_v56 = vadd.f32 %v31565_v42, %v15045_v11 }
0x2824   : > { %v16844_v40 = vpack.c.bf16 %v15067_v15, %v15066_v43  ;;  %v15060_v62 = vadd.f32 %v31567_v51, %v15044_v34 }
0x2825   : > { %v15069_v29 = vmul.f32 %v16830_v27, %v15061_v56 }
0x2826   : > { %16891 = vst [vmem:[%s25078_s14 + $0x30] sm:$0xff] %v16844_v40   ;;  %v15068_v23 = vmul.f32 %v16829_v60, %v15060_v62 }
0x2828   : > { %v16849_v59 = vpack.c.bf16 %v15069_v29, %v15068_v23 }
0x282a   : > { %16892 = vst [vmem:[%s25078_s14 + $0x38] sm:$0xff] %v16849_v59  }
0x282b   : > { %24387 = shalt.err (!%p24384_p8)
}
0x282c   : > { %s24388_s28 = scalar_lea.hbm %s30561_s26, 1024  ;;  %s24392_s29 = scalar_lea.hbm %s31569_s13, 4096 }
0x282d   : > { %p24389_p1 = scmp.ne.s32.totalorder %s30561_s26, %s24388_s28  ;;  %p24393_p10 = scmp.lt.u32.totalorder %s30561_s26, %s31569_s13 }
0x282e   : > { %p24394_p5 = scmp.lt.u32.totalorder %s24392_s29, %s24388_s28  ;;  %p24396_p4 = scmp.lt.u32.totalorder %s24388_s28, %s30561_s26 }
0x282f   : > { %p24390_p12 = pnand %p24389_p1, %p31570_p7 }
0x2830   : > { %p24395_p2 = por %p24394_p5, %p24393_p10 }
0x2831   : > { %p24391_p13 = pneg %p24390_p12 }
0x2832   : > { %p24397_p3 = por %p24396_p4, %p24395_p2 }
0x2834   : > { %p24398_p0 = pnand %p24397_p3, %p24391_p13 }
0x2836   : > { %24401 = shalt.err (!%p24398_p0)
}
0x2837   : > { %s24519_s23 = smov 4  }
0x2838   : > { %23477 = dma.vmem_to_hbm [thread:$0]  (%p31570_p7), %s30556_s20, 1024, %s30561_s26, %s15112_s5, %s24517_s25, %s24517_s25, %s24519_s23  }
0x2839 PF: > { %s31571_s6 = sld [smem:[#allocation36_spill]]  ;;  %s31572_s11 = sld [smem:[#allocation30_spill]] }
0x283a   : > { %s31573_s27 = sld [smem:[#allocation41_spill]] }
0x283f   : > { %p23529_p9 = scmp.ge.s32.totalorder %s31571_s6, 2  ;;  %s15143_s15 = sand.u32 1, %s31572_s11  }
0x2840   : > { %p31574_p11 = scmp.ne.s32.totalorder %s31573_s27, 0  ;;  %s15144_s24 = scalar_lea.sflag [#allocation5], %s15143_s15 }
0x2842   : > { %p23515_p6 = pnand %p23529_p9, %p31574_p11 }
0x2844   : > { %24463 = dma.done.wait (!%p23515_p6), %s15144_s24, 1024  }
0x2845   : > { %24465 = vsyncadd (!%p23515_p6), %s15144_s24, 4294966272  ;;  %s38_s24 = sadd.s32 1, %s31571_s6   ;;  %s31575_s22 = sld [smem:[#allocation31_spill]] }
0x2846   : > { %p35_p8 = scmp.ge.s32.totalorder %s38_s24, 6   ;;  %s31576_s19 = sld [smem:[#allocation42_spill]] }
0x2847   : > { %s31577_s20 = sld [smem:[#allocation34_spill]]  ;;  %s31578_s21 = sld [smem:[#allocation35_spill]] }
0x2848   : > { %s31579_s7 = sld [smem:[#allocation38_spill]]  ;;  %s31580_s23 = sld [smem:[#allocation39_spill]] }
0x2849   : > { %s31581_s17 = smov %s24472_s18  ;;  %37 = sbr.rel (!%p35_p8) target bundleno = 22 (0x16), region = 207 }
0x284b   : > { %s31582_s18 = smov %s31575_s22 }
0x284e   : > { %s31583_s22 = smov %s31579_s7 }
0x2850   :  { %15149 = vsyncpa [#allocation4], 1 }
0x2851   :  { %15151 = vsyncpa [#allocation4 + $0x1], 1 }
0x2852   :  { %15152 = vsyncpa [#allocation7], 1 }
0x2853   :  { %15154 = vsyncpa [#allocation7 + $0x1], 1 }
0x2854   :  { %15155 = vsyncpa [#allocation10], 1 }
0x2855   :  { %15157 = vsyncpa [#allocation10 + $0x1], 1 }
0x2856   :  { %15158 = vsyncpa [#allocation13], 1 }
0x2857   :  { %15160 = vsyncpa [#allocation13 + $0x1], 1 }
0x2858   :  { %15161 = vsyncpa [#allocation16], 1 }
0x2859   :  { %15162 = vsyncpa [#allocation19], 1 }
0x285a   :  { %15163 = vsyncpa [#allocation5], 1 }
0x285b   :  { %15165 = vsyncpa [#allocation5 + $0x1], 1 }

</bundles_post_ra>
